<compile_context>
chip_gen: v7x
topology: tpu7x:2x2x1
jax: 0.10.0
libtpu: 0.0.40
codegen_flags: <defaults>
</compile_context>

<pallas_src>
import functools
import numpy as np
import jax
import jax.numpy as jnp
from jax import lax
from jax.experimental import pallas as pl
from jax.experimental.pallas import tpu as pltpu

# ---------------- config (small, consistent with the module) ----------------
SR = 44100
N_FFT = 64                       # -> F = 33 frequency bins
BANDSPLITS = [(2000, 1000), (10000, 4000)]
T_TIMESTEPS = 16
FC_DIM = 32
MLP_DIM = 64
FREQUENCY_MUL = 16               # 4 * 2 (complex_as_channel) * 2 (stereo)
N_CHANNELS = FREQUENCY_MUL // 2  # 8 complex channels so reshape matches the FC dims
EPS = 1e-5


# ---------------- band-split index computation (numpy port of freq2bands) ----------------
def get_fftfreq(sr, n_fft):
    out = sr * np.fft.fftfreq(n_fft)[: n_fft // 2 + 1]
    out[-1] = sr // 2
    return out


def get_subband_indices(freqs, splits):
    indices = []
    start_freq, start_index = 0, 0
    for end_freq, step in splits:
        bands = np.arange(start_freq + step, end_freq + step, step)
        start_freq = end_freq
        for band in bands:
            end_index = int((freqs < band).sum())
            indices.append((start_index, end_index))
            start_index = end_index
    indices.append((start_index, freqs.shape[0]))
    return indices


def freq2bands(bandsplits, sr, n_fft):
    return get_subband_indices(get_fftfreq(sr, n_fft), bandsplits)


# ---------------- static band layout (compile-time constants) ----------------
BAND_INDICES = freq2bands(BANDSPLITS, SR, N_FFT)       # [(0,2),(2,3),(3,9),(9,15),(15,33)]
K_SUBBANDS = len(BAND_INDICES)
BAND_DIMS = tuple(FREQUENCY_MUL * (e - s) for (s, e) in BAND_INDICES)  # (32,16,96,96,288)
D_MAX = max(BAND_DIMS)

# Two balanced grid steps (v7x megacore split / fewer steps on 1-TC chips):
# the heaviest band alone vs all other bands (D totals 288 vs 240).
_HEAVY = max(range(K_SUBBANDS), key=lambda k: BAND_DIMS[k])
GROUPS = (tuple(k for k in range(K_SUBBANDS) if k != _HEAVY), (_HEAVY,))
SLOTS = max(len(g) for g in GROUPS)                     # output slots per grid step
_slot_of_band = {}
for _gi, _grp in enumerate(GROUPS):
    for _si, _k in enumerate(_grp):
        _slot_of_band[_k] = _gi * SLOTS + _si
OUT_SLOT_IDX = np.array([_slot_of_band[k] for k in range(K_SUBBANDS)], np.int32)


# ---------------- fused Pallas kernel: 2 balanced grid steps, full batch ----------------
def _bandsplit_kernel(x_ref, g2b2_ref, w1_ref, wa_ref, wb_ref, wt_ref,
                      bias_ref, ntf_ref, wconv_ref, o_ref,
                      *, b, t, fc, dims, groups, slots):
    step = pl.program_id(0)

    def layernorm(h, gamma, beta, inv_n):
        # centered two-pass form (matches reference; avoids E[x^2]-mu^2 cancellation)
        mu = jnp.sum(jnp.sum(h, axis=2, keepdims=True), axis=1, keepdims=True) * inv_n
        xc = h - mu
        var = jnp.sum(jnp.sum(xc * xc, axis=2, keepdims=True), axis=1, keepdims=True) * inv_n
        return xc * lax.rsqrt(var + EPS) * gamma + beta

    def band(k, slot):
        d = dims[k]                                       # static per-band feature width
        inv_dt = 1.0 / (d * t)
        inv_tf = 1.0 / (t * fc)

        # ---- norm2: LayerNorm over the whole (T, D) slab per batch, then act4 = tanh ----
        x = x_ref[k, :, :, :d]                                            # [B, T, D]
        xn = jnp.tanh(layernorm(x, g2b2_ref[k, 0, :, :d],
                                g2b2_ref[k, 1, :, :d], inv_dt))

        # ---- MLP: Linear -> tanh -> Linear -> GLU(sigmoid); rows M = B*T ----
        h = xn.reshape(b * t, d)
        h = jnp.tanh(jnp.dot(h, w1_ref[k, :d, :],
                             preferred_element_type=jnp.float32) + bias_ref[k, 0:1, :])
        h = jnp.dot(h, wa_ref[k, 0], preferred_element_type=jnp.float32) + bias_ref[k, 4:5, :fc]
        g = jnp.dot(h, wb_ref[k, 0], preferred_element_type=jnp.float32) + bias_ref[k, 1:2, :]
        h = g[:, :fc] * jax.nn.sigmoid(g[:, fc:])                         # [B*T, FC]

        # ---- norm3: LayerNorm over [T, FC] per batch element ----
        h3 = layernorm(h.reshape(b, t, fc), ntf_ref[k, 0], ntf_ref[k, 1], inv_tf)

        # ---- CBAM / CAM: avg & max pool over time, shared MLP on stacked rows ----
        avg = jnp.sum(h3, axis=1, keepdims=True) * (1.0 / t)              # [B,1,FC]
        mx = jnp.max(h3, axis=1, keepdims=True)                           # [B,1,FC]
        pooled = jnp.concatenate([avg, mx], axis=1).reshape(2 * b, fc)    # [2B,FC]
        u = jnp.maximum(jnp.dot(pooled, wb_ref[k, 2], preferred_element_type=jnp.float32)
                        + bias_ref[k, 2:3, :], 0.0)                       # relu (act_cbam)
        v = jnp.dot(u, wa_ref[k, 1], preferred_element_type=jnp.float32) + bias_ref[k, 5:6, :fc]
        feats = jnp.sum(v.reshape(b, 2, fc), axis=1)                      # avg + max paths
        gg = jnp.dot(feats, wb_ref[k, 1], preferred_element_type=jnp.float32) + bias_ref[k, 3:4, :]
        feats = gg[:, :fc] * jax.nn.sigmoid(gg[:, fc:])                   # GLU  [B,FC]

        trans = jnp.dot(h3.reshape(b * t, fc), wt_ref[k],
                        preferred_element_type=jnp.float32) + bias_ref[k, 6:7, :fc]  # conv1x1
        xca = trans.reshape(b, t, fc) * feats.reshape(b, 1, fc)           # [B,T,FC]

        # ---- CBAM / SAM: 7-tap temporal conv as one banded [T, 2T] matmul per batch ----
        cmean = jnp.sum(xca, axis=2, keepdims=True) * (1.0 / fc)          # [B,T,1]
        cmax = jnp.max(xca, axis=2, keepdims=True)                        # [B,T,1]
        wcv = wconv_ref[k]                                                # [T, 2T]
        conv = jnp.stack(
            [jnp.dot(wcv, jnp.concatenate([cmean[bi], cmax[bi]], axis=0),
                     preferred_element_type=jnp.float32) for bi in range(b)],
            axis=0) + bias_ref[k, 7:8, 0:1]                               # [B,T,1]
        h4 = xca * jax.nn.sigmoid(conv)

        # ---- norm4: LayerNorm over [T, FC] per batch element ----
        h4 = layernorm(h4, ntf_ref[k, 2], ntf_ref[k, 3], inv_tf)

        # lane-dense writeback: band slot occupies lanes [slot*FC, (slot+1)*FC)
        o_ref[:, slot * fc:(slot + 1) * fc] = h4.reshape(b * t, fc).astype(o_ref.dtype)

    for gi, grp in enumerate(groups):
        @pl.when(step == gi)
        def _(grp=grp):
            if len(grp) < slots:            # zero the padded output slots of this step
                o_ref[:, len(grp) * fc:] = jnp.zeros(
                    (b * t, (slots - len(grp)) * fc), o_ref.dtype)
            for slot, k in enumerate(grp):
                band(k, slot)


# ---------------- one-time, weight-only packing (hoisted out of the per-call path) ---------
def pack_params(params, band_indices):
    K = len(band_indices)
    C, F, T = N_CHANNELS, N_FFT // 2 + 1, T_TIMESTEPS
    d_max = max(FREQUENCY_MUL * (e - s) for (s, e) in band_indices)

    # Gather table: band-local feature order (channel, re/im, freq) -> flat (c*2F + r*F + f).
    # Padded entries point at an appended all-zero column (index 2*C*F).
    idx = np.full((K, d_max), 2 * C * F, np.int32)
    for k, (s, e) in enumerate(band_indices):
        w = e - s
        cols = (np.arange(C)[:, None, None] * (2 * F)
                + np.arange(2)[None, :, None] * F
                + (s + np.arange(w))[None, None, :]).reshape(-1)
        idx[k, :cols.size] = cols

    def pad_d(a, axis):
        pad = [(0, 0)] * a.ndim
        pad[axis] = (0, d_max - a.shape[axis])
        return jnp.pad(a, pad)

    g2b2 = jnp.stack([jnp.stack([pad_d(p['g2'].T, 1), pad_d(p['be2'].T, 1)])
                      for p in params])                                   # [K,2,T,Dmax]
    w1 = jnp.stack([pad_d(p['w1'], 0) for p in params])                   # [K,Dmax,MLP]
    wa = jnp.stack([jnp.stack([p['w2'], p['wm2']]) for p in params])      # [K,2,MLP,FC]
    wb = jnp.stack([jnp.stack([p['wg'], p['wgc'], p['wm1']]) for p in params])  # [K,3,FC,2FC]
    wt = jnp.stack([p['wt'] for p in params])                             # [K,FC,FC]

    z32 = jnp.zeros((1, FC_DIM), jnp.float32)

    def bias_slab(p):
        row7 = jnp.zeros((1, MLP_DIM), jnp.float32).at[0, 0].set(p['bs'][0, 0])  # SAM conv bias
        return jnp.concatenate([
            p['b1'], p['bg'], p['bm1'], p['bgc'],
            jnp.concatenate([p['b2'], z32], axis=1),
            jnp.concatenate([p['bm2'], z32], axis=1),
            jnp.concatenate([p['bt'], z32], axis=1),
            row7], axis=0)                                                # [8, MLP]
    bias = jnp.stack([bias_slab(p) for p in params])                      # [K,8,64]

    ntf = jnp.stack([jnp.stack([p['g3'], p['be3'], p['g4'], p['be4']])
                     for p in params])                                    # [K,4,T,FC]

    # SAM 7-tap conv (pad=3) folded into banded matrices: conv[t] = sum_u M_c[t,u]*feat_c[u]
    def band_mats(p):
        ws = np.asarray(p['ws'])
        m = np.zeros((2, T, T), np.float32)
        for tt in range(T):
            for u in range(max(0, tt - 3), min(T, tt + 4)):
                m[0, tt, u] = ws[0, u - tt + 3]
                m[1, tt, u] = ws[1, u - tt + 3]
        return np.concatenate([m[0], m[1]], axis=1)                       # [T, 2T]
    wconv = jnp.asarray(np.stack([band_mats(p) for p in params]))         # [K,T,2T]

    return (jnp.asarray(idx), g2b2, w1, wa, wb, wt, bias, ntf, wconv)


# ---------------- per-call forward: x extraction (one gather) + one pallas_call ------------
def bandsplit_forward(x_complex, packed):
    """x: complex64 [B, C, F, T] -> [B, K_subbands, T, FC]."""
    idx, g2b2, w1, wa, wb, wt, bias, ntf, wconv = packed
    B, C, F, T = x_complex.shape
    K, _, _, d_max = g2b2.shape
    n_steps = len(GROUPS)

    # Fused band extraction: real/imag interleave + per-band (c, re/im, f) gather + pad,
    # all in one gather on a lane-dense [B, T, 2CF] view.
    xr = jnp.stack([jnp.real(x_complex), jnp.imag(x_complex)], axis=2)    # [B,C,2,F,T]
    xf = jnp.swapaxes(xr.reshape(B, 2 * C * F, T), 1, 2).astype(jnp.float32)
    xf = jnp.concatenate([xf, jnp.zeros((B, T, 1), jnp.float32)], axis=2)  # zero column
    xg = jnp.take(xf, idx.reshape(-1), axis=2).reshape(B, T, K, d_max)
    xg = jnp.transpose(xg, (2, 0, 1, 3))                                  # [K,B,T,Dmax]

    kern = functools.partial(_bandsplit_kernel, b=B, t=T, fc=FC_DIM,
                             dims=BAND_DIMS, groups=GROUPS, slots=SLOTS)

    def full(a):  # whole array VMEM-resident; constant index map -> DMA'd once per core
        return pl.BlockSpec(a.shape, lambda i, _nd=a.ndim: (0,) * _nd)

    out = pl.pallas_call(
        kern,
        out_shape=jax.ShapeDtypeStruct((B * T, n_steps * SLOTS * FC_DIM), jnp.float32),
        grid=(n_steps,),
        in_specs=[full(xg), full(g2b2), full(w1), full(wa), full(wb),
                  full(wt), full(bias), full(ntf), full(wconv)],
        out_specs=pl.BlockSpec((B * T, SLOTS * FC_DIM), lambda i: (0, i)),
        compiler_params=pltpu.CompilerParams(dimension_semantics=("parallel",)),
    )(xg, g2b2, w1, wa, wb, wt, bias, ntf, wconv)

    # act9 / norm5 / act10 are identity in this config; remaining wrapper work is a
    # tiny (32 KB) reshape/transpose of the already lane-dense kernel output.
    out = jnp.transpose(out.reshape(B, T, n_steps * SLOTS, FC_DIM), (0, 2, 1, 3))
    return out[:, OUT_SLOT_IDX]                                            # [B, K, T, FC]


# ---------------- pure-JAX reference (for correctness check) ----------------
def _band_ref(xb, p):
    B = xb.shape[0]

    def ln(h, g, b):
        mu = h.mean(axis=tuple(range(1, h.ndim)), keepdims=True)
        var = ((h - mu) ** 2).mean(axis=tuple(range(1, h.ndim)), keepdims=True)
        return (h - mu) / jnp.sqrt(var + EPS) * g + b

    h = jnp.tanh(ln(xb, p['g2'], p['be2']))                     # [B, D, T]
    h = jnp.swapaxes(h, 1, 2)                                   # [B, T, D]
    h = jnp.tanh(h @ p['w1'] + p['b1'])
    h = h @ p['w2'] + p['b2']
    g = h @ p['wg'] + p['bg']
    h = g[..., :FC_DIM] * jax.nn.sigmoid(g[..., FC_DIM:])
    h = ln(h, p['g3'], p['be3'])
    avg, mx = h.mean(axis=1), h.max(axis=1)
    mlp = lambda v: jnp.maximum(v @ p['wm1'] + p['bm1'], 0.0) @ p['wm2'] + p['bm2']
    feats = mlp(avg) + mlp(mx)
    gg = feats @ p['wgc'] + p['bgc']
    feats = gg[..., :FC_DIM] * jax.nn.sigmoid(gg[..., FC_DIM:])
    xca = (h @ p['wt'] + p['bt']) * feats[:, None, :]
    feat = jnp.concatenate([xca.mean(axis=2, keepdims=True),
                            xca.max(axis=2, keepdims=True)], axis=2)  # [B, T, 2]
    fp = jnp.pad(feat, ((0, 0), (3, 3), (0, 0)))
    conv = jnp.zeros((B, T_TIMESTEPS, 1), jnp.float32) + p['bs'][0, 0]
    for k in range(7):
        conv = conv + fp[:, k:k + T_TIMESTEPS, 0:1] * p['ws'][0, k] \
                    + fp[:, k:k + T_TIMESTEPS, 1:2] * p['ws'][1, k]
    h = xca * jax.nn.sigmoid(conv)
    return ln(h, p['g4'], p['be4'])


def bandsplit_ref(x_complex, params, band_indices):
    B, C, F, T = x_complex.shape
    outs = []
    with jax.default_matmul_precision("float32"):
        for i, (s, e) in enumerate(band_indices):
            wb = e - s
            xb = x_complex[:, :, s:e, :]
            xr = jnp.stack([xb.real, xb.imag], axis=2).reshape(B, C * 2 * wb, T)
            outs.append(_band_ref(xr.astype(jnp.float32), params[i]))
    return jnp.stack(outs, axis=1)


# ---------------- deterministic parameter init ----------------
def init_band_params(key, D):
    ks = jax.random.split(key, 32)
    dense = lambda k, fan_in, shape: (jax.random.normal(k, shape, jnp.float32)
                                      / np.sqrt(fan_in)).astype(jnp.float32)
    p = {}
    p['g2'] = 1.0 + 0.1 * jax.random.normal(ks[0], (D, T_TIMESTEPS), jnp.float32)
    p['be2'] = 0.05 * jax.random.normal(ks[1], (D, T_TIMESTEPS), jnp.float32)
    p['w1'] = dense(ks[2], D, (D, MLP_DIM));            p['b1'] = 0.01 * jax.random.normal(ks[3], (1, MLP_DIM))
    p['w2'] = dense(ks[4], MLP_DIM, (MLP_DIM, FC_DIM)); p['b2'] = 0.01 * jax.random.normal(ks[5], (1, FC_DIM))
    p['wg'] = dense(ks[6], FC_DIM, (FC_DIM, 2 * FC_DIM)); p['bg'] = 0.01 * jax.random.normal(ks[7], (1, 2 * FC_DIM))
    p['g3'] = 1.0 + 0.1 * jax.random.normal(ks[8], (T_TIMESTEPS, FC_DIM))
    p['be3'] = 0.05 * jax.random.normal(ks[9], (T_TIMESTEPS, FC_DIM))
    p['wt'] = dense(ks[10], FC_DIM, (FC_DIM, FC_DIM));  p['bt'] = 0.01 * jax.random.normal(ks[11], (1, FC_DIM))
    p['wm1'] = dense(ks[12], FC_DIM, (FC_DIM, MLP_DIM)); p['bm1'] = 0.01 * jax.random.normal(ks[13], (1, MLP_DIM))
    p['wm2'] = dense(ks[14], MLP_DIM, (MLP_DIM, FC_DIM)); p['bm2'] = 0.01 * jax.random.normal(ks[15], (1, FC_DIM))
    p['wgc'] = dense(ks[16], FC_DIM, (FC_DIM, 2 * FC_DIM)); p['bgc'] = 0.01 * jax.random.normal(ks[17], (1, 2 * FC_DIM))
    p['ws'] = 0.2 * jax.random.normal(ks[18], (2, 7), jnp.float32)
    p['bs'] = 0.01 * jax.random.normal(ks[19], (1, 1), jnp.float32)
    p['g4'] = 1.0 + 0.1 * jax.random.normal(ks[20], (T_TIMESTEPS, FC_DIM))
    p['be4'] = 0.05 * jax.random.normal(ks[21], (T_TIMESTEPS, FC_DIM))
    return jax.tree_util.tree_map(lambda a: a.astype(jnp.float32), p)


if __name__ == "__main__":
    B, C, F, T = 2, N_CHANNELS, N_FFT // 2 + 1, T_TIMESTEPS

    key = jax.random.PRNGKey(0)
    kx, kp = jax.random.split(key)
    xparts = jax.random.normal(kx, (2, B, C, F, T), jnp.float32)
    x = (xparts[0] + 1j * xparts[1]).astype(jnp.complex64)      # complex spectrogram input

    params = [init_band_params(jax.random.fold_in(kp, i), FREQUENCY_MUL * (e - s))
              for i, (s, e) in enumerate(BAND_INDICES)]

    packed = pack_params(params, BAND_INDICES)   # hoisted: weight-only packing, done once

    fwd = jax.jit(bandsplit_forward)
    out = jax.block_until_ready(fwd(x, packed))
    assert out.shape == (B, K_SUBBANDS, T, FC_DIM)

    ref = bandsplit_ref(x, params, BAND_INDICES)
    max_err = float(jnp.max(jnp.abs(out - ref)))
    if not (max_err < 2e-3):
        raise AssertionError(f"Pallas output mismatch vs reference, max_err={max_err}")

    print("KERNEL_OK")
</pallas_src>

<mosaic_0001>
module attributes {stable_mosaic.version = 11 : i64} {
  func.func @_bandsplit_kernel(%arg0: i32, %arg1: memref<5x2x16x288xf32, #tpu.memory_space<vmem>>, %arg2: memref<5x2x16x288xf32, #tpu.memory_space<vmem>>, %arg3: memref<5x288x64xf32, #tpu.memory_space<vmem>>, %arg4: memref<5x2x64x32xf32, #tpu.memory_space<vmem>>, %arg5: memref<5x3x32x64xf32, #tpu.memory_space<vmem>>, %arg6: memref<5x32x32xf32, #tpu.memory_space<vmem>>, %arg7: memref<5x8x64xf32, #tpu.memory_space<vmem>>, %arg8: memref<5x4x16x32xf32, #tpu.memory_space<vmem>>, %arg9: memref<5x16x32xf32, #tpu.memory_space<vmem>>, %arg10: memref<32x128xf32, #tpu.memory_space<vmem>>) attributes {dimension_semantics = [#tpu.dimension_semantics<parallel>], iteration_bounds = array<i64: 2>, scalar_prefetch = 0 : i64, scratch_operands = 0 : i64, tpu.core_type = #tpu.core_type<tc>, window_params = [{pipeline_mode = #tpu.pipeline_mode<synchronous>, transform_indices = @transform_0, window_bounds = array<i64: 5, 2, 16, 288>}, {pipeline_mode = #tpu.pipeline_mode<synchronous>, transform_indices = @transform_1, window_bounds = array<i64: 5, 2, 16, 288>}, {pipeline_mode = #tpu.pipeline_mode<synchronous>, transform_indices = @transform_2, window_bounds = array<i64: 5, 288, 64>}, {pipeline_mode = #tpu.pipeline_mode<synchronous>, transform_indices = @transform_3, window_bounds = array<i64: 5, 2, 64, 32>}, {pipeline_mode = #tpu.pipeline_mode<synchronous>, transform_indices = @transform_4, window_bounds = array<i64: 5, 3, 32, 64>}, {pipeline_mode = #tpu.pipeline_mode<synchronous>, transform_indices = @transform_5, window_bounds = array<i64: 5, 32, 32>}, {pipeline_mode = #tpu.pipeline_mode<synchronous>, transform_indices = @transform_6, window_bounds = array<i64: 5, 8, 64>}, {pipeline_mode = #tpu.pipeline_mode<synchronous>, transform_indices = @transform_7, window_bounds = array<i64: 5, 4, 16, 32>}, {pipeline_mode = #tpu.pipeline_mode<synchronous>, transform_indices = @transform_8, window_bounds = array<i64: 5, 16, 32>}, {transform_indices = @transform_9, window_bounds = array<i64: 32, 128>}]} {
    %c0_i32 = arith.constant 0 : i32
    %0 = arith.cmpi eq, %arg0, %c0_i32 : i32
    %1 = arith.extui %0 : i1 to i32
    %c0_i32_0 = arith.constant 0 : i32
    %2 = arith.cmpi ne, %1, %c0_i32_0 : i32
    scf.if %2 {
      %c0 = arith.constant 0 : index
      %c0_2 = arith.constant 0 : index
      %c0_3 = arith.constant 0 : index
      %c0_4 = arith.constant 0 : index
      %6 = vector.load %arg1[%c0, %c0_2, %c0_3, %c0_4] : memref<5x2x16x288xf32, #tpu.memory_space<vmem>>, vector<1x2x16x32xf32>
      %7 = vector.shape_cast %6 : vector<1x2x16x32xf32> to vector<2x16x32xf32>
      %c0_5 = arith.constant 0 : index
      %c0_6 = arith.constant 0 : index
      %c0_7 = arith.constant 0 : index
      %c0_8 = arith.constant 0 : index
      %8 = vector.load %arg2[%c0_5, %c0_6, %c0_7, %c0_8] : memref<5x2x16x288xf32, #tpu.memory_space<vmem>>, vector<1x1x16x32xf32>
      %9 = vector.shape_cast %8 : vector<1x1x16x32xf32> to vector<16x32xf32>
      %c0_9 = arith.constant 0 : index
      %c1 = arith.constant 1 : index
      %c0_10 = arith.constant 0 : index
      %c0_11 = arith.constant 0 : index
      %10 = vector.load %arg2[%c0_9, %c1, %c0_10, %c0_11] : memref<5x2x16x288xf32, #tpu.memory_space<vmem>>, vector<1x1x16x32xf32>
      %11 = vector.shape_cast %10 : vector<1x1x16x32xf32> to vector<16x32xf32>
      %cst = arith.constant dense<0.000000e+00> : vector<2x16xf32>
      %12 = vector.multi_reduction <add>, %7, %cst [2] : vector<2x16x32xf32> to vector<2x16xf32>
      %13 = vector.shape_cast %12 : vector<2x16xf32> to vector<2x16x1xf32>
      %cst_12 = arith.constant dense<0.000000e+00> : vector<2x1xf32>
      %14 = vector.multi_reduction <add>, %13, %cst_12 [1] : vector<2x16x1xf32> to vector<2x1xf32>
      %15 = vector.shape_cast %14 : vector<2x1xf32> to vector<2x1x1xf32>
      %cst_13 = arith.constant 0.001953125 : f32
      %16 = vector.broadcast %cst_13 : f32 to vector<2x1x1xf32>
      %17 = arith.mulf %15, %16 : vector<2x1x1xf32>
      %18 = vector.broadcast %17 : vector<2x1x1xf32> to vector<2x16x32xf32>
      %19 = arith.subf %7, %18 : vector<2x16x32xf32>
      %20 = arith.mulf %19, %19 : vector<2x16x32xf32>
      %cst_14 = arith.constant dense<0.000000e+00> : vector<2x16xf32>
      %21 = vector.multi_reduction <add>, %20, %cst_14 [2] : vector<2x16x32xf32> to vector<2x16xf32>
      %22 = vector.shape_cast %21 : vector<2x16xf32> to vector<2x16x1xf32>
      %cst_15 = arith.constant dense<0.000000e+00> : vector<2x1xf32>
      %23 = vector.multi_reduction <add>, %22, %cst_15 [1] : vector<2x16x1xf32> to vector<2x1xf32>
      %24 = vector.shape_cast %23 : vector<2x1xf32> to vector<2x1x1xf32>
      %cst_16 = arith.constant 0.001953125 : f32
      %25 = vector.broadcast %cst_16 : f32 to vector<2x1x1xf32>
      %26 = arith.mulf %24, %25 : vector<2x1x1xf32>
      %cst_17 = arith.constant 9.99999974E-6 : f32
      %27 = vector.broadcast %cst_17 : f32 to vector<2x1x1xf32>
      %28 = arith.addf %26, %27 : vector<2x1x1xf32>
      %29 = math.rsqrt %28 : vector<2x1x1xf32>
      %30 = vector.broadcast %29 : vector<2x1x1xf32> to vector<2x16x32xf32>
      %31 = arith.mulf %19, %30 : vector<2x16x32xf32>
      %32 = vector.shape_cast %9 : vector<16x32xf32> to vector<1x16x32xf32>
      %33 = vector.broadcast %32 : vector<1x16x32xf32> to vector<2x16x32xf32>
      %34 = arith.mulf %31, %33 : vector<2x16x32xf32>
      %35 = vector.shape_cast %11 : vector<16x32xf32> to vector<1x16x32xf32>
      %36 = vector.broadcast %35 : vector<1x16x32xf32> to vector<2x16x32xf32>
      %37 = arith.addf %34, %36 : vector<2x16x32xf32>
      %38 = math.tanh %37 : vector<2x16x32xf32>
      %39 = vector.shape_cast %38 : vector<2x16x32xf32> to vector<32x32xf32>
      %c0_18 = arith.constant 0 : index
      %c0_19 = arith.constant 0 : index
      %c0_20 = arith.constant 0 : index
      %40 = vector.load %arg3[%c0_18, %c0_19, %c0_20] : memref<5x288x64xf32, #tpu.memory_space<vmem>>, vector<1x32x64xf32>
      %41 = vector.shape_cast %40 : vector<1x32x64xf32> to vector<32x64xf32>
      %cst_21 = arith.constant dense<0.000000e+00> : vector<32x64xf32>
      %42 = tpu.matmul %39, %41, %cst_21 {dimension_numbers = #tpu.dot_dimension_numbers<[1], [0], [0], [1], [0, 0, 1, 1], [], []>} : vector<32x32xf32>, vector<32x64xf32>, vector<32x64xf32> -> vector<32x64xf32>
      %c0_22 = arith.constant 0 : index
      %c0_23 = arith.constant 0 : index
      %c0_24 = arith.constant 0 : index
      %43 = vector.load %arg7[%c0_22, %c0_23, %c0_24] : memref<5x8x64xf32, #tpu.memory_space<vmem>>, vector<1x1x64xf32>
      %44 = vector.shape_cast %43 : vector<1x1x64xf32> to vector<1x64xf32>
      %45 = vector.broadcast %44 : vector<1x64xf32> to vector<32x64xf32>
      %46 = arith.addf %42, %45 : vector<32x64xf32>
      %47 = math.tanh %46 : vector<32x64xf32>
      %c0_25 = arith.constant 0 : index
      %c0_26 = arith.constant 0 : index
      %c0_27 = arith.constant 0 : index
      %c0_28 = arith.constant 0 : index
      %48 = vector.load %arg4[%c0_25, %c0_26, %c0_27, %c0_28] : memref<5x2x64x32xf32, #tpu.memory_space<vmem>>, vector<1x1x64x32xf32>
      %49 = vector.shape_cast %48 : vector<1x1x64x32xf32> to vector<64x32xf32>
      %cst_29 = arith.constant dense<0.000000e+00> : vector<32x32xf32>
      %50 = tpu.matmul %47, %49, %cst_29 {dimension_numbers = #tpu.dot_dimension_numbers<[1], [0], [0], [1], [0, 0, 1, 1], [], []>} : vector<32x64xf32>, vector<64x32xf32>, vector<32x32xf32> -> vector<32x32xf32>
      %c0_30 = arith.constant 0 : index
      %c4 = arith.constant 4 : index
      %c0_31 = arith.constant 0 : index
      %51 = vector.load %arg7[%c0_30, %c4, %c0_31] : memref<5x8x64xf32, #tpu.memory_space<vmem>>, vector<1x1x32xf32>
      %52 = vector.shape_cast %51 : vector<1x1x32xf32> to vector<1x32xf32>
      %53 = vector.broadcast %52 : vector<1x32xf32> to vector<32x32xf32>
      %54 = arith.addf %50, %53 : vector<32x32xf32>
      %c0_32 = arith.constant 0 : index
      %c0_33 = arith.constant 0 : index
      %c0_34 = arith.constant 0 : index
      %c0_35 = arith.constant 0 : index
      %55 = vector.load %arg5[%c0_32, %c0_33, %c0_34, %c0_35] : memref<5x3x32x64xf32, #tpu.memory_space<vmem>>, vector<1x1x32x64xf32>
      %56 = vector.shape_cast %55 : vector<1x1x32x64xf32> to vector<32x64xf32>
      %cst_36 = arith.constant dense<0.000000e+00> : vector<32x64xf32>
      %57 = tpu.matmul %54, %56, %cst_36 {dimension_numbers = #tpu.dot_dimension_numbers<[1], [0], [0], [1], [0, 0, 1, 1], [], []>} : vector<32x32xf32>, vector<32x64xf32>, vector<32x64xf32> -> vector<32x64xf32>
      %c0_37 = arith.constant 0 : index
      %c1_38 = arith.constant 1 : index
      %c0_39 = arith.constant 0 : index
      %58 = vector.load %arg7[%c0_37, %c1_38, %c0_39] : memref<5x8x64xf32, #tpu.memory_space<vmem>>, vector<1x1x64xf32>
      %59 = vector.shape_cast %58 : vector<1x1x64xf32> to vector<1x64xf32>
      %60 = vector.broadcast %59 : vector<1x64xf32> to vector<32x64xf32>
      %61 = arith.addf %57, %60 : vector<32x64xf32>
      %62 = vector.extract_strided_slice %61 {offsets = [0, 0], sizes = [32, 32], strides = [1, 1]} : vector<32x64xf32> to vector<32x32xf32>
      %63 = vector.extract_strided_slice %61 {offsets = [0, 32], sizes = [32, 32], strides = [1, 1]} : vector<32x64xf32> to vector<32x32xf32>
      %64 = arith.negf %63 : vector<32x32xf32>
      %65 = math.exp %64 : vector<32x32xf32>
      %cst_40 = arith.constant 1.000000e+00 : f32
      %66 = vector.broadcast %cst_40 : f32 to vector<32x32xf32>
      %67 = arith.addf %66, %65 : vector<32x32xf32>
      %68 = arith.divf %66, %67 : vector<32x32xf32>
      %69 = arith.mulf %62, %68 : vector<32x32xf32>
      %70 = vector.shape_cast %69 : vector<32x32xf32> to vector<2x16x32xf32>
      %c0_41 = arith.constant 0 : index
      %c0_42 = arith.constant 0 : index
      %c0_43 = arith.constant 0 : index
      %c0_44 = arith.constant 0 : index
      %71 = vector.load %arg8[%c0_41, %c0_42, %c0_43, %c0_44] : memref<5x4x16x32xf32, #tpu.memory_space<vmem>>, vector<1x1x16x32xf32>
      %72 = vector.shape_cast %71 : vector<1x1x16x32xf32> to vector<16x32xf32>
      %c0_45 = arith.constant 0 : index
      %c1_46 = arith.constant 1 : index
      %c0_47 = arith.constant 0 : index
      %c0_48 = arith.constant 0 : index
      %73 = vector.load %arg8[%c0_45, %c1_46, %c0_47, %c0_48] : memref<5x4x16x32xf32, #tpu.memory_space<vmem>>, vector<1x1x16x32xf32>
      %74 = vector.shape_cast %73 : vector<1x1x16x32xf32> to vector<16x32xf32>
      %cst_49 = arith.constant dense<0.000000e+00> : vector<2x16xf32>
      %75 = vector.multi_reduction <add>, %70, %cst_49 [2] : vector<2x16x32xf32> to vector<2x16xf32>
      %76 = vector.shape_cast %75 : vector<2x16xf32> to vector<2x16x1xf32>
      %cst_50 = arith.constant dense<0.000000e+00> : vector<2x1xf32>
      %77 = vector.multi_reduction <add>, %76, %cst_50 [1] : vector<2x16x1xf32> to vector<2x1xf32>
      %78 = vector.shape_cast %77 : vector<2x1xf32> to vector<2x1x1xf32>
      %cst_51 = arith.constant 0.001953125 : f32
      %79 = vector.broadcast %cst_51 : f32 to vector<2x1x1xf32>
      %80 = arith.mulf %78, %79 : vector<2x1x1xf32>
      %81 = vector.broadcast %80 : vector<2x1x1xf32> to vector<2x16x32xf32>
      %82 = arith.subf %70, %81 : vector<2x16x32xf32>
      %83 = arith.mulf %82, %82 : vector<2x16x32xf32>
      %cst_52 = arith.constant dense<0.000000e+00> : vector<2x16xf32>
      %84 = vector.multi_reduction <add>, %83, %cst_52 [2] : vector<2x16x32xf32> to vector<2x16xf32>
      %85 = vector.shape_cast %84 : vector<2x16xf32> to vector<2x16x1xf32>
      %cst_53 = arith.constant dense<0.000000e+00> : vector<2x1xf32>
      %86 = vector.multi_reduction <add>, %85, %cst_53 [1] : vector<2x16x1xf32> to vector<2x1xf32>
      %87 = vector.shape_cast %86 : vector<2x1xf32> to vector<2x1x1xf32>
      %cst_54 = arith.constant 0.001953125 : f32
      %88 = vector.broadcast %cst_54 : f32 to vector<2x1x1xf32>
      %89 = arith.mulf %87, %88 : vector<2x1x1xf32>
      %cst_55 = arith.constant 9.99999974E-6 : f32
      %90 = vector.broadcast %cst_55 : f32 to vector<2x1x1xf32>
      %91 = arith.addf %89, %90 : vector<2x1x1xf32>
      %92 = math.rsqrt %91 : vector<2x1x1xf32>
      %93 = vector.broadcast %92 : vector<2x1x1xf32> to vector<2x16x32xf32>
      %94 = arith.mulf %82, %93 : vector<2x16x32xf32>
      %95 = vector.shape_cast %72 : vector<16x32xf32> to vector<1x16x32xf32>
      %96 = vector.broadcast %95 : vector<1x16x32xf32> to vector<2x16x32xf32>
      %97 = arith.mulf %94, %96 : vector<2x16x32xf32>
      %98 = vector.shape_cast %74 : vector<16x32xf32> to vector<1x16x32xf32>
      %99 = vector.broadcast %98 : vector<1x16x32xf32> to vector<2x16x32xf32>
      %100 = arith.addf %97, %99 : vector<2x16x32xf32>
      %cst_56 = arith.constant dense<0.000000e+00> : vector<2x32xf32>
      %101 = vector.multi_reduction <add>, %100, %cst_56 [1] : vector<2x16x32xf32> to vector<2x32xf32>
      %102 = vector.shape_cast %101 : vector<2x32xf32> to vector<2x1x32xf32>
      %cst_57 = arith.constant 6.250000e-02 : f32
      %103 = vector.broadcast %cst_57 : f32 to vector<2x1x32xf32>
      %104 = arith.mulf %102, %103 : vector<2x1x32xf32>
      %cst_58 = arith.constant dense<0xFF800000> : vector<2x32xf32>
      %105 = vector.multi_reduction <maximumf>, %100, %cst_58 [1] : vector<2x16x32xf32> to vector<2x32xf32>
      %106 = vector.shape_cast %105 : vector<2x32xf32> to vector<2x1x32xf32>
      %107 = tpu.concatenate %104, %106 in 1 : vector<2x1x32xf32>, vector<2x1x32xf32> -> vector<2x2x32xf32>
      %108 = vector.shape_cast %107 : vector<2x2x32xf32> to vector<4x32xf32>
      %c0_59 = arith.constant 0 : index
      %c2 = arith.constant 2 : index
      %c0_60 = arith.constant 0 : index
      %c0_61 = arith.constant 0 : index
      %109 = vector.load %arg5[%c0_59, %c2, %c0_60, %c0_61] : memref<5x3x32x64xf32, #tpu.memory_space<vmem>>, vector<1x1x32x64xf32>
      %110 = vector.shape_cast %109 : vector<1x1x32x64xf32> to vector<32x64xf32>
      %cst_62 = arith.constant dense<0.000000e+00> : vector<4x64xf32>
      %111 = tpu.matmul %108, %110, %cst_62 {dimension_numbers = #tpu.dot_dimension_numbers<[1], [0], [0], [1], [0, 0, 1, 1], [], []>} : vector<4x32xf32>, vector<32x64xf32>, vector<4x64xf32> -> vector<4x64xf32>
      %c0_63 = arith.constant 0 : index
      %c2_64 = arith.constant 2 : index
      %c0_65 = arith.constant 0 : index
      %112 = vector.load %arg7[%c0_63, %c2_64, %c0_65] : memref<5x8x64xf32, #tpu.memory_space<vmem>>, vector<1x1x64xf32>
      %113 = vector.shape_cast %112 : vector<1x1x64xf32> to vector<1x64xf32>
      %114 = vector.broadcast %113 : vector<1x64xf32> to vector<4x64xf32>
      %115 = arith.addf %111, %114 : vector<4x64xf32>
      %cst_66 = arith.constant 0.000000e+00 : f32
      %116 = vector.broadcast %cst_66 : f32 to vector<4x64xf32>
      %117 = arith.maximumf %115, %116 : vector<4x64xf32>
      %c0_67 = arith.constant 0 : index
      %c1_68 = arith.constant 1 : index
      %c0_69 = arith.constant 0 : index
      %c0_70 = arith.constant 0 : index
      %118 = vector.load %arg4[%c0_67, %c1_68, %c0_69, %c0_70] : memref<5x2x64x32xf32, #tpu.memory_space<vmem>>, vector<1x1x64x32xf32>
      %119 = vector.shape_cast %118 : vector<1x1x64x32xf32> to vector<64x32xf32>
      %cst_71 = arith.constant dense<0.000000e+00> : vector<4x32xf32>
      %120 = tpu.matmul %117, %119, %cst_71 {dimension_numbers = #tpu.dot_dimension_numbers<[1], [0], [0], [1], [0, 0, 1, 1], [], []>} : vector<4x64xf32>, vector<64x32xf32>, vector<4x32xf32> -> vector<4x32xf32>
      %c0_72 = arith.constant 0 : index
      %c5 = arith.constant 5 : index
      %c0_73 = arith.constant 0 : index
      %121 = vector.load %arg7[%c0_72, %c5, %c0_73] : memref<5x8x64xf32, #tpu.memory_space<vmem>>, vector<1x1x32xf32>
      %122 = vector.shape_cast %121 : vector<1x1x32xf32> to vector<1x32xf32>
      %123 = vector.broadcast %122 : vector<1x32xf32> to vector<4x32xf32>
      %124 = arith.addf %120, %123 : vector<4x32xf32>
      %125 = vector.shape_cast %124 : vector<4x32xf32> to vector<2x2x32xf32>
      %cst_74 = arith.constant dense<0.000000e+00> : vector<2x32xf32>
      %126 = vector.multi_reduction <add>, %125, %cst_74 [1] : vector<2x2x32xf32> to vector<2x32xf32>
      %c0_75 = arith.constant 0 : index
      %c1_76 = arith.constant 1 : index
      %c0_77 = arith.constant 0 : index
      %c0_78 = arith.constant 0 : index
      %127 = vector.load %arg5[%c0_75, %c1_76, %c0_77, %c0_78] : memref<5x3x32x64xf32, #tpu.memory_space<vmem>>, vector<1x1x32x64xf32>
      %128 = vector.shape_cast %127 : vector<1x1x32x64xf32> to vector<32x64xf32>
      %cst_79 = arith.constant dense<0.000000e+00> : vector<2x64xf32>
      %129 = tpu.matmul %126, %128, %cst_79 {dimension_numbers = #tpu.dot_dimension_numbers<[1], [0], [0], [1], [0, 0, 1, 1], [], []>} : vector<2x32xf32>, vector<32x64xf32>, vector<2x64xf32> -> vector<2x64xf32>
      %c0_80 = arith.constant 0 : index
      %c3 = arith.constant 3 : index
      %c0_81 = arith.constant 0 : index
      %130 = vector.load %arg7[%c0_80, %c3, %c0_81] : memref<5x8x64xf32, #tpu.memory_space<vmem>>, vector<1x1x64xf32>
      %131 = vector.shape_cast %130 : vector<1x1x64xf32> to vector<1x64xf32>
      %132 = vector.broadcast %131 : vector<1x64xf32> to vector<2x64xf32>
      %133 = arith.addf %129, %132 : vector<2x64xf32>
      %134 = vector.extract_strided_slice %133 {offsets = [0, 0], sizes = [2, 32], strides = [1, 1]} : vector<2x64xf32> to vector<2x32xf32>
      %135 = vector.extract_strided_slice %133 {offsets = [0, 32], sizes = [2, 32], strides = [1, 1]} : vector<2x64xf32> to vector<2x32xf32>
      %136 = arith.negf %135 : vector<2x32xf32>
      %137 = math.exp %136 : vector<2x32xf32>
      %cst_82 = arith.constant 1.000000e+00 : f32
      %138 = vector.broadcast %cst_82 : f32 to vector<2x32xf32>
      %139 = arith.addf %138, %137 : vector<2x32xf32>
      %140 = arith.divf %138, %139 : vector<2x32xf32>
      %141 = arith.mulf %134, %140 : vector<2x32xf32>
      %142 = vector.shape_cast %100 : vector<2x16x32xf32> to vector<32x32xf32>
      %c0_83 = arith.constant 0 : index
      %c0_84 = arith.constant 0 : index
      %c0_85 = arith.constant 0 : index
      %143 = vector.load %arg6[%c0_83, %c0_84, %c0_85] : memref<5x32x32xf32, #tpu.memory_space<vmem>>, vector<1x32x32xf32>
      %144 = vector.shape_cast %143 : vector<1x32x32xf32> to vector<32x32xf32>
      %cst_86 = arith.constant dense<0.000000e+00> : vector<32x32xf32>
      %145 = tpu.matmul %142, %144, %cst_86 {dimension_numbers = #tpu.dot_dimension_numbers<[1], [0], [0], [1], [0, 0, 1, 1], [], []>} : vector<32x32xf32>, vector<32x32xf32>, vector<32x32xf32> -> vector<32x32xf32>
      %c0_87 = arith.constant 0 : index
      %c6 = arith.constant 6 : index
      %c0_88 = arith.constant 0 : index
      %146 = vector.load %arg7[%c0_87, %c6, %c0_88] : memref<5x8x64xf32, #tpu.memory_space<vmem>>, vector<1x1x32xf32>
      %147 = vector.shape_cast %146 : vector<1x1x32xf32> to vector<1x32xf32>
      %148 = vector.broadcast %147 : vector<1x32xf32> to vector<32x32xf32>
      %149 = arith.addf %145, %148 : vector<32x32xf32>
      %150 = vector.shape_cast %149 : vector<32x32xf32> to vector<2x16x32xf32>
      %151 = vector.shape_cast %141 : vector<2x32xf32> to vector<2x1x32xf32>
      %152 = vector.broadcast %151 : vector<2x1x32xf32> to vector<2x16x32xf32>
      %153 = arith.mulf %150, %152 : vector<2x16x32xf32>
      %cst_89 = arith.constant dense<0.000000e+00> : vector<2x16xf32>
      %154 = vector.multi_reduction <add>, %153, %cst_89 [2] : vector<2x16x32xf32> to vector<2x16xf32>
      %155 = vector.shape_cast %154 : vector<2x16xf32> to vector<2x16x1xf32>
      %cst_90 = arith.constant 3.125000e-02 : f32
      %156 = vector.broadcast %cst_90 : f32 to vector<2x16x1xf32>
      %157 = arith.mulf %155, %156 : vector<2x16x1xf32>
      %cst_91 = arith.constant dense<0xFF800000> : vector<2x16xf32>
      %158 = vector.multi_reduction <maximumf>, %153, %cst_91 [2] : vector<2x16x32xf32> to vector<2x16xf32>
      %159 = vector.shape_cast %158 : vector<2x16xf32> to vector<2x16x1xf32>
      %c0_92 = arith.constant 0 : index
      %c0_93 = arith.constant 0 : index
      %c0_94 = arith.constant 0 : index
      %160 = vector.load %arg9[%c0_92, %c0_93, %c0_94] : memref<5x16x32xf32, #tpu.memory_space<vmem>>, vector<1x16x32xf32>
      %161 = vector.shape_cast %160 : vector<1x16x32xf32> to vector<16x32xf32>
      %162 = vector.extract_strided_slice %157 {offsets = [0, 0, 0], sizes = [1, 16, 1], strides = [1, 1, 1]} : vector<2x16x1xf32> to vector<1x16x1xf32>
      %163 = vector.shape_cast %162 : vector<1x16x1xf32> to vector<16x1xf32>
      %164 = vector.extract_strided_slice %159 {offsets = [0, 0, 0], sizes = [1, 16, 1], strides = [1, 1, 1]} : vector<2x16x1xf32> to vector<1x16x1xf32>
      %165 = vector.shape_cast %164 : vector<1x16x1xf32> to vector<16x1xf32>
      %166 = tpu.concatenate %163, %165 in 0 : vector<16x1xf32>, vector<16x1xf32> -> vector<32x1xf32>
      %cst_95 = arith.constant dense<0.000000e+00> : vector<16x1xf32>
      %167 = tpu.matmul %161, %166, %cst_95 {dimension_numbers = #tpu.dot_dimension_numbers<[1], [0], [0], [1], [0, 0, 1, 1], [], []>} : vector<16x32xf32>, vector<32x1xf32>, vector<16x1xf32> -> vector<16x1xf32>
      %168 = vector.extract_strided_slice %157 {offsets = [1, 0, 0], sizes = [1, 16, 1], strides = [1, 1, 1]} : vector<2x16x1xf32> to vector<1x16x1xf32>
      %169 = vector.shape_cast %168 : vector<1x16x1xf32> to vector<16x1xf32>
      %170 = vector.extract_strided_slice %159 {offsets = [1, 0, 0], sizes = [1, 16, 1], strides = [1, 1, 1]} : vector<2x16x1xf32> to vector<1x16x1xf32>
      %171 = vector.shape_cast %170 : vector<1x16x1xf32> to vector<16x1xf32>
      %172 = tpu.concatenate %169, %171 in 0 : vector<16x1xf32>, vector<16x1xf32> -> vector<32x1xf32>
      %cst_96 = arith.constant dense<0.000000e+00> : vector<16x1xf32>
      %173 = tpu.matmul %161, %172, %cst_96 {dimension_numbers = #tpu.dot_dimension_numbers<[1], [0], [0], [1], [0, 0, 1, 1], [], []>} : vector<16x32xf32>, vector<32x1xf32>, vector<16x1xf32> -> vector<16x1xf32>
      %174 = vector.shape_cast %167 : vector<16x1xf32> to vector<1x16x1xf32>
      %175 = vector.shape_cast %173 : vector<16x1xf32> to vector<1x16x1xf32>
      %176 = tpu.concatenate %174, %175 in 0 : vector<1x16x1xf32>, vector<1x16x1xf32> -> vector<2x16x1xf32>
      %c0_97 = arith.constant 0 : index
      %c7 = arith.constant 7 : index
      %c0_98 = arith.constant 0 : index
      %177 = vector.load %arg7[%c0_97, %c7, %c0_98] : memref<5x8x64xf32, #tpu.memory_space<vmem>>, vector<1x1x1xf32>
      %178 = vector.shape_cast %177 : vector<1x1x1xf32> to vector<1x1xf32>
      %179 = vector.shape_cast %178 : vector<1x1xf32> to vector<1x1x1xf32>
      %180 = vector.broadcast %179 : vector<1x1x1xf32> to vector<2x16x1xf32>
      %181 = arith.addf %176, %180 : vector<2x16x1xf32>
      %182 = arith.negf %181 : vector<2x16x1xf32>
      %183 = math.exp %182 : vector<2x16x1xf32>
      %cst_99 = arith.constant 1.000000e+00 : f32
      %184 = vector.broadcast %cst_99 : f32 to vector<2x16x1xf32>
      %185 = arith.addf %184, %183 : vector<2x16x1xf32>
      %186 = arith.divf %184, %185 : vector<2x16x1xf32>
      %187 = vector.broadcast %186 : vector<2x16x1xf32> to vector<2x16x32xf32>
      %188 = arith.mulf %153, %187 : vector<2x16x32xf32>
      %c0_100 = arith.constant 0 : index
      %c2_101 = arith.constant 2 : index
      %c0_102 = arith.constant 0 : index
      %c0_103 = arith.constant 0 : index
      %189 = vector.load %arg8[%c0_100, %c2_101, %c0_102, %c0_103] : memref<5x4x16x32xf32, #tpu.memory_space<vmem>>, vector<1x1x16x32xf32>
      %190 = vector.shape_cast %189 : vector<1x1x16x32xf32> to vector<16x32xf32>
      %c0_104 = arith.constant 0 : index
      %c3_105 = arith.constant 3 : index
      %c0_106 = arith.constant 0 : index
      %c0_107 = arith.constant 0 : index
      %191 = vector.load %arg8[%c0_104, %c3_105, %c0_106, %c0_107] : memref<5x4x16x32xf32, #tpu.memory_space<vmem>>, vector<1x1x16x32xf32>
      %192 = vector.shape_cast %191 : vector<1x1x16x32xf32> to vector<16x32xf32>
      %cst_108 = arith.constant dense<0.000000e+00> : vector<2x16xf32>
      %193 = vector.multi_reduction <add>, %188, %cst_108 [2] : vector<2x16x32xf32> to vector<2x16xf32>
      %194 = vector.shape_cast %193 : vector<2x16xf32> to vector<2x16x1xf32>
      %cst_109 = arith.constant dense<0.000000e+00> : vector<2x1xf32>
      %195 = vector.multi_reduction <add>, %194, %cst_109 [1] : vector<2x16x1xf32> to vector<2x1xf32>
      %196 = vector.shape_cast %195 : vector<2x1xf32> to vector<2x1x1xf32>
      %cst_110 = arith.constant 0.001953125 : f32
      %197 = vector.broadcast %cst_110 : f32 to vector<2x1x1xf32>
      %198 = arith.mulf %196, %197 : vector<2x1x1xf32>
      %199 = vector.broadcast %198 : vector<2x1x1xf32> to vector<2x16x32xf32>
      %200 = arith.subf %188, %199 : vector<2x16x32xf32>
      %201 = arith.mulf %200, %200 : vector<2x16x32xf32>
      %cst_111 = arith.constant dense<0.000000e+00> : vector<2x16xf32>
      %202 = vector.multi_reduction <add>, %201, %cst_111 [2] : vector<2x16x32xf32> to vector<2x16xf32>
      %203 = vector.shape_cast %202 : vector<2x16xf32> to vector<2x16x1xf32>
      %cst_112 = arith.constant dense<0.000000e+00> : vector<2x1xf32>
      %204 = vector.multi_reduction <add>, %203, %cst_112 [1] : vector<2x16x1xf32> to vector<2x1xf32>
      %205 = vector.shape_cast %204 : vector<2x1xf32> to vector<2x1x1xf32>
      %cst_113 = arith.constant 0.001953125 : f32
      %206 = vector.broadcast %cst_113 : f32 to vector<2x1x1xf32>
      %207 = arith.mulf %205, %206 : vector<2x1x1xf32>
      %cst_114 = arith.constant 9.99999974E-6 : f32
      %208 = vector.broadcast %cst_114 : f32 to vector<2x1x1xf32>
      %209 = arith.addf %207, %208 : vector<2x1x1xf32>
      %210 = math.rsqrt %209 : vector<2x1x1xf32>
      %211 = vector.broadcast %210 : vector<2x1x1xf32> to vector<2x16x32xf32>
      %212 = arith.mulf %200, %211 : vector<2x16x32xf32>
      %213 = vector.shape_cast %190 : vector<16x32xf32> to vector<1x16x32xf32>
      %214 = vector.broadcast %213 : vector<1x16x32xf32> to vector<2x16x32xf32>
      %215 = arith.mulf %212, %214 : vector<2x16x32xf32>
      %216 = vector.shape_cast %192 : vector<16x32xf32> to vector<1x16x32xf32>
      %217 = vector.broadcast %216 : vector<1x16x32xf32> to vector<2x16x32xf32>
      %218 = arith.addf %215, %217 : vector<2x16x32xf32>
      %219 = vector.shape_cast %218 : vector<2x16x32xf32> to vector<32x32xf32>
      %c0_115 = arith.constant 0 : index
      %c0_116 = arith.constant 0 : index
      %220 = vector.load %arg10[%c0_115, %c0_116] : memref<32x128xf32, #tpu.memory_space<vmem>>, vector<32x32xf32>
      tpu.vector_store %arg10[%c0_115, %c0_116], %219 {strides = array<i32>} : memref<32x128xf32, #tpu.memory_space<vmem>>, vector<32x32xf32>,
      %c1_117 = arith.constant 1 : index
      %c0_118 = arith.constant 0 : index
      %c0_119 = arith.constant 0 : index
      %c0_120 = arith.constant 0 : index
      %221 = vector.load %arg1[%c1_117, %c0_118, %c0_119, %c0_120] : memref<5x2x16x288xf32, #tpu.memory_space<vmem>>, vector<1x2x16x16xf32>
      %222 = vector.shape_cast %221 : vector<1x2x16x16xf32> to vector<2x16x16xf32>
      %c1_121 = arith.constant 1 : index
      %c0_122 = arith.constant 0 : index
      %c0_123 = arith.constant 0 : index
      %c0_124 = arith.constant 0 : index
      %223 = vector.load %arg2[%c1_121, %c0_122, %c0_123, %c0_124] : memref<5x2x16x288xf32, #tpu.memory_space<vmem>>, vector<1x1x16x16xf32>
      %224 = vector.shape_cast %223 : vector<1x1x16x16xf32> to vector<16x16xf32>
      %c1_125 = arith.constant 1 : index
      %c1_126 = arith.constant 1 : index
      %c0_127 = arith.constant 0 : index
      %c0_128 = arith.constant 0 : index
      %225 = vector.load %arg2[%c1_125, %c1_126, %c0_127, %c0_128] : memref<5x2x16x288xf32, #tpu.memory_space<vmem>>, vector<1x1x16x16xf32>
      %226 = vector.shape_cast %225 : vector<1x1x16x16xf32> to vector<16x16xf32>
      %cst_129 = arith.constant dense<0.000000e+00> : vector<2x16xf32>
      %227 = vector.multi_reduction <add>, %222, %cst_129 [2] : vector<2x16x16xf32> to vector<2x16xf32>
      %228 = vector.shape_cast %227 : vector<2x16xf32> to vector<2x16x1xf32>
      %cst_130 = arith.constant dense<0.000000e+00> : vector<2x1xf32>
      %229 = vector.multi_reduction <add>, %228, %cst_130 [1] : vector<2x16x1xf32> to vector<2x1xf32>
      %230 = vector.shape_cast %229 : vector<2x1xf32> to vector<2x1x1xf32>
      %cst_131 = arith.constant 3.906250e-03 : f32
      %231 = vector.broadcast %cst_131 : f32 to vector<2x1x1xf32>
      %232 = arith.mulf %230, %231 : vector<2x1x1xf32>
      %233 = vector.broadcast %232 : vector<2x1x1xf32> to vector<2x16x16xf32>
      %234 = arith.subf %222, %233 : vector<2x16x16xf32>
      %235 = arith.mulf %234, %234 : vector<2x16x16xf32>
      %cst_132 = arith.constant dense<0.000000e+00> : vector<2x16xf32>
      %236 = vector.multi_reduction <add>, %235, %cst_132 [2] : vector<2x16x16xf32> to vector<2x16xf32>
      %237 = vector.shape_cast %236 : vector<2x16xf32> to vector<2x16x1xf32>
      %cst_133 = arith.constant dense<0.000000e+00> : vector<2x1xf32>
      %238 = vector.multi_reduction <add>, %237, %cst_133 [1] : vector<2x16x1xf32> to vector<2x1xf32>
      %239 = vector.shape_cast %238 : vector<2x1xf32> to vector<2x1x1xf32>
      %cst_134 = arith.constant 3.906250e-03 : f32
      %240 = vector.broadcast %cst_134 : f32 to vector<2x1x1xf32>
      %241 = arith.mulf %239, %240 : vector<2x1x1xf32>
      %cst_135 = arith.constant 9.99999974E-6 : f32
      %242 = vector.broadcast %cst_135 : f32 to vector<2x1x1xf32>
      %243 = arith.addf %241, %242 : vector<2x1x1xf32>
      %244 = math.rsqrt %243 : vector<2x1x1xf32>
      %245 = vector.broadcast %244 : vector<2x1x1xf32> to vector<2x16x16xf32>
      %246 = arith.mulf %234, %245 : vector<2x16x16xf32>
      %247 = vector.shape_cast %224 : vector<16x16xf32> to vector<1x16x16xf32>
      %248 = vector.broadcast %247 : vector<1x16x16xf32> to vector<2x16x16xf32>
      %249 = arith.mulf %246, %248 : vector<2x16x16xf32>
      %250 = vector.shape_cast %226 : vector<16x16xf32> to vector<1x16x16xf32>
      %251 = vector.broadcast %250 : vector<1x16x16xf32> to vector<2x16x16xf32>
      %252 = arith.addf %249, %251 : vector<2x16x16xf32>
      %253 = math.tanh %252 : vector<2x16x16xf32>
      %254 = vector.shape_cast %253 : vector<2x16x16xf32> to vector<32x16xf32>
      %c1_136 = arith.constant 1 : index
      %c0_137 = arith.constant 0 : index
      %c0_138 = arith.constant 0 : index
      %255 = vector.load %arg3[%c1_136, %c0_137, %c0_138] : memref<5x288x64xf32, #tpu.memory_space<vmem>>, vector<1x16x64xf32>
      %256 = vector.shape_cast %255 : vector<1x16x64xf32> to vector<16x64xf32>
      %cst_139 = arith.constant dense<0.000000e+00> : vector<32x64xf32>
      %257 = tpu.matmul %254, %256, %cst_139 {dimension_numbers = #tpu.dot_dimension_numbers<[1], [0], [0], [1], [0, 0, 1, 1], [], []>} : vector<32x16xf32>, vector<16x64xf32>, vector<32x64xf32> -> vector<32x64xf32>
      %c1_140 = arith.constant 1 : index
      %c0_141 = arith.constant 0 : index
      %c0_142 = arith.constant 0 : index
      %258 = vector.load %arg7[%c1_140, %c0_141, %c0_142] : memref<5x8x64xf32, #tpu.memory_space<vmem>>, vector<1x1x64xf32>
      %259 = vector.shape_cast %258 : vector<1x1x64xf32> to vector<1x64xf32>
      %260 = vector.broadcast %259 : vector<1x64xf32> to vector<32x64xf32>
      %261 = arith.addf %257, %260 : vector<32x64xf32>
      %262 = math.tanh %261 : vector<32x64xf32>
      %c1_143 = arith.constant 1 : index
      %c0_144 = arith.constant 0 : index
      %c0_145 = arith.constant 0 : index
      %c0_146 = arith.constant 0 : index
      %263 = vector.load %arg4[%c1_143, %c0_144, %c0_145, %c0_146] : memref<5x2x64x32xf32, #tpu.memory_space<vmem>>, vector<1x1x64x32xf32>
      %264 = vector.shape_cast %263 : vector<1x1x64x32xf32> to vector<64x32xf32>
      %cst_147 = arith.constant dense<0.000000e+00> : vector<32x32xf32>
      %265 = tpu.matmul %262, %264, %cst_147 {dimension_numbers = #tpu.dot_dimension_numbers<[1], [0], [0], [1], [0, 0, 1, 1], [], []>} : vector<32x64xf32>, vector<64x32xf32>, vector<32x32xf32> -> vector<32x32xf32>
      %c1_148 = arith.constant 1 : index
      %c4_149 = arith.constant 4 : index
      %c0_150 = arith.constant 0 : index
      %266 = vector.load %arg7[%c1_148, %c4_149, %c0_150] : memref<5x8x64xf32, #tpu.memory_space<vmem>>, vector<1x1x32xf32>
      %267 = vector.shape_cast %266 : vector<1x1x32xf32> to vector<1x32xf32>
      %268 = vector.broadcast %267 : vector<1x32xf32> to vector<32x32xf32>
      %269 = arith.addf %265, %268 : vector<32x32xf32>
      %c1_151 = arith.constant 1 : index
      %c0_152 = arith.constant 0 : index
      %c0_153 = arith.constant 0 : index
      %c0_154 = arith.constant 0 : index
      %270 = vector.load %arg5[%c1_151, %c0_152, %c0_153, %c0_154] : memref<5x3x32x64xf32, #tpu.memory_space<vmem>>, vector<1x1x32x64xf32>
      %271 = vector.shape_cast %270 : vector<1x1x32x64xf32> to vector<32x64xf32>
      %cst_155 = arith.constant dense<0.000000e+00> : vector<32x64xf32>
      %272 = tpu.matmul %269, %271, %cst_155 {dimension_numbers = #tpu.dot_dimension_numbers<[1], [0], [0], [1], [0, 0, 1, 1], [], []>} : vector<32x32xf32>, vector<32x64xf32>, vector<32x64xf32> -> vector<32x64xf32>
      %c1_156 = arith.constant 1 : index
      %c1_157 = arith.constant 1 : index
      %c0_158 = arith.constant 0 : index
      %273 = vector.load %arg7[%c1_156, %c1_157, %c0_158] : memref<5x8x64xf32, #tpu.memory_space<vmem>>, vector<1x1x64xf32>
      %274 = vector.shape_cast %273 : vector<1x1x64xf32> to vector<1x64xf32>
      %275 = vector.broadcast %274 : vector<1x64xf32> to vector<32x64xf32>
      %276 = arith.addf %272, %275 : vector<32x64xf32>
      %277 = vector.extract_strided_slice %276 {offsets = [0, 0], sizes = [32, 32], strides = [1, 1]} : vector<32x64xf32> to vector<32x32xf32>
      %278 = vector.extract_strided_slice %276 {offsets = [0, 32], sizes = [32, 32], strides = [1, 1]} : vector<32x64xf32> to vector<32x32xf32>
      %279 = arith.negf %278 : vector<32x32xf32>
      %280 = math.exp %279 : vector<32x32xf32>
      %cst_159 = arith.constant 1.000000e+00 : f32
      %281 = vector.broadcast %cst_159 : f32 to vector<32x32xf32>
      %282 = arith.addf %281, %280 : vector<32x32xf32>
      %283 = arith.divf %281, %282 : vector<32x32xf32>
      %284 = arith.mulf %277, %283 : vector<32x32xf32>
      %285 = vector.shape_cast %284 : vector<32x32xf32> to vector<2x16x32xf32>
      %c1_160 = arith.constant 1 : index
      %c0_161 = arith.constant 0 : index
      %c0_162 = arith.constant 0 : index
      %c0_163 = arith.constant 0 : index
      %286 = vector.load %arg8[%c1_160, %c0_161, %c0_162, %c0_163] : memref<5x4x16x32xf32, #tpu.memory_space<vmem>>, vector<1x1x16x32xf32>
      %287 = vector.shape_cast %286 : vector<1x1x16x32xf32> to vector<16x32xf32>
      %c1_164 = arith.constant 1 : index
      %c1_165 = arith.constant 1 : index
      %c0_166 = arith.constant 0 : index
      %c0_167 = arith.constant 0 : index
      %288 = vector.load %arg8[%c1_164, %c1_165, %c0_166, %c0_167] : memref<5x4x16x32xf32, #tpu.memory_space<vmem>>, vector<1x1x16x32xf32>
      %289 = vector.shape_cast %288 : vector<1x1x16x32xf32> to vector<16x32xf32>
      %cst_168 = arith.constant dense<0.000000e+00> : vector<2x16xf32>
      %290 = vector.multi_reduction <add>, %285, %cst_168 [2] : vector<2x16x32xf32> to vector<2x16xf32>
      %291 = vector.shape_cast %290 : vector<2x16xf32> to vector<2x16x1xf32>
      %cst_169 = arith.constant dense<0.000000e+00> : vector<2x1xf32>
      %292 = vector.multi_reduction <add>, %291, %cst_169 [1] : vector<2x16x1xf32> to vector<2x1xf32>
      %293 = vector.shape_cast %292 : vector<2x1xf32> to vector<2x1x1xf32>
      %cst_170 = arith.constant 0.001953125 : f32
      %294 = vector.broadcast %cst_170 : f32 to vector<2x1x1xf32>
      %295 = arith.mulf %293, %294 : vector<2x1x1xf32>
      %296 = vector.broadcast %295 : vector<2x1x1xf32> to vector<2x16x32xf32>
      %297 = arith.subf %285, %296 : vector<2x16x32xf32>
      %298 = arith.mulf %297, %297 : vector<2x16x32xf32>
      %cst_171 = arith.constant dense<0.000000e+00> : vector<2x16xf32>
      %299 = vector.multi_reduction <add>, %298, %cst_171 [2] : vector<2x16x32xf32> to vector<2x16xf32>
      %300 = vector.shape_cast %299 : vector<2x16xf32> to vector<2x16x1xf32>
      %cst_172 = arith.constant dense<0.000000e+00> : vector<2x1xf32>
      %301 = vector.multi_reduction <add>, %300, %cst_172 [1] : vector<2x16x1xf32> to vector<2x1xf32>
      %302 = vector.shape_cast %301 : vector<2x1xf32> to vector<2x1x1xf32>
      %cst_173 = arith.constant 0.001953125 : f32
      %303 = vector.broadcast %cst_173 : f32 to vector<2x1x1xf32>
      %304 = arith.mulf %302, %303 : vector<2x1x1xf32>
      %cst_174 = arith.constant 9.99999974E-6 : f32
      %305 = vector.broadcast %cst_174 : f32 to vector<2x1x1xf32>
      %306 = arith.addf %304, %305 : vector<2x1x1xf32>
      %307 = math.rsqrt %306 : vector<2x1x1xf32>
      %308 = vector.broadcast %307 : vector<2x1x1xf32> to vector<2x16x32xf32>
      %309 = arith.mulf %297, %308 : vector<2x16x32xf32>
      %310 = vector.shape_cast %287 : vector<16x32xf32> to vector<1x16x32xf32>
      %311 = vector.broadcast %310 : vector<1x16x32xf32> to vector<2x16x32xf32>
      %312 = arith.mulf %309, %311 : vector<2x16x32xf32>
      %313 = vector.shape_cast %289 : vector<16x32xf32> to vector<1x16x32xf32>
      %314 = vector.broadcast %313 : vector<1x16x32xf32> to vector<2x16x32xf32>
      %315 = arith.addf %312, %314 : vector<2x16x32xf32>
      %cst_175 = arith.constant dense<0.000000e+00> : vector<2x32xf32>
      %316 = vector.multi_reduction <add>, %315, %cst_175 [1] : vector<2x16x32xf32> to vector<2x32xf32>
      %317 = vector.shape_cast %316 : vector<2x32xf32> to vector<2x1x32xf32>
      %cst_176 = arith.constant 6.250000e-02 : f32
      %318 = vector.broadcast %cst_176 : f32 to vector<2x1x32xf32>
      %319 = arith.mulf %317, %318 : vector<2x1x32xf32>
      %cst_177 = arith.constant dense<0xFF800000> : vector<2x32xf32>
      %320 = vector.multi_reduction <maximumf>, %315, %cst_177 [1] : vector<2x16x32xf32> to vector<2x32xf32>
      %321 = vector.shape_cast %320 : vector<2x32xf32> to vector<2x1x32xf32>
      %322 = tpu.concatenate %319, %321 in 1 : vector<2x1x32xf32>, vector<2x1x32xf32> -> vector<2x2x32xf32>
      %323 = vector.shape_cast %322 : vector<2x2x32xf32> to vector<4x32xf32>
      %c1_178 = arith.constant 1 : index
      %c2_179 = arith.constant 2 : index
      %c0_180 = arith.constant 0 : index
      %c0_181 = arith.constant 0 : index
      %324 = vector.load %arg5[%c1_178, %c2_179, %c0_180, %c0_181] : memref<5x3x32x64xf32, #tpu.memory_space<vmem>>, vector<1x1x32x64xf32>
      %325 = vector.shape_cast %324 : vector<1x1x32x64xf32> to vector<32x64xf32>
      %cst_182 = arith.constant dense<0.000000e+00> : vector<4x64xf32>
      %326 = tpu.matmul %323, %325, %cst_182 {dimension_numbers = #tpu.dot_dimension_numbers<[1], [0], [0], [1], [0, 0, 1, 1], [], []>} : vector<4x32xf32>, vector<32x64xf32>, vector<4x64xf32> -> vector<4x64xf32>
      %c1_183 = arith.constant 1 : index
      %c2_184 = arith.constant 2 : index
      %c0_185 = arith.constant 0 : index
      %327 = vector.load %arg7[%c1_183, %c2_184, %c0_185] : memref<5x8x64xf32, #tpu.memory_space<vmem>>, vector<1x1x64xf32>
      %328 = vector.shape_cast %327 : vector<1x1x64xf32> to vector<1x64xf32>
      %329 = vector.broadcast %328 : vector<1x64xf32> to vector<4x64xf32>
      %330 = arith.addf %326, %329 : vector<4x64xf32>
      %cst_186 = arith.constant 0.000000e+00 : f32
      %331 = vector.broadcast %cst_186 : f32 to vector<4x64xf32>
      %332 = arith.maximumf %330, %331 : vector<4x64xf32>
      %c1_187 = arith.constant 1 : index
      %c1_188 = arith.constant 1 : index
      %c0_189 = arith.constant 0 : index
      %c0_190 = arith.constant 0 : index
      %333 = vector.load %arg4[%c1_187, %c1_188, %c0_189, %c0_190] : memref<5x2x64x32xf32, #tpu.memory_space<vmem>>, vector<1x1x64x32xf32>
      %334 = vector.shape_cast %333 : vector<1x1x64x32xf32> to vector<64x32xf32>
      %cst_191 = arith.constant dense<0.000000e+00> : vector<4x32xf32>
      %335 = tpu.matmul %332, %334, %cst_191 {dimension_numbers = #tpu.dot_dimension_numbers<[1], [0], [0], [1], [0, 0, 1, 1], [], []>} : vector<4x64xf32>, vector<64x32xf32>, vector<4x32xf32> -> vector<4x32xf32>
      %c1_192 = arith.constant 1 : index
      %c5_193 = arith.constant 5 : index
      %c0_194 = arith.constant 0 : index
      %336 = vector.load %arg7[%c1_192, %c5_193, %c0_194] : memref<5x8x64xf32, #tpu.memory_space<vmem>>, vector<1x1x32xf32>
      %337 = vector.shape_cast %336 : vector<1x1x32xf32> to vector<1x32xf32>
      %338 = vector.broadcast %337 : vector<1x32xf32> to vector<4x32xf32>
      %339 = arith.addf %335, %338 : vector<4x32xf32>
      %340 = vector.shape_cast %339 : vector<4x32xf32> to vector<2x2x32xf32>
      %cst_195 = arith.constant dense<0.000000e+00> : vector<2x32xf32>
      %341 = vector.multi_reduction <add>, %340, %cst_195 [1] : vector<2x2x32xf32> to vector<2x32xf32>
      %c1_196 = arith.constant 1 : index
      %c1_197 = arith.constant 1 : index
      %c0_198 = arith.constant 0 : index
      %c0_199 = arith.constant 0 : index
      %342 = vector.load %arg5[%c1_196, %c1_197, %c0_198, %c0_199] : memref<5x3x32x64xf32, #tpu.memory_space<vmem>>, vector<1x1x32x64xf32>
      %343 = vector.shape_cast %342 : vector<1x1x32x64xf32> to vector<32x64xf32>
      %cst_200 = arith.constant dense<0.000000e+00> : vector<2x64xf32>
      %344 = tpu.matmul %341, %343, %cst_200 {dimension_numbers = #tpu.dot_dimension_numbers<[1], [0], [0], [1], [0, 0, 1, 1], [], []>} : vector<2x32xf32>, vector<32x64xf32>, vector<2x64xf32> -> vector<2x64xf32>
      %c1_201 = arith.constant 1 : index
      %c3_202 = arith.constant 3 : index
      %c0_203 = arith.constant 0 : index
      %345 = vector.load %arg7[%c1_201, %c3_202, %c0_203] : memref<5x8x64xf32, #tpu.memory_space<vmem>>, vector<1x1x64xf32>
      %346 = vector.shape_cast %345 : vector<1x1x64xf32> to vector<1x64xf32>
      %347 = vector.broadcast %346 : vector<1x64xf32> to vector<2x64xf32>
      %348 = arith.addf %344, %347 : vector<2x64xf32>
      %349 = vector.extract_strided_slice %348 {offsets = [0, 0], sizes = [2, 32], strides = [1, 1]} : vector<2x64xf32> to vector<2x32xf32>
      %350 = vector.extract_strided_slice %348 {offsets = [0, 32], sizes = [2, 32], strides = [1, 1]} : vector<2x64xf32> to vector<2x32xf32>
      %351 = arith.negf %350 : vector<2x32xf32>
      %352 = math.exp %351 : vector<2x32xf32>
      %cst_204 = arith.constant 1.000000e+00 : f32
      %353 = vector.broadcast %cst_204 : f32 to vector<2x32xf32>
      %354 = arith.addf %353, %352 : vector<2x32xf32>
      %355 = arith.divf %353, %354 : vector<2x32xf32>
      %356 = arith.mulf %349, %355 : vector<2x32xf32>
      %357 = vector.shape_cast %315 : vector<2x16x32xf32> to vector<32x32xf32>
      %c1_205 = arith.constant 1 : index
      %c0_206 = arith.constant 0 : index
      %c0_207 = arith.constant 0 : index
      %358 = vector.load %arg6[%c1_205, %c0_206, %c0_207] : memref<5x32x32xf32, #tpu.memory_space<vmem>>, vector<1x32x32xf32>
      %359 = vector.shape_cast %358 : vector<1x32x32xf32> to vector<32x32xf32>
      %cst_208 = arith.constant dense<0.000000e+00> : vector<32x32xf32>
      %360 = tpu.matmul %357, %359, %cst_208 {dimension_numbers = #tpu.dot_dimension_numbers<[1], [0], [0], [1], [0, 0, 1, 1], [], []>} : vector<32x32xf32>, vector<32x32xf32>, vector<32x32xf32> -> vector<32x32xf32>
      %c1_209 = arith.constant 1 : index
      %c6_210 = arith.constant 6 : index
      %c0_211 = arith.constant 0 : index
      %361 = vector.load %arg7[%c1_209, %c6_210, %c0_211] : memref<5x8x64xf32, #tpu.memory_space<vmem>>, vector<1x1x32xf32>
      %362 = vector.shape_cast %361 : vector<1x1x32xf32> to vector<1x32xf32>
      %363 = vector.broadcast %362 : vector<1x32xf32> to vector<32x32xf32>
      %364 = arith.addf %360, %363 : vector<32x32xf32>
      %365 = vector.shape_cast %364 : vector<32x32xf32> to vector<2x16x32xf32>
      %366 = vector.shape_cast %356 : vector<2x32xf32> to vector<2x1x32xf32>
      %367 = vector.broadcast %366 : vector<2x1x32xf32> to vector<2x16x32xf32>
      %368 = arith.mulf %365, %367 : vector<2x16x32xf32>
      %cst_212 = arith.constant dense<0.000000e+00> : vector<2x16xf32>
      %369 = vector.multi_reduction <add>, %368, %cst_212 [2] : vector<2x16x32xf32> to vector<2x16xf32>
      %370 = vector.shape_cast %369 : vector<2x16xf32> to vector<2x16x1xf32>
      %cst_213 = arith.constant 3.125000e-02 : f32
      %371 = vector.broadcast %cst_213 : f32 to vector<2x16x1xf32>
      %372 = arith.mulf %370, %371 : vector<2x16x1xf32>
      %cst_214 = arith.constant dense<0xFF800000> : vector<2x16xf32>
      %373 = vector.multi_reduction <maximumf>, %368, %cst_214 [2] : vector<2x16x32xf32> to vector<2x16xf32>
      %374 = vector.shape_cast %373 : vector<2x16xf32> to vector<2x16x1xf32>
      %c1_215 = arith.constant 1 : index
      %c0_216 = arith.constant 0 : index
      %c0_217 = arith.constant 0 : index
      %375 = vector.load %arg9[%c1_215, %c0_216, %c0_217] : memref<5x16x32xf32, #tpu.memory_space<vmem>>, vector<1x16x32xf32>
      %376 = vector.shape_cast %375 : vector<1x16x32xf32> to vector<16x32xf32>
      %377 = vector.extract_strided_slice %372 {offsets = [0, 0, 0], sizes = [1, 16, 1], strides = [1, 1, 1]} : vector<2x16x1xf32> to vector<1x16x1xf32>
      %378 = vector.shape_cast %377 : vector<1x16x1xf32> to vector<16x1xf32>
      %379 = vector.extract_strided_slice %374 {offsets = [0, 0, 0], sizes = [1, 16, 1], strides = [1, 1, 1]} : vector<2x16x1xf32> to vector<1x16x1xf32>
      %380 = vector.shape_cast %379 : vector<1x16x1xf32> to vector<16x1xf32>
      %381 = tpu.concatenate %378, %380 in 0 : vector<16x1xf32>, vector<16x1xf32> -> vector<32x1xf32>
      %cst_218 = arith.constant dense<0.000000e+00> : vector<16x1xf32>
      %382 = tpu.matmul %376, %381, %cst_218 {dimension_numbers = #tpu.dot_dimension_numbers<[1], [0], [0], [1], [0, 0, 1, 1], [], []>} : vector<16x32xf32>, vector<32x1xf32>, vector<16x1xf32> -> vector<16x1xf32>
      %383 = vector.extract_strided_slice %372 {offsets = [1, 0, 0], sizes = [1, 16, 1], strides = [1, 1, 1]} : vector<2x16x1xf32> to vector<1x16x1xf32>
      %384 = vector.shape_cast %383 : vector<1x16x1xf32> to vector<16x1xf32>
      %385 = vector.extract_strided_slice %374 {offsets = [1, 0, 0], sizes = [1, 16, 1], strides = [1, 1, 1]} : vector<2x16x1xf32> to vector<1x16x1xf32>
      %386 = vector.shape_cast %385 : vector<1x16x1xf32> to vector<16x1xf32>
      %387 = tpu.concatenate %384, %386 in 0 : vector<16x1xf32>, vector<16x1xf32> -> vector<32x1xf32>
      %cst_219 = arith.constant dense<0.000000e+00> : vector<16x1xf32>
      %388 = tpu.matmul %376, %387, %cst_219 {dimension_numbers = #tpu.dot_dimension_numbers<[1], [0], [0], [1], [0, 0, 1, 1], [], []>} : vector<16x32xf32>, vector<32x1xf32>, vector<16x1xf32> -> vector<16x1xf32>
      %389 = vector.shape_cast %382 : vector<16x1xf32> to vector<1x16x1xf32>
      %390 = vector.shape_cast %388 : vector<16x1xf32> to vector<1x16x1xf32>
      %391 = tpu.concatenate %389, %390 in 0 : vector<1x16x1xf32>, vector<1x16x1xf32> -> vector<2x16x1xf32>
      %c1_220 = arith.constant 1 : index
      %c7_221 = arith.constant 7 : index
      %c0_222 = arith.constant 0 : index
      %392 = vector.load %arg7[%c1_220, %c7_221, %c0_222] : memref<5x8x64xf32, #tpu.memory_space<vmem>>, vector<1x1x1xf32>
      %393 = vector.shape_cast %392 : vector<1x1x1xf32> to vector<1x1xf32>
      %394 = vector.shape_cast %393 : vector<1x1xf32> to vector<1x1x1xf32>
      %395 = vector.broadcast %394 : vector<1x1x1xf32> to vector<2x16x1xf32>
      %396 = arith.addf %391, %395 : vector<2x16x1xf32>
      %397 = arith.negf %396 : vector<2x16x1xf32>
      %398 = math.exp %397 : vector<2x16x1xf32>
      %cst_223 = arith.constant 1.000000e+00 : f32
      %399 = vector.broadcast %cst_223 : f32 to vector<2x16x1xf32>
      %400 = arith.addf %399, %398 : vector<2x16x1xf32>
      %401 = arith.divf %399, %400 : vector<2x16x1xf32>
      %402 = vector.broadcast %401 : vector<2x16x1xf32> to vector<2x16x32xf32>
      %403 = arith.mulf %368, %402 : vector<2x16x32xf32>
      %c1_224 = arith.constant 1 : index
      %c2_225 = arith.constant 2 : index
      %c0_226 = arith.constant 0 : index
      %c0_227 = arith.constant 0 : index
      %404 = vector.load %arg8[%c1_224, %c2_225, %c0_226, %c0_227] : memref<5x4x16x32xf32, #tpu.memory_space<vmem>>, vector<1x1x16x32xf32>
      %405 = vector.shape_cast %404 : vector<1x1x16x32xf32> to vector<16x32xf32>
      %c1_228 = arith.constant 1 : index
      %c3_229 = arith.constant 3 : index
      %c0_230 = arith.constant 0 : index
      %c0_231 = arith.constant 0 : index
      %406 = vector.load %arg8[%c1_228, %c3_229, %c0_230, %c0_231] : memref<5x4x16x32xf32, #tpu.memory_space<vmem>>, vector<1x1x16x32xf32>
      %407 = vector.shape_cast %406 : vector<1x1x16x32xf32> to vector<16x32xf32>
      %cst_232 = arith.constant dense<0.000000e+00> : vector<2x16xf32>
      %408 = vector.multi_reduction <add>, %403, %cst_232 [2] : vector<2x16x32xf32> to vector<2x16xf32>
      %409 = vector.shape_cast %408 : vector<2x16xf32> to vector<2x16x1xf32>
      %cst_233 = arith.constant dense<0.000000e+00> : vector<2x1xf32>
      %410 = vector.multi_reduction <add>, %409, %cst_233 [1] : vector<2x16x1xf32> to vector<2x1xf32>
      %411 = vector.shape_cast %410 : vector<2x1xf32> to vector<2x1x1xf32>
      %cst_234 = arith.constant 0.001953125 : f32
      %412 = vector.broadcast %cst_234 : f32 to vector<2x1x1xf32>
      %413 = arith.mulf %411, %412 : vector<2x1x1xf32>
      %414 = vector.broadcast %413 : vector<2x1x1xf32> to vector<2x16x32xf32>
      %415 = arith.subf %403, %414 : vector<2x16x32xf32>
      %416 = arith.mulf %415, %415 : vector<2x16x32xf32>
      %cst_235 = arith.constant dense<0.000000e+00> : vector<2x16xf32>
      %417 = vector.multi_reduction <add>, %416, %cst_235 [2] : vector<2x16x32xf32> to vector<2x16xf32>
      %418 = vector.shape_cast %417 : vector<2x16xf32> to vector<2x16x1xf32>
      %cst_236 = arith.constant dense<0.000000e+00> : vector<2x1xf32>
      %419 = vector.multi_reduction <add>, %418, %cst_236 [1] : vector<2x16x1xf32> to vector<2x1xf32>
      %420 = vector.shape_cast %419 : vector<2x1xf32> to vector<2x1x1xf32>
      %cst_237 = arith.constant 0.001953125 : f32
      %421 = vector.broadcast %cst_237 : f32 to vector<2x1x1xf32>
      %422 = arith.mulf %420, %421 : vector<2x1x1xf32>
      %cst_238 = arith.constant 9.99999974E-6 : f32
      %423 = vector.broadcast %cst_238 : f32 to vector<2x1x1xf32>
      %424 = arith.addf %422, %423 : vector<2x1x1xf32>
      %425 = math.rsqrt %424 : vector<2x1x1xf32>
      %426 = vector.broadcast %425 : vector<2x1x1xf32> to vector<2x16x32xf32>
      %427 = arith.mulf %415, %426 : vector<2x16x32xf32>
      %428 = vector.shape_cast %405 : vector<16x32xf32> to vector<1x16x32xf32>
      %429 = vector.broadcast %428 : vector<1x16x32xf32> to vector<2x16x32xf32>
      %430 = arith.mulf %427, %429 : vector<2x16x32xf32>
      %431 = vector.shape_cast %407 : vector<16x32xf32> to vector<1x16x32xf32>
      %432 = vector.broadcast %431 : vector<1x16x32xf32> to vector<2x16x32xf32>
      %433 = arith.addf %430, %432 : vector<2x16x32xf32>
      %434 = vector.shape_cast %433 : vector<2x16x32xf32> to vector<32x32xf32>
      %c0_239 = arith.constant 0 : index
      %c32 = arith.constant 32 : index
      %435 = vector.load %arg10[%c0_239, %c32] : memref<32x128xf32, #tpu.memory_space<vmem>>, vector<32x32xf32>
      tpu.vector_store %arg10[%c0_239, %c32], %434 {strides = array<i32>} : memref<32x128xf32, #tpu.memory_space<vmem>>, vector<32x32xf32>,
      %c2_240 = arith.constant 2 : index
      %c0_241 = arith.constant 0 : index
      %c0_242 = arith.constant 0 : index
      %c0_243 = arith.constant 0 : index
      %436 = vector.load %arg1[%c2_240, %c0_241, %c0_242, %c0_243] : memref<5x2x16x288xf32, #tpu.memory_space<vmem>>, vector<1x2x16x96xf32>
      %437 = vector.shape_cast %436 : vector<1x2x16x96xf32> to vector<2x16x96xf32>
      %c2_244 = arith.constant 2 : index
      %c0_245 = arith.constant 0 : index
      %c0_246 = arith.constant 0 : index
      %c0_247 = arith.constant 0 : index
      %438 = vector.load %arg2[%c2_244, %c0_245, %c0_246, %c0_247] : memref<5x2x16x288xf32, #tpu.memory_space<vmem>>, vector<1x1x16x96xf32>
      %439 = vector.shape_cast %438 : vector<1x1x16x96xf32> to vector<16x96xf32>
      %c2_248 = arith.constant 2 : index
      %c1_249 = arith.constant 1 : index
      %c0_250 = arith.constant 0 : index
      %c0_251 = arith.constant 0 : index
      %440 = vector.load %arg2[%c2_248, %c1_249, %c0_250, %c0_251] : memref<5x2x16x288xf32, #tpu.memory_space<vmem>>, vector<1x1x16x96xf32>
      %441 = vector.shape_cast %440 : vector<1x1x16x96xf32> to vector<16x96xf32>
      %cst_252 = arith.constant dense<0.000000e+00> : vector<2x16xf32>
      %442 = vector.multi_reduction <add>, %437, %cst_252 [2] : vector<2x16x96xf32> to vector<2x16xf32>
      %443 = vector.shape_cast %442 : vector<2x16xf32> to vector<2x16x1xf32>
      %cst_253 = arith.constant dense<0.000000e+00> : vector<2x1xf32>
      %444 = vector.multi_reduction <add>, %443, %cst_253 [1] : vector<2x16x1xf32> to vector<2x1xf32>
      %445 = vector.shape_cast %444 : vector<2x1xf32> to vector<2x1x1xf32>
      %cst_254 = arith.constant 6.51041686E-4 : f32
      %446 = vector.broadcast %cst_254 : f32 to vector<2x1x1xf32>
      %447 = arith.mulf %445, %446 : vector<2x1x1xf32>
      %448 = vector.broadcast %447 : vector<2x1x1xf32> to vector<2x16x96xf32>
      %449 = arith.subf %437, %448 : vector<2x16x96xf32>
      %450 = arith.mulf %449, %449 : vector<2x16x96xf32>
      %cst_255 = arith.constant dense<0.000000e+00> : vector<2x16xf32>
      %451 = vector.multi_reduction <add>, %450, %cst_255 [2] : vector<2x16x96xf32> to vector<2x16xf32>
      %452 = vector.shape_cast %451 : vector<2x16xf32> to vector<2x16x1xf32>
      %cst_256 = arith.constant dense<0.000000e+00> : vector<2x1xf32>
      %453 = vector.multi_reduction <add>, %452, %cst_256 [1] : vector<2x16x1xf32> to vector<2x1xf32>
      %454 = vector.shape_cast %453 : vector<2x1xf32> to vector<2x1x1xf32>
      %cst_257 = arith.constant 6.51041686E-4 : f32
      %455 = vector.broadcast %cst_257 : f32 to vector<2x1x1xf32>
      %456 = arith.mulf %454, %455 : vector<2x1x1xf32>
      %cst_258 = arith.constant 9.99999974E-6 : f32
      %457 = vector.broadcast %cst_258 : f32 to vector<2x1x1xf32>
      %458 = arith.addf %456, %457 : vector<2x1x1xf32>
      %459 = math.rsqrt %458 : vector<2x1x1xf32>
      %460 = vector.broadcast %459 : vector<2x1x1xf32> to vector<2x16x96xf32>
      %461 = arith.mulf %449, %460 : vector<2x16x96xf32>
      %462 = vector.shape_cast %439 : vector<16x96xf32> to vector<1x16x96xf32>
      %463 = vector.broadcast %462 : vector<1x16x96xf32> to vector<2x16x96xf32>
      %464 = arith.mulf %461, %463 : vector<2x16x96xf32>
      %465 = vector.shape_cast %441 : vector<16x96xf32> to vector<1x16x96xf32>
      %466 = vector.broadcast %465 : vector<1x16x96xf32> to vector<2x16x96xf32>
      %467 = arith.addf %464, %466 : vector<2x16x96xf32>
      %468 = math.tanh %467 : vector<2x16x96xf32>
      %469 = vector.shape_cast %468 : vector<2x16x96xf32> to vector<32x96xf32>
      %c2_259 = arith.constant 2 : index
      %c0_260 = arith.constant 0 : index
      %c0_261 = arith.constant 0 : index
      %470 = vector.load %arg3[%c2_259, %c0_260, %c0_261] : memref<5x288x64xf32, #tpu.memory_space<vmem>>, vector<1x96x64xf32>
      %471 = vector.shape_cast %470 : vector<1x96x64xf32> to vector<96x64xf32>
      %cst_262 = arith.constant dense<0.000000e+00> : vector<32x64xf32>
      %472 = tpu.matmul %469, %471, %cst_262 {dimension_numbers = #tpu.dot_dimension_numbers<[1], [0], [0], [1], [0, 0, 1, 1], [], []>} : vector<32x96xf32>, vector<96x64xf32>, vector<32x64xf32> -> vector<32x64xf32>
      %c2_263 = arith.constant 2 : index
      %c0_264 = arith.constant 0 : index
      %c0_265 = arith.constant 0 : index
      %473 = vector.load %arg7[%c2_263, %c0_264, %c0_265] : memref<5x8x64xf32, #tpu.memory_space<vmem>>, vector<1x1x64xf32>
      %474 = vector.shape_cast %473 : vector<1x1x64xf32> to vector<1x64xf32>
      %475 = vector.broadcast %474 : vector<1x64xf32> to vector<32x64xf32>
      %476 = arith.addf %472, %475 : vector<32x64xf32>
      %477 = math.tanh %476 : vector<32x64xf32>
      %c2_266 = arith.constant 2 : index
      %c0_267 = arith.constant 0 : index
      %c0_268 = arith.constant 0 : index
      %c0_269 = arith.constant 0 : index
      %478 = vector.load %arg4[%c2_266, %c0_267, %c0_268, %c0_269] : memref<5x2x64x32xf32, #tpu.memory_space<vmem>>, vector<1x1x64x32xf32>
      %479 = vector.shape_cast %478 : vector<1x1x64x32xf32> to vector<64x32xf32>
      %cst_270 = arith.constant dense<0.000000e+00> : vector<32x32xf32>
      %480 = tpu.matmul %477, %479, %cst_270 {dimension_numbers = #tpu.dot_dimension_numbers<[1], [0], [0], [1], [0, 0, 1, 1], [], []>} : vector<32x64xf32>, vector<64x32xf32>, vector<32x32xf32> -> vector<32x32xf32>
      %c2_271 = arith.constant 2 : index
      %c4_272 = arith.constant 4 : index
      %c0_273 = arith.constant 0 : index
      %481 = vector.load %arg7[%c2_271, %c4_272, %c0_273] : memref<5x8x64xf32, #tpu.memory_space<vmem>>, vector<1x1x32xf32>
      %482 = vector.shape_cast %481 : vector<1x1x32xf32> to vector<1x32xf32>
      %483 = vector.broadcast %482 : vector<1x32xf32> to vector<32x32xf32>
      %484 = arith.addf %480, %483 : vector<32x32xf32>
      %c2_274 = arith.constant 2 : index
      %c0_275 = arith.constant 0 : index
      %c0_276 = arith.constant 0 : index
      %c0_277 = arith.constant 0 : index
      %485 = vector.load %arg5[%c2_274, %c0_275, %c0_276, %c0_277] : memref<5x3x32x64xf32, #tpu.memory_space<vmem>>, vector<1x1x32x64xf32>
      %486 = vector.shape_cast %485 : vector<1x1x32x64xf32> to vector<32x64xf32>
      %cst_278 = arith.constant dense<0.000000e+00> : vector<32x64xf32>
      %487 = tpu.matmul %484, %486, %cst_278 {dimension_numbers = #tpu.dot_dimension_numbers<[1], [0], [0], [1], [0, 0, 1, 1], [], []>} : vector<32x32xf32>, vector<32x64xf32>, vector<32x64xf32> -> vector<32x64xf32>
      %c2_279 = arith.constant 2 : index
      %c1_280 = arith.constant 1 : index
      %c0_281 = arith.constant 0 : index
      %488 = vector.load %arg7[%c2_279, %c1_280, %c0_281] : memref<5x8x64xf32, #tpu.memory_space<vmem>>, vector<1x1x64xf32>
      %489 = vector.shape_cast %488 : vector<1x1x64xf32> to vector<1x64xf32>
      %490 = vector.broadcast %489 : vector<1x64xf32> to vector<32x64xf32>
      %491 = arith.addf %487, %490 : vector<32x64xf32>
      %492 = vector.extract_strided_slice %491 {offsets = [0, 0], sizes = [32, 32], strides = [1, 1]} : vector<32x64xf32> to vector<32x32xf32>
      %493 = vector.extract_strided_slice %491 {offsets = [0, 32], sizes = [32, 32], strides = [1, 1]} : vector<32x64xf32> to vector<32x32xf32>
      %494 = arith.negf %493 : vector<32x32xf32>
      %495 = math.exp %494 : vector<32x32xf32>
      %cst_282 = arith.constant 1.000000e+00 : f32
      %496 = vector.broadcast %cst_282 : f32 to vector<32x32xf32>
      %497 = arith.addf %496, %495 : vector<32x32xf32>
      %498 = arith.divf %496, %497 : vector<32x32xf32>
      %499 = arith.mulf %492, %498 : vector<32x32xf32>
      %500 = vector.shape_cast %499 : vector<32x32xf32> to vector<2x16x32xf32>
      %c2_283 = arith.constant 2 : index
      %c0_284 = arith.constant 0 : index
      %c0_285 = arith.constant 0 : index
      %c0_286 = arith.constant 0 : index
      %501 = vector.load %arg8[%c2_283, %c0_284, %c0_285, %c0_286] : memref<5x4x16x32xf32, #tpu.memory_space<vmem>>, vector<1x1x16x32xf32>
      %502 = vector.shape_cast %501 : vector<1x1x16x32xf32> to vector<16x32xf32>
      %c2_287 = arith.constant 2 : index
      %c1_288 = arith.constant 1 : index
      %c0_289 = arith.constant 0 : index
      %c0_290 = arith.constant 0 : index
      %503 = vector.load %arg8[%c2_287, %c1_288, %c0_289, %c0_290] : memref<5x4x16x32xf32, #tpu.memory_space<vmem>>, vector<1x1x16x32xf32>
      %504 = vector.shape_cast %503 : vector<1x1x16x32xf32> to vector<16x32xf32>
      %cst_291 = arith.constant dense<0.000000e+00> : vector<2x16xf32>
      %505 = vector.multi_reduction <add>, %500, %cst_291 [2] : vector<2x16x32xf32> to vector<2x16xf32>
      %506 = vector.shape_cast %505 : vector<2x16xf32> to vector<2x16x1xf32>
      %cst_292 = arith.constant dense<0.000000e+00> : vector<2x1xf32>
      %507 = vector.multi_reduction <add>, %506, %cst_292 [1] : vector<2x16x1xf32> to vector<2x1xf32>
      %508 = vector.shape_cast %507 : vector<2x1xf32> to vector<2x1x1xf32>
      %cst_293 = arith.constant 0.001953125 : f32
      %509 = vector.broadcast %cst_293 : f32 to vector<2x1x1xf32>
      %510 = arith.mulf %508, %509 : vector<2x1x1xf32>
      %511 = vector.broadcast %510 : vector<2x1x1xf32> to vector<2x16x32xf32>
      %512 = arith.subf %500, %511 : vector<2x16x32xf32>
      %513 = arith.mulf %512, %512 : vector<2x16x32xf32>
      %cst_294 = arith.constant dense<0.000000e+00> : vector<2x16xf32>
      %514 = vector.multi_reduction <add>, %513, %cst_294 [2] : vector<2x16x32xf32> to vector<2x16xf32>
      %515 = vector.shape_cast %514 : vector<2x16xf32> to vector<2x16x1xf32>
      %cst_295 = arith.constant dense<0.000000e+00> : vector<2x1xf32>
      %516 = vector.multi_reduction <add>, %515, %cst_295 [1] : vector<2x16x1xf32> to vector<2x1xf32>
      %517 = vector.shape_cast %516 : vector<2x1xf32> to vector<2x1x1xf32>
      %cst_296 = arith.constant 0.001953125 : f32
      %518 = vector.broadcast %cst_296 : f32 to vector<2x1x1xf32>
      %519 = arith.mulf %517, %518 : vector<2x1x1xf32>
      %cst_297 = arith.constant 9.99999974E-6 : f32
      %520 = vector.broadcast %cst_297 : f32 to vector<2x1x1xf32>
      %521 = arith.addf %519, %520 : vector<2x1x1xf32>
      %522 = math.rsqrt %521 : vector<2x1x1xf32>
      %523 = vector.broadcast %522 : vector<2x1x1xf32> to vector<2x16x32xf32>
      %524 = arith.mulf %512, %523 : vector<2x16x32xf32>
      %525 = vector.shape_cast %502 : vector<16x32xf32> to vector<1x16x32xf32>
      %526 = vector.broadcast %525 : vector<1x16x32xf32> to vector<2x16x32xf32>
      %527 = arith.mulf %524, %526 : vector<2x16x32xf32>
      %528 = vector.shape_cast %504 : vector<16x32xf32> to vector<1x16x32xf32>
      %529 = vector.broadcast %528 : vector<1x16x32xf32> to vector<2x16x32xf32>
      %530 = arith.addf %527, %529 : vector<2x16x32xf32>
      %cst_298 = arith.constant dense<0.000000e+00> : vector<2x32xf32>
      %531 = vector.multi_reduction <add>, %530, %cst_298 [1] : vector<2x16x32xf32> to vector<2x32xf32>
      %532 = vector.shape_cast %531 : vector<2x32xf32> to vector<2x1x32xf32>
      %cst_299 = arith.constant 6.250000e-02 : f32
      %533 = vector.broadcast %cst_299 : f32 to vector<2x1x32xf32>
      %534 = arith.mulf %532, %533 : vector<2x1x32xf32>
      %cst_300 = arith.constant dense<0xFF800000> : vector<2x32xf32>
      %535 = vector.multi_reduction <maximumf>, %530, %cst_300 [1] : vector<2x16x32xf32> to vector<2x32xf32>
      %536 = vector.shape_cast %535 : vector<2x32xf32> to vector<2x1x32xf32>
      %537 = tpu.concatenate %534, %536 in 1 : vector<2x1x32xf32>, vector<2x1x32xf32> -> vector<2x2x32xf32>
      %538 = vector.shape_cast %537 : vector<2x2x32xf32> to vector<4x32xf32>
      %c2_301 = arith.constant 2 : index
      %c2_302 = arith.constant 2 : index
      %c0_303 = arith.constant 0 : index
      %c0_304 = arith.constant 0 : index
      %539 = vector.load %arg5[%c2_301, %c2_302, %c0_303, %c0_304] : memref<5x3x32x64xf32, #tpu.memory_space<vmem>>, vector<1x1x32x64xf32>
      %540 = vector.shape_cast %539 : vector<1x1x32x64xf32> to vector<32x64xf32>
      %cst_305 = arith.constant dense<0.000000e+00> : vector<4x64xf32>
      %541 = tpu.matmul %538, %540, %cst_305 {dimension_numbers = #tpu.dot_dimension_numbers<[1], [0], [0], [1], [0, 0, 1, 1], [], []>} : vector<4x32xf32>, vector<32x64xf32>, vector<4x64xf32> -> vector<4x64xf32>
      %c2_306 = arith.constant 2 : index
      %c2_307 = arith.constant 2 : index
      %c0_308 = arith.constant 0 : index
      %542 = vector.load %arg7[%c2_306, %c2_307, %c0_308] : memref<5x8x64xf32, #tpu.memory_space<vmem>>, vector<1x1x64xf32>
      %543 = vector.shape_cast %542 : vector<1x1x64xf32> to vector<1x64xf32>
      %544 = vector.broadcast %543 : vector<1x64xf32> to vector<4x64xf32>
      %545 = arith.addf %541, %544 : vector<4x64xf32>
      %cst_309 = arith.constant 0.000000e+00 : f32
      %546 = vector.broadcast %cst_309 : f32 to vector<4x64xf32>
      %547 = arith.maximumf %545, %546 : vector<4x64xf32>
      %c2_310 = arith.constant 2 : index
      %c1_311 = arith.constant 1 : index
      %c0_312 = arith.constant 0 : index
      %c0_313 = arith.constant 0 : index
      %548 = vector.load %arg4[%c2_310, %c1_311, %c0_312, %c0_313] : memref<5x2x64x32xf32, #tpu.memory_space<vmem>>, vector<1x1x64x32xf32>
      %549 = vector.shape_cast %548 : vector<1x1x64x32xf32> to vector<64x32xf32>
      %cst_314 = arith.constant dense<0.000000e+00> : vector<4x32xf32>
      %550 = tpu.matmul %547, %549, %cst_314 {dimension_numbers = #tpu.dot_dimension_numbers<[1], [0], [0], [1], [0, 0, 1, 1], [], []>} : vector<4x64xf32>, vector<64x32xf32>, vector<4x32xf32> -> vector<4x32xf32>
      %c2_315 = arith.constant 2 : index
      %c5_316 = arith.constant 5 : index
      %c0_317 = arith.constant 0 : index
      %551 = vector.load %arg7[%c2_315, %c5_316, %c0_317] : memref<5x8x64xf32, #tpu.memory_space<vmem>>, vector<1x1x32xf32>
      %552 = vector.shape_cast %551 : vector<1x1x32xf32> to vector<1x32xf32>
      %553 = vector.broadcast %552 : vector<1x32xf32> to vector<4x32xf32>
      %554 = arith.addf %550, %553 : vector<4x32xf32>
      %555 = vector.shape_cast %554 : vector<4x32xf32> to vector<2x2x32xf32>
      %cst_318 = arith.constant dense<0.000000e+00> : vector<2x32xf32>
      %556 = vector.multi_reduction <add>, %555, %cst_318 [1] : vector<2x2x32xf32> to vector<2x32xf32>
      %c2_319 = arith.constant 2 : index
      %c1_320 = arith.constant 1 : index
      %c0_321 = arith.constant 0 : index
      %c0_322 = arith.constant 0 : index
      %557 = vector.load %arg5[%c2_319, %c1_320, %c0_321, %c0_322] : memref<5x3x32x64xf32, #tpu.memory_space<vmem>>, vector<1x1x32x64xf32>
      %558 = vector.shape_cast %557 : vector<1x1x32x64xf32> to vector<32x64xf32>
      %cst_323 = arith.constant dense<0.000000e+00> : vector<2x64xf32>
      %559 = tpu.matmul %556, %558, %cst_323 {dimension_numbers = #tpu.dot_dimension_numbers<[1], [0], [0], [1], [0, 0, 1, 1], [], []>} : vector<2x32xf32>, vector<32x64xf32>, vector<2x64xf32> -> vector<2x64xf32>
      %c2_324 = arith.constant 2 : index
      %c3_325 = arith.constant 3 : index
      %c0_326 = arith.constant 0 : index
      %560 = vector.load %arg7[%c2_324, %c3_325, %c0_326] : memref<5x8x64xf32, #tpu.memory_space<vmem>>, vector<1x1x64xf32>
      %561 = vector.shape_cast %560 : vector<1x1x64xf32> to vector<1x64xf32>
      %562 = vector.broadcast %561 : vector<1x64xf32> to vector<2x64xf32>
      %563 = arith.addf %559, %562 : vector<2x64xf32>
      %564 = vector.extract_strided_slice %563 {offsets = [0, 0], sizes = [2, 32], strides = [1, 1]} : vector<2x64xf32> to vector<2x32xf32>
      %565 = vector.extract_strided_slice %563 {offsets = [0, 32], sizes = [2, 32], strides = [1, 1]} : vector<2x64xf32> to vector<2x32xf32>
      %566 = arith.negf %565 : vector<2x32xf32>
      %567 = math.exp %566 : vector<2x32xf32>
      %cst_327 = arith.constant 1.000000e+00 : f32
      %568 = vector.broadcast %cst_327 : f32 to vector<2x32xf32>
      %569 = arith.addf %568, %567 : vector<2x32xf32>
      %570 = arith.divf %568, %569 : vector<2x32xf32>
      %571 = arith.mulf %564, %570 : vector<2x32xf32>
      %572 = vector.shape_cast %530 : vector<2x16x32xf32> to vector<32x32xf32>
      %c2_328 = arith.constant 2 : index
      %c0_329 = arith.constant 0 : index
      %c0_330 = arith.constant 0 : index
      %573 = vector.load %arg6[%c2_328, %c0_329, %c0_330] : memref<5x32x32xf32, #tpu.memory_space<vmem>>, vector<1x32x32xf32>
      %574 = vector.shape_cast %573 : vector<1x32x32xf32> to vector<32x32xf32>
      %cst_331 = arith.constant dense<0.000000e+00> : vector<32x32xf32>
      %575 = tpu.matmul %572, %574, %cst_331 {dimension_numbers = #tpu.dot_dimension_numbers<[1], [0], [0], [1], [0, 0, 1, 1], [], []>} : vector<32x32xf32>, vector<32x32xf32>, vector<32x32xf32> -> vector<32x32xf32>
      %c2_332 = arith.constant 2 : index
      %c6_333 = arith.constant 6 : index
      %c0_334 = arith.constant 0 : index
      %576 = vector.load %arg7[%c2_332, %c6_333, %c0_334] : memref<5x8x64xf32, #tpu.memory_space<vmem>>, vector<1x1x32xf32>
      %577 = vector.shape_cast %576 : vector<1x1x32xf32> to vector<1x32xf32>
      %578 = vector.broadcast %577 : vector<1x32xf32> to vector<32x32xf32>
      %579 = arith.addf %575, %578 : vector<32x32xf32>
      %580 = vector.shape_cast %579 : vector<32x32xf32> to vector<2x16x32xf32>
      %581 = vector.shape_cast %571 : vector<2x32xf32> to vector<2x1x32xf32>
      %582 = vector.broadcast %581 : vector<2x1x32xf32> to vector<2x16x32xf32>
      %583 = arith.mulf %580, %582 : vector<2x16x32xf32>
      %cst_335 = arith.constant dense<0.000000e+00> : vector<2x16xf32>
      %584 = vector.multi_reduction <add>, %583, %cst_335 [2] : vector<2x16x32xf32> to vector<2x16xf32>
      %585 = vector.shape_cast %584 : vector<2x16xf32> to vector<2x16x1xf32>
      %cst_336 = arith.constant 3.125000e-02 : f32
      %586 = vector.broadcast %cst_336 : f32 to vector<2x16x1xf32>
      %587 = arith.mulf %585, %586 : vector<2x16x1xf32>
      %cst_337 = arith.constant dense<0xFF800000> : vector<2x16xf32>
      %588 = vector.multi_reduction <maximumf>, %583, %cst_337 [2] : vector<2x16x32xf32> to vector<2x16xf32>
      %589 = vector.shape_cast %588 : vector<2x16xf32> to vector<2x16x1xf32>
      %c2_338 = arith.constant 2 : index
      %c0_339 = arith.constant 0 : index
      %c0_340 = arith.constant 0 : index
      %590 = vector.load %arg9[%c2_338, %c0_339, %c0_340] : memref<5x16x32xf32, #tpu.memory_space<vmem>>, vector<1x16x32xf32>
      %591 = vector.shape_cast %590 : vector<1x16x32xf32> to vector<16x32xf32>
      %592 = vector.extract_strided_slice %587 {offsets = [0, 0, 0], sizes = [1, 16, 1], strides = [1, 1, 1]} : vector<2x16x1xf32> to vector<1x16x1xf32>
      %593 = vector.shape_cast %592 : vector<1x16x1xf32> to vector<16x1xf32>
      %594 = vector.extract_strided_slice %589 {offsets = [0, 0, 0], sizes = [1, 16, 1], strides = [1, 1, 1]} : vector<2x16x1xf32> to vector<1x16x1xf32>
      %595 = vector.shape_cast %594 : vector<1x16x1xf32> to vector<16x1xf32>
      %596 = tpu.concatenate %593, %595 in 0 : vector<16x1xf32>, vector<16x1xf32> -> vector<32x1xf32>
      %cst_341 = arith.constant dense<0.000000e+00> : vector<16x1xf32>
      %597 = tpu.matmul %591, %596, %cst_341 {dimension_numbers = #tpu.dot_dimension_numbers<[1], [0], [0], [1], [0, 0, 1, 1], [], []>} : vector<16x32xf32>, vector<32x1xf32>, vector<16x1xf32> -> vector<16x1xf32>
      %598 = vector.extract_strided_slice %587 {offsets = [1, 0, 0], sizes = [1, 16, 1], strides = [1, 1, 1]} : vector<2x16x1xf32> to vector<1x16x1xf32>
      %599 = vector.shape_cast %598 : vector<1x16x1xf32> to vector<16x1xf32>
      %600 = vector.extract_strided_slice %589 {offsets = [1, 0, 0], sizes = [1, 16, 1], strides = [1, 1, 1]} : vector<2x16x1xf32> to vector<1x16x1xf32>
      %601 = vector.shape_cast %600 : vector<1x16x1xf32> to vector<16x1xf32>
      %602 = tpu.concatenate %599, %601 in 0 : vector<16x1xf32>, vector<16x1xf32> -> vector<32x1xf32>
      %cst_342 = arith.constant dense<0.000000e+00> : vector<16x1xf32>
      %603 = tpu.matmul %591, %602, %cst_342 {dimension_numbers = #tpu.dot_dimension_numbers<[1], [0], [0], [1], [0, 0, 1, 1], [], []>} : vector<16x32xf32>, vector<32x1xf32>, vector<16x1xf32> -> vector<16x1xf32>
      %604 = vector.shape_cast %597 : vector<16x1xf32> to vector<1x16x1xf32>
      %605 = vector.shape_cast %603 : vector<16x1xf32> to vector<1x16x1xf32>
      %606 = tpu.concatenate %604, %605 in 0 : vector<1x16x1xf32>, vector<1x16x1xf32> -> vector<2x16x1xf32>
      %c2_343 = arith.constant 2 : index
      %c7_344 = arith.constant 7 : index
      %c0_345 = arith.constant 0 : index
      %607 = vector.load %arg7[%c2_343, %c7_344, %c0_345] : memref<5x8x64xf32, #tpu.memory_space<vmem>>, vector<1x1x1xf32>
      %608 = vector.shape_cast %607 : vector<1x1x1xf32> to vector<1x1xf32>
      %609 = vector.shape_cast %608 : vector<1x1xf32> to vector<1x1x1xf32>
      %610 = vector.broadcast %609 : vector<1x1x1xf32> to vector<2x16x1xf32>
      %611 = arith.addf %606, %610 : vector<2x16x1xf32>
      %612 = arith.negf %611 : vector<2x16x1xf32>
      %613 = math.exp %612 : vector<2x16x1xf32>
      %cst_346 = arith.constant 1.000000e+00 : f32
      %614 = vector.broadcast %cst_346 : f32 to vector<2x16x1xf32>
      %615 = arith.addf %614, %613 : vector<2x16x1xf32>
      %616 = arith.divf %614, %615 : vector<2x16x1xf32>
      %617 = vector.broadcast %616 : vector<2x16x1xf32> to vector<2x16x32xf32>
      %618 = arith.mulf %583, %617 : vector<2x16x32xf32>
      %c2_347 = arith.constant 2 : index
      %c2_348 = arith.constant 2 : index
      %c0_349 = arith.constant 0 : index
      %c0_350 = arith.constant 0 : index
      %619 = vector.load %arg8[%c2_347, %c2_348, %c0_349, %c0_350] : memref<5x4x16x32xf32, #tpu.memory_space<vmem>>, vector<1x1x16x32xf32>
      %620 = vector.shape_cast %619 : vector<1x1x16x32xf32> to vector<16x32xf32>
      %c2_351 = arith.constant 2 : index
      %c3_352 = arith.constant 3 : index
      %c0_353 = arith.constant 0 : index
      %c0_354 = arith.constant 0 : index
      %621 = vector.load %arg8[%c2_351, %c3_352, %c0_353, %c0_354] : memref<5x4x16x32xf32, #tpu.memory_space<vmem>>, vector<1x1x16x32xf32>
      %622 = vector.shape_cast %621 : vector<1x1x16x32xf32> to vector<16x32xf32>
      %cst_355 = arith.constant dense<0.000000e+00> : vector<2x16xf32>
      %623 = vector.multi_reduction <add>, %618, %cst_355 [2] : vector<2x16x32xf32> to vector<2x16xf32>
      %624 = vector.shape_cast %623 : vector<2x16xf32> to vector<2x16x1xf32>
      %cst_356 = arith.constant dense<0.000000e+00> : vector<2x1xf32>
      %625 = vector.multi_reduction <add>, %624, %cst_356 [1] : vector<2x16x1xf32> to vector<2x1xf32>
      %626 = vector.shape_cast %625 : vector<2x1xf32> to vector<2x1x1xf32>
      %cst_357 = arith.constant 0.001953125 : f32
      %627 = vector.broadcast %cst_357 : f32 to vector<2x1x1xf32>
      %628 = arith.mulf %626, %627 : vector<2x1x1xf32>
      %629 = vector.broadcast %628 : vector<2x1x1xf32> to vector<2x16x32xf32>
      %630 = arith.subf %618, %629 : vector<2x16x32xf32>
      %631 = arith.mulf %630, %630 : vector<2x16x32xf32>
      %cst_358 = arith.constant dense<0.000000e+00> : vector<2x16xf32>
      %632 = vector.multi_reduction <add>, %631, %cst_358 [2] : vector<2x16x32xf32> to vector<2x16xf32>
      %633 = vector.shape_cast %632 : vector<2x16xf32> to vector<2x16x1xf32>
      %cst_359 = arith.constant dense<0.000000e+00> : vector<2x1xf32>
      %634 = vector.multi_reduction <add>, %633, %cst_359 [1] : vector<2x16x1xf32> to vector<2x1xf32>
      %635 = vector.shape_cast %634 : vector<2x1xf32> to vector<2x1x1xf32>
      %cst_360 = arith.constant 0.001953125 : f32
      %636 = vector.broadcast %cst_360 : f32 to vector<2x1x1xf32>
      %637 = arith.mulf %635, %636 : vector<2x1x1xf32>
      %cst_361 = arith.constant 9.99999974E-6 : f32
      %638 = vector.broadcast %cst_361 : f32 to vector<2x1x1xf32>
      %639 = arith.addf %637, %638 : vector<2x1x1xf32>
      %640 = math.rsqrt %639 : vector<2x1x1xf32>
      %641 = vector.broadcast %640 : vector<2x1x1xf32> to vector<2x16x32xf32>
      %642 = arith.mulf %630, %641 : vector<2x16x32xf32>
      %643 = vector.shape_cast %620 : vector<16x32xf32> to vector<1x16x32xf32>
      %644 = vector.broadcast %643 : vector<1x16x32xf32> to vector<2x16x32xf32>
      %645 = arith.mulf %642, %644 : vector<2x16x32xf32>
      %646 = vector.shape_cast %622 : vector<16x32xf32> to vector<1x16x32xf32>
      %647 = vector.broadcast %646 : vector<1x16x32xf32> to vector<2x16x32xf32>
      %648 = arith.addf %645, %647 : vector<2x16x32xf32>
      %649 = vector.shape_cast %648 : vector<2x16x32xf32> to vector<32x32xf32>
      %c0_362 = arith.constant 0 : index
      %c64 = arith.constant 64 : index
      %650 = vector.load %arg10[%c0_362, %c64] : memref<32x128xf32, #tpu.memory_space<vmem>>, vector<32x32xf32>
      tpu.vector_store %arg10[%c0_362, %c64], %649 {strides = array<i32>} : memref<32x128xf32, #tpu.memory_space<vmem>>, vector<32x32xf32>,
      %c3_363 = arith.constant 3 : index
      %c0_364 = arith.constant 0 : index
      %c0_365 = arith.constant 0 : index
      %c0_366 = arith.constant 0 : index
      %651 = vector.load %arg1[%c3_363, %c0_364, %c0_365, %c0_366] : memref<5x2x16x288xf32, #tpu.memory_space<vmem>>, vector<1x2x16x96xf32>
      %652 = vector.shape_cast %651 : vector<1x2x16x96xf32> to vector<2x16x96xf32>
      %c3_367 = arith.constant 3 : index
      %c0_368 = arith.constant 0 : index
      %c0_369 = arith.constant 0 : index
      %c0_370 = arith.constant 0 : index
      %653 = vector.load %arg2[%c3_367, %c0_368, %c0_369, %c0_370] : memref<5x2x16x288xf32, #tpu.memory_space<vmem>>, vector<1x1x16x96xf32>
      %654 = vector.shape_cast %653 : vector<1x1x16x96xf32> to vector<16x96xf32>
      %c3_371 = arith.constant 3 : index
      %c1_372 = arith.constant 1 : index
      %c0_373 = arith.constant 0 : index
      %c0_374 = arith.constant 0 : index
      %655 = vector.load %arg2[%c3_371, %c1_372, %c0_373, %c0_374] : memref<5x2x16x288xf32, #tpu.memory_space<vmem>>, vector<1x1x16x96xf32>
      %656 = vector.shape_cast %655 : vector<1x1x16x96xf32> to vector<16x96xf32>
      %cst_375 = arith.constant dense<0.000000e+00> : vector<2x16xf32>
      %657 = vector.multi_reduction <add>, %652, %cst_375 [2] : vector<2x16x96xf32> to vector<2x16xf32>
      %658 = vector.shape_cast %657 : vector<2x16xf32> to vector<2x16x1xf32>
      %cst_376 = arith.constant dense<0.000000e+00> : vector<2x1xf32>
      %659 = vector.multi_reduction <add>, %658, %cst_376 [1] : vector<2x16x1xf32> to vector<2x1xf32>
      %660 = vector.shape_cast %659 : vector<2x1xf32> to vector<2x1x1xf32>
      %cst_377 = arith.constant 6.51041686E-4 : f32
      %661 = vector.broadcast %cst_377 : f32 to vector<2x1x1xf32>
      %662 = arith.mulf %660, %661 : vector<2x1x1xf32>
      %663 = vector.broadcast %662 : vector<2x1x1xf32> to vector<2x16x96xf32>
      %664 = arith.subf %652, %663 : vector<2x16x96xf32>
      %665 = arith.mulf %664, %664 : vector<2x16x96xf32>
      %cst_378 = arith.constant dense<0.000000e+00> : vector<2x16xf32>
      %666 = vector.multi_reduction <add>, %665, %cst_378 [2] : vector<2x16x96xf32> to vector<2x16xf32>
      %667 = vector.shape_cast %666 : vector<2x16xf32> to vector<2x16x1xf32>
      %cst_379 = arith.constant dense<0.000000e+00> : vector<2x1xf32>
      %668 = vector.multi_reduction <add>, %667, %cst_379 [1] : vector<2x16x1xf32> to vector<2x1xf32>
      %669 = vector.shape_cast %668 : vector<2x1xf32> to vector<2x1x1xf32>
      %cst_380 = arith.constant 6.51041686E-4 : f32
      %670 = vector.broadcast %cst_380 : f32 to vector<2x1x1xf32>
      %671 = arith.mulf %669, %670 : vector<2x1x1xf32>
      %cst_381 = arith.constant 9.99999974E-6 : f32
      %672 = vector.broadcast %cst_381 : f32 to vector<2x1x1xf32>
      %673 = arith.addf %671, %672 : vector<2x1x1xf32>
      %674 = math.rsqrt %673 : vector<2x1x1xf32>
      %675 = vector.broadcast %674 : vector<2x1x1xf32> to vector<2x16x96xf32>
      %676 = arith.mulf %664, %675 : vector<2x16x96xf32>
      %677 = vector.shape_cast %654 : vector<16x96xf32> to vector<1x16x96xf32>
      %678 = vector.broadcast %677 : vector<1x16x96xf32> to vector<2x16x96xf32>
      %679 = arith.mulf %676, %678 : vector<2x16x96xf32>
      %680 = vector.shape_cast %656 : vector<16x96xf32> to vector<1x16x96xf32>
      %681 = vector.broadcast %680 : vector<1x16x96xf32> to vector<2x16x96xf32>
      %682 = arith.addf %679, %681 : vector<2x16x96xf32>
      %683 = math.tanh %682 : vector<2x16x96xf32>
      %684 = vector.shape_cast %683 : vector<2x16x96xf32> to vector<32x96xf32>
      %c3_382 = arith.constant 3 : index
      %c0_383 = arith.constant 0 : index
      %c0_384 = arith.constant 0 : index
      %685 = vector.load %arg3[%c3_382, %c0_383, %c0_384] : memref<5x288x64xf32, #tpu.memory_space<vmem>>, vector<1x96x64xf32>
      %686 = vector.shape_cast %685 : vector<1x96x64xf32> to vector<96x64xf32>
      %cst_385 = arith.constant dense<0.000000e+00> : vector<32x64xf32>
      %687 = tpu.matmul %684, %686, %cst_385 {dimension_numbers = #tpu.dot_dimension_numbers<[1], [0], [0], [1], [0, 0, 1, 1], [], []>} : vector<32x96xf32>, vector<96x64xf32>, vector<32x64xf32> -> vector<32x64xf32>
      %c3_386 = arith.constant 3 : index
      %c0_387 = arith.constant 0 : index
      %c0_388 = arith.constant 0 : index
      %688 = vector.load %arg7[%c3_386, %c0_387, %c0_388] : memref<5x8x64xf32, #tpu.memory_space<vmem>>, vector<1x1x64xf32>
      %689 = vector.shape_cast %688 : vector<1x1x64xf32> to vector<1x64xf32>
      %690 = vector.broadcast %689 : vector<1x64xf32> to vector<32x64xf32>
      %691 = arith.addf %687, %690 : vector<32x64xf32>
      %692 = math.tanh %691 : vector<32x64xf32>
      %c3_389 = arith.constant 3 : index
      %c0_390 = arith.constant 0 : index
      %c0_391 = arith.constant 0 : index
      %c0_392 = arith.constant 0 : index
      %693 = vector.load %arg4[%c3_389, %c0_390, %c0_391, %c0_392] : memref<5x2x64x32xf32, #tpu.memory_space<vmem>>, vector<1x1x64x32xf32>
      %694 = vector.shape_cast %693 : vector<1x1x64x32xf32> to vector<64x32xf32>
      %cst_393 = arith.constant dense<0.000000e+00> : vector<32x32xf32>
      %695 = tpu.matmul %692, %694, %cst_393 {dimension_numbers = #tpu.dot_dimension_numbers<[1], [0], [0], [1], [0, 0, 1, 1], [], []>} : vector<32x64xf32>, vector<64x32xf32>, vector<32x32xf32> -> vector<32x32xf32>
      %c3_394 = arith.constant 3 : index
      %c4_395 = arith.constant 4 : index
      %c0_396 = arith.constant 0 : index
      %696 = vector.load %arg7[%c3_394, %c4_395, %c0_396] : memref<5x8x64xf32, #tpu.memory_space<vmem>>, vector<1x1x32xf32>
      %697 = vector.shape_cast %696 : vector<1x1x32xf32> to vector<1x32xf32>
      %698 = vector.broadcast %697 : vector<1x32xf32> to vector<32x32xf32>
      %699 = arith.addf %695, %698 : vector<32x32xf32>
      %c3_397 = arith.constant 3 : index
      %c0_398 = arith.constant 0 : index
      %c0_399 = arith.constant 0 : index
      %c0_400 = arith.constant 0 : index
      %700 = vector.load %arg5[%c3_397, %c0_398, %c0_399, %c0_400] : memref<5x3x32x64xf32, #tpu.memory_space<vmem>>, vector<1x1x32x64xf32>
      %701 = vector.shape_cast %700 : vector<1x1x32x64xf32> to vector<32x64xf32>
      %cst_401 = arith.constant dense<0.000000e+00> : vector<32x64xf32>
      %702 = tpu.matmul %699, %701, %cst_401 {dimension_numbers = #tpu.dot_dimension_numbers<[1], [0], [0], [1], [0, 0, 1, 1], [], []>} : vector<32x32xf32>, vector<32x64xf32>, vector<32x64xf32> -> vector<32x64xf32>
      %c3_402 = arith.constant 3 : index
      %c1_403 = arith.constant 1 : index
      %c0_404 = arith.constant 0 : index
      %703 = vector.load %arg7[%c3_402, %c1_403, %c0_404] : memref<5x8x64xf32, #tpu.memory_space<vmem>>, vector<1x1x64xf32>
      %704 = vector.shape_cast %703 : vector<1x1x64xf32> to vector<1x64xf32>
      %705 = vector.broadcast %704 : vector<1x64xf32> to vector<32x64xf32>
      %706 = arith.addf %702, %705 : vector<32x64xf32>
      %707 = vector.extract_strided_slice %706 {offsets = [0, 0], sizes = [32, 32], strides = [1, 1]} : vector<32x64xf32> to vector<32x32xf32>
      %708 = vector.extract_strided_slice %706 {offsets = [0, 32], sizes = [32, 32], strides = [1, 1]} : vector<32x64xf32> to vector<32x32xf32>
      %709 = arith.negf %708 : vector<32x32xf32>
      %710 = math.exp %709 : vector<32x32xf32>
      %cst_405 = arith.constant 1.000000e+00 : f32
      %711 = vector.broadcast %cst_405 : f32 to vector<32x32xf32>
      %712 = arith.addf %711, %710 : vector<32x32xf32>
      %713 = arith.divf %711, %712 : vector<32x32xf32>
      %714 = arith.mulf %707, %713 : vector<32x32xf32>
      %715 = vector.shape_cast %714 : vector<32x32xf32> to vector<2x16x32xf32>
      %c3_406 = arith.constant 3 : index
      %c0_407 = arith.constant 0 : index
      %c0_408 = arith.constant 0 : index
      %c0_409 = arith.constant 0 : index
      %716 = vector.load %arg8[%c3_406, %c0_407, %c0_408, %c0_409] : memref<5x4x16x32xf32, #tpu.memory_space<vmem>>, vector<1x1x16x32xf32>
      %717 = vector.shape_cast %716 : vector<1x1x16x32xf32> to vector<16x32xf32>
      %c3_410 = arith.constant 3 : index
      %c1_411 = arith.constant 1 : index
      %c0_412 = arith.constant 0 : index
      %c0_413 = arith.constant 0 : index
      %718 = vector.load %arg8[%c3_410, %c1_411, %c0_412, %c0_413] : memref<5x4x16x32xf32, #tpu.memory_space<vmem>>, vector<1x1x16x32xf32>
      %719 = vector.shape_cast %718 : vector<1x1x16x32xf32> to vector<16x32xf32>
      %cst_414 = arith.constant dense<0.000000e+00> : vector<2x16xf32>
      %720 = vector.multi_reduction <add>, %715, %cst_414 [2] : vector<2x16x32xf32> to vector<2x16xf32>
      %721 = vector.shape_cast %720 : vector<2x16xf32> to vector<2x16x1xf32>
      %cst_415 = arith.constant dense<0.000000e+00> : vector<2x1xf32>
      %722 = vector.multi_reduction <add>, %721, %cst_415 [1] : vector<2x16x1xf32> to vector<2x1xf32>
      %723 = vector.shape_cast %722 : vector<2x1xf32> to vector<2x1x1xf32>
      %cst_416 = arith.constant 0.001953125 : f32
      %724 = vector.broadcast %cst_416 : f32 to vector<2x1x1xf32>
      %725 = arith.mulf %723, %724 : vector<2x1x1xf32>
      %726 = vector.broadcast %725 : vector<2x1x1xf32> to vector<2x16x32xf32>
      %727 = arith.subf %715, %726 : vector<2x16x32xf32>
      %728 = arith.mulf %727, %727 : vector<2x16x32xf32>
      %cst_417 = arith.constant dense<0.000000e+00> : vector<2x16xf32>
      %729 = vector.multi_reduction <add>, %728, %cst_417 [2] : vector<2x16x32xf32> to vector<2x16xf32>
      %730 = vector.shape_cast %729 : vector<2x16xf32> to vector<2x16x1xf32>
      %cst_418 = arith.constant dense<0.000000e+00> : vector<2x1xf32>
      %731 = vector.multi_reduction <add>, %730, %cst_418 [1] : vector<2x16x1xf32> to vector<2x1xf32>
      %732 = vector.shape_cast %731 : vector<2x1xf32> to vector<2x1x1xf32>
      %cst_419 = arith.constant 0.001953125 : f32
      %733 = vector.broadcast %cst_419 : f32 to vector<2x1x1xf32>
      %734 = arith.mulf %732, %733 : vector<2x1x1xf32>
      %cst_420 = arith.constant 9.99999974E-6 : f32
      %735 = vector.broadcast %cst_420 : f32 to vector<2x1x1xf32>
      %736 = arith.addf %734, %735 : vector<2x1x1xf32>
      %737 = math.rsqrt %736 : vector<2x1x1xf32>
      %738 = vector.broadcast %737 : vector<2x1x1xf32> to vector<2x16x32xf32>
      %739 = arith.mulf %727, %738 : vector<2x16x32xf32>
      %740 = vector.shape_cast %717 : vector<16x32xf32> to vector<1x16x32xf32>
      %741 = vector.broadcast %740 : vector<1x16x32xf32> to vector<2x16x32xf32>
      %742 = arith.mulf %739, %741 : vector<2x16x32xf32>
      %743 = vector.shape_cast %719 : vector<16x32xf32> to vector<1x16x32xf32>
      %744 = vector.broadcast %743 : vector<1x16x32xf32> to vector<2x16x32xf32>
      %745 = arith.addf %742, %744 : vector<2x16x32xf32>
      %cst_421 = arith.constant dense<0.000000e+00> : vector<2x32xf32>
      %746 = vector.multi_reduction <add>, %745, %cst_421 [1] : vector<2x16x32xf32> to vector<2x32xf32>
      %747 = vector.shape_cast %746 : vector<2x32xf32> to vector<2x1x32xf32>
      %cst_422 = arith.constant 6.250000e-02 : f32
      %748 = vector.broadcast %cst_422 : f32 to vector<2x1x32xf32>
      %749 = arith.mulf %747, %748 : vector<2x1x32xf32>
      %cst_423 = arith.constant dense<0xFF800000> : vector<2x32xf32>
      %750 = vector.multi_reduction <maximumf>, %745, %cst_423 [1] : vector<2x16x32xf32> to vector<2x32xf32>
      %751 = vector.shape_cast %750 : vector<2x32xf32> to vector<2x1x32xf32>
      %752 = tpu.concatenate %749, %751 in 1 : vector<2x1x32xf32>, vector<2x1x32xf32> -> vector<2x2x32xf32>
      %753 = vector.shape_cast %752 : vector<2x2x32xf32> to vector<4x32xf32>
      %c3_424 = arith.constant 3 : index
      %c2_425 = arith.constant 2 : index
      %c0_426 = arith.constant 0 : index
      %c0_427 = arith.constant 0 : index
      %754 = vector.load %arg5[%c3_424, %c2_425, %c0_426, %c0_427] : memref<5x3x32x64xf32, #tpu.memory_space<vmem>>, vector<1x1x32x64xf32>
      %755 = vector.shape_cast %754 : vector<1x1x32x64xf32> to vector<32x64xf32>
      %cst_428 = arith.constant dense<0.000000e+00> : vector<4x64xf32>
      %756 = tpu.matmul %753, %755, %cst_428 {dimension_numbers = #tpu.dot_dimension_numbers<[1], [0], [0], [1], [0, 0, 1, 1], [], []>} : vector<4x32xf32>, vector<32x64xf32>, vector<4x64xf32> -> vector<4x64xf32>
      %c3_429 = arith.constant 3 : index
      %c2_430 = arith.constant 2 : index
      %c0_431 = arith.constant 0 : index
      %757 = vector.load %arg7[%c3_429, %c2_430, %c0_431] : memref<5x8x64xf32, #tpu.memory_space<vmem>>, vector<1x1x64xf32>
      %758 = vector.shape_cast %757 : vector<1x1x64xf32> to vector<1x64xf32>
      %759 = vector.broadcast %758 : vector<1x64xf32> to vector<4x64xf32>
      %760 = arith.addf %756, %759 : vector<4x64xf32>
      %cst_432 = arith.constant 0.000000e+00 : f32
      %761 = vector.broadcast %cst_432 : f32 to vector<4x64xf32>
      %762 = arith.maximumf %760, %761 : vector<4x64xf32>
      %c3_433 = arith.constant 3 : index
      %c1_434 = arith.constant 1 : index
      %c0_435 = arith.constant 0 : index
      %c0_436 = arith.constant 0 : index
      %763 = vector.load %arg4[%c3_433, %c1_434, %c0_435, %c0_436] : memref<5x2x64x32xf32, #tpu.memory_space<vmem>>, vector<1x1x64x32xf32>
      %764 = vector.shape_cast %763 : vector<1x1x64x32xf32> to vector<64x32xf32>
      %cst_437 = arith.constant dense<0.000000e+00> : vector<4x32xf32>
      %765 = tpu.matmul %762, %764, %cst_437 {dimension_numbers = #tpu.dot_dimension_numbers<[1], [0], [0], [1], [0, 0, 1, 1], [], []>} : vector<4x64xf32>, vector<64x32xf32>, vector<4x32xf32> -> vector<4x32xf32>
      %c3_438 = arith.constant 3 : index
      %c5_439 = arith.constant 5 : index
      %c0_440 = arith.constant 0 : index
      %766 = vector.load %arg7[%c3_438, %c5_439, %c0_440] : memref<5x8x64xf32, #tpu.memory_space<vmem>>, vector<1x1x32xf32>
      %767 = vector.shape_cast %766 : vector<1x1x32xf32> to vector<1x32xf32>
      %768 = vector.broadcast %767 : vector<1x32xf32> to vector<4x32xf32>
      %769 = arith.addf %765, %768 : vector<4x32xf32>
      %770 = vector.shape_cast %769 : vector<4x32xf32> to vector<2x2x32xf32>
      %cst_441 = arith.constant dense<0.000000e+00> : vector<2x32xf32>
      %771 = vector.multi_reduction <add>, %770, %cst_441 [1] : vector<2x2x32xf32> to vector<2x32xf32>
      %c3_442 = arith.constant 3 : index
      %c1_443 = arith.constant 1 : index
      %c0_444 = arith.constant 0 : index
      %c0_445 = arith.constant 0 : index
      %772 = vector.load %arg5[%c3_442, %c1_443, %c0_444, %c0_445] : memref<5x3x32x64xf32, #tpu.memory_space<vmem>>, vector<1x1x32x64xf32>
      %773 = vector.shape_cast %772 : vector<1x1x32x64xf32> to vector<32x64xf32>
      %cst_446 = arith.constant dense<0.000000e+00> : vector<2x64xf32>
      %774 = tpu.matmul %771, %773, %cst_446 {dimension_numbers = #tpu.dot_dimension_numbers<[1], [0], [0], [1], [0, 0, 1, 1], [], []>} : vector<2x32xf32>, vector<32x64xf32>, vector<2x64xf32> -> vector<2x64xf32>
      %c3_447 = arith.constant 3 : index
      %c3_448 = arith.constant 3 : index
      %c0_449 = arith.constant 0 : index
      %775 = vector.load %arg7[%c3_447, %c3_448, %c0_449] : memref<5x8x64xf32, #tpu.memory_space<vmem>>, vector<1x1x64xf32>
      %776 = vector.shape_cast %775 : vector<1x1x64xf32> to vector<1x64xf32>
      %777 = vector.broadcast %776 : vector<1x64xf32> to vector<2x64xf32>
      %778 = arith.addf %774, %777 : vector<2x64xf32>
      %779 = vector.extract_strided_slice %778 {offsets = [0, 0], sizes = [2, 32], strides = [1, 1]} : vector<2x64xf32> to vector<2x32xf32>
      %780 = vector.extract_strided_slice %778 {offsets = [0, 32], sizes = [2, 32], strides = [1, 1]} : vector<2x64xf32> to vector<2x32xf32>
      %781 = arith.negf %780 : vector<2x32xf32>
      %782 = math.exp %781 : vector<2x32xf32>
      %cst_450 = arith.constant 1.000000e+00 : f32
      %783 = vector.broadcast %cst_450 : f32 to vector<2x32xf32>
      %784 = arith.addf %783, %782 : vector<2x32xf32>
      %785 = arith.divf %783, %784 : vector<2x32xf32>
      %786 = arith.mulf %779, %785 : vector<2x32xf32>
      %787 = vector.shape_cast %745 : vector<2x16x32xf32> to vector<32x32xf32>
      %c3_451 = arith.constant 3 : index
      %c0_452 = arith.constant 0 : index
      %c0_453 = arith.constant 0 : index
      %788 = vector.load %arg6[%c3_451, %c0_452, %c0_453] : memref<5x32x32xf32, #tpu.memory_space<vmem>>, vector<1x32x32xf32>
      %789 = vector.shape_cast %788 : vector<1x32x32xf32> to vector<32x32xf32>
      %cst_454 = arith.constant dense<0.000000e+00> : vector<32x32xf32>
      %790 = tpu.matmul %787, %789, %cst_454 {dimension_numbers = #tpu.dot_dimension_numbers<[1], [0], [0], [1], [0, 0, 1, 1], [], []>} : vector<32x32xf32>, vector<32x32xf32>, vector<32x32xf32> -> vector<32x32xf32>
      %c3_455 = arith.constant 3 : index
      %c6_456 = arith.constant 6 : index
      %c0_457 = arith.constant 0 : index
      %791 = vector.load %arg7[%c3_455, %c6_456, %c0_457] : memref<5x8x64xf32, #tpu.memory_space<vmem>>, vector<1x1x32xf32>
      %792 = vector.shape_cast %791 : vector<1x1x32xf32> to vector<1x32xf32>
      %793 = vector.broadcast %792 : vector<1x32xf32> to vector<32x32xf32>
      %794 = arith.addf %790, %793 : vector<32x32xf32>
      %795 = vector.shape_cast %794 : vector<32x32xf32> to vector<2x16x32xf32>
      %796 = vector.shape_cast %786 : vector<2x32xf32> to vector<2x1x32xf32>
      %797 = vector.broadcast %796 : vector<2x1x32xf32> to vector<2x16x32xf32>
      %798 = arith.mulf %795, %797 : vector<2x16x32xf32>
      %cst_458 = arith.constant dense<0.000000e+00> : vector<2x16xf32>
      %799 = vector.multi_reduction <add>, %798, %cst_458 [2] : vector<2x16x32xf32> to vector<2x16xf32>
      %800 = vector.shape_cast %799 : vector<2x16xf32> to vector<2x16x1xf32>
      %cst_459 = arith.constant 3.125000e-02 : f32
      %801 = vector.broadcast %cst_459 : f32 to vector<2x16x1xf32>
      %802 = arith.mulf %800, %801 : vector<2x16x1xf32>
      %cst_460 = arith.constant dense<0xFF800000> : vector<2x16xf32>
      %803 = vector.multi_reduction <maximumf>, %798, %cst_460 [2] : vector<2x16x32xf32> to vector<2x16xf32>
      %804 = vector.shape_cast %803 : vector<2x16xf32> to vector<2x16x1xf32>
      %c3_461 = arith.constant 3 : index
      %c0_462 = arith.constant 0 : index
      %c0_463 = arith.constant 0 : index
      %805 = vector.load %arg9[%c3_461, %c0_462, %c0_463] : memref<5x16x32xf32, #tpu.memory_space<vmem>>, vector<1x16x32xf32>
      %806 = vector.shape_cast %805 : vector<1x16x32xf32> to vector<16x32xf32>
      %807 = vector.extract_strided_slice %802 {offsets = [0, 0, 0], sizes = [1, 16, 1], strides = [1, 1, 1]} : vector<2x16x1xf32> to vector<1x16x1xf32>
      %808 = vector.shape_cast %807 : vector<1x16x1xf32> to vector<16x1xf32>
      %809 = vector.extract_strided_slice %804 {offsets = [0, 0, 0], sizes = [1, 16, 1], strides = [1, 1, 1]} : vector<2x16x1xf32> to vector<1x16x1xf32>
      %810 = vector.shape_cast %809 : vector<1x16x1xf32> to vector<16x1xf32>
      %811 = tpu.concatenate %808, %810 in 0 : vector<16x1xf32>, vector<16x1xf32> -> vector<32x1xf32>
      %cst_464 = arith.constant dense<0.000000e+00> : vector<16x1xf32>
      %812 = tpu.matmul %806, %811, %cst_464 {dimension_numbers = #tpu.dot_dimension_numbers<[1], [0], [0], [1], [0, 0, 1, 1], [], []>} : vector<16x32xf32>, vector<32x1xf32>, vector<16x1xf32> -> vector<16x1xf32>
      %813 = vector.extract_strided_slice %802 {offsets = [1, 0, 0], sizes = [1, 16, 1], strides = [1, 1, 1]} : vector<2x16x1xf32> to vector<1x16x1xf32>
      %814 = vector.shape_cast %813 : vector<1x16x1xf32> to vector<16x1xf32>
      %815 = vector.extract_strided_slice %804 {offsets = [1, 0, 0], sizes = [1, 16, 1], strides = [1, 1, 1]} : vector<2x16x1xf32> to vector<1x16x1xf32>
      %816 = vector.shape_cast %815 : vector<1x16x1xf32> to vector<16x1xf32>
      %817 = tpu.concatenate %814, %816 in 0 : vector<16x1xf32>, vector<16x1xf32> -> vector<32x1xf32>
      %cst_465 = arith.constant dense<0.000000e+00> : vector<16x1xf32>
      %818 = tpu.matmul %806, %817, %cst_465 {dimension_numbers = #tpu.dot_dimension_numbers<[1], [0], [0], [1], [0, 0, 1, 1], [], []>} : vector<16x32xf32>, vector<32x1xf32>, vector<16x1xf32> -> vector<16x1xf32>
      %819 = vector.shape_cast %812 : vector<16x1xf32> to vector<1x16x1xf32>
      %820 = vector.shape_cast %818 : vector<16x1xf32> to vector<1x16x1xf32>
      %821 = tpu.concatenate %819, %820 in 0 : vector<1x16x1xf32>, vector<1x16x1xf32> -> vector<2x16x1xf32>
      %c3_466 = arith.constant 3 : index
      %c7_467 = arith.constant 7 : index
      %c0_468 = arith.constant 0 : index
      %822 = vector.load %arg7[%c3_466, %c7_467, %c0_468] : memref<5x8x64xf32, #tpu.memory_space<vmem>>, vector<1x1x1xf32>
      %823 = vector.shape_cast %822 : vector<1x1x1xf32> to vector<1x1xf32>
      %824 = vector.shape_cast %823 : vector<1x1xf32> to vector<1x1x1xf32>
      %825 = vector.broadcast %824 : vector<1x1x1xf32> to vector<2x16x1xf32>
      %826 = arith.addf %821, %825 : vector<2x16x1xf32>
      %827 = arith.negf %826 : vector<2x16x1xf32>
      %828 = math.exp %827 : vector<2x16x1xf32>
      %cst_469 = arith.constant 1.000000e+00 : f32
      %829 = vector.broadcast %cst_469 : f32 to vector<2x16x1xf32>
      %830 = arith.addf %829, %828 : vector<2x16x1xf32>
      %831 = arith.divf %829, %830 : vector<2x16x1xf32>
      %832 = vector.broadcast %831 : vector<2x16x1xf32> to vector<2x16x32xf32>
      %833 = arith.mulf %798, %832 : vector<2x16x32xf32>
      %c3_470 = arith.constant 3 : index
      %c2_471 = arith.constant 2 : index
      %c0_472 = arith.constant 0 : index
      %c0_473 = arith.constant 0 : index
      %834 = vector.load %arg8[%c3_470, %c2_471, %c0_472, %c0_473] : memref<5x4x16x32xf32, #tpu.memory_space<vmem>>, vector<1x1x16x32xf32>
      %835 = vector.shape_cast %834 : vector<1x1x16x32xf32> to vector<16x32xf32>
      %c3_474 = arith.constant 3 : index
      %c3_475 = arith.constant 3 : index
      %c0_476 = arith.constant 0 : index
      %c0_477 = arith.constant 0 : index
      %836 = vector.load %arg8[%c3_474, %c3_475, %c0_476, %c0_477] : memref<5x4x16x32xf32, #tpu.memory_space<vmem>>, vector<1x1x16x32xf32>
      %837 = vector.shape_cast %836 : vector<1x1x16x32xf32> to vector<16x32xf32>
      %cst_478 = arith.constant dense<0.000000e+00> : vector<2x16xf32>
      %838 = vector.multi_reduction <add>, %833, %cst_478 [2] : vector<2x16x32xf32> to vector<2x16xf32>
      %839 = vector.shape_cast %838 : vector<2x16xf32> to vector<2x16x1xf32>
      %cst_479 = arith.constant dense<0.000000e+00> : vector<2x1xf32>
      %840 = vector.multi_reduction <add>, %839, %cst_479 [1] : vector<2x16x1xf32> to vector<2x1xf32>
      %841 = vector.shape_cast %840 : vector<2x1xf32> to vector<2x1x1xf32>
      %cst_480 = arith.constant 0.001953125 : f32
      %842 = vector.broadcast %cst_480 : f32 to vector<2x1x1xf32>
      %843 = arith.mulf %841, %842 : vector<2x1x1xf32>
      %844 = vector.broadcast %843 : vector<2x1x1xf32> to vector<2x16x32xf32>
      %845 = arith.subf %833, %844 : vector<2x16x32xf32>
      %846 = arith.mulf %845, %845 : vector<2x16x32xf32>
      %cst_481 = arith.constant dense<0.000000e+00> : vector<2x16xf32>
      %847 = vector.multi_reduction <add>, %846, %cst_481 [2] : vector<2x16x32xf32> to vector<2x16xf32>
      %848 = vector.shape_cast %847 : vector<2x16xf32> to vector<2x16x1xf32>
      %cst_482 = arith.constant dense<0.000000e+00> : vector<2x1xf32>
      %849 = vector.multi_reduction <add>, %848, %cst_482 [1] : vector<2x16x1xf32> to vector<2x1xf32>
      %850 = vector.shape_cast %849 : vector<2x1xf32> to vector<2x1x1xf32>
      %cst_483 = arith.constant 0.001953125 : f32
      %851 = vector.broadcast %cst_483 : f32 to vector<2x1x1xf32>
      %852 = arith.mulf %850, %851 : vector<2x1x1xf32>
      %cst_484 = arith.constant 9.99999974E-6 : f32
      %853 = vector.broadcast %cst_484 : f32 to vector<2x1x1xf32>
      %854 = arith.addf %852, %853 : vector<2x1x1xf32>
      %855 = math.rsqrt %854 : vector<2x1x1xf32>
      %856 = vector.broadcast %855 : vector<2x1x1xf32> to vector<2x16x32xf32>
      %857 = arith.mulf %845, %856 : vector<2x16x32xf32>
      %858 = vector.shape_cast %835 : vector<16x32xf32> to vector<1x16x32xf32>
      %859 = vector.broadcast %858 : vector<1x16x32xf32> to vector<2x16x32xf32>
      %860 = arith.mulf %857, %859 : vector<2x16x32xf32>
      %861 = vector.shape_cast %837 : vector<16x32xf32> to vector<1x16x32xf32>
      %862 = vector.broadcast %861 : vector<1x16x32xf32> to vector<2x16x32xf32>
      %863 = arith.addf %860, %862 : vector<2x16x32xf32>
      %864 = vector.shape_cast %863 : vector<2x16x32xf32> to vector<32x32xf32>
      %c0_485 = arith.constant 0 : index
      %c96 = arith.constant 96 : index
      %865 = vector.load %arg10[%c0_485, %c96] : memref<32x128xf32, #tpu.memory_space<vmem>>, vector<32x32xf32>
      tpu.vector_store %arg10[%c0_485, %c96], %864 {strides = array<i32>} : memref<32x128xf32, #tpu.memory_space<vmem>>, vector<32x32xf32>,
    } else {
    }
    %c1_i32 = arith.constant 1 : i32
    %3 = arith.cmpi eq, %arg0, %c1_i32 : i32
    %4 = arith.extui %3 : i1 to i32
    %c0_i32_1 = arith.constant 0 : i32
    %5 = arith.cmpi ne, %4, %c0_i32_1 : i32
    scf.if %5 {
      %cst = arith.constant 0.000000e+00 : f32
      %6 = vector.broadcast %cst : f32 to vector<32x96xf32>
      %c0 = arith.constant 0 : index
      %c32 = arith.constant 32 : index
      %7 = vector.load %arg10[%c0, %c32] : memref<32x128xf32, #tpu.memory_space<vmem>>, vector<32x96xf32>
      tpu.vector_store %arg10[%c0, %c32], %6 {strides = array<i32>} : memref<32x128xf32, #tpu.memory_space<vmem>>, vector<32x96xf32>,
      %c4 = arith.constant 4 : index
      %c0_2 = arith.constant 0 : index
      %c0_3 = arith.constant 0 : index
      %c0_4 = arith.constant 0 : index
      %8 = vector.load %arg1[%c4, %c0_2, %c0_3, %c0_4] : memref<5x2x16x288xf32, #tpu.memory_space<vmem>>, vector<1x2x16x288xf32>
      %9 = vector.shape_cast %8 : vector<1x2x16x288xf32> to vector<2x16x288xf32>
      %c4_5 = arith.constant 4 : index
      %c0_6 = arith.constant 0 : index
      %c0_7 = arith.constant 0 : index
      %c0_8 = arith.constant 0 : index
      %10 = vector.load %arg2[%c4_5, %c0_6, %c0_7, %c0_8] : memref<5x2x16x288xf32, #tpu.memory_space<vmem>>, vector<1x1x16x288xf32>
      %11 = vector.shape_cast %10 : vector<1x1x16x288xf32> to vector<16x288xf32>
      %c4_9 = arith.constant 4 : index
      %c1 = arith.constant 1 : index
      %c0_10 = arith.constant 0 : index
      %c0_11 = arith.constant 0 : index
      %12 = vector.load %arg2[%c4_9, %c1, %c0_10, %c0_11] : memref<5x2x16x288xf32, #tpu.memory_space<vmem>>, vector<1x1x16x288xf32>
      %13 = vector.shape_cast %12 : vector<1x1x16x288xf32> to vector<16x288xf32>
      %cst_12 = arith.constant dense<0.000000e+00> : vector<2x16xf32>
      %14 = vector.multi_reduction <add>, %9, %cst_12 [2] : vector<2x16x288xf32> to vector<2x16xf32>
      %15 = vector.shape_cast %14 : vector<2x16xf32> to vector<2x16x1xf32>
      %cst_13 = arith.constant dense<0.000000e+00> : vector<2x1xf32>
      %16 = vector.multi_reduction <add>, %15, %cst_13 [1] : vector<2x16x1xf32> to vector<2x1xf32>
      %17 = vector.shape_cast %16 : vector<2x1xf32> to vector<2x1x1xf32>
      %cst_14 = arith.constant 2.17013891E-4 : f32
      %18 = vector.broadcast %cst_14 : f32 to vector<2x1x1xf32>
      %19 = arith.mulf %17, %18 : vector<2x1x1xf32>
      %20 = vector.broadcast %19 : vector<2x1x1xf32> to vector<2x16x288xf32>
      %21 = arith.subf %9, %20 : vector<2x16x288xf32>
      %22 = arith.mulf %21, %21 : vector<2x16x288xf32>
      %cst_15 = arith.constant dense<0.000000e+00> : vector<2x16xf32>
      %23 = vector.multi_reduction <add>, %22, %cst_15 [2] : vector<2x16x288xf32> to vector<2x16xf32>
      %24 = vector.shape_cast %23 : vector<2x16xf32> to vector<2x16x1xf32>
      %cst_16 = arith.constant dense<0.000000e+00> : vector<2x1xf32>
      %25 = vector.multi_reduction <add>, %24, %cst_16 [1] : vector<2x16x1xf32> to vector<2x1xf32>
      %26 = vector.shape_cast %25 : vector<2x1xf32> to vector<2x1x1xf32>
      %cst_17 = arith.constant 2.17013891E-4 : f32
      %27 = vector.broadcast %cst_17 : f32 to vector<2x1x1xf32>
      %28 = arith.mulf %26, %27 : vector<2x1x1xf32>
      %cst_18 = arith.constant 9.99999974E-6 : f32
      %29 = vector.broadcast %cst_18 : f32 to vector<2x1x1xf32>
      %30 = arith.addf %28, %29 : vector<2x1x1xf32>
      %31 = math.rsqrt %30 : vector<2x1x1xf32>
      %32 = vector.broadcast %31 : vector<2x1x1xf32> to vector<2x16x288xf32>
      %33 = arith.mulf %21, %32 : vector<2x16x288xf32>
      %34 = vector.shape_cast %11 : vector<16x288xf32> to vector<1x16x288xf32>
      %35 = vector.broadcast %34 : vector<1x16x288xf32> to vector<2x16x288xf32>
      %36 = arith.mulf %33, %35 : vector<2x16x288xf32>
      %37 = vector.shape_cast %13 : vector<16x288xf32> to vector<1x16x288xf32>
      %38 = vector.broadcast %37 : vector<1x16x288xf32> to vector<2x16x288xf32>
      %39 = arith.addf %36, %38 : vector<2x16x288xf32>
      %40 = math.tanh %39 : vector<2x16x288xf32>
      %41 = vector.shape_cast %40 : vector<2x16x288xf32> to vector<32x288xf32>
      %c4_19 = arith.constant 4 : index
      %c0_20 = arith.constant 0 : index
      %c0_21 = arith.constant 0 : index
      %42 = vector.load %arg3[%c4_19, %c0_20, %c0_21] : memref<5x288x64xf32, #tpu.memory_space<vmem>>, vector<1x288x64xf32>
      %43 = vector.shape_cast %42 : vector<1x288x64xf32> to vector<288x64xf32>
      %cst_22 = arith.constant dense<0.000000e+00> : vector<32x64xf32>
      %44 = tpu.matmul %41, %43, %cst_22 {dimension_numbers = #tpu.dot_dimension_numbers<[1], [0], [0], [1], [0, 0, 1, 1], [], []>} : vector<32x288xf32>, vector<288x64xf32>, vector<32x64xf32> -> vector<32x64xf32>
      %c4_23 = arith.constant 4 : index
      %c0_24 = arith.constant 0 : index
      %c0_25 = arith.constant 0 : index
      %45 = vector.load %arg7[%c4_23, %c0_24, %c0_25] : memref<5x8x64xf32, #tpu.memory_space<vmem>>, vector<1x1x64xf32>
      %46 = vector.shape_cast %45 : vector<1x1x64xf32> to vector<1x64xf32>
      %47 = vector.broadcast %46 : vector<1x64xf32> to vector<32x64xf32>
      %48 = arith.addf %44, %47 : vector<32x64xf32>
      %49 = math.tanh %48 : vector<32x64xf32>
      %c4_26 = arith.constant 4 : index
      %c0_27 = arith.constant 0 : index
      %c0_28 = arith.constant 0 : index
      %c0_29 = arith.constant 0 : index
      %50 = vector.load %arg4[%c4_26, %c0_27, %c0_28, %c0_29] : memref<5x2x64x32xf32, #tpu.memory_space<vmem>>, vector<1x1x64x32xf32>
      %51 = vector.shape_cast %50 : vector<1x1x64x32xf32> to vector<64x32xf32>
      %cst_30 = arith.constant dense<0.000000e+00> : vector<32x32xf32>
      %52 = tpu.matmul %49, %51, %cst_30 {dimension_numbers = #tpu.dot_dimension_numbers<[1], [0], [0], [1], [0, 0, 1, 1], [], []>} : vector<32x64xf32>, vector<64x32xf32>, vector<32x32xf32> -> vector<32x32xf32>
      %c4_31 = arith.constant 4 : index
      %c4_32 = arith.constant 4 : index
      %c0_33 = arith.constant 0 : index
      %53 = vector.load %arg7[%c4_31, %c4_32, %c0_33] : memref<5x8x64xf32, #tpu.memory_space<vmem>>, vector<1x1x32xf32>
      %54 = vector.shape_cast %53 : vector<1x1x32xf32> to vector<1x32xf32>
      %55 = vector.broadcast %54 : vector<1x32xf32> to vector<32x32xf32>
      %56 = arith.addf %52, %55 : vector<32x32xf32>
      %c4_34 = arith.constant 4 : index
      %c0_35 = arith.constant 0 : index
      %c0_36 = arith.constant 0 : index
      %c0_37 = arith.constant 0 : index
      %57 = vector.load %arg5[%c4_34, %c0_35, %c0_36, %c0_37] : memref<5x3x32x64xf32, #tpu.memory_space<vmem>>, vector<1x1x32x64xf32>
      %58 = vector.shape_cast %57 : vector<1x1x32x64xf32> to vector<32x64xf32>
      %cst_38 = arith.constant dense<0.000000e+00> : vector<32x64xf32>
      %59 = tpu.matmul %56, %58, %cst_38 {dimension_numbers = #tpu.dot_dimension_numbers<[1], [0], [0], [1], [0, 0, 1, 1], [], []>} : vector<32x32xf32>, vector<32x64xf32>, vector<32x64xf32> -> vector<32x64xf32>
      %c4_39 = arith.constant 4 : index
      %c1_40 = arith.constant 1 : index
      %c0_41 = arith.constant 0 : index
      %60 = vector.load %arg7[%c4_39, %c1_40, %c0_41] : memref<5x8x64xf32, #tpu.memory_space<vmem>>, vector<1x1x64xf32>
      %61 = vector.shape_cast %60 : vector<1x1x64xf32> to vector<1x64xf32>
      %62 = vector.broadcast %61 : vector<1x64xf32> to vector<32x64xf32>
      %63 = arith.addf %59, %62 : vector<32x64xf32>
      %64 = vector.extract_strided_slice %63 {offsets = [0, 0], sizes = [32, 32], strides = [1, 1]} : vector<32x64xf32> to vector<32x32xf32>
      %65 = vector.extract_strided_slice %63 {offsets = [0, 32], sizes = [32, 32], strides = [1, 1]} : vector<32x64xf32> to vector<32x32xf32>
      %66 = arith.negf %65 : vector<32x32xf32>
      %67 = math.exp %66 : vector<32x32xf32>
      %cst_42 = arith.constant 1.000000e+00 : f32
      %68 = vector.broadcast %cst_42 : f32 to vector<32x32xf32>
      %69 = arith.addf %68, %67 : vector<32x32xf32>
      %70 = arith.divf %68, %69 : vector<32x32xf32>
      %71 = arith.mulf %64, %70 : vector<32x32xf32>
      %72 = vector.shape_cast %71 : vector<32x32xf32> to vector<2x16x32xf32>
      %c4_43 = arith.constant 4 : index
      %c0_44 = arith.constant 0 : index
      %c0_45 = arith.constant 0 : index
      %c0_46 = arith.constant 0 : index
      %73 = vector.load %arg8[%c4_43, %c0_44, %c0_45, %c0_46] : memref<5x4x16x32xf32, #tpu.memory_space<vmem>>, vector<1x1x16x32xf32>
      %74 = vector.shape_cast %73 : vector<1x1x16x32xf32> to vector<16x32xf32>
      %c4_47 = arith.constant 4 : index
      %c1_48 = arith.constant 1 : index
      %c0_49 = arith.constant 0 : index
      %c0_50 = arith.constant 0 : index
      %75 = vector.load %arg8[%c4_47, %c1_48, %c0_49, %c0_50] : memref<5x4x16x32xf32, #tpu.memory_space<vmem>>, vector<1x1x16x32xf32>
      %76 = vector.shape_cast %75 : vector<1x1x16x32xf32> to vector<16x32xf32>
      %cst_51 = arith.constant dense<0.000000e+00> : vector<2x16xf32>
      %77 = vector.multi_reduction <add>, %72, %cst_51 [2] : vector<2x16x32xf32> to vector<2x16xf32>
      %78 = vector.shape_cast %77 : vector<2x16xf32> to vector<2x16x1xf32>
      %cst_52 = arith.constant dense<0.000000e+00> : vector<2x1xf32>
      %79 = vector.multi_reduction <add>, %78, %cst_52 [1] : vector<2x16x1xf32> to vector<2x1xf32>
      %80 = vector.shape_cast %79 : vector<2x1xf32> to vector<2x1x1xf32>
      %cst_53 = arith.constant 0.001953125 : f32
      %81 = vector.broadcast %cst_53 : f32 to vector<2x1x1xf32>
      %82 = arith.mulf %80, %81 : vector<2x1x1xf32>
      %83 = vector.broadcast %82 : vector<2x1x1xf32> to vector<2x16x32xf32>
      %84 = arith.subf %72, %83 : vector<2x16x32xf32>
      %85 = arith.mulf %84, %84 : vector<2x16x32xf32>
      %cst_54 = arith.constant dense<0.000000e+00> : vector<2x16xf32>
      %86 = vector.multi_reduction <add>, %85, %cst_54 [2] : vector<2x16x32xf32> to vector<2x16xf32>
      %87 = vector.shape_cast %86 : vector<2x16xf32> to vector<2x16x1xf32>
      %cst_55 = arith.constant dense<0.000000e+00> : vector<2x1xf32>
      %88 = vector.multi_reduction <add>, %87, %cst_55 [1] : vector<2x16x1xf32> to vector<2x1xf32>
      %89 = vector.shape_cast %88 : vector<2x1xf32> to vector<2x1x1xf32>
      %cst_56 = arith.constant 0.001953125 : f32
      %90 = vector.broadcast %cst_56 : f32 to vector<2x1x1xf32>
      %91 = arith.mulf %89, %90 : vector<2x1x1xf32>
      %cst_57 = arith.constant 9.99999974E-6 : f32
      %92 = vector.broadcast %cst_57 : f32 to vector<2x1x1xf32>
      %93 = arith.addf %91, %92 : vector<2x1x1xf32>
      %94 = math.rsqrt %93 : vector<2x1x1xf32>
      %95 = vector.broadcast %94 : vector<2x1x1xf32> to vector<2x16x32xf32>
      %96 = arith.mulf %84, %95 : vector<2x16x32xf32>
      %97 = vector.shape_cast %74 : vector<16x32xf32> to vector<1x16x32xf32>
      %98 = vector.broadcast %97 : vector<1x16x32xf32> to vector<2x16x32xf32>
      %99 = arith.mulf %96, %98 : vector<2x16x32xf32>
      %100 = vector.shape_cast %76 : vector<16x32xf32> to vector<1x16x32xf32>
      %101 = vector.broadcast %100 : vector<1x16x32xf32> to vector<2x16x32xf32>
      %102 = arith.addf %99, %101 : vector<2x16x32xf32>
      %cst_58 = arith.constant dense<0.000000e+00> : vector<2x32xf32>
      %103 = vector.multi_reduction <add>, %102, %cst_58 [1] : vector<2x16x32xf32> to vector<2x32xf32>
      %104 = vector.shape_cast %103 : vector<2x32xf32> to vector<2x1x32xf32>
      %cst_59 = arith.constant 6.250000e-02 : f32
      %105 = vector.broadcast %cst_59 : f32 to vector<2x1x32xf32>
      %106 = arith.mulf %104, %105 : vector<2x1x32xf32>
      %cst_60 = arith.constant dense<0xFF800000> : vector<2x32xf32>
      %107 = vector.multi_reduction <maximumf>, %102, %cst_60 [1] : vector<2x16x32xf32> to vector<2x32xf32>
      %108 = vector.shape_cast %107 : vector<2x32xf32> to vector<2x1x32xf32>
      %109 = tpu.concatenate %106, %108 in 1 : vector<2x1x32xf32>, vector<2x1x32xf32> -> vector<2x2x32xf32>
      %110 = vector.shape_cast %109 : vector<2x2x32xf32> to vector<4x32xf32>
      %c4_61 = arith.constant 4 : index
      %c2 = arith.constant 2 : index
      %c0_62 = arith.constant 0 : index
      %c0_63 = arith.constant 0 : index
      %111 = vector.load %arg5[%c4_61, %c2, %c0_62, %c0_63] : memref<5x3x32x64xf32, #tpu.memory_space<vmem>>, vector<1x1x32x64xf32>
      %112 = vector.shape_cast %111 : vector<1x1x32x64xf32> to vector<32x64xf32>
      %cst_64 = arith.constant dense<0.000000e+00> : vector<4x64xf32>
      %113 = tpu.matmul %110, %112, %cst_64 {dimension_numbers = #tpu.dot_dimension_numbers<[1], [0], [0], [1], [0, 0, 1, 1], [], []>} : vector<4x32xf32>, vector<32x64xf32>, vector<4x64xf32> -> vector<4x64xf32>
      %c4_65 = arith.constant 4 : index
      %c2_66 = arith.constant 2 : index
      %c0_67 = arith.constant 0 : index
      %114 = vector.load %arg7[%c4_65, %c2_66, %c0_67] : memref<5x8x64xf32, #tpu.memory_space<vmem>>, vector<1x1x64xf32>
      %115 = vector.shape_cast %114 : vector<1x1x64xf32> to vector<1x64xf32>
      %116 = vector.broadcast %115 : vector<1x64xf32> to vector<4x64xf32>
      %117 = arith.addf %113, %116 : vector<4x64xf32>
      %cst_68 = arith.constant 0.000000e+00 : f32
      %118 = vector.broadcast %cst_68 : f32 to vector<4x64xf32>
      %119 = arith.maximumf %117, %118 : vector<4x64xf32>
      %c4_69 = arith.constant 4 : index
      %c1_70 = arith.constant 1 : index
      %c0_71 = arith.constant 0 : index
      %c0_72 = arith.constant 0 : index
      %120 = vector.load %arg4[%c4_69, %c1_70, %c0_71, %c0_72] : memref<5x2x64x32xf32, #tpu.memory_space<vmem>>, vector<1x1x64x32xf32>
      %121 = vector.shape_cast %120 : vector<1x1x64x32xf32> to vector<64x32xf32>
      %cst_73 = arith.constant dense<0.000000e+00> : vector<4x32xf32>
      %122 = tpu.matmul %119, %121, %cst_73 {dimension_numbers = #tpu.dot_dimension_numbers<[1], [0], [0], [1], [0, 0, 1, 1], [], []>} : vector<4x64xf32>, vector<64x32xf32>, vector<4x32xf32> -> vector<4x32xf32>
      %c4_74 = arith.constant 4 : index
      %c5 = arith.constant 5 : index
      %c0_75 = arith.constant 0 : index
      %123 = vector.load %arg7[%c4_74, %c5, %c0_75] : memref<5x8x64xf32, #tpu.memory_space<vmem>>, vector<1x1x32xf32>
      %124 = vector.shape_cast %123 : vector<1x1x32xf32> to vector<1x32xf32>
      %125 = vector.broadcast %124 : vector<1x32xf32> to vector<4x32xf32>
      %126 = arith.addf %122, %125 : vector<4x32xf32>
      %127 = vector.shape_cast %126 : vector<4x32xf32> to vector<2x2x32xf32>
      %cst_76 = arith.constant dense<0.000000e+00> : vector<2x32xf32>
      %128 = vector.multi_reduction <add>, %127, %cst_76 [1] : vector<2x2x32xf32> to vector<2x32xf32>
      %c4_77 = arith.constant 4 : index
      %c1_78 = arith.constant 1 : index
      %c0_79 = arith.constant 0 : index
      %c0_80 = arith.constant 0 : index
      %129 = vector.load %arg5[%c4_77, %c1_78, %c0_79, %c0_80] : memref<5x3x32x64xf32, #tpu.memory_space<vmem>>, vector<1x1x32x64xf32>
      %130 = vector.shape_cast %129 : vector<1x1x32x64xf32> to vector<32x64xf32>
      %cst_81 = arith.constant dense<0.000000e+00> : vector<2x64xf32>
      %131 = tpu.matmul %128, %130, %cst_81 {dimension_numbers = #tpu.dot_dimension_numbers<[1], [0], [0], [1], [0, 0, 1, 1], [], []>} : vector<2x32xf32>, vector<32x64xf32>, vector<2x64xf32> -> vector<2x64xf32>
      %c4_82 = arith.constant 4 : index
      %c3 = arith.constant 3 : index
      %c0_83 = arith.constant 0 : index
      %132 = vector.load %arg7[%c4_82, %c3, %c0_83] : memref<5x8x64xf32, #tpu.memory_space<vmem>>, vector<1x1x64xf32>
      %133 = vector.shape_cast %132 : vector<1x1x64xf32> to vector<1x64xf32>
      %134 = vector.broadcast %133 : vector<1x64xf32> to vector<2x64xf32>
      %135 = arith.addf %131, %134 : vector<2x64xf32>
      %136 = vector.extract_strided_slice %135 {offsets = [0, 0], sizes = [2, 32], strides = [1, 1]} : vector<2x64xf32> to vector<2x32xf32>
      %137 = vector.extract_strided_slice %135 {offsets = [0, 32], sizes = [2, 32], strides = [1, 1]} : vector<2x64xf32> to vector<2x32xf32>
      %138 = arith.negf %137 : vector<2x32xf32>
      %139 = math.exp %138 : vector<2x32xf32>
      %cst_84 = arith.constant 1.000000e+00 : f32
      %140 = vector.broadcast %cst_84 : f32 to vector<2x32xf32>
      %141 = arith.addf %140, %139 : vector<2x32xf32>
      %142 = arith.divf %140, %141 : vector<2x32xf32>
      %143 = arith.mulf %136, %142 : vector<2x32xf32>
      %144 = vector.shape_cast %102 : vector<2x16x32xf32> to vector<32x32xf32>
      %c4_85 = arith.constant 4 : index
      %c0_86 = arith.constant 0 : index
      %c0_87 = arith.constant 0 : index
      %145 = vector.load %arg6[%c4_85, %c0_86, %c0_87] : memref<5x32x32xf32, #tpu.memory_space<vmem>>, vector<1x32x32xf32>
      %146 = vector.shape_cast %145 : vector<1x32x32xf32> to vector<32x32xf32>
      %cst_88 = arith.constant dense<0.000000e+00> : vector<32x32xf32>
      %147 = tpu.matmul %144, %146, %cst_88 {dimension_numbers = #tpu.dot_dimension_numbers<[1], [0], [0], [1], [0, 0, 1, 1], [], []>} : vector<32x32xf32>, vector<32x32xf32>, vector<32x32xf32> -> vector<32x32xf32>
      %c4_89 = arith.constant 4 : index
      %c6 = arith.constant 6 : index
      %c0_90 = arith.constant 0 : index
      %148 = vector.load %arg7[%c4_89, %c6, %c0_90] : memref<5x8x64xf32, #tpu.memory_space<vmem>>, vector<1x1x32xf32>
      %149 = vector.shape_cast %148 : vector<1x1x32xf32> to vector<1x32xf32>
      %150 = vector.broadcast %149 : vector<1x32xf32> to vector<32x32xf32>
      %151 = arith.addf %147, %150 : vector<32x32xf32>
      %152 = vector.shape_cast %151 : vector<32x32xf32> to vector<2x16x32xf32>
      %153 = vector.shape_cast %143 : vector<2x32xf32> to vector<2x1x32xf32>
      %154 = vector.broadcast %153 : vector<2x1x32xf32> to vector<2x16x32xf32>
      %155 = arith.mulf %152, %154 : vector<2x16x32xf32>
      %cst_91 = arith.constant dense<0.000000e+00> : vector<2x16xf32>
      %156 = vector.multi_reduction <add>, %155, %cst_91 [2] : vector<2x16x32xf32> to vector<2x16xf32>
      %157 = vector.shape_cast %156 : vector<2x16xf32> to vector<2x16x1xf32>
      %cst_92 = arith.constant 3.125000e-02 : f32
      %158 = vector.broadcast %cst_92 : f32 to vector<2x16x1xf32>
      %159 = arith.mulf %157, %158 : vector<2x16x1xf32>
      %cst_93 = arith.constant dense<0xFF800000> : vector<2x16xf32>
      %160 = vector.multi_reduction <maximumf>, %155, %cst_93 [2] : vector<2x16x32xf32> to vector<2x16xf32>
      %161 = vector.shape_cast %160 : vector<2x16xf32> to vector<2x16x1xf32>
      %c4_94 = arith.constant 4 : index
      %c0_95 = arith.constant 0 : index
      %c0_96 = arith.constant 0 : index
      %162 = vector.load %arg9[%c4_94, %c0_95, %c0_96] : memref<5x16x32xf32, #tpu.memory_space<vmem>>, vector<1x16x32xf32>
      %163 = vector.shape_cast %162 : vector<1x16x32xf32> to vector<16x32xf32>
      %164 = vector.extract_strided_slice %159 {offsets = [0, 0, 0], sizes = [1, 16, 1], strides = [1, 1, 1]} : vector<2x16x1xf32> to vector<1x16x1xf32>
      %165 = vector.shape_cast %164 : vector<1x16x1xf32> to vector<16x1xf32>
      %166 = vector.extract_strided_slice %161 {offsets = [0, 0, 0], sizes = [1, 16, 1], strides = [1, 1, 1]} : vector<2x16x1xf32> to vector<1x16x1xf32>
      %167 = vector.shape_cast %166 : vector<1x16x1xf32> to vector<16x1xf32>
      %168 = tpu.concatenate %165, %167 in 0 : vector<16x1xf32>, vector<16x1xf32> -> vector<32x1xf32>
      %cst_97 = arith.constant dense<0.000000e+00> : vector<16x1xf32>
      %169 = tpu.matmul %163, %168, %cst_97 {dimension_numbers = #tpu.dot_dimension_numbers<[1], [0], [0], [1], [0, 0, 1, 1], [], []>} : vector<16x32xf32>, vector<32x1xf32>, vector<16x1xf32> -> vector<16x1xf32>
      %170 = vector.extract_strided_slice %159 {offsets = [1, 0, 0], sizes = [1, 16, 1], strides = [1, 1, 1]} : vector<2x16x1xf32> to vector<1x16x1xf32>
      %171 = vector.shape_cast %170 : vector<1x16x1xf32> to vector<16x1xf32>
      %172 = vector.extract_strided_slice %161 {offsets = [1, 0, 0], sizes = [1, 16, 1], strides = [1, 1, 1]} : vector<2x16x1xf32> to vector<1x16x1xf32>
      %173 = vector.shape_cast %172 : vector<1x16x1xf32> to vector<16x1xf32>
      %174 = tpu.concatenate %171, %173 in 0 : vector<16x1xf32>, vector<16x1xf32> -> vector<32x1xf32>
      %cst_98 = arith.constant dense<0.000000e+00> : vector<16x1xf32>
      %175 = tpu.matmul %163, %174, %cst_98 {dimension_numbers = #tpu.dot_dimension_numbers<[1], [0], [0], [1], [0, 0, 1, 1], [], []>} : vector<16x32xf32>, vector<32x1xf32>, vector<16x1xf32> -> vector<16x1xf32>
      %176 = vector.shape_cast %169 : vector<16x1xf32> to vector<1x16x1xf32>
      %177 = vector.shape_cast %175 : vector<16x1xf32> to vector<1x16x1xf32>
      %178 = tpu.concatenate %176, %177 in 0 : vector<1x16x1xf32>, vector<1x16x1xf32> -> vector<2x16x1xf32>
      %c4_99 = arith.constant 4 : index
      %c7 = arith.constant 7 : index
      %c0_100 = arith.constant 0 : index
      %179 = vector.load %arg7[%c4_99, %c7, %c0_100] : memref<5x8x64xf32, #tpu.memory_space<vmem>>, vector<1x1x1xf32>
      %180 = vector.shape_cast %179 : vector<1x1x1xf32> to vector<1x1xf32>
      %181 = vector.shape_cast %180 : vector<1x1xf32> to vector<1x1x1xf32>
      %182 = vector.broadcast %181 : vector<1x1x1xf32> to vector<2x16x1xf32>
      %183 = arith.addf %178, %182 : vector<2x16x1xf32>
      %184 = arith.negf %183 : vector<2x16x1xf32>
      %185 = math.exp %184 : vector<2x16x1xf32>
      %cst_101 = arith.constant 1.000000e+00 : f32
      %186 = vector.broadcast %cst_101 : f32 to vector<2x16x1xf32>
      %187 = arith.addf %186, %185 : vector<2x16x1xf32>
      %188 = arith.divf %186, %187 : vector<2x16x1xf32>
      %189 = vector.broadcast %188 : vector<2x16x1xf32> to vector<2x16x32xf32>
      %190 = arith.mulf %155, %189 : vector<2x16x32xf32>
      %c4_102 = arith.constant 4 : index
      %c2_103 = arith.constant 2 : index
      %c0_104 = arith.constant 0 : index
      %c0_105 = arith.constant 0 : index
      %191 = vector.load %arg8[%c4_102, %c2_103, %c0_104, %c0_105] : memref<5x4x16x32xf32, #tpu.memory_space<vmem>>, vector<1x1x16x32xf32>
      %192 = vector.shape_cast %191 : vector<1x1x16x32xf32> to vector<16x32xf32>
      %c4_106 = arith.constant 4 : index
      %c3_107 = arith.constant 3 : index
      %c0_108 = arith.constant 0 : index
      %c0_109 = arith.constant 0 : index
      %193 = vector.load %arg8[%c4_106, %c3_107, %c0_108, %c0_109] : memref<5x4x16x32xf32, #tpu.memory_space<vmem>>, vector<1x1x16x32xf32>
      %194 = vector.shape_cast %193 : vector<1x1x16x32xf32> to vector<16x32xf32>
      %cst_110 = arith.constant dense<0.000000e+00> : vector<2x16xf32>
      %195 = vector.multi_reduction <add>, %190, %cst_110 [2] : vector<2x16x32xf32> to vector<2x16xf32>
      %196 = vector.shape_cast %195 : vector<2x16xf32> to vector<2x16x1xf32>
      %cst_111 = arith.constant dense<0.000000e+00> : vector<2x1xf32>
      %197 = vector.multi_reduction <add>, %196, %cst_111 [1] : vector<2x16x1xf32> to vector<2x1xf32>
      %198 = vector.shape_cast %197 : vector<2x1xf32> to vector<2x1x1xf32>
      %cst_112 = arith.constant 0.001953125 : f32
      %199 = vector.broadcast %cst_112 : f32 to vector<2x1x1xf32>
      %200 = arith.mulf %198, %199 : vector<2x1x1xf32>
      %201 = vector.broadcast %200 : vector<2x1x1xf32> to vector<2x16x32xf32>
      %202 = arith.subf %190, %201 : vector<2x16x32xf32>
      %203 = arith.mulf %202, %202 : vector<2x16x32xf32>
      %cst_113 = arith.constant dense<0.000000e+00> : vector<2x16xf32>
      %204 = vector.multi_reduction <add>, %203, %cst_113 [2] : vector<2x16x32xf32> to vector<2x16xf32>
      %205 = vector.shape_cast %204 : vector<2x16xf32> to vector<2x16x1xf32>
      %cst_114 = arith.constant dense<0.000000e+00> : vector<2x1xf32>
      %206 = vector.multi_reduction <add>, %205, %cst_114 [1] : vector<2x16x1xf32> to vector<2x1xf32>
      %207 = vector.shape_cast %206 : vector<2x1xf32> to vector<2x1x1xf32>
      %cst_115 = arith.constant 0.001953125 : f32
      %208 = vector.broadcast %cst_115 : f32 to vector<2x1x1xf32>
      %209 = arith.mulf %207, %208 : vector<2x1x1xf32>
      %cst_116 = arith.constant 9.99999974E-6 : f32
      %210 = vector.broadcast %cst_116 : f32 to vector<2x1x1xf32>
      %211 = arith.addf %209, %210 : vector<2x1x1xf32>
      %212 = math.rsqrt %211 : vector<2x1x1xf32>
      %213 = vector.broadcast %212 : vector<2x1x1xf32> to vector<2x16x32xf32>
      %214 = arith.mulf %202, %213 : vector<2x16x32xf32>
      %215 = vector.shape_cast %192 : vector<16x32xf32> to vector<1x16x32xf32>
      %216 = vector.broadcast %215 : vector<1x16x32xf32> to vector<2x16x32xf32>
      %217 = arith.mulf %214, %216 : vector<2x16x32xf32>
      %218 = vector.shape_cast %194 : vector<16x32xf32> to vector<1x16x32xf32>
      %219 = vector.broadcast %218 : vector<1x16x32xf32> to vector<2x16x32xf32>
      %220 = arith.addf %217, %219 : vector<2x16x32xf32>
      %221 = vector.shape_cast %220 : vector<2x16x32xf32> to vector<32x32xf32>
      %c0_117 = arith.constant 0 : index
      %c0_118 = arith.constant 0 : index
      %222 = vector.load %arg10[%c0_117, %c0_118] : memref<32x128xf32, #tpu.memory_space<vmem>>, vector<32x32xf32>
      tpu.vector_store %arg10[%c0_117, %c0_118], %221 {strides = array<i32>} : memref<32x128xf32, #tpu.memory_space<vmem>>, vector<32x32xf32>,
    } else {
    }
    return
  }
  func.func @transform_0(%arg0: i32) -> (i32, i32, i32, i32) {
    %c0_i32 = arith.constant 0 : i32
    %c0_i32_0 = arith.constant 0 : i32
    %c0_i32_1 = arith.constant 0 : i32
    %c0_i32_2 = arith.constant 0 : i32
    %c0_i32_3 = arith.constant 0 : i32
    return %c0_i32, %c0_i32_0, %c0_i32_1, %c0_i32_2 : i32, i32, i32, i32
  }
  func.func @transform_1(%arg0: i32) -> (i32, i32, i32, i32) {
    %c0_i32 = arith.constant 0 : i32
    %c0_i32_0 = arith.constant 0 : i32
    %c0_i32_1 = arith.constant 0 : i32
    %c0_i32_2 = arith.constant 0 : i32
    %c0_i32_3 = arith.constant 0 : i32
    return %c0_i32, %c0_i32_0, %c0_i32_1, %c0_i32_2 : i32, i32, i32, i32
  }
  func.func @transform_2(%arg0: i32) -> (i32, i32, i32) {
    %c0_i32 = arith.constant 0 : i32
    %c0_i32_0 = arith.constant 0 : i32
    %c0_i32_1 = arith.constant 0 : i32
    %c0_i32_2 = arith.constant 0 : i32
    return %c0_i32, %c0_i32_0, %c0_i32_1 : i32, i32, i32
  }
  func.func @transform_3(%arg0: i32) -> (i32, i32, i32, i32) {
    %c0_i32 = arith.constant 0 : i32
    %c0_i32_0 = arith.constant 0 : i32
    %c0_i32_1 = arith.constant 0 : i32
    %c0_i32_2 = arith.constant 0 : i32
    %c0_i32_3 = arith.constant 0 : i32
    return %c0_i32, %c0_i32_0, %c0_i32_1, %c0_i32_2 : i32, i32, i32, i32
  }
  func.func @transform_4(%arg0: i32) -> (i32, i32, i32, i32) {
    %c0_i32 = arith.constant 0 : i32
    %c0_i32_0 = arith.constant 0 : i32
    %c0_i32_1 = arith.constant 0 : i32
    %c0_i32_2 = arith.constant 0 : i32
    %c0_i32_3 = arith.constant 0 : i32
    return %c0_i32, %c0_i32_0, %c0_i32_1, %c0_i32_2 : i32, i32, i32, i32
  }
  func.func @transform_5(%arg0: i32) -> (i32, i32, i32) {
    %c0_i32 = arith.constant 0 : i32
    %c0_i32_0 = arith.constant 0 : i32
    %c0_i32_1 = arith.constant 0 : i32
    %c0_i32_2 = arith.constant 0 : i32
    return %c0_i32, %c0_i32_0, %c0_i32_1 : i32, i32, i32
  }
  func.func @transform_6(%arg0: i32) -> (i32, i32, i32) {
    %c0_i32 = arith.constant 0 : i32
    %c0_i32_0 = arith.constant 0 : i32
    %c0_i32_1 = arith.constant 0 : i32
    %c0_i32_2 = arith.constant 0 : i32
    return %c0_i32, %c0_i32_0, %c0_i32_1 : i32, i32, i32
  }
  func.func @transform_7(%arg0: i32) -> (i32, i32, i32, i32) {
    %c0_i32 = arith.constant 0 : i32
    %c0_i32_0 = arith.constant 0 : i32
    %c0_i32_1 = arith.constant 0 : i32
    %c0_i32_2 = arith.constant 0 : i32
    %c0_i32_3 = arith.constant 0 : i32
    return %c0_i32, %c0_i32_0, %c0_i32_1, %c0_i32_2 : i32, i32, i32, i32
  }
  func.func @transform_8(%arg0: i32) -> (i32, i32, i32) {
    %c0_i32 = arith.constant 0 : i32
    %c0_i32_0 = arith.constant 0 : i32
    %c0_i32_1 = arith.constant 0 : i32
    %c0_i32_2 = arith.constant 0 : i32
    return %c0_i32, %c0_i32_0, %c0_i32_1 : i32, i32, i32
  }
  func.func @transform_9(%arg0: i32) -> (i32, i32) {
    %c0_i32 = arith.constant 0 : i32
    %c0_i32_0 = arith.constant 0 : i32
    return %c0_i32, %arg0 : i32, i32
  }
}

</mosaic_0001>

<bundles_post_ra>
// kernel: custom-call.1
= control target key start
LH: loop header
LB: loop body
LE: loop exit
PB: predicated region body
PF: predicated region fallthrough
CT: control target
= control target key end

     0   :  { %s59_s0 = inlined_call_operand.hbm [shape: c64[2,8,33,16], index: 0, kind: input, shape index: {}]   ;;  %s60_s1 = inlined_call_operand.vmem [shape: f32[2,8,33,16], index: 1, kind: output, shape index: {}]  }
   0x1   :  { %s2_s8 = scalar_lea.hbm %s59_s0, 4096 }
   0x2   :  { %3 = vsyncpa [#allocation0], 0  ;;  %s4_s11 = sshll.u32 %s60_s1, 4  ;;  %s34_s14 = scalar_lea.hbm %s59_s0, 8192  ;;  %s5_s11 = int_to_ptr.vmem [resolvable:$true] %s4_s11 }
   0x3   :  { %p11_p0 = scmp.ne.s32.totalorder %s2_s8, %s34_s14  ;;  %p13_p1 = scmp.lt.u32.totalorder %s2_s8, %s59_s0 }
   0x4   :  { %p14_p2 = scmp.lt.u32.totalorder %s34_s14, %s34_s14  ;;  %p16_p4 = scmp.lt.u32.totalorder %s34_s14, %s2_s8 }
   0x6   :  { %p15_p3 = por %p14_p2, %p13_p1 }
   0x8   :  { %p17_p5 = por %p16_p4, %p15_p3 }
   0xa   :  { %p18_p6 = pnand %p17_p5, %p11_p0 }
   0xc   :  { %21 = shalt.err (!%p18_p6)  }
   0xd   :  { %s22_s17 = scalar_lea.vmem %s5_s11, 4096  ;;  %p27_p8 = scmp.lt.s32.totalorder %s5_s11, %s5_s11 }
   0xe   :  { %p23_p7 = scmp.ne.s32.totalorder %s5_s11, %s22_s17  ;;  %p28_p9 = scmp.lt.s32.totalorder %s22_s17, %s22_s17 }
  0x10   :  { %p29_p10 = por %p28_p9, %p27_p8 }
  0x12   :  { %p30_p11 = pnand %p29_p10, %p23_p7 }
  0x14   :  { %33 = shalt.err (!%p30_p11)  }
  0x15   :  { %7 = dma.hbm_to_vmem [thread:$0]  %s2_s8, 4096, %s5_s11, [#allocation0] }
  0x16   :  { %35 = dma.done.wait [#allocation0], 4096  }
  0x17   :  { %36 = vsyncadd [#allocation0], 4294963200 }
  0x18   :  { %9 = vsyncpa [#allocation0], 1 }

// kernel: custom-call
= control target key start
LH: loop header
LB: loop body
LE: loop exit
PB: predicated region body
PF: predicated region fallthrough
CT: control target
= control target key end

     0   :  { %2 = vsyncpa [#allocation0], 0  ;;  %s61_s0 = inlined_call_operand.hbm [shape: c64[2,8,33,16], index: 0, kind: input, shape index: {}]   ;;  %s62_s1 = inlined_call_operand.vmem [shape: f32[2,8,33,16], index: 1, kind: output, shape index: {}]  }
   0x1   :  { %s3_s8 = sshll.u32 %s62_s1, 4  ;;  %s9_s11 = scalar_lea.hbm %s61_s0, 4096  ;;  %s4_s8 = int_to_ptr.vmem [resolvable:$true] %s3_s8 }
   0x2   :  { %p10_p0 = scmp.ne.s32.totalorder %s61_s0, %s9_s11  ;;  %s11_s16 = scalar_lea.hbm %s61_s0, 8192 }
   0x3   :  { %p12_p1 = scmp.lt.u32.totalorder %s11_s16, %s9_s11  ;;  %p13_p2 = scmp.lt.u32.totalorder %s9_s11, %s61_s0 }
   0x5   :  { %p14_p3 = por %p13_p2, %p12_p1 }
   0x7   :  { %p15_p4 = pnand %p14_p3, %p10_p0 }
   0x9   :  { %18 = shalt.err (!%p15_p4)  }
   0xa   :  { %s19_s1 = scalar_lea.vmem %s4_s8, 4096  ;;  %p24_p6 = scmp.lt.s32.totalorder %s4_s8, %s4_s8 }
   0xb   :  { %p20_p5 = scmp.ne.s32.totalorder %s4_s8, %s19_s1  ;;  %p25_p7 = scmp.lt.s32.totalorder %s19_s1, %s19_s1 }
   0xd   :  { %p26_p8 = por %p25_p7, %p24_p6 }
   0xf   :  { %p27_p9 = pnand %p26_p8, %p20_p5 }
  0x11   :  { %30 = shalt.err (!%p27_p9)  }
  0x12   :  { %6 = dma.hbm_to_vmem [thread:$0]  %s61_s0, 4096, %s4_s8, [#allocation0] }
  0x13   :  { %31 = dma.done.wait [#allocation0], 4096  }
  0x14   :  { %32 = vsyncadd [#allocation0], 4294963200 }
  0x15   :  { %8 = vsyncpa [#allocation0], 1 }

// kernel: bandsplit_forward.1
= control target key start
LH: loop header
LB: loop body
LE: loop exit
PB: predicated region body
PF: predicated region fallthrough
CT: control target
= control target key end

     0   :  { %s10077_s30 = smov 0   ;;  %s10079_s10 = smov 0   ;;  %s12429_s0 = inlined_call_operand.vmem [shape: f32[5,2,16,288], index: 0, kind: input, shape index: {}]   ;;  %s12430_s1 = inlined_call_operand.vmem [shape: f32[5,2,16,288], index: 1, kind: input, shape index: {}]   ;;  %s12431_s2 = inlined_call_operand.vmem [shape: f32[5,288,64], index: 2, kind: input, shape index: {}]   ;;  %s12432_s3 = inlined_call_operand.vmem [shape: f32[5,2,64,32], index: 3, kind: input, shape index: {}]   ;;  %s12433_s4 = inlined_call_operand.vmem [shape: f32[5,3,32,64], index: 4, kind: input, shape index: {}]   ;;  %s12434_s5 = inlined_call_operand.vmem [shape: f32[5,32,32], index: 5, kind: input, shape index: {}]   ;;  %s12435_s6 = inlined_call_operand.vmem [shape: f32[5,8,64], index: 6, kind: input, shape index: {}]   ;;  %s12436_s7 = inlined_call_operand.vmem [shape: f32[5,4,16,32], index: 7, kind: input, shape index: {}]   ;;  %s12437_s8 = inlined_call_operand.vmem [shape: f32[5,16,32], index: 8, kind: input, shape index: {}]   ;;  %s12438_s9 = inlined_call_operand.vmem [shape: f32[32,256], index: 9, kind: output, shape index: {}]  }
   0x1   :  { %s10081_s11 = smov 0  }
   0x2 LB: > { %s10088_s12 = sadd.s32 4294967295, %s10009_s11   ;;  %s10090_s13 = sadd.s32 1, %s10009_s11   ;;  %s10009_s11 = sphi %s10081_s11, %s12442_s11   ;;  %s10005_s10 = sphi %s10079_s10, %s12441_s10   ;;  %s10001_s30 = sphi %s10077_s30, %s12440_s30  }
   0x3   : > { %s212_s14 = ssub.s32 %s10009_s11, %s10090_s13  ;;  %s215_s15 = sadd.s32 1, %s10005_s10 }
   0x4   : > { %p213_p0 = scmp.eq.s32.totalorder %s212_s14, 0  ;;  %p225_p1 = scmp.ne.s32.totalorder %s10005_s10, %s10001_s30 }
   0x5   : > { %p226_p2 = scmp.eq.s32.totalorder %s10088_s12, 1  ;;  %p7549_p3 = scmp.ge.s32.totalorder %s10009_s11, 1 }
   0x6   : > { %s10097_s16 = scalar_select %p213_p0, %s10005_s10, %s215_s15  }
   0x7   : > { %p10099_p4 = por %p226_p2, %p225_p1  ;;  %p277_p5 = scmp.lt.s32.totalorder %s10009_s11, 3 }
   0x9   : > { %p278_p6 = pnand %p7549_p3, %p277_p5 }
   0xa   : > { %s304_s18 = sand.u32 (!%p278_p6), 1, %s10001_s30   ;;  %p7551_p7 = scmp.ne.s32.totalorder (!%p278_p6), %s10088_s12, 0 }
   0xb   : > { %281 = sbr.rel (%p278_p6) target bundleno = 13357 (0x342d), region = 56  ;;  %s7550_s19 = sshll.u32 (!%p278_p6), %s304_s18, 5 }
   0xc   : > { %s10103_s20 = scalar_lea.vmem (!%p278_p6), [#allocation2], %s7550_s19 }
  0x12   : > { %310 = sbr.rel (%p7551_p7) target bundleno = 10087 (0x2767), region = 60  ;;  %v313_v0 = vld [vmem:[%s12429_s0 + $0x30] sm:$0xff] (!%p7551_p7)  ;;  %vm320_vm0 = vcmask (!%p7551_p7), 261120   ;;  %v311_v1 = vld [vmem:[%s12429_s0] sm:$0xff] (!%p7551_p7)  ;;  %v314_v2 = vld [vmem:[%s12429_s0 + $0x48] sm:$0xff] (!%p7551_p7)  ;;  %vm528_vm1 = vcmask (!%p7551_p7), 523264  }
  0x13   : > { %v327_v3 = vsel (!%p7551_p7), %vm320_vm0, %v313_v0, 0.0  ;;  %v321_v4 = vsel (!%p7551_p7), %vm320_vm0, %v311_v1, 0.0  ;;  %v312_v5 = vld [vmem:[%s12429_s0 + $0x18] sm:$0xff] (!%p7551_p7)  ;;  %v330_v6 = vsel (!%p7551_p7), %vm320_vm0, %v314_v2, 0.0  ;;  %v405_v40 = vld [vmem:[%s12431_s2] sm:$0xff] (!%p7551_p7)  ;;  %v406_v41 = vld [vmem:[%s12431_s2 + $0x8] sm:$0xff] (!%p7551_p7) }
  0x14   : > { %328 = vadd.xlane.f32.xlu1 (!%p7551_p7), %v327_v3  ;;  %322 = vadd.xlane.f32.xlu0 (!%p7551_p7), %v321_v4  ;;  %v324_v7 = vsel (!%p7551_p7), %vm320_vm0, %v312_v5, 0.0  ;;  %v9147_v42 = vpack.c.bf16 (!%p7551_p7), %v406_v41, %v405_v40  ;;  %v407_v43 = vld [vmem:[%s12431_s2 + $0x10] sm:$0xff] (!%p7551_p7)  ;;  %v408_v44 = vld [vmem:[%s12431_s2 + $0x18] sm:$0xff] (!%p7551_p7)  ;;  %v7554_v41 = vld [vmem:[%s12435_s6] ss:$0 sm:$0xff] (!%p7551_p7)  ;;  %s10011_s30 = smov (!%p7551_p7), 96  }
  0x15   : > { %v9151_v45 = vpack.c.bf16 (!%p7551_p7), %v408_v44, %v407_v43  ;;  %vm10013_vm2 = vmmov (!%p7551_p7), 0   ;;  %vm899_vm3 = vcmask (!%p7551_p7), 1040384   ;;  %vm1692_vm4 = vcmask (!%p7551_p7), 130048   ;;  %s10018_s22 = smov (!%p7551_p7), 32   ;;  %s10019_s14 = smov (!%p7551_p7), 64  }
  0x16   : > { %9148 = vmatprep.subr.bf16.mxu0 (!%p7551_p7), %v9147_v42  ;;  %vm1093_vm5 = vcmask (!%p7551_p7), 254976   ;;  %vm1120_vm6 = vcmask (!%p7551_p7), 1041409   ;;  %vm3082_vm7 = vcmask (!%p7551_p7), 785408   ;;  %vm3066_vm8 = vcmask (!%p7551_p7), 523520  }
  0x17   : > { %9150 = vmatpush3.bf16.msra.mxu0 (!%p7551_p7), %v9147_v42  ;;  %vm4466_vm9 = vcmask (!%p7551_p7), 785920   ;;  %vm5865_vm10 = vcmask (!%p7551_p7), 1048320  }
  0x18   : > { %331 = vadd.xlane.f32.xlu1 (!%p7551_p7), %v330_v6  ;;  %325 = vadd.xlane.f32.xlu0 (!%p7551_p7), %v324_v7  ;;  %v315_v6 = vld [vmem:[%s12430_s1] sm:$0xff] (!%p7551_p7) }
  0x19   : > { %9152 = vmatprep.subr.bf16.mxu0 %v9151_v45 }
  0x1b   : > { %9154 = vmatpush3.bf16.msra.mxu0 %v9151_v45 }
  0xa1   : > { %v329_v8 = vpop.xlane.xlu1 %328  ;;  %v323_v9 = vpop.xlane.xlu0 %322 }
  0xa5   : > { %v332_v10 = vpop.xlane.xlu1 %331  ;;  %v326_v11 = vpop.xlane.xlu0 %325 }
  0xa6   : > { %v340_v12 = vadd.f32 %v332_v10, %v329_v8  ;;  %v333_v13 = vadd.f32 %v326_v11, %v323_v9  ;;  %v7553_v9 = vld [vmem:[%s12430_s1 + $0x48] sm:$0xff]  ;;  %v7552_v10 = vld [vmem:[%s12430_s1 + $0x30] sm:$0xff] }
  0xa8   : > { %v341_v14 = vrot.slane %v340_v12, 4  ;;  %v334_v15 = vrot.slane %v333_v13, 4 }
  0xaa   : > { %v342_v16 = vadd.f32 %v341_v14, %v340_v12  ;;  %v335_v17 = vadd.f32 %v334_v15, %v333_v13 }
  0xac   : > { %v343_v18 = vrot.slane %v342_v16, 2  ;;  %v336_v19 = vrot.slane %v335_v17, 2 }
  0xae   : > { %v344_v20 = vadd.f32 %v343_v18, %v342_v16  ;;  %v337_v21 = vadd.f32 %v336_v19, %v335_v17 }
  0xb0   : > { %v345_v22 = vrot.slane %v344_v20, 1  ;;  %v338_v23 = vrot.slane %v337_v21, 1 }
  0xb2   : > { %v339_v24 = vadd.f32 %v338_v23, %v337_v21  ;;  %v346_v25 = vadd.f32 %v345_v22, %v344_v20 }
  0xb4   : > { %v347_v26 = vmul.f32 0.001953125, %v339_v24  ;;  %v348_v27 = vmul.f32 0.001953125, %v346_v25 }
  0xb6   : > { %v350_v28 = vsub.f32 %v312_v5, %v347_v26  ;;  %v349_v29 = vsub.f32 %v311_v1, %v347_v26  ;;  %v352_v30 = vsub.f32 %v314_v2, %v348_v27  ;;  %v351_v31 = vsub.f32 %v313_v0, %v348_v27  ;;  %v316_v5 = vld [vmem:[%s12430_s1 + $0x18] sm:$0xff]  ;;  %v515_v26 = vld [vmem:[%s12432_s3] sm:$0xff]  ;;  %v516_v27 = vld [vmem:[%s12432_s3 + $0x8] sm:$0xff] }
  0xb8   : > { %v354_v32 = vmul.f32 %v350_v28, %v350_v28  ;;  %v353_v33 = vmul.f32 %v349_v29, %v349_v29  ;;  %v356_v36 = vmul.f32 %v352_v30, %v352_v30  ;;  %v355_v37 = vmul.f32 %v351_v31, %v351_v31 }
  0xba   : > { %v360_v34 = vsel %vm320_vm0, %v354_v32, 0.0  ;;  %v357_v35 = vsel %vm320_vm0, %v353_v33, 0.0  ;;  %v366_v38 = vsel %vm320_vm0, %v356_v36, 0.0  ;;  %v363_v39 = vsel %vm320_vm0, %v355_v37, 0.0  ;;  %v519_v32 = vld [vmem:[%s12432_s3 + $0x20] sm:$0xff]  ;;  %v520_v33 = vld [vmem:[%s12432_s3 + $0x28] sm:$0xff] }
  0xbb   : > { %361 = vadd.xlane.f32.xlu1 %v360_v34  ;;  %358 = vadd.xlane.f32.xlu0 %v357_v35  ;;  %v9163_v34 = vpack.c.bf16 %v520_v33, %v519_v32  ;;  %v521_v35 = vld [vmem:[%s12432_s3 + $0x30] sm:$0xff]  ;;  %v522_v36 = vld [vmem:[%s12432_s3 + $0x38] sm:$0xff] }
  0xbc   : > { %v9167_v37 = vpack.c.bf16 %v522_v36, %v521_v35 }
  0xbf   : > { %367 = vadd.xlane.f32.xlu1 %v366_v38  ;;  %364 = vadd.xlane.f32.xlu0 %v363_v39  ;;  %v626_v38 = vld [vmem:[%s12433_s4] sm:$0xff]  ;;  %v627_v39 = vld [vmem:[%s12433_s4 + $0x8] sm:$0xff] }
  0xc0   : > { %v9171_v40 = vpack.c.bf16 %v627_v39, %v626_v38 }
  0xc2   : > { %9172 = vmatprep.subr.bf16.mxu0 %v9171_v40 }
 0x148   : > { %v362_v46 = vpop.xlane.xlu1 %361  ;;  %v359_v47 = vpop.xlane.xlu0 %358 }
 0x149   : > { %v369_v48 = vadd.f32 %v362_v46, %v359_v47 }
 0x14b   : > { %v370_v49 = vrot.slane %v369_v48, 4 }
 0x14c   : > { %v368_v50 = vpop.xlane.xlu1 %367  ;;  %v365_v51 = vpop.xlane.xlu0 %364 }
 0x14d   : > { %v371_v52 = vadd.f32 %v370_v49, %v369_v48  ;;  %v376_v53 = vadd.f32 %v368_v50, %v365_v51 }
 0x14f   : > { %v372_v54 = vrot.slane %v371_v52, 2  ;;  %v377_v55 = vrot.slane %v376_v53, 4 }
 0x151   : > { %v373_v56 = vadd.f32 %v372_v54, %v371_v52  ;;  %v378_v57 = vadd.f32 %v377_v55, %v376_v53  ;;  %v628_v54 = vld [vmem:[%s12433_s4 + $0x10] sm:$0xff]  ;;  %v629_v55 = vld [vmem:[%s12433_s4 + $0x18] sm:$0xff] }
 0x153   : > { %v374_v58 = vrot.slane %v373_v56, 1  ;;  %v379_v59 = vrot.slane %v378_v57, 2 }
 0x155   : > { %v375_v60 = vadd.f32 %v374_v58, %v373_v56  ;;  %v380_v61 = vadd.f32 %v379_v59, %v378_v57  ;;  %v9175_v56 = vpack.c.bf16 %v629_v55, %v628_v54  ;;  %v7559_v57 = vld [vmem:[%s12435_s6 + $0x4] ss:$0 sm:$0xff] }
 0x157   : > { %v383_v62 = vmul.f32 0.001953125, %v375_v60  ;;  %v381_v63 = vrot.slane %v380_v61, 1 }
 0x159   : > { %v385_v0 = vadd.f32 1e-05, %v383_v62  ;;  %v382_v1 = vadd.f32 %v381_v63, %v380_v61 }
 0x15b   : > { %9649 = vrsqrt.f32 %v385_v0  ;;  %v384_v2 = vmul.f32 0.001953125, %v382_v1 }
 0x15d   : > { %v386_v3 = vadd.f32 1e-05, %v384_v2  ;;  %v7564_v2 = vld [vmem:[%s12435_s6 + $0x1] ss:$0 sm:$0xff] }
 0x15f   : > { %9651 = vrsqrt.f32 %v386_v3 }
 0x165   : > { %v9650_v4 = vpop.eup %9649 }
 0x166   : > { %v390_v7 = vmul.f32 %v9650_v4, %v350_v28  ;;  %v389_v8 = vmul.f32 %v9650_v4, %v349_v29  ;;  %v9155_v28 = vpack.c.bf16 %v516_v27, %v515_v26  ;;  %v517_v29 = vld [vmem:[%s12432_s3 + $0x10] sm:$0xff] }
 0x168   : > { %v394_v11 = vmul.f32 %v390_v7, %v316_v5  ;;  %v393_v12 = vmul.f32 %v389_v8, %v315_v6  ;;  %9156 = vmatprep.subr.bf16.mxu1 %v9155_v28 }
 0x169   : > { %v9652_v13 = vpop.eup %9651  ;;  %9158 = vmatpush3.bf16.msra.mxu1 %v9155_v28 }
 0x16a   : > { %v398_v14 = vadd.f32 %v7553_v9, %v394_v11  ;;  %v392_v15 = vmul.f32 %v9652_v13, %v352_v30  ;;  %v391_v16 = vmul.f32 %v9652_v13, %v351_v31  ;;  %v397_v17 = vadd.f32 %v7552_v10, %v393_v12  ;;  %v518_v30 = vld [vmem:[%s12432_s3 + $0x18] sm:$0xff] }
 0x16b   : > { %v9159_v31 = vpack.c.bf16 %v518_v30, %v517_v29 }
 0x16c   : > { %9653 = vtanh.f32 %v398_v14  ;;  %v396_v18 = vmul.f32 %v392_v15, %v316_v5  ;;  %v395_v19 = vmul.f32 %v391_v16, %v315_v6 }
 0x16d   : > { %9655 = vtanh.f32 %v397_v17  ;;  %9160 = vmatprep.subr.bf16.mxu1 %v9159_v31 }
 0x16e   : > { %v400_v20 = vadd.f32 %v7553_v9, %v396_v18  ;;  %v399_v21 = vadd.f32 %v7552_v10, %v395_v19  ;;  %9162 = vmatpush3.bf16.msra.mxu1 %v9159_v31 }
 0x16f   : > { %9164 = vmatprep.subr.bf16.mxu1 %v9163_v34 }
 0x170   : > { %9657 = vtanh.f32 %v400_v20 }
 0x171   : > { %9659 = vtanh.f32 %v399_v21 }
 0x172   : > { %9166 = vmatpush3.bf16.msra.mxu1 %v9163_v34 }
 0x173   : > { %9168 = vmatprep.subr.bf16.mxu1 %v9167_v37 }
 0x176   : > { %v9654_v22 = vpop.eup %9653  ;;  %9170 = vmatpush3.bf16.msra.mxu1 %v9167_v37 }
 0x177   : > { %v9656_v23 = vpop.eup %9655 }
 0x178   : > { %8492 = vmatprep.mubr.msk.f32.mxu0 %vm320_vm0, %v9656_v23 }
 0x179   : > { %8493 = vmatmul.mubr.msk.f32.vlgmr.msra.gmra.mrb[0].mxu0 %vm320_vm0, %v9654_v22 }
 0x17a   : > { %v9658_v24 = vpop.eup %9657  ;;  %9174 = vmatpush3.bf16.msra.mxu0 %v9171_v40 }
 0x17b   : > { %v9660_v25 = vpop.eup %9659  ;;  %9176 = vmatprep.subr.bf16.mxu0 %v9175_v56 }
 0x17c   : > { %8495 = vmatprep.mubr.msk.f32.mxu0 %vm320_vm0, %v9660_v25 }
 0x17d   : > { %8496 = vmatmul.mubr.msk.f32.gmra.mrb[2].mxu0 %vm320_vm0, %v9658_v24 }
 0x17e   : > { %9178 = vmatpush3.bf16.msra.mxu0 %v9175_v56 }
 0x24c   : > { %v8494_v42 = vpop.f32.mrb[0].mxu0 }
 0x24d   : > { %v498_v43 = vadd.f32 %v8494_v42, %v7554_v41  ;;  %v492_v44 = vpop.f32.mrb[1].mxu0 }
 0x24e   : > { %v493_v45 = vadd.f32 %v7554_v41, %v492_v44 }
 0x250   : > { %9661 = vtanh.f32 %v493_v45  ;;  %v8497_v46 = vpop.f32.mrb[2].mxu0 }
 0x251   : > { %9663 = vtanh.f32 %v498_v43  ;;  %v508_v47 = vadd.f32 %v8497_v46, %v7554_v41  ;;  %v502_v48 = vpop.f32.mrb[3].mxu0 }
 0x252   : > { %v503_v49 = vadd.f32 %v7554_v41, %v502_v48 }
 0x254   : > { %9665 = vtanh.f32 %v503_v49 }
 0x255   : > { %9667 = vtanh.f32 %v508_v47 }
 0x25a   : > { %v9662_v50 = vpop.eup %9661 }
 0x25b   : > { %v9664_v51 = vpop.eup %9663  ;;  %8514 = vmatprep.mubr.msk.f32.mxu1 %vm528_vm1, %v9662_v50 }
 0x25c   : > { %8515 = vmatmul.mubr.msk.f32.vlgmr.msra.gmra.mrb[0].mxu1 %vm528_vm1, %v9664_v51 }
 0x25e   : > { %v9666_v52 = vpop.eup %9665 }
 0x25f   : > { %v9668_v53 = vpop.eup %9667  ;;  %8517 = vmatprep.mubr.msk.f32.mxu1 %vm528_vm1, %v9666_v52 }
 0x260   : > { %8518 = vmatmul.mubr.msk.f32.gmra.mrb[2].mxu1 %vm528_vm1, %v9668_v53 }
 0x32f   : > { %v8516_v58 = vpop.f32.mrb[0].mxu1 }
 0x330   : > { %v607_v59 = vpop.f32.mrb[1].mxu1  ;;  %v613_v61 = vadd.f32 %v8516_v58, %v7559_v57 }
 0x331   : > { %v608_v60 = vadd.f32 %v7559_v57, %v607_v59 }
 0x333   : > { %v8519_v62 = vpop.f32.mrb[2].mxu1  ;;  %8528 = vmatprep.mubr.msk.f32.mxu0 %vm320_vm0, %v608_v60 }
 0x334   : > { %v617_v63 = vpop.f32.mrb[3].mxu1  ;;  %8529 = vmatmul.mubr.msk.f32.vlgmr.msra.gmra.mrb[4].mxu0 %vm320_vm0, %v613_v61  ;;  %v623_v1 = vadd.f32 %v8519_v62, %v7559_v57 }
 0x335   : > { %v618_v0 = vadd.f32 %v7559_v57, %v617_v63 }
 0x337   : > { %8531 = vmatprep.mubr.msk.f32.mxu0 %vm320_vm0, %v618_v0 }
 0x338   : > { %8532 = vmatmul.mubr.msk.f32.gmra.mrb[6].mxu0 %vm320_vm0, %v623_v1 }
 0x407   : > { %v8530_v3 = vpop.f32.mrb[4].mxu0 }
 0x408   : > { %v719_v4 = vadd.f32 %v8530_v3, %v7564_v2  ;;  %v713_v5 = vpop.f32.mrb[5].mxu0 }
 0x409   : > { %v714_v6 = vadd.f32 %v7564_v2, %v713_v5 }
 0x40a   : > { %v7570_v7 = vmul.f32 -1.442695, %v719_v4 }
 0x40b   : > { %v7569_v8 = vmul.f32 -1.442695, %v714_v6  ;;  %v8533_v9 = vpop.f32.mrb[6].mxu0 }
 0x40c   : > { %9669 = vpow2.f32 %v7570_v7  ;;  %v729_v10 = vadd.f32 %v8533_v9, %v7564_v2  ;;  %v723_v11 = vpop.f32.mrb[7].mxu0  ;;  %v7575_v7 = vld [vmem:[%s12433_s4 + $0x40] sm:$0xff]  ;;  %v7577_v9 = vld [vmem:[%s12433_s4 + $0x50] sm:$0xff] }
 0x40d   : > { %9671 = vpow2.f32 %v7569_v8  ;;  %v724_v12 = vadd.f32 %v7564_v2, %v723_v11  ;;  %v7576_v8 = vld [vmem:[%s12433_s4 + $0x48] sm:$0xff] }
 0x40e   : > { %v7572_v13 = vmul.f32 -1.442695, %v729_v10  ;;  %v9180_v11 = vpack.c.bf16 %v7576_v8, %v7575_v7 }
 0x40f   : > { %v7571_v14 = vmul.f32 -1.442695, %v724_v12 }
 0x410   : > { %9673 = vpow2.f32 %v7572_v13  ;;  %v10014_v13 = vmov 0.0  }
 0x411   : > { %9675 = vpow2.f32 %v7571_v14  ;;  %8542 = vmatprep.mubr.msk.f32.mxu0 %vm10013_vm2, %v10014_v13  ;;  %8561 = vmatprep.mubr.msk.f32.mxu1 %vm10013_vm2, %v10014_v13 }
 0x416   : > { %v9670_v15 = vpop.eup %9669 }
 0x417   : > { %v9672_v16 = vpop.eup %9671  ;;  %v745_v17 = vadd.f32 1.0, %v9670_v15  ;;  %v7581_v15 = vld [vmem:[%s12432_s3 + $0x40] sm:$0xff] }
 0x418   : > { %v744_v18 = vadd.f32 1.0, %v9672_v16  ;;  %v7582_v16 = vld [vmem:[%s12432_s3 + $0x48] sm:$0xff] }
 0x419   : > { %9677 = vrcp.f32 %v745_v17  ;;  %v7583_v17 = vld [vmem:[%s12432_s3 + $0x50] sm:$0xff] }
 0x41a   : > { %v9674_v19 = vpop.eup %9673  ;;  %9679 = vrcp.f32 %v744_v18  ;;  %v9186_v18 = vpack.c.bf16 %v7582_v16, %v7581_v15 }
 0x41b   : > { %v9676_v20 = vpop.eup %9675  ;;  %v747_v22 = vadd.f32 1.0, %v9674_v19  ;;  %v7584_v19 = vld [vmem:[%s12432_s3 + $0x58] sm:$0xff] }
 0x41c   : > { %v746_v21 = vadd.f32 1.0, %v9676_v20  ;;  %v9189_v20 = vpack.c.bf16 %v7584_v19, %v7583_v17 }
 0x41e   : > { %9681 = vrcp.f32 %v746_v21  ;;  %v7585_v21 = vld [vmem:[%s12432_s3 + $0x60] sm:$0xff] }
 0x41f   : > { %9683 = vrcp.f32 %v747_v22  ;;  %v7586_v22 = vld [vmem:[%s12432_s3 + $0x68] sm:$0xff] }
 0x423   : > { %v9678_v23 = vpop.eup %9677 }
 0x424   : > { %v9680_v24 = vpop.eup %9679  ;;  %762 = vrot.lane.b32.xlu1 %v9678_v23, %s10011_s30  ;;  %v9192_v23 = vpack.c.bf16 %v7586_v22, %v7585_v21 }
 0x425   : > { %760 = vrot.lane.b32.xlu0 %v9680_v24, %s10011_s30 }
 0x428   : > { %v9682_v25 = vpop.eup %9681 }
 0x429   : > { %764 = vrot.lane.b32.xlu1 %v9682_v25, %s10011_s30  ;;  %v9684_v26 = vpop.eup %9683 }
 0x42d   : > { %766 = vrot.lane.b32.xlu1 %v9684_v26, %s10011_s30 }
 0x496   : > { %v763_v27 = vpop.permute.xlu1 %762 }
 0x497   : > { %v773_v28 = vmul.f32 %v763_v27, %v719_v4  ;;  %v761_v29 = vpop.permute.xlu0 %760 }
 0x498   : > { %v772_v30 = vmul.f32 %v761_v29, %v714_v6 }
 0x499   : > { %v784_v31 = vsel %vm320_vm0, %v773_v28, 0.0 }
 0x49a   : > { %785 = vadd.xlane.f32.xlu1 %v784_v31  ;;  %v781_v32 = vsel %vm320_vm0, %v772_v30, 0.0 }
 0x49b   : > { %782 = vadd.xlane.f32.xlu0 %v781_v32  ;;  %v765_v33 = vpop.permute.xlu1 %764 }
 0x49c   : > { %v774_v34 = vmul.f32 %v765_v33, %v724_v12  ;;  %v7578_v12 = vld [vmem:[%s12433_s4 + $0x58] sm:$0xff] }
 0x49d   : > { %v9183_v14 = vpack.c.bf16 %v7578_v12, %v7577_v9 }
 0x49e   : > { %v787_v35 = vsel %vm320_vm0, %v774_v34, 0.0 }
 0x49f   : > { %788 = vadd.xlane.f32.xlu0 %v787_v35  ;;  %v767_v36 = vpop.permute.xlu1 %766 }
 0x4a0   : > { %v775_v37 = vmul.f32 %v767_v36, %v729_v10  ;;  %v10012_v10 = vmov 0.0|0.0  }
 0x4a1   : > { %9179 = vmatprep.subr.bf16.mxu0 %v10012_v10  ;;  %9185 = vmatprep.subr.bf16.mxu1 %v10012_v10 }
 0x4a2   : > { %v790_v38 = vsel %vm320_vm0, %v775_v37, 0.0  ;;  %9181 = vmatpush3.bf16.msra.mxu0 %v9180_v11  ;;  %9187 = vmatpush3.bf16.msra.mxu1 %v9186_v18 }
 0x4a3   : > { %791 = vadd.xlane.f32.xlu0 %v790_v38  ;;  %9182 = vmatprep.subr.bf16.mxu0 %v10012_v10 }
 0x4a4   : > { %9188 = vmatprep.subr.bf16.mxu1 %v10012_v10 }
 0x4a6   : > { %9184 = vmatpush3.bf16.msra.mxu0 %v9183_v14  ;;  %9190 = vmatpush3.bf16.msra.mxu1 %v9189_v20 }
 0x4a7   : > { %9197 = vmatprep.subr.bf16.mxu0 %v10012_v10  ;;  %9191 = vmatprep.subr.bf16.mxu1 %v10012_v10 }
 0x4aa   : > { %9193 = vmatpush3.bf16.msra.mxu1 %v9192_v23 }
 0x4ab   : > { %9194 = vmatprep.subr.bf16.mxu1 %v10012_v10 }
 0x527   : > { %v786_v39 = vpop.xlane.xlu1 %785 }
 0x528   : > { %v783_v40 = vpop.xlane.xlu0 %782 }
 0x529   : > { %v793_v41 = vadd.f32 %v786_v39, %v783_v40 }
 0x52b   : > { %v794_v42 = vrot.slane %v793_v41, 4 }
 0x52c   : > { %v789_v43 = vpop.xlane.xlu0 %788 }
 0x52d   : > { %v795_v44 = vadd.f32 %v794_v42, %v793_v41 }
 0x52f   : > { %v796_v45 = vrot.slane %v795_v44, 2 }
 0x530   : > { %v792_v46 = vpop.xlane.xlu0 %791 }
 0x531   : > { %v797_v47 = vadd.f32 %v796_v45, %v795_v44  ;;  %v800_v48 = vadd.f32 %v792_v46, %v789_v43 }
 0x533   : > { %v798_v49 = vrot.slane %v797_v47, 1  ;;  %v801_v50 = vrot.slane %v800_v48, 4 }
 0x535   : > { %v802_v51 = vadd.f32 %v801_v50, %v800_v48  ;;  %v799_v52 = vadd.f32 %v798_v49, %v797_v47  ;;  %v776_v47 = vld [vmem:[%s12436_s7] sm:$0xff]  ;;  %v777_v48 = vld [vmem:[%s12436_s7 + $0x8] sm:$0xff] }
 0x537   : > { %v803_v53 = vrot.slane %v802_v51, 2  ;;  %v807_v54 = vmul.f32 0.001953125, %v799_v52  ;;  %v7574_v52 = vld [vmem:[%s12436_s7 + $0x18] sm:$0xff] }
 0x539   : > { %v804_v55 = vadd.f32 %v803_v53, %v802_v51  ;;  %v10215_v56 = vsub.f32 %v773_v28, %v807_v54  ;;  %v10217_v57 = vsub.f32 %v772_v30, %v807_v54  ;;  %v7573_v51 = vld [vmem:[%s12436_s7 + $0x10] sm:$0xff] }
 0x53b   : > { %v805_v58 = vrot.slane %v804_v55, 1  ;;  %v814_v59 = vmul.f32 %v10215_v56, %v10215_v56  ;;  %v813_v60 = vmul.f32 %v10217_v57, %v10217_v57 }
 0x53d   : > { %v820_v61 = vsel %vm320_vm0, %v814_v59, 0.0  ;;  %v817_v62 = vsel %vm320_vm0, %v813_v60, 0.0  ;;  %v806_v63 = vadd.f32 %v805_v58, %v804_v55 }
 0x53e   : > { %821 = vadd.xlane.f32.xlu1 %v820_v61  ;;  %818 = vadd.xlane.f32.xlu0 %v817_v62 }
 0x53f   : > { %v808_v0 = vmul.f32 0.001953125, %v806_v63 }
 0x541   : > { %v10225_v1 = vsub.f32 %v775_v37, %v808_v0  ;;  %v10227_v2 = vsub.f32 %v774_v34, %v808_v0 }
 0x543   : > { %v816_v3 = vmul.f32 %v10225_v1, %v10225_v1  ;;  %v815_v4 = vmul.f32 %v10227_v2, %v10227_v2 }
 0x545   : > { %v826_v5 = vsel %vm320_vm0, %v816_v3, 0.0  ;;  %v823_v6 = vsel %vm320_vm0, %v815_v4, 0.0 }
 0x546   : > { %827 = vadd.xlane.f32.xlu1 %v826_v5  ;;  %824 = vadd.xlane.f32.xlu0 %v823_v6 }
 0x5cb   : > { %v822_v24 = vpop.xlane.xlu1 %821  ;;  %v819_v25 = vpop.xlane.xlu0 %818 }
 0x5cc   : > { %v829_v26 = vadd.f32 %v822_v24, %v819_v25 }
 0x5ce   : > { %v830_v27 = vrot.slane %v829_v26, 4 }
 0x5d0   : > { %v831_v28 = vadd.f32 %v830_v27, %v829_v26 }
 0x5d2   : > { %v832_v29 = vrot.slane %v831_v28, 2 }
 0x5d3   : > { %v828_v30 = vpop.xlane.xlu1 %827  ;;  %v825_v31 = vpop.xlane.xlu0 %824 }
 0x5d4   : > { %v833_v32 = vadd.f32 %v832_v29, %v831_v28  ;;  %v836_v33 = vadd.f32 %v828_v30, %v825_v31  ;;  %v10015_v29 = vmov 1983009808   ;;  %v918_v31 = vlaneseq }
 0x5d5   : > { %v916_v30 = vunpack.c.l.s4 %v10015_v29 }
 0x5d6   : > { %v834_v34 = vrot.slane %v833_v32, 1  ;;  %v837_v35 = vrot.slane %v836_v33, 4 }
 0x5d8   : > { %v835_v36 = vadd.f32 %v834_v34, %v833_v32  ;;  %v838_v37 = vadd.f32 %v837_v35, %v836_v33 }
 0x5da   : > { %v843_v38 = vmul.f32 0.001953125, %v835_v36  ;;  %v839_v39 = vrot.slane %v838_v37, 2 }
 0x5dc   : > { %v845_v40 = vadd.f32 1e-05, %v843_v38  ;;  %v840_v41 = vadd.f32 %v839_v39, %v838_v37  ;;  %v917_v38 = vunpack.c.0.s8 %v916_v30  ;;  %v10316_v39 = vshrl.u32 %v918_v31, 7 }
 0x5de   : > { %9685 = vrsqrt.f32 %v845_v40  ;;  %v841_v42 = vrot.slane %v840_v41, 1 }
 0x5e0   : > { %v842_v43 = vadd.f32 %v841_v42, %v840_v41 }
 0x5e2   : > { %v844_v44 = vmul.f32 0.001953125, %v842_v43 }
 0x5e4   : > { %v846_v45 = vadd.f32 1e-05, %v844_v44 }
 0x5e6   : > { %9687 = vrsqrt.f32 %v846_v45  ;;  %v10319_v45 = vsub.s32 %v917_v38, %v10316_v39 }
 0x5e8   : > { %v9686_v46 = vpop.eup %9685 }
 0x5e9   : > { %v849_v49 = vmul.f32 %v9686_v46, %v10217_v57  ;;  %v850_v50 = vmul.f32 %v9686_v46, %v10215_v56 }
 0x5eb   : > { %v853_v53 = vmul.f32 %v849_v49, %v776_v47  ;;  %v854_v54 = vmul.f32 %v850_v50, %v777_v48  ;;  %v7587_v50 = vld [vmem:[%s12432_s3 + $0x70] sm:$0xff] }
 0x5ed   : > { %v10290_v55 = vadd.f32 %v7573_v51, %v853_v53  ;;  %v10292_v58 = vadd.f32 %v7574_v52, %v854_v54  ;;  %v7579_v53 = vld [vmem:[%s12435_s6 + $0x2] ss:$0 sm:$0xff] }
 0x5ef   : > { %v861_v59 = vsel %vm320_vm0, %v10290_v55, 0.0  ;;  %v862_v56 = vsel %vm320_vm0, %v10292_v58, 0.0  ;;  %v881_v57 = vsel %vm320_vm0, %v10290_v55, -inf  ;;  %v882_v60 = vsel %vm320_vm0, %v10292_v58, -inf }
 0x5f0   : > { %v9688_v61 = vpop.eup %9687  ;;  %v863_v62 = vadd.f32 %v862_v56, %v861_v59  ;;  %v883_v63 = vmax.f32 %v881_v57, %v882_v60  ;;  %v10340_v60 = vld [vmem:[%s12429_s0 + $0x78] sm:$0xff] }
 0x5f1   : > { %v851_v0 = vmul.f32 %v9688_v61, %v10227_v2  ;;  %v852_v3 = vmul.f32 %v9688_v61, %v10225_v1  ;;  %v10345_v61 = vld [vmem:[%s12429_s0 + $0x60] sm:$0xff] }
 0x5f2   : > { %v864_v4 = vrot.slane %v863_v62, 4  ;;  %v884_v5 = vrot.slane %v883_v63, 4 }
 0x5f3   : > { %v855_v6 = vmul.f32 %v851_v0, %v776_v47  ;;  %v856_v7 = vmul.f32 %v852_v3, %v777_v48  ;;  %v7591_v0 = vld [vmem:[%s12433_s4 + $0x20] sm:$0xff]  ;;  %v7592_v3 = vld [vmem:[%s12433_s4 + $0x28] sm:$0xff] }
 0x5f4   : > { %v865_v8 = vadd.f32 %v864_v4, %v863_v62  ;;  %v885_v14 = vmax.f32 %v883_v63, %v884_v5  ;;  %v1696_v62 = vsel %vm1692_vm4, %v10340_v60, 0.0  ;;  %v1693_v63 = vsel %vm1692_vm4, %v10345_v61, 0.0  ;;  %v10360_v4 = vld [vmem:[%s12429_s0 + $0xa8] sm:$0xff]  ;;  %v10365_v5 = vld [vmem:[%s12429_s0 + $0x90] sm:$0xff] }
 0x5f5   : > { %v10304_v9 = vadd.f32 %v7573_v51, %v855_v6  ;;  %v10306_v11 = vadd.f32 %v7574_v52, %v856_v7  ;;  %v7588_v51 = vld [vmem:[%s12432_s3 + $0x78] sm:$0xff]  ;;  %1697 = vadd.xlane.f32.xlu1 %v1696_v62  ;;  %1694 = vadd.xlane.f32.xlu0 %v1693_v63  ;;  %v9198_v6 = vpack.c.bf16 %v7592_v3, %v7591_v0  ;;  %v1702_v7 = vsel %vm1692_vm4, %v10360_v4, 0.0 }
 0x5f6   : > { %v866_v12 = vrot.slane %v865_v8, 2  ;;  %v886_v21 = vrot.slane %v885_v14, 2  ;;  %v9195_v52 = vpack.c.bf16 %v7588_v51, %v7587_v50 }
 0x5f7   : > { %v870_v15 = vsel %vm320_vm0, %v10304_v9, 0.0  ;;  %v871_v16 = vsel %vm320_vm0, %v10306_v11, 0.0  ;;  %v890_v1 = vsel %vm320_vm0, %v10304_v9, -inf  ;;  %v891_v2 = vsel %vm320_vm0, %v10306_v11, -inf }
 0x5f8   : > { %v872_v17 = vadd.f32 %v871_v16, %v870_v15  ;;  %v892_v18 = vmax.f32 %v890_v1, %v891_v2  ;;  %v867_v19 = vadd.f32 %v866_v12, %v865_v8  ;;  %v887_v27 = vmax.f32 %v885_v14, %v886_v21  ;;  %9196 = vmatpush3.bf16.msra.mxu1 %v9195_v52  ;;  %v7593_v12 = vld [vmem:[%s12433_s4 + $0x30] sm:$0xff]  ;;  %v7594_v14 = vld [vmem:[%s12433_s4 + $0x38] sm:$0xff]  ;;  %v1205_v16 = vld [vmem:[%s12434_s5] sm:$0xff] }
 0x5f9   : > { %v1699_v8 = vsel %vm1692_vm4, %v10365_v5, 0.0  ;;  %1703 = vadd.xlane.f32.xlu1 %v1702_v7  ;;  %v9201_v15 = vpack.c.bf16 %v7594_v14, %v7593_v12  ;;  %v1206_v1 = vld [vmem:[%s12434_s5 + $0x8] sm:$0xff] }
 0x5fa   : > { %v873_v20 = vrot.slane %v872_v17, 4  ;;  %v893_v22 = vrot.slane %v892_v18, 4  ;;  %v868_v23 = vrot.slane %v867_v19, 1  ;;  %v888_v36 = vrot.slane %v887_v27, 1  ;;  %1700 = vadd.xlane.f32.xlu0 %v1699_v8 }
 0x5fb   : > { %v9203_v2 = vpack.c.bf16 %v1206_v1, %v1205_v16 }
 0x5fc   : > { %v874_v24 = vadd.f32 %v873_v20, %v872_v17  ;;  %v894_v25 = vmax.f32 %v892_v18, %v893_v22  ;;  %v869_v32 = vadd.f32 %v868_v23, %v867_v19  ;;  %v889_v43 = vmax.f32 %v887_v27, %v888_v36  ;;  %v7589_v17 = vld [vmem:[%s12435_s6 + $0x5] ss:$0 sm:$0xff]  ;;  %v1208_v36 = vld [vmem:[%s12434_s5 + $0x18] sm:$0xff] }
 0x5fe   : > { %v875_v26 = vrot.slane %v874_v24, 2  ;;  %v895_v28 = vrot.slane %v894_v25, 2  ;;  %v879_v41 = vmul.f32 0.0625, %v869_v32 }
 0x600   : > { %v876_v33 = vadd.f32 %v875_v26, %v874_v24  ;;  %v896_v34 = vmax.f32 %v894_v25, %v895_v28  ;;  %v900_v46 = vsel %vm899_vm3, %v879_v41, %v889_v43 }
 0x602   : > { %v877_v35 = vrot.slane %v876_v33, 1  ;;  %v897_v37 = vrot.slane %v896_v34, 1 }
 0x604   : > { %v878_v40 = vadd.f32 %v877_v35, %v876_v33  ;;  %v898_v44 = vmax.f32 %v896_v34, %v897_v37  ;;  %v1207_v35 = vld [vmem:[%s12434_s5 + $0x10] sm:$0xff] }
 0x606   : > { %v880_v42 = vmul.f32 0.0625, %v878_v40 }
 0x608   : > { %v901_v47 = vsel %vm899_vm3, %v880_v42, %v898_v44  ;;  %v9207_v42 = vpack.c.bf16 %v1208_v36, %v1207_v35 }
 0x609   : > { %v914_v48 = vcombine.low %v900_v46, %v901_v47 }
 0x60b   : > { %v921_v49 = vrot.slane %v914_v48, %v10319_v45 }
 0x60d   : > { %8543 = vmatmul.mubr.msk.f32.vlgmr.msra.gmra.mrb[8].mxu0 %vm320_vm0, %v921_v49 }
 0x60e   : > { %8572 = vmatprep.mubr.msk.f32.mxu0 %vm10013_vm2, %v10014_v13  ;;  %9199 = vmatpush3.bf16.msra.mxu0 %v9198_v6 }
 0x60f   : > { %9200 = vmatprep.subr.bf16.mxu0 %v10012_v10 }
 0x612   : > { %9202 = vmatpush3.bf16.msra.mxu0 %v9201_v15 }
 0x613   : > { %9204 = vmatprep.subr.bf16.mxu0 %v9203_v2 }
 0x682   : > { %v1698_v40 = vpop.xlane.xlu1 %1697  ;;  %v1695_v41 = vpop.xlane.xlu0 %1694 }
 0x683   : > { %v1705_v43 = vadd.f32 %v1698_v40, %v1695_v41 }
 0x685   : > { %v1706_v46 = vrot.slane %v1705_v43, 4 }
 0x686   : > { %v1704_v49 = vpop.xlane.xlu1 %1703 }
 0x687   : > { %v1707_v47 = vadd.f32 %v1706_v46, %v1705_v43  ;;  %v1701_v50 = vpop.xlane.xlu0 %1700 }
 0x688   : > { %v1712_v52 = vadd.f32 %v1704_v49, %v1701_v50 }
 0x689   : > { %v1708_v48 = vrot.slane %v1707_v47, 2 }
 0x68b   : > { %v1709_v51 = vadd.f32 %v1708_v48, %v1707_v47 }
 0x6e0   : > { %v990_v54 = vpop.f32.mrb[8].mxu0 }
 0x6e1   : > { %v991_v59 = vadd.f32 %v7579_v53, %v990_v54  ;;  %v8544_v56 = vpop.f32.mrb[9].mxu0  ;;  %v1710_v53 = vrot.slane %v1709_v51, 1  ;;  %v1713_v54 = vrot.slane %v1712_v52, 4 }
 0x6e3   : > { %v994_v57 = vmax.f32 %v991_v59, 0.0  ;;  %v1714_v59 = vadd.f32 %v1713_v54, %v1712_v52  ;;  %v1711_v56 = vadd.f32 %v1710_v53, %v1709_v51 }
 0x6e5   : > { %8562 = vmatmul.mubr.msk.f32.vlgmr.msra.gmra.mrb[4].mxu1 %vm528_vm1, %v994_v57  ;;  %v1719_v57 = vmul.f32 0.00390625, %v1711_v56  ;;  %v1376_v56 = vld [vmem:[%s12437_s8] sm:$0xff] }
 0x6e6   : > { %8597 = vmatprep.mubr.msk.f32.mxu1 %vm320_vm0, %v1376_v56 }
 0x6e7   : > { %v10407_v63 = vsub.f32 %v10345_v61, %v1719_v57  ;;  %v10410_v0 = vsub.f32 %v10340_v60, %v1719_v57 }
 0x6e9   : > { %v1725_v3 = vmul.f32 %v10407_v63, %v10407_v63 }
 0x6eb   : > { %v1729_v6 = vsel %vm1692_vm4, %v1725_v3, 0.0 }
 0x6ec   : > { %1730 = vadd.xlane.f32.xlu1 %v1729_v6 }
 0x7b8   : > { %v1078_v18 = vpop.f32.mrb[4].mxu1 }
 0x7b9   : > { %v1079_v19 = vadd.f32 %v7589_v17, %v1078_v18  ;;  %v8563_v20 = vpop.f32.mrb[5].mxu1 }
 0x7bb   : > { %v1089_v21 = vrot.slane %v1079_v19, %v10319_v45 }
 0x7bd   : > { %v1090_v22 = vcombine.high %v1089_v21, %v1089_v21  ;;  %v1094_v23 = vsel %vm1093_vm5, %v1089_v21, 0.0 }
 0x7be   : > { %v1095_v24 = vrot.slane %v1094_v23, 4 }
 0x7bf   : > { %v1101_v25 = vsel %vm1093_vm5, %v1090_v22, 0.0 }
 0x7c0   : > { %v1096_v26 = vadd.f32 %v1095_v24, %v1094_v23  ;;  %v1102_v27 = vrot.slane %v1101_v25, 4 }
 0x7c2   : > { %v1097_v28 = vrot.slane %v1096_v26, 2  ;;  %v1103_v29 = vadd.f32 %v1102_v27, %v1101_v25  ;;  %v10016_v25 = vmov 1966171168  }
 0x7c4   : > { %v1098_v30 = vadd.f32 %v1097_v28, %v1096_v26  ;;  %v1104_v31 = vrot.slane %v1103_v29, 2  ;;  %v1313_v26 = vunpack.c.l.s4 %v10016_v25 }
 0x7c6   : > { %v1099_v32 = vrot.slane %v1098_v30, 1  ;;  %v1105_v33 = vadd.f32 %v1104_v31, %v1103_v29  ;;  %v1314_v27 = vunpack.c.0.s8 %v1313_v26  ;;  %v7621_v26 = vld [vmem:[%s12430_s1 + $0x78] sm:$0xff] }
 0x7c8   : > { %v1106_v34 = vrot.slane %v1105_v33, 1  ;;  %v1100_v37 = vadd.f32 %v1099_v32, %v1098_v30  ;;  %v10435_v28 = vsub.s32 %v1314_v27, %v10316_v39  ;;  %v10439_v32 = vsub.s32 0, %v10316_v39 }
 0x7ca   : > { %v1107_v38 = vadd.f32 %v1106_v34, %v1105_v33  ;;  %v7598_v33 = vld [vmem:[%s12435_s6 + $0x6] ss:$0 sm:$0xff] }
 0x7cc   : > { %v1121_v44 = vsel %vm1120_vm6, %v1107_v38, %v1100_v37 }
 0x7cd   : > { %8573 = vmatmul.mubr.msk.f32.vlgmr.msra.gmra.mrb[10].mxu0 %vm320_vm0, %v1121_v44 }
 0x7ce   : > { %9206 = vmatpush3.bf16.msra.mxu0 %v9203_v2  ;;  %8583 = vmatprep.mubr.msk.f32.mxu0 %vm320_vm0, %v10290_v55  ;;  %v1715_v55 = vrot.slane %v1714_v59, 2 }
 0x7cf   : > { %9208 = vmatprep.subr.bf16.mxu0 %v9207_v42 }
 0x7d0   : > { %v1716_v62 = vadd.f32 %v1715_v55, %v1714_v59  ;;  %v1731_v55 = vpop.xlane.xlu1 %1730 }
 0x7d2   : > { %9210 = vmatpush3.bf16.msra.mxu0 %v9207_v42 }
 0x7d5   : > { %8584 = vmatmul.mubr.msk.f32.vlgmr.msra.gmra.mrb[12].mxu0 %vm320_vm0, %v10292_v58  ;;  %v1717_v58 = vrot.slane %v1716_v62, 1 }
 0x7d6   : > { %8586 = vmatprep.mubr.msk.f32.mxu0 %vm320_vm0, %v10304_v9  ;;  %v1726_v9 = vmul.f32 %v10410_v0, %v10410_v0 }
 0x7d7   : > { %v1718_v7 = vadd.f32 %v1717_v58, %v1716_v62 }
 0x7d9   : > { %8587 = vmatmul.mubr.msk.f32.gmra.mrb[14].mxu0 %vm320_vm0, %v10306_v11  ;;  %v1732_v11 = vsel %vm1692_vm4, %v1726_v9, 0.0  ;;  %v1720_v8 = vmul.f32 0.00390625, %v1718_v7 }
 0x7da   : > { %1733 = vadd.xlane.f32.xlu1 %v1732_v11  ;;  %8608 = vmatprep.mubr.msk.f32.mxu0 %vm320_vm0, %v1376_v56 }
 0x7db   : > { %v10419_v61 = vsub.f32 %v10365_v5, %v1720_v8  ;;  %v10422_v60 = vsub.f32 %v10360_v4, %v1720_v8  ;;  %v7595_v5 = vld [vmem:[%s12435_s6 + $0x3] ss:$0 sm:$0xff] }
 0x7dd   : > { %v1727_v12 = vmul.f32 %v10419_v61, %v10419_v61  ;;  %v1728_v14 = vmul.f32 %v10422_v60, %v10422_v60 }
 0x7df   : > { %v1735_v15 = vsel %vm1692_vm4, %v1727_v12, 0.0  ;;  %v1738_v16 = vsel %vm1692_vm4, %v1728_v14, 0.0 }
 0x7e0   : > { %1736 = vadd.xlane.f32.xlu1 %v1735_v15 }
 0x7e4   : > { %1739 = vadd.xlane.f32.xlu1 %v1738_v16 }
 0x867   : > { %v1734_v57 = vpop.xlane.xlu1 %1733 }
 0x868   : > { %v1741_v58 = vadd.f32 %v1734_v57, %v1731_v55 }
 0x86a   : > { %v1742_v9 = vrot.slane %v1741_v58, 4 }
 0x86c   : > { %v1743_v7 = vadd.f32 %v1742_v9, %v1741_v58 }
 0x86d   : > { %v1737_v62 = vpop.xlane.xlu1 %1736 }
 0x86e   : > { %v1744_v8 = vrot.slane %v1743_v7, 2 }
 0x870   : > { %v1745_v14 = vadd.f32 %v1744_v8, %v1743_v7  ;;  %v7632_v8 = vld [vmem:[%s12432_s3 + $0x80] sm:$0xff] }
 0x871   : > { %v1740_v3 = vpop.xlane.xlu1 %1739 }
 0x872   : > { %v1748_v6 = vadd.f32 %v1740_v3, %v1737_v62  ;;  %v1746_v16 = vrot.slane %v1745_v14, 1 }
 0x874   : > { %v1749_v11 = vrot.slane %v1748_v6, 4 }
 0x876   : > { %v1750_v12 = vadd.f32 %v1749_v11, %v1748_v6 }
 0x878   : > { %v1751_v15 = vrot.slane %v1750_v12, 2 }
 0x8a0   : > { %v1190_v1 = vpop.f32.mrb[10].mxu0 }
 0x8a1   : > { %v1191_v4 = vadd.f32 %v7595_v5, %v1190_v1  ;;  %v8574_v2 = vpop.f32.mrb[11].mxu0  ;;  %v1752_v5 = vadd.f32 %v1751_v15, %v1750_v12  ;;  %v1747_v1 = vadd.f32 %v1746_v16, %v1745_v14  ;;  %v7633_v12 = vld [vmem:[%s12432_s3 + $0x88] sm:$0xff]  ;;  %v7634_v15 = vld [vmem:[%s12432_s3 + $0x90] sm:$0xff]  ;;  %v7635_v16 = vld [vmem:[%s12432_s3 + $0x98] sm:$0xff] }
 0x8a2   : > { %v9231_v14 = vpack.c.bf16 %v7633_v12, %v7632_v8 }
 0x8a3   : > { %v7597_v17 = vmul.f32 -1.442695, %v1191_v4  ;;  %v1755_v2 = vmul.f32 0.00390625, %v1747_v1  ;;  %v7636_v1 = vld [vmem:[%s12432_s3 + $0xa0] sm:$0xff] }
 0x8a5   : > { %9689 = vpow2.f32 %v7597_v17 }
 0x8a8   : > { %v8585_v18 = vpop.f32.mrb[12].mxu0 }
 0x8a9   : > { %v1292_v19 = vpop.f32.mrb[13].mxu0  ;;  %v1298_v38 = vadd.f32 %v8585_v18, %v7598_v33  ;;  %v1757_v18 = vadd.f32 1e-05, %v1755_v2 }
 0x8aa   : > { %v1293_v35 = vadd.f32 %v7598_v33, %v1292_v19 }
 0x8ac   : > { %v8588_v20 = vpop.f32.mrb[14].mxu0 }
 0x8ad   : > { %v1302_v21 = vpop.f32.mrb[15].mxu0  ;;  %v1308_v50 = vadd.f32 %v8588_v20, %v7598_v33 }
 0x8ae   : > { %v1303_v47 = vadd.f32 %v7598_v33, %v1302_v21 }
 0x8af   : > { %v9690_v22 = vpop.eup %9689 }
 0x8b0   : > { %v1197_v23 = vadd.f32 1.0, %v9690_v22 }
 0x8b2   : > { %9691 = vrcp.f32 %v1197_v23 }
 0x8b3   : > { %9693 = vrsqrt.f32 %v1757_v18  ;;  %v7639_v18 = vld [vmem:[%s12432_s3 + $0xb8] sm:$0xff] }
 0x8bc   : > { %v9692_v24 = vpop.eup %9691 }
 0x8bd   : > { %1201 = vrot.lane.b32.xlu0 %v9692_v24, %s10011_s30  ;;  %v9694_v21 = vpop.eup %9693  ;;  %v7620_v24 = vld [vmem:[%s12430_s1 + $0x60] sm:$0xff] }
 0x8be   : > { %v1761_v22 = vmul.f32 %v9694_v21, %v10407_v63  ;;  %v1762_v25 = vmul.f32 %v9694_v21, %v10410_v0  ;;  %v7647_v21 = vld [vmem:[%s12433_s4 + $0x68] sm:$0xff] }
 0x8c0   : > { %v1765_v27 = vmul.f32 %v7620_v24, %v1761_v22  ;;  %v1766_v63 = vmul.f32 %v7621_v26, %v1762_v25  ;;  %v7627_v25 = vld [vmem:[%s12435_s6 + $0x8] ss:$0 sm:$0xff] }
 0x92f   : > { %v1202_v29 = vpop.permute.xlu0 %1201 }
 0x930   : > { %v1204_v30 = vmul.f32 %v1202_v29, %v1191_v4  ;;  %v1753_v4 = vrot.slane %v1752_v5, 1 }
 0x932   : > { %v1318_v31 = vrot.slane %v1204_v30, %v10435_v28  ;;  %v1754_v17 = vadd.f32 %v1753_v4, %v1752_v5  ;;  %v7622_v30 = vld [vmem:[%s12430_s1 + $0x90] sm:$0xff]  ;;  %v9235_v5 = vpack.c.bf16 %v7635_v16, %v7634_v15  ;;  %v7637_v4 = vld [vmem:[%s12432_s3 + $0xa8] sm:$0xff] }
 0x933   : > { %v1769_v0 = vadd.f32 %v7622_v30, %v1765_v27  ;;  %v9239_v2 = vpack.c.bf16 %v7637_v4, %v7636_v1 }
 0x934   : > { %v1326_v34 = vrot.slane %v1318_v31, %v10435_v28  ;;  %v1319_v36 = vcombine.high %v1318_v31, %v1318_v31  ;;  %v1756_v19 = vmul.f32 0.00390625, %v1754_v17  ;;  %v7638_v17 = vld [vmem:[%s12432_s3 + $0xb0] sm:$0xff] }
 0x936   : > { %v1337_v37 = vrot.slane %v1326_v34, %v10439_v32  ;;  %v1333_v41 = vrot.slane %v1319_v36, %v10435_v28  ;;  %v1758_v20 = vadd.f32 1e-05, %v1756_v19  ;;  %v7623_v34 = vld [vmem:[%s12430_s1 + $0xa8] sm:$0xff]  ;;  %v9243_v19 = vpack.c.bf16 %v7639_v18, %v7638_v17 }
 0x938   : > { %v10446_v40 = vmul.f32 %v1337_v37, %v1293_v35  ;;  %v10453_v43 = vmul.f32 %v1337_v37, %v1298_v38  ;;  %v1341_v46 = vrot.slane %v1333_v41, %v10439_v32  ;;  %9695 = vrsqrt.f32 %v1758_v20  ;;  %v7646_v20 = vld [vmem:[%s12433_s4 + $0x60] sm:$0xff] }
 0x939   : > { %v1770_v41 = vadd.f32 %v7623_v34, %v1766_v63  ;;  %9697 = vtanh.f32 %v1769_v0  ;;  %v9247_v22 = vpack.c.bf16 %v7647_v21, %v7646_v20 }
 0x93a   : > { %v1364_v42 = vsel %vm320_vm0, %v10446_v40, -inf  ;;  %v1348_v39 = vsel %vm320_vm0, %v10446_v40, 0.0  ;;  %v1351_v44 = vsel %vm320_vm0, %v10453_v43, 0.0  ;;  %v1367_v48 = vsel %vm320_vm0, %v10453_v43, -inf }
 0x93b   : > { %1365 = vmax.xlane.f32.xlu0 %v1364_v42  ;;  %1349 = vadd.xlane.f32.xlu1 %v1348_v39  ;;  %v10460_v49 = vmul.f32 %v1341_v46, %v1303_v47  ;;  %v10464_v52 = vmul.f32 %v1341_v46, %v1308_v50  ;;  %v7625_v47 = vld [vmem:[%s12431_s2 + $0x128] sm:$0xff]  ;;  %9699 = vtanh.f32 %v1770_v41  ;;  %v7649_v41 = vld [vmem:[%s12433_s4 + $0x78] sm:$0xff] }
 0x93d   : > { %v1354_v51 = vsel %vm320_vm0, %v10460_v49, 0.0  ;;  %v1357_v53 = vsel %vm320_vm0, %v10464_v52, 0.0  ;;  %v1370_v54 = vsel %vm320_vm0, %v10460_v49, -inf  ;;  %v1373_v59 = vsel %vm320_vm0, %v10464_v52, -inf }
 0x93f   : > { %1352 = vadd.xlane.f32.xlu1 %v1351_v44 }
 0x942   : > { %v9696_v23 = vpop.eup %9695 }
 0x943   : > { %1368 = vmax.xlane.f32.xlu1 %v1367_v48  ;;  %v1763_v29 = vmul.f32 %v9696_v23, %v10419_v61  ;;  %v1764_v33 = vmul.f32 %v9696_v23, %v10422_v60  ;;  %v7624_v60 = vld [vmem:[%s12431_s2 + $0x120] sm:$0xff]  ;;  %v9698_v56 = vpop.eup %9697 }
 0x945   : > { %v1767_v35 = vmul.f32 %v7620_v24, %v1763_v29  ;;  %v1768_v42 = vmul.f32 %v7621_v26, %v1764_v33  ;;  %v9700_v58 = vpop.eup %9699 }
 0x947   : > { %1355 = vadd.xlane.f32.xlu1 %v1354_v51  ;;  %v1771_v61 = vadd.f32 %v7622_v30, %v1767_v35  ;;  %v1772_v50 = vadd.f32 %v7623_v34, %v1768_v42  ;;  %v9227_v51 = vpack.c.bf16 %v7625_v47, %v7624_v60 }
 0x949   : > { %9701 = vtanh.f32 %v1771_v61 }
 0x94a   : > { %9703 = vtanh.f32 %v1772_v50 }
 0x94b   : > { %1358 = vadd.xlane.f32.xlu1 %v1357_v53 }
 0x94f   : > { %1371 = vmax.xlane.f32.xlu1 %v1370_v54  ;;  %v1377_v54 = vld [vmem:[%s12437_s8 + $0x8] sm:$0xff] }
 0x953   : > { %1374 = vmax.xlane.f32.xlu1 %v1373_v59  ;;  %v9702_v9 = vpop.eup %9701 }
 0x954   : > { %v9704_v6 = vpop.eup %9703 }
 0x9c8   : > { %v1350_v31 = vpop.xlane.xlu1 %1349  ;;  %v1366_v44 = vpop.xlane.xlu0 %1365 }
 0x9c9   : > { %v1360_v37 = vmul.f32 0.03125, %v1350_v31 }
 0x9cc   : > { %v1353_v36 = vpop.xlane.xlu1 %1352 }
 0x9cd   : > { %v1361_v38 = vmul.f32 0.03125, %v1353_v36 }
 0x9cf   : > { %v9211_v39 = vpack.c.bf16 %v1361_v38, %v1360_v37  ;;  %v7648_v38 = vld [vmem:[%s12433_s4 + $0x70] sm:$0xff] }
 0x9d0   : > { %v1369_v46 = vpop.xlane.xlu1 %1368  ;;  %v9251_v42 = vpack.c.bf16 %v7649_v41, %v7648_v38 }
 0x9d1   : > { %v9215_v48 = vpack.c.bf16 %v1369_v46, %v1366_v44  ;;  %9212 = vmatprep.subr.bf16.mxu1 %v9211_v39  ;;  %v7641_v44 = vld [vmem:[%s12435_s6 + $0xc] ss:$0 sm:$0xff] }
 0x9d2   : > { %9214 = vmatpush3.bf16.msra.mxu1 %v9211_v39 }
 0x9d3   : > { %9216 = vmatprep.subr.bf16.mxu1 %v9215_v48 }
 0x9d4   : > { %v1356_v53 = vpop.xlane.xlu1 %1355 }
 0x9d5   : > { %v1362_v55 = vmul.f32 0.03125, %v1356_v53 }
 0x9d6   : > { %9218 = vmatpush3.bf16.msra.mxu1 %v9215_v48 }
 0x9d7   : > { %9228 = vmatprep.subr.bf16.mxu1 %v9227_v51 }
 0x9d8   : > { %v1359_v59 = vpop.xlane.xlu1 %1358 }
 0x9d9   : > { %v1363_v57 = vmul.f32 0.03125, %v1359_v59  ;;  %8598 = vmatmul.mubr.msk.f32.vlgmr.msra.gmra.mrb[6].mxu1 %vm320_vm0, %v1377_v54  ;;  %v7651_v59 = vld [vmem:[%s12435_s6 + $0x9] ss:$0 sm:$0xff] }
 0x9da   : > { %9230 = vmatpush3.bf16.msra.mxu1 %v9227_v51  ;;  %8615 = vmatprep.mubr.msk.f32.mxu1 %vm1692_vm4, %v9698_v56 }
 0x9db   : > { %v9219_v62 = vpack.c.bf16 %v1363_v57, %v1362_v55  ;;  %9232 = vmatprep.subr.bf16.mxu1 %v9231_v14 }
 0x9dc   : > { %v1372_v3 = vpop.xlane.xlu1 %1371 }
 0x9dd   : > { %9220 = vmatprep.subr.bf16.mxu0 %v9219_v62  ;;  %8616 = vmatmul.mubr.msk.f32.vlgmr.msra.gmra.mrb[8].mxu1 %vm1692_vm4, %v9700_v58 }
 0x9de   : > { %9222 = vmatpush3.bf16.msra.mxu0 %v9219_v62  ;;  %8618 = vmatprep.mubr.msk.f32.mxu1 %vm1692_vm4, %v9702_v9 }
 0x9df   : > { %9234 = vmatpush3.bf16.msra.mxu1 %v9231_v14 }
 0x9e0   : > { %v1375_v7 = vpop.xlane.xlu1 %1374  ;;  %9236 = vmatprep.subr.bf16.mxu1 %v9235_v5 }
 0x9e1   : > { %v9223_v11 = vpack.c.bf16 %v1375_v7, %v1372_v3  ;;  %8619 = vmatmul.mubr.msk.f32.gmra.mrb[10].mxu1 %vm1692_vm4, %v9704_v6 }
 0x9e3   : > { %9224 = vmatprep.subr.bf16.mxu0 %v9223_v11  ;;  %9238 = vmatpush3.bf16.msra.mxu1 %v9235_v5 }
 0x9e4   : > { %9226 = vmatpush3.bf16.msra.mxu0 %v9223_v11  ;;  %9240 = vmatprep.subr.bf16.mxu1 %v9239_v2 }
 0x9e5   : > { %9248 = vmatprep.subr.bf16.mxu0 %v9247_v22 }
 0x9e7   : > { %8609 = vmatmul.mubr.msk.f32.vlgmr.msra.gmra.mrb[16].mxu0 %vm320_vm0, %v1377_v54  ;;  %9242 = vmatpush3.bf16.msra.mxu1 %v9239_v2 }
 0x9e8   : > { %9244 = vmatprep.subr.bf16.mxu1 %v9243_v19  ;;  %9250 = vmatpush3.bf16.msra.mxu0 %v9247_v22 }
 0x9e9   : > { %9252 = vmatprep.subr.bf16.mxu0 %v9251_v42 }
 0x9eb   : > { %9246 = vmatpush3.bf16.msra.mxu1 %v9243_v19 }
 0x9ec   : > { %9261 = vmatprep.subr.bf16.mxu1 %v10012_v10  ;;  %9254 = vmatpush3.bf16.msra.mxu0 %v9251_v42 }
 0x9ed   : > { %9255 = vmatprep.subr.bf16.mxu0 %v10012_v10 }
 0xaac   : > { %v10539_v23 = vpop.f32.mrb[6].mxu1 }
 0xaad   : > { %v10541_v24 = vpop.f32.mrb[7].mxu1 }
 0xab0   : > { %v8617_v26 = vpop.f32.mrb[8].mxu1 }
 0xab1   : > { %v1870_v27 = vadd.f32 %v8617_v26, %v7627_v25  ;;  %v1864_v29 = vpop.f32.mrb[9].mxu1 }
 0xab2   : > { %v1865_v30 = vadd.f32 %v7627_v25, %v1864_v29 }
 0xab4   : > { %9705 = vtanh.f32 %v1865_v30  ;;  %v8620_v31 = vpop.f32.mrb[10].mxu1 }
 0xab5   : > { %9707 = vtanh.f32 %v1870_v27  ;;  %v1880_v63 = vadd.f32 %v8620_v31, %v7627_v25  ;;  %v1874_v33 = vpop.f32.mrb[11].mxu1 }
 0xab6   : > { %v1875_v34 = vadd.f32 %v7627_v25, %v1874_v33 }
 0xab8   : > { %9709 = vtanh.f32 %v1875_v34 }
 0xab9   : > { %9711 = vtanh.f32 %v1880_v63 }
 0xaba   : > { %v10559_v61 = vpop.f32.mrb[16].mxu0 }
 0xabb   : > { %v10561_v39 = vpop.f32.mrb[17].mxu0 }
 0xabe   : > { %v9706_v0 = vpop.eup %9705 }
 0xabf   : > { %v9708_v35 = vpop.eup %9707  ;;  %8637 = vmatprep.mubr.msk.f32.mxu1 %vm528_vm1, %v9706_v0 }
 0xac0   : > { %8638 = vmatmul.mubr.msk.f32.vlgmr.msra.gmra.mrb[12].mxu1 %vm528_vm1, %v9708_v35 }
 0xac2   : > { %v9710_v36 = vpop.eup %9709 }
 0xac3   : > { %v9712_v37 = vpop.eup %9711  ;;  %8640 = vmatprep.mubr.msk.f32.mxu1 %vm528_vm1, %v9710_v36 }
 0xac4   : > { %8641 = vmatmul.mubr.msk.f32.gmra.mrb[14].mxu1 %vm528_vm1, %v9712_v37 }
 0xac5   : > { %8684 = vmatprep.mubr.msk.f32.mxu1 %vm10013_vm2, %v10014_v13 }
 0xb93   : > { %v8639_v46 = vpop.f32.mrb[12].mxu1 }
 0xb94   : > { %v1979_v60 = vpop.f32.mrb[13].mxu1  ;;  %v1985_v48 = vadd.f32 %v8639_v46, %v7641_v44 }
 0xb95   : > { %v1980_v47 = vadd.f32 %v7641_v44, %v1979_v60 }
 0xb97   : > { %v8642_v50 = vpop.f32.mrb[14].mxu1  ;;  %8651 = vmatprep.mubr.msk.f32.mxu0 %vm320_vm0, %v1980_v47 }
 0xb98   : > { %v1989_v51 = vpop.f32.mrb[15].mxu1  ;;  %8652 = vmatmul.mubr.msk.f32.vlgmr.msra.gmra.mrb[18].mxu0 %vm320_vm0, %v1985_v48  ;;  %v1995_v54 = vadd.f32 %v8642_v50, %v7641_v44 }
 0xb99   : > { %v1990_v53 = vadd.f32 %v7641_v44, %v1989_v51 }
 0xb9b   : > { %8654 = vmatprep.mubr.msk.f32.mxu0 %vm320_vm0, %v1990_v53 }
 0xb9c   : > { %8655 = vmatmul.mubr.msk.f32.gmra.mrb[20].mxu0 %vm320_vm0, %v1995_v54 }
 0xb9d   : > { %8665 = vmatprep.mubr.msk.f32.mxu0 %vm10013_vm2, %v10014_v13 }
 0xc6b   : > { %v8653_v56 = vpop.f32.mrb[18].mxu0 }
 0xc6c   : > { %v2092_v55 = vadd.f32 %v8653_v56, %v7651_v59  ;;  %v2086_v57 = vpop.f32.mrb[19].mxu0 }
 0xc6d   : > { %v2087_v62 = vadd.f32 %v7651_v59, %v2086_v57 }
 0xc6e   : > { %v7657_v58 = vmul.f32 -1.442695, %v2092_v55 }
 0xc6f   : > { %v7656_v3 = vmul.f32 -1.442695, %v2087_v62  ;;  %v8656_v9 = vpop.f32.mrb[20].mxu0 }
 0xc70   : > { %9713 = vpow2.f32 %v7657_v58  ;;  %v2102_v6 = vadd.f32 %v8656_v9, %v7651_v59  ;;  %v2096_v7 = vpop.f32.mrb[21].mxu0 }
 0xc71   : > { %9715 = vpow2.f32 %v7656_v3  ;;  %v2097_v11 = vadd.f32 %v7651_v59, %v2096_v7 }
 0xc72   : > { %v7659_v8 = vmul.f32 -1.442695, %v2102_v6 }
 0xc73   : > { %v7658_v12 = vmul.f32 -1.442695, %v2097_v11 }
 0xc74   : > { %9717 = vpow2.f32 %v7659_v8 }
 0xc75   : > { %9719 = vpow2.f32 %v7658_v12 }
 0xc7a   : > { %v9714_v14 = vpop.eup %9713 }
 0xc7b   : > { %v9716_v15 = vpop.eup %9715  ;;  %v2118_v16 = vadd.f32 1.0, %v9714_v14 }
 0xc7c   : > { %v2117_v5 = vadd.f32 1.0, %v9716_v15 }
 0xc7d   : > { %9721 = vrcp.f32 %v2118_v16 }
 0xc7e   : > { %v9718_v1 = vpop.eup %9717  ;;  %9723 = vrcp.f32 %v2117_v5 }
 0xc7f   : > { %v9720_v4 = vpop.eup %9719  ;;  %v2120_v17 = vadd.f32 1.0, %v9718_v1 }
 0xc80   : > { %v2119_v2 = vadd.f32 1.0, %v9720_v4  ;;  %v7664_v4 = vld [vmem:[%s12433_s4 + $0xa0] sm:$0xff] }
 0xc82   : > { %9725 = vrcp.f32 %v2119_v2  ;;  %v7665_v2 = vld [vmem:[%s12433_s4 + $0xa8] sm:$0xff] }
 0xc83   : > { %9727 = vrcp.f32 %v2120_v17  ;;  %v7666_v17 = vld [vmem:[%s12433_s4 + $0xb0] sm:$0xff] }
 0xc87   : > { %v9722_v18 = vpop.eup %9721 }
 0xc88   : > { %v9724_v19 = vpop.eup %9723  ;;  %2135 = vrot.lane.b32.xlu0 %v9722_v18, %s10011_s30  ;;  %v9256_v18 = vpack.c.bf16 %v7665_v2, %v7664_v4 }
 0xc89   : > { %2133 = vrot.lane.b32.xlu1 %v9724_v19, %s10011_s30  ;;  %v7667_v19 = vld [vmem:[%s12433_s4 + $0xb8] sm:$0xff] }
 0xc8a   : > { %9257 = vmatpush3.bf16.msra.mxu0 %v9256_v18 }
 0xc8b   : > { %9258 = vmatprep.subr.bf16.mxu0 %v10012_v10 }
 0xc8c   : > { %v9726_v20 = vpop.eup %9725 }
 0xc8d   : > { %2137 = vrot.lane.b32.xlu1 %v9726_v20, %s10011_s30  ;;  %v9728_v21 = vpop.eup %9727  ;;  %v9259_v20 = vpack.c.bf16 %v7667_v19, %v7666_v17 }
 0xc8f   : > { %9260 = vmatpush3.bf16.msra.mxu0 %v9259_v20 }
 0xc90   : > { %9273 = vmatprep.subr.bf16.mxu0 %v10012_v10 }
 0xc91   : > { %2139 = vrot.lane.b32.xlu1 %v9728_v21, %s10011_s30  ;;  %v7671_v21 = vld [vmem:[%s12432_s3 + $0xc0] sm:$0xff] }
 0xcfa   : > { %v2136_v22 = vpop.permute.xlu0 %2135 }
 0xcfb   : > { %v2146_v25 = vmul.f32 %v2136_v22, %v2092_v55  ;;  %v2134_v26 = vpop.permute.xlu1 %2133  ;;  %v7672_v22 = vld [vmem:[%s12432_s3 + $0xc8] sm:$0xff] }
 0xcfc   : > { %v2145_v27 = vmul.f32 %v2134_v26, %v2087_v62  ;;  %v9262_v26 = vpack.c.bf16 %v7672_v22, %v7671_v21 }
 0xcfd   : > { %v2158_v29 = vsel %vm320_vm0, %v2146_v25, 0.0 }
 0xcfe   : > { %2159 = vadd.xlane.f32.xlu0 %v2158_v29  ;;  %v2155_v30 = vsel %vm320_vm0, %v2145_v27, 0.0  ;;  %9263 = vmatpush3.bf16.msra.mxu1 %v9262_v26 }
 0xcff   : > { %2156 = vadd.xlane.f32.xlu1 %v2155_v30  ;;  %v2138_v31 = vpop.permute.xlu1 %2137  ;;  %9264 = vmatprep.subr.bf16.mxu1 %v10012_v10  ;;  %v7675_v30 = vld [vmem:[%s12432_s3 + $0xe0] sm:$0xff] }
 0xd00   : > { %v2147_v63 = vmul.f32 %v2138_v31, %v2097_v11  ;;  %v7676_v31 = vld [vmem:[%s12432_s3 + $0xe8] sm:$0xff] }
 0xd02   : > { %v2161_v33 = vsel %vm320_vm0, %v2147_v63, 0.0 }
 0xd03   : > { %2162 = vadd.xlane.f32.xlu1 %v2161_v33  ;;  %v2140_v34 = vpop.permute.xlu1 %2139 }
 0xd04   : > { %v2148_v0 = vmul.f32 %v2140_v34, %v2102_v6 }
 0xd06   : > { %v2164_v35 = vsel %vm320_vm0, %v2148_v0, 0.0 }
 0xd07   : > { %2165 = vadd.xlane.f32.xlu0 %v2164_v35 }
 0xd8b   : > { %v2160_v36 = vpop.xlane.xlu0 %2159 }
 0xd8c   : > { %v2157_v37 = vpop.xlane.xlu1 %2156 }
 0xd8d   : > { %v2167_v38 = vadd.f32 %v2160_v36, %v2157_v37 }
 0xd8f   : > { %v2168_v41 = vrot.slane %v2167_v38, 4 }
 0xd90   : > { %v2163_v46 = vpop.xlane.xlu1 %2162 }
 0xd91   : > { %v2169_v42 = vadd.f32 %v2168_v41, %v2167_v38 }
 0xd93   : > { %v2170_v44 = vrot.slane %v2169_v42, 2 }
 0xd94   : > { %v2166_v60 = vpop.xlane.xlu0 %2165 }
 0xd95   : > { %v2171_v47 = vadd.f32 %v2170_v44, %v2169_v42  ;;  %v2174_v48 = vadd.f32 %v2166_v60, %v2163_v46 }
 0xd97   : > { %v2172_v50 = vrot.slane %v2171_v47, 1  ;;  %v2175_v51 = vrot.slane %v2174_v48, 4 }
 0xd99   : > { %v2176_v53 = vadd.f32 %v2175_v51, %v2174_v48  ;;  %v2173_v54 = vadd.f32 %v2172_v50, %v2171_v47 }
 0xd9b   : > { %v2177_v59 = vrot.slane %v2176_v53, 2  ;;  %v2181_v56 = vmul.f32 0.001953125, %v2173_v54 }
 0xd9d   : > { %v2178_v55 = vadd.f32 %v2177_v59, %v2176_v53  ;;  %v10583_v57 = vsub.f32 %v2146_v25, %v2181_v56  ;;  %v10585_v62 = vsub.f32 %v2145_v27, %v2181_v56  ;;  %v7673_v25 = vld [vmem:[%s12432_s3 + $0xd0] sm:$0xff]  ;;  %v7674_v27 = vld [vmem:[%s12432_s3 + $0xd8] sm:$0xff] }
 0xd9e   : > { %v9265_v29 = vpack.c.bf16 %v7674_v27, %v7673_v25 }
 0xd9f   : > { %v2179_v58 = vrot.slane %v2178_v55, 1  ;;  %v2188_v3 = vmul.f32 %v10583_v57, %v10583_v57  ;;  %v2187_v9 = vmul.f32 %v10585_v62, %v10585_v62 }
 0xda0   : > { %9266 = vmatpush3.bf16.msra.mxu1 %v9265_v29 }
 0xda1   : > { %v2194_v6 = vsel %vm320_vm0, %v2188_v3, 0.0  ;;  %v2191_v7 = vsel %vm320_vm0, %v2187_v9, 0.0  ;;  %v2180_v11 = vadd.f32 %v2179_v58, %v2178_v55  ;;  %9267 = vmatprep.subr.bf16.mxu1 %v10012_v10  ;;  %v7660_v9 = vld [vmem:[%s12436_s7 + $0x40] sm:$0xff] }
 0xda2   : > { %2195 = vadd.xlane.f32.xlu0 %v2194_v6  ;;  %2192 = vadd.xlane.f32.xlu1 %v2191_v7  ;;  %v7661_v6 = vld [vmem:[%s12436_s7 + $0x48] sm:$0xff] }
 0xda3   : > { %v2182_v8 = vmul.f32 0.001953125, %v2180_v11 }
 0xda5   : > { %v10593_v12 = vsub.f32 %v2148_v0, %v2182_v8  ;;  %v10595_v14 = vsub.f32 %v2147_v63, %v2182_v8  ;;  %v9268_v63 = vpack.c.bf16 %v7676_v31, %v7675_v30  ;;  %v7662_v8 = vld [vmem:[%s12436_s7 + $0x50] sm:$0xff] }
 0xda7   : > { %v2190_v15 = vmul.f32 %v10593_v12, %v10593_v12  ;;  %v2189_v16 = vmul.f32 %v10595_v14, %v10595_v14  ;;  %9269 = vmatpush3.bf16.msra.mxu1 %v9268_v63 }
 0xda8   : > { %9270 = vmatprep.subr.bf16.mxu1 %v10012_v10 }
 0xda9   : > { %v2200_v5 = vsel %vm320_vm0, %v2190_v15, 0.0  ;;  %v2197_v1 = vsel %vm320_vm0, %v2189_v16, 0.0  ;;  %v7663_v15 = vld [vmem:[%s12436_s7 + $0x58] sm:$0xff] }
 0xdaa   : > { %2201 = vadd.xlane.f32.xlu0 %v2200_v5  ;;  %2198 = vadd.xlane.f32.xlu1 %v2197_v1 }
 0xe2f   : > { %v2196_v33 = vpop.xlane.xlu0 %2195  ;;  %v2193_v34 = vpop.xlane.xlu1 %2192 }
 0xe30   : > { %v2203_v0 = vadd.f32 %v2196_v33, %v2193_v34 }
 0xe32   : > { %v2204_v35 = vrot.slane %v2203_v0, 4 }
 0xe34   : > { %v2205_v36 = vadd.f32 %v2204_v35, %v2203_v0 }
 0xe36   : > { %v2206_v37 = vrot.slane %v2205_v36, 2 }
 0xe37   : > { %v2202_v38 = vpop.xlane.xlu0 %2201  ;;  %v2199_v41 = vpop.xlane.xlu1 %2198 }
 0xe38   : > { %v2207_v42 = vadd.f32 %v2206_v37, %v2205_v36  ;;  %v2210_v44 = vadd.f32 %v2202_v38, %v2199_v41 }
 0xe3a   : > { %v2208_v46 = vrot.slane %v2207_v42, 1  ;;  %v2211_v60 = vrot.slane %v2210_v44, 4 }
 0xe3c   : > { %v2209_v47 = vadd.f32 %v2208_v46, %v2207_v42  ;;  %v2212_v48 = vadd.f32 %v2211_v60, %v2210_v44 }
 0xe3e   : > { %v2217_v50 = vmul.f32 0.001953125, %v2209_v47  ;;  %v2213_v51 = vrot.slane %v2212_v48, 2 }
 0xe40   : > { %v2219_v53 = vadd.f32 1e-05, %v2217_v50  ;;  %v2214_v54 = vadd.f32 %v2213_v51, %v2212_v48 }
 0xe42   : > { %9729 = vrsqrt.f32 %v2219_v53  ;;  %v2215_v59 = vrot.slane %v2214_v54, 1 }
 0xe44   : > { %v2216_v56 = vadd.f32 %v2215_v59, %v2214_v54 }
 0xe46   : > { %v2218_v55 = vmul.f32 0.001953125, %v2216_v56 }
 0xe48   : > { %v2220_v58 = vadd.f32 1e-05, %v2218_v55 }
 0xe4a   : > { %9731 = vrsqrt.f32 %v2220_v58 }
 0xe4c   : > { %v9730_v3 = vpop.eup %9729 }
 0xe4d   : > { %v2223_v7 = vmul.f32 %v9730_v3, %v10585_v62  ;;  %v2224_v11 = vmul.f32 %v9730_v3, %v10583_v57 }
 0xe4f   : > { %v2227_v16 = vmul.f32 %v7660_v9, %v2223_v7  ;;  %v2228_v5 = vmul.f32 %v7661_v6, %v2224_v11 }
 0xe51   : > { %v10652_v1 = vadd.f32 %v7662_v8, %v2227_v16  ;;  %v10654_v4 = vadd.f32 %v7663_v15, %v2228_v5 }
 0xe53   : > { %v2235_v2 = vsel %vm320_vm0, %v10652_v1, 0.0  ;;  %v2236_v57 = vsel %vm320_vm0, %v10654_v4, 0.0  ;;  %v2255_v62 = vsel %vm320_vm0, %v10652_v1, -inf  ;;  %v2256_v17 = vsel %vm320_vm0, %v10654_v4, -inf }
 0xe54   : > { %v9732_v18 = vpop.eup %9731  ;;  %v2237_v19 = vadd.f32 %v2236_v57, %v2235_v2  ;;  %v2257_v20 = vmax.f32 %v2255_v62, %v2256_v17  ;;  %v7677_v2 = vld [vmem:[%s12432_s3 + $0xf0] sm:$0xff]  ;;  %v7678_v57 = vld [vmem:[%s12432_s3 + $0xf8] sm:$0xff]  ;;  %v7669_v17 = vld [vmem:[%s12435_s6 + $0xa] ss:$0 sm:$0xff] }
 0xe55   : > { %v2225_v21 = vmul.f32 %v9732_v18, %v10595_v14  ;;  %v2226_v22 = vmul.f32 %v9732_v18, %v10593_v12  ;;  %v9271_v62 = vpack.c.bf16 %v7678_v57, %v7677_v2 }
 0xe56   : > { %v2238_v25 = vrot.slane %v2237_v19, 4  ;;  %v2258_v26 = vrot.slane %v2257_v20, 4 }
 0xe57   : > { %v2229_v27 = vmul.f32 %v7660_v9, %v2225_v21  ;;  %v2230_v29 = vmul.f32 %v7661_v6, %v2226_v22  ;;  %9272 = vmatpush3.bf16.msra.mxu1 %v9271_v62  ;;  %v7682_v22 = vld [vmem:[%s12433_s4 + $0x80] sm:$0xff] }
 0xe58   : > { %v2239_v30 = vadd.f32 %v2238_v25, %v2237_v19  ;;  %v2259_v34 = vmax.f32 %v2257_v20, %v2258_v26  ;;  %v7683_v25 = vld [vmem:[%s12433_s4 + $0x88] sm:$0xff] }
 0xe59   : > { %v10666_v31 = vadd.f32 %v7662_v8, %v2229_v27  ;;  %v10668_v63 = vadd.f32 %v7663_v15, %v2230_v29  ;;  %v9274_v26 = vpack.c.bf16 %v7683_v25, %v7682_v22  ;;  %v7684_v27 = vld [vmem:[%s12433_s4 + $0x90] sm:$0xff]  ;;  %v7685_v29 = vld [vmem:[%s12433_s4 + $0x98] sm:$0xff] }
 0xe5a   : > { %v2240_v33 = vrot.slane %v2239_v30, 2  ;;  %v2260_v42 = vrot.slane %v2259_v34, 2 }
 0xe5b   : > { %v2244_v0 = vsel %vm320_vm0, %v10666_v31, 0.0  ;;  %v2245_v35 = vsel %vm320_vm0, %v10668_v63, 0.0  ;;  %v2264_v12 = vsel %vm320_vm0, %v10666_v31, -inf  ;;  %v2265_v14 = vsel %vm320_vm0, %v10668_v63, -inf }
 0xe5c   : > { %v2246_v36 = vadd.f32 %v2245_v35, %v2244_v0  ;;  %v2266_v37 = vmax.f32 %v2264_v12, %v2265_v14  ;;  %v2241_v38 = vadd.f32 %v2240_v33, %v2239_v30  ;;  %v2261_v50 = vmax.f32 %v2259_v34, %v2260_v42  ;;  %v7690_v33 = vld [vmem:[%s12434_s5 + $0x20] sm:$0xff]  ;;  %v7691_v34 = vld [vmem:[%s12434_s5 + $0x28] sm:$0xff]  ;;  %v10716_v35 = vld [vmem:[%s12429_s0 + $0xd8] sm:$0xff] }
 0xe5d   : > { %v9277_v30 = vpack.c.bf16 %v7685_v29, %v7684_v27  ;;  %v9279_v0 = vpack.c.bf16 %v7691_v34, %v7690_v33  ;;  %v7716_v12 = vld [vmem:[%s12429_s0 + $0xc0] sm:$0xff]  ;;  %v3086_v14 = vsel %vm3082_vm7, %v10716_v35, 0.0 }
 0xe5e   : > { %v2247_v41 = vrot.slane %v2246_v36, 4  ;;  %v2267_v44 = vrot.slane %v2266_v37, 4  ;;  %v2242_v46 = vrot.slane %v2241_v38, 1  ;;  %v2262_v55 = vrot.slane %v2261_v50, 1  ;;  %3087 = vadd.xlane.f32.xlu0 %v3086_v14 }
 0xe60   : > { %v2248_v60 = vadd.f32 %v2247_v41, %v2246_v36  ;;  %v2268_v47 = vmax.f32 %v2266_v37, %v2267_v44  ;;  %v2243_v53 = vadd.f32 %v2242_v46, %v2241_v38  ;;  %v2263_v7 = vmax.f32 %v2261_v50, %v2262_v55  ;;  %v10727_v37 = vld [vmem:[%s12429_s0 + $0x108] sm:$0xff]  ;;  %v10732_v38 = vld [vmem:[%s12429_s0 + $0xf0] sm:$0xff] }
 0xe61   : > { %v3083_v36 = vsel %vm3082_vm7, %v7716_v12, 0.0  ;;  %v3092_v41 = vsel %vm3082_vm7, %v10727_v37, 0.0  ;;  %v3089_v42 = vsel %vm3082_vm7, %v10732_v38, 0.0  ;;  %v7680_v44 = vld [vmem:[%s12435_s6 + $0xd] ss:$0 sm:$0xff] }
 0xe62   : > { %v2249_v48 = vrot.slane %v2248_v60, 2  ;;  %v2269_v51 = vrot.slane %v2268_v47, 2  ;;  %v2253_v9 = vmul.f32 0.0625, %v2243_v53  ;;  %3084 = vadd.xlane.f32.xlu1 %v3083_v36  ;;  %3093 = vadd.xlane.f32.xlu0 %v3092_v41 }
 0xe64   : > { %v2250_v54 = vadd.f32 %v2249_v48, %v2248_v60  ;;  %v2270_v59 = vmax.f32 %v2268_v47, %v2269_v51  ;;  %v2273_v8 = vsel %vm899_vm3, %v2253_v9, %v2263_v7 }
 0xe66   : > { %v2251_v56 = vrot.slane %v2250_v54, 1  ;;  %v2271_v58 = vrot.slane %v2270_v59, 1  ;;  %3090 = vadd.xlane.f32.xlu1 %v3089_v42 }
 0xe68   : > { %v2252_v3 = vadd.f32 %v2251_v56, %v2250_v54  ;;  %v2272_v11 = vmax.f32 %v2270_v59, %v2271_v58 }
 0xe6a   : > { %v2254_v6 = vmul.f32 0.0625, %v2252_v3 }
 0xe6c   : > { %v2274_v15 = vsel %vm899_vm3, %v2254_v6, %v2272_v11 }
 0xe6d   : > { %v2287_v16 = vcombine.low %v2273_v8, %v2274_v15  ;;  %v7692_v8 = vld [vmem:[%s12434_s5 + $0x30] sm:$0xff]  ;;  %v7693_v15 = vld [vmem:[%s12434_s5 + $0x38] sm:$0xff] }
 0xe6e   : > { %v9283_v2 = vpack.c.bf16 %v7693_v15, %v7692_v8 }
 0xe6f   : > { %v2294_v5 = vrot.slane %v2287_v16, %v10319_v45 }
 0xe71   : > { %8666 = vmatmul.mubr.msk.f32.vlgmr.msra.gmra.mrb[22].mxu0 %vm320_vm0, %v2294_v5 }
 0xe72   : > { %8695 = vmatprep.mubr.msk.f32.mxu0 %vm10013_vm2, %v10014_v13  ;;  %9275 = vmatpush3.bf16.msra.mxu0 %v9274_v26 }
 0xe73   : > { %9276 = vmatprep.subr.bf16.mxu0 %v10012_v10 }
 0xe76   : > { %9278 = vmatpush3.bf16.msra.mxu0 %v9277_v30 }
 0xe77   : > { %9280 = vmatprep.subr.bf16.mxu0 %v9279_v0 }
 0xeeb   : > { %v3088_v62 = vpop.xlane.xlu0 %3087 }
 0xeef   : > { %v3094_v22 = vpop.xlane.xlu0 %3093 }
 0xf44   : > { %v2363_v18 = vpop.f32.mrb[22].mxu0 }
 0xf45   : > { %v2364_v19 = vadd.f32 %v7669_v17, %v2363_v18  ;;  %v8667_v20 = vpop.f32.mrb[23].mxu0  ;;  %v3085_v17 = vpop.xlane.xlu1 %3084 }
 0xf46   : > { %v3095_v18 = vadd.f32 %v3088_v62, %v3085_v17 }
 0xf47   : > { %v2367_v21 = vmax.f32 %v2364_v19, 0.0 }
 0xf48   : > { %v3096_v19 = vrot.slane %v3095_v18, 4 }
 0xf49   : > { %8685 = vmatmul.mubr.msk.f32.vlgmr.msra.gmra.mrb[16].mxu1 %vm528_vm1, %v2367_v21  ;;  %v3091_v25 = vpop.xlane.xlu1 %3090 }
 0xf4a   : > { %v3097_v20 = vadd.f32 %v3096_v19, %v3095_v18  ;;  %v3102_v26 = vadd.f32 %v3094_v22, %v3091_v25 }
 0xf4c   : > { %v3098_v21 = vrot.slane %v3097_v20, 2  ;;  %v3103_v29 = vrot.slane %v3102_v26, 4 }
 0xf4e   : > { %v3104_v30 = vadd.f32 %v3103_v29, %v3102_v26 }
 0xf50   : > { %v3105_v33 = vrot.slane %v3104_v30, 2 }
0x101c   : > { %v2451_v46 = vpop.f32.mrb[16].mxu1 }
0x101d   : > { %v2452_v60 = vadd.f32 %v7680_v44, %v2451_v46  ;;  %v8686_v47 = vpop.f32.mrb[17].mxu1 }
0x101f   : > { %v2462_v48 = vrot.slane %v2452_v60, %v10319_v45 }
0x1021   : > { %v2463_v50 = vcombine.high %v2462_v48, %v2462_v48  ;;  %v2466_v51 = vsel %vm1093_vm5, %v2462_v48, 0.0 }
0x1022   : > { %v2467_v53 = vrot.slane %v2466_v51, 4 }
0x1023   : > { %v2473_v54 = vsel %vm1093_vm5, %v2463_v50, 0.0 }
0x1024   : > { %v2468_v59 = vadd.f32 %v2467_v53, %v2466_v51  ;;  %v2474_v56 = vrot.slane %v2473_v54, 4 }
0x1026   : > { %v2469_v55 = vrot.slane %v2468_v59, 2  ;;  %v2475_v58 = vadd.f32 %v2474_v56, %v2473_v54 }
0x1028   : > { %v2470_v3 = vadd.f32 %v2469_v55, %v2468_v59  ;;  %v2476_v9 = vrot.slane %v2475_v58, 2 }
0x102a   : > { %v2471_v6 = vrot.slane %v2470_v3, 1  ;;  %v2477_v7 = vadd.f32 %v2476_v9, %v2475_v58 }
0x102c   : > { %v2478_v11 = vrot.slane %v2477_v7, 1  ;;  %v2472_v16 = vadd.f32 %v2471_v6, %v2470_v3 }
0x102e   : > { %v2479_v5 = vadd.f32 %v2478_v11, %v2477_v7 }
0x1030   : > { %v2492_v57 = vsel %vm1120_vm6, %v2479_v5, %v2472_v16  ;;  %v7695_v16 = vld [vmem:[%s12435_s6 + $0xe] ss:$0 sm:$0xff] }
0x1031   : > { %8696 = vmatmul.mubr.msk.f32.vlgmr.msra.gmra.mrb[24].mxu0 %vm320_vm0, %v2492_v57 }
0x1032   : > { %9282 = vmatpush3.bf16.msra.mxu0 %v9279_v0  ;;  %8706 = vmatprep.mubr.msk.f32.mxu0 %vm320_vm0, %v10652_v1  ;;  %v3099_v1 = vadd.f32 %v3098_v21, %v3097_v20 }
0x1033   : > { %9284 = vmatprep.subr.bf16.mxu0 %v9283_v2 }
0x1034   : > { %v3100_v27 = vrot.slane %v3099_v1, 1 }
0x1036   : > { %9286 = vmatpush3.bf16.msra.mxu0 %v9283_v2 }
0x1039   : > { %8707 = vmatmul.mubr.msk.f32.vlgmr.msra.gmra.mrb[26].mxu0 %vm320_vm0, %v10654_v4  ;;  %v3101_v4 = vadd.f32 %v3100_v27, %v3099_v1 }
0x103a   : > { %8709 = vmatprep.mubr.msk.f32.mxu0 %vm320_vm0, %v10666_v31  ;;  %v3106_v31 = vadd.f32 %v3105_v33, %v3104_v30 }
0x103b   : > { %v3109_v34 = vmul.f32 0.0006510417, %v3101_v4 }
0x103c   : > { %v3107_v14 = vrot.slane %v3106_v31, 1 }
0x103d   : > { %8710 = vmatmul.mubr.msk.f32.gmra.mrb[28].mxu0 %vm320_vm0, %v10668_v63  ;;  %v10760_v0 = vsub.f32 %v7716_v12, %v3109_v34  ;;  %v10763_v63 = vsub.f32 %v10716_v35, %v3109_v34 }
0x103e   : > { %v3108_v44 = vadd.f32 %v3107_v14, %v3106_v31 }
0x103f   : > { %v3115_v36 = vmul.f32 %v10760_v0, %v10760_v0  ;;  %v3116_v41 = vmul.f32 %v10763_v63, %v10763_v63 }
0x1040   : > { %v3110_v60 = vmul.f32 0.0006510417, %v3108_v44 }
0x1041   : > { %v3119_v42 = vsel %vm3082_vm7, %v3115_v36, 0.0  ;;  %v3122_v46 = vsel %vm3082_vm7, %v3116_v41, 0.0  ;;  %v7700_v36 = vld [vmem:[%s12437_s8 + $0x10] sm:$0xff] }
0x1042   : > { %3120 = vadd.xlane.f32.xlu0 %v3119_v42  ;;  %v10772_v12 = vsub.f32 %v10732_v38, %v3110_v60  ;;  %v10775_v35 = vsub.f32 %v10727_v37, %v3110_v60  ;;  %v7687_v38 = vld [vmem:[%s12435_s6 + $0xb] ss:$0 sm:$0xff]  ;;  %8720 = vmatprep.mubr.msk.f32.mxu1 %vm320_vm0, %v7700_v36 }
0x1043   : > { %8731 = vmatprep.mubr.msk.f32.mxu0 %vm320_vm0, %v7700_v36 }
0x1044   : > { %v3117_v47 = vmul.f32 %v10772_v12, %v10772_v12  ;;  %v3118_v48 = vmul.f32 %v10775_v35, %v10775_v35 }
0x1046   : > { %3123 = vadd.xlane.f32.xlu0 %v3122_v46  ;;  %v3125_v50 = vsel %vm3082_vm7, %v3117_v47, 0.0  ;;  %v3128_v51 = vsel %vm3082_vm7, %v3118_v48, 0.0 }
0x104a   : > { %3126 = vadd.xlane.f32.xlu0 %v3125_v50 }
0x104e   : > { %3129 = vadd.xlane.f32.xlu0 %v3128_v51 }
0x10cf   : > { %v3121_v41 = vpop.xlane.xlu0 %3120 }
0x10d3   : > { %v3124_v42 = vpop.xlane.xlu0 %3123 }
0x10d4   : > { %v3131_v44 = vadd.f32 %v3124_v42, %v3121_v41  ;;  %v7728_v42 = vld [vmem:[%s12431_s2 + $0x260] sm:$0xff] }
0x10d6   : > { %v3132_v46 = vrot.slane %v3131_v44, 4 }
0x10d7   : > { %v3127_v48 = vpop.xlane.xlu0 %3126 }
0x10d8   : > { %v3133_v60 = vadd.f32 %v3132_v46, %v3131_v44  ;;  %v7729_v44 = vld [vmem:[%s12431_s2 + $0x268] sm:$0xff] }
0x10da   : > { %v3134_v47 = vrot.slane %v3133_v60, 2 }
0x10dc   : > { %v3135_v50 = vadd.f32 %v3134_v47, %v3133_v60 }
0x10de   : > { %v3136_v51 = vrot.slane %v3135_v50, 1 }
0x1104   : > { %v2561_v53 = vpop.f32.mrb[24].mxu0 }
0x1105   : > { %v2562_v37 = vadd.f32 %v7687_v38, %v2561_v53  ;;  %v8697_v54 = vpop.f32.mrb[25].mxu0  ;;  %v3130_v38 = vpop.xlane.xlu0 %3129  ;;  %v3137_v53 = vadd.f32 %v3136_v51, %v3135_v50 }
0x1107   : > { %v7689_v59 = vmul.f32 -1.442695, %v2562_v37  ;;  %v3145_v54 = vmul.f32 0.0006510417, %v3137_v53  ;;  %v9311_v53 = vpack.c.bf16 %v7729_v44, %v7728_v42  ;;  %v7757_v42 = vld [vmem:[%s12433_s4 + $0xc8] sm:$0xff] }
0x1109   : > { %9733 = vpow2.f32 %v7689_v59 }
0x110c   : > { %v8708_v56 = vpop.f32.mrb[26].mxu0 }
0x110d   : > { %v2664_v55 = vpop.f32.mrb[27].mxu0  ;;  %v2670_v2 = vadd.f32 %v8708_v56, %v7695_v16  ;;  %v3147_v56 = vadd.f32 1e-05, %v3145_v54 }
0x110e   : > { %v2665_v57 = vadd.f32 %v7695_v16, %v2664_v55 }
0x1110   : > { %v8711_v58 = vpop.f32.mrb[28].mxu0 }
0x1111   : > { %v2674_v3 = vpop.f32.mrb[29].mxu0  ;;  %v2680_v30 = vadd.f32 %v8711_v58, %v7695_v16 }
0x1112   : > { %v2675_v26 = vadd.f32 %v7695_v16, %v2674_v3 }
0x1113   : > { %v9734_v9 = vpop.eup %9733 }
0x1114   : > { %v2568_v6 = vadd.f32 1.0, %v9734_v9 }
0x1116   : > { %9735 = vrcp.f32 %v2568_v6 }
0x1117   : > { %9737 = vrsqrt.f32 %v3147_v56 }
0x1120   : > { %v9736_v7 = vpop.eup %9735 }
0x1121   : > { %2572 = vrot.lane.b32.xlu1 %v9736_v7, %s10011_s30  ;;  %v9738_v6 = vpop.eup %9737 }
0x1122   : > { %v3152_v60 = vmul.f32 %v9738_v6, %v10763_v63  ;;  %v7731_v63 = vld [vmem:[%s12431_s2 + $0x278] sm:$0xff] }
0x1193   : > { %v2573_v11 = vpop.permute.xlu1 %2572 }
0x1194   : > { %v2575_v8 = vmul.f32 %v2573_v11, %v2562_v37  ;;  %v3138_v37 = vadd.f32 %v3130_v38, %v3127_v48  ;;  %v3151_v11 = vmul.f32 %v9738_v6, %v10760_v0  ;;  %v7724_v0 = vld [vmem:[%s12431_s2 + $0x240] sm:$0xff]  ;;  %v7721_v48 = vld [vmem:[%s12430_s1 + $0xd8] sm:$0xff]  ;;  %v7733_v6 = vld [vmem:[%s12431_s2 + $0x288] sm:$0xff] }
0x1196   : > { %v2690_v15 = vrot.slane %v2575_v8, %v10435_v28  ;;  %v3139_v59 = vrot.slane %v3138_v37, 4  ;;  %v7720_v8 = vld [vmem:[%s12430_s1 + $0xc0] sm:$0xff] }
0x1197   : > { %v3155_v16 = vmul.f32 %v7720_v8, %v3151_v11 }
0x1198   : > { %v2698_v5 = vrot.slane %v2690_v15, %v10435_v28  ;;  %v2691_v62 = vcombine.high %v2690_v15, %v2690_v15  ;;  %v3140_v55 = vadd.f32 %v3139_v59, %v3138_v37  ;;  %v7730_v37 = vld [vmem:[%s12431_s2 + $0x270] sm:$0xff]  ;;  %v3156_v59 = vmul.f32 %v7721_v48, %v3152_v60 }
0x119a   : > { %v2709_v17 = vrot.slane %v2698_v5, %v10439_v32  ;;  %v2705_v20 = vrot.slane %v2691_v62, %v10435_v28  ;;  %v3141_v58 = vrot.slane %v3140_v55, 2  ;;  %v7722_v5 = vld [vmem:[%s12430_s1 + $0xf0] sm:$0xff] }
0x119c   : > { %v10793_v18 = vmul.f32 %v2709_v17, %v2670_v2  ;;  %v10795_v19 = vmul.f32 %v2709_v17, %v2665_v57  ;;  %v2713_v1 = vrot.slane %v2705_v20, %v10439_v32  ;;  %v3142_v3 = vadd.f32 %v3141_v58, %v3140_v55 }
0x119d   : > { %v3159_v17 = vadd.f32 %v7722_v5, %v3155_v16 }
0x119e   : > { %v2723_v21 = vsel %vm320_vm0, %v10793_v18, 0.0  ;;  %v2720_v22 = vsel %vm320_vm0, %v10795_v19, 0.0  ;;  %v2736_v25 = vsel %vm320_vm0, %v10795_v19, -inf  ;;  %v2739_v27 = vsel %vm320_vm0, %v10793_v18, -inf }
0x119f   : > { %2724 = vadd.xlane.f32.xlu1 %v2723_v21  ;;  %2721 = vadd.xlane.f32.xlu0 %v2720_v22  ;;  %v10807_v29 = vmul.f32 %v2713_v1, %v2675_v26  ;;  %v10811_v33 = vmul.f32 %v2713_v1, %v2680_v30  ;;  %v3143_v9 = vrot.slane %v3142_v3, 1  ;;  %v7725_v1 = vld [vmem:[%s12431_s2 + $0x248] sm:$0xff] }
0x11a0   : > { %v9303_v30 = vpack.c.bf16 %v7725_v1, %v7724_v0  ;;  %v7744_v1 = vld [vmem:[%s12432_s3 + $0x110] sm:$0xff] }
0x11a1   : > { %v2726_v4 = vsel %vm320_vm0, %v10807_v29, 0.0  ;;  %v2729_v34 = vsel %vm320_vm0, %v10811_v33, 0.0  ;;  %v2742_v31 = vsel %vm320_vm0, %v10807_v29, -inf  ;;  %v2745_v14 = vsel %vm320_vm0, %v10811_v33, -inf }
0x11a2   : > { %v3144_v7 = vadd.f32 %v3143_v9, %v3142_v3  ;;  %v9315_v3 = vpack.c.bf16 %v7731_v63, %v7730_v37  ;;  %v7732_v9 = vld [vmem:[%s12431_s2 + $0x280] sm:$0xff] }
0x11a3   : > { %2737 = vmax.xlane.f32.xlu0 %v2736_v25 }
0x11a4   : > { %v3146_v15 = vmul.f32 0.0006510417, %v3144_v7 }
0x11a6   : > { %v3148_v2 = vadd.f32 1e-05, %v3146_v15 }
0x11a7   : > { %2740 = vmax.xlane.f32.xlu0 %v2739_v27 }
0x11a8   : > { %9739 = vrsqrt.f32 %v3148_v2  ;;  %v7734_v2 = vld [vmem:[%s12431_s2 + $0x290] sm:$0xff] }
0x11a9   : > { %9741 = vtanh.f32 %v3159_v17 }
0x11ab   : > { %2727 = vadd.xlane.f32.xlu0 %v2726_v4  ;;  %v7726_v4 = vld [vmem:[%s12431_s2 + $0x250] sm:$0xff] }
0x11af   : > { %2730 = vadd.xlane.f32.xlu0 %v2729_v34  ;;  %v7727_v34 = vld [vmem:[%s12431_s2 + $0x258] sm:$0xff] }
0x11b0   : > { %v9307_v36 = vpack.c.bf16 %v7727_v34, %v7726_v4  ;;  %v7747_v4 = vld [vmem:[%s12432_s3 + $0x128] sm:$0xff] }
0x11b2   : > { %v9740_v41 = vpop.eup %9739 }
0x11b3   : > { %2743 = vmax.xlane.f32.xlu0 %v2742_v31  ;;  %v9742_v46 = vpop.eup %9741  ;;  %v3153_v50 = vmul.f32 %v9740_v41, %v10772_v12  ;;  %v3154_v56 = vmul.f32 %v9740_v41, %v10775_v35  ;;  %v7723_v12 = vld [vmem:[%s12430_s1 + $0x108] sm:$0xff]  ;;  %v7756_v41 = vld [vmem:[%s12433_s4 + $0xc0] sm:$0xff] }
0x11b4   : > { %v3160_v35 = vadd.f32 %v7723_v12, %v3156_v59  ;;  %v9343_v44 = vpack.c.bf16 %v7757_v42, %v7756_v41 }
0x11b5   : > { %v3157_v58 = vmul.f32 %v7720_v8, %v3153_v50  ;;  %v3158_v7 = vmul.f32 %v7721_v48, %v3154_v56  ;;  %v9319_v8 = vpack.c.bf16 %v7733_v6, %v7732_v9  ;;  %v7737_v50 = vld [vmem:[%s12435_s6 + $0x10] ss:$0 sm:$0xff]  ;;  %v7759_v6 = vld [vmem:[%s12433_s4 + $0xd8] sm:$0xff] }
0x11b6   : > { %9743 = vtanh.f32 %v3160_v35  ;;  %v7758_v9 = vld [vmem:[%s12433_s4 + $0xd0] sm:$0xff] }
0x11b7   : > { %2746 = vmax.xlane.f32.xlu0 %v2745_v14  ;;  %v7701_v14 = vld [vmem:[%s12437_s8 + $0x18] sm:$0xff]  ;;  %v3161_v15 = vadd.f32 %v7722_v5, %v3157_v58  ;;  %v9347_v35 = vpack.c.bf16 %v7759_v6, %v7758_v9 }
0x11b9   : > { %9745 = vtanh.f32 %v3161_v15 }
0x11c0   : > { %v9744_v5 = vpop.eup %9743 }
0x122c   : > { %v2725_v57 = vpop.xlane.xlu1 %2724  ;;  %v2722_v62 = vpop.xlane.xlu0 %2721 }
0x122d   : > { %v2733_v20 = vmul.f32 0.03125, %v2725_v57  ;;  %v2732_v21 = vmul.f32 0.03125, %v2722_v62  ;;  %v7735_v57 = vld [vmem:[%s12431_s2 + $0x298] sm:$0xff]  ;;  %v3162_v62 = vadd.f32 %v7723_v12, %v3158_v7  ;;  %v7751_v7 = vld [vmem:[%s12435_s6 + $0x14] ss:$0 sm:$0xff] }
0x122e   : > { %v9323_v17 = vpack.c.bf16 %v7735_v57, %v7734_v2 }
0x122f   : > { %v9287_v22 = vpack.c.bf16 %v2733_v20, %v2732_v21  ;;  %9747 = vtanh.f32 %v3162_v62  ;;  %v9746_v20 = vpop.eup %9745 }
0x1230   : > { %v2738_v25 = vpop.xlane.xlu0 %2737 }
0x1231   : > { %9288 = vmatprep.subr.bf16.mxu1 %v9287_v22 }
0x1232   : > { %9290 = vmatpush3.bf16.msra.mxu1 %v9287_v22  ;;  %v7742_v22 = vld [vmem:[%s12432_s3 + $0x100] sm:$0xff] }
0x1234   : > { %v2741_v26 = vpop.xlane.xlu0 %2740 }
0x1235   : > { %v9291_v27 = vpack.c.bf16 %v2741_v26, %v2738_v25  ;;  %v7743_v25 = vld [vmem:[%s12432_s3 + $0x108] sm:$0xff]  ;;  %v7745_v26 = vld [vmem:[%s12432_s3 + $0x118] sm:$0xff] }
0x1236   : > { %v9327_v0 = vpack.c.bf16 %v7743_v25, %v7742_v22 }
0x1237   : > { %9292 = vmatprep.subr.bf16.mxu1 %v9291_v27 }
0x1238   : > { %9294 = vmatpush3.bf16.msra.mxu1 %v9291_v27  ;;  %v2728_v31 = vpop.xlane.xlu0 %2727  ;;  %v9331_v27 = vpack.c.bf16 %v7745_v26, %v7744_v1 }
0x1239   : > { %9304 = vmatprep.subr.bf16.mxu1 %v9303_v30  ;;  %v2734_v51 = vmul.f32 0.03125, %v2728_v31  ;;  %v9748_v21 = vpop.eup %9747  ;;  %v7748_v31 = vld [vmem:[%s12432_s3 + $0x130] sm:$0xff] }
0x123b   : > { %8721 = vmatmul.mubr.msk.f32.vlgmr.msra.gmra.mrb[18].mxu1 %vm320_vm0, %v7701_v14 }
0x123c   : > { %9306 = vmatpush3.bf16.msra.mxu1 %v9303_v30  ;;  %8758 = vmatprep.mubr.msk.f32.mxu1 %vm3082_vm7, %v9742_v46  ;;  %v2731_v47 = vpop.xlane.xlu0 %2730  ;;  %v7746_v30 = vld [vmem:[%s12432_s3 + $0x120] sm:$0xff] }
0x123d   : > { %v2735_v38 = vmul.f32 0.03125, %v2731_v47  ;;  %9308 = vmatprep.subr.bf16.mxu1 %v9307_v36  ;;  %v9335_v34 = vpack.c.bf16 %v7747_v4, %v7746_v30 }
0x123f   : > { %v9295_v54 = vpack.c.bf16 %v2735_v38, %v2734_v51 }
0x1240   : > { %9310 = vmatpush3.bf16.msra.mxu1 %v9307_v36  ;;  %v2744_v55 = vpop.xlane.xlu0 %2743 }
0x1241   : > { %9296 = vmatprep.subr.bf16.mxu0 %v9295_v54  ;;  %9312 = vmatprep.subr.bf16.mxu1 %v9311_v53 }
0x1242   : > { %9298 = vmatpush3.bf16.msra.mxu0 %v9295_v54 }
0x1244   : > { %9314 = vmatpush3.bf16.msra.mxu1 %v9311_v53  ;;  %v2747_v11 = vpop.xlane.xlu0 %2746 }
0x1245   : > { %v9299_v16 = vpack.c.bf16 %v2747_v11, %v2744_v55  ;;  %9316 = vmatprep.subr.bf16.mxu1 %v9315_v3 }
0x1247   : > { %9300 = vmatprep.subr.bf16.mxu0 %v9299_v16 }
0x1248   : > { %9302 = vmatpush3.bf16.msra.mxu0 %v9299_v16  ;;  %9318 = vmatpush3.bf16.msra.mxu1 %v9315_v3 }
0x1249   : > { %9320 = vmatprep.subr.bf16.mxu1 %v9319_v8  ;;  %9328 = vmatprep.subr.bf16.mxu0 %v9327_v0 }
0x124b   : > { %8732 = vmatmul.mubr.msk.f32.vlgmr.msra.gmra.mrb[30].mxu0 %vm320_vm0, %v7701_v14  ;;  %v7749_v14 = vld [vmem:[%s12432_s3 + $0x138] sm:$0xff] }
0x124c   : > { %9322 = vmatpush3.bf16.msra.mxu1 %v9319_v8  ;;  %9330 = vmatpush3.bf16.msra.mxu0 %v9327_v0  ;;  %v9339_v36 = vpack.c.bf16 %v7749_v14, %v7748_v31 }
0x124d   : > { %9324 = vmatprep.subr.bf16.mxu1 %v9323_v17  ;;  %9332 = vmatprep.subr.bf16.mxu0 %v9331_v27 }
0x1250   : > { %9326 = vmatpush3.bf16.msra.mxu1 %v9323_v17  ;;  %9334 = vmatpush3.bf16.msra.mxu0 %v9331_v27 }
0x1251   : > { %9351 = vmatprep.subr.bf16.mxu1 %v10012_v10  ;;  %9336 = vmatprep.subr.bf16.mxu0 %v9335_v34 }
0x1253   : > { %8759 = vmatmul.mubr.msk.f32.vlgmr.msra.gmra.mrb[20].mxu1 %vm3082_vm7, %v9744_v5  ;;  %v7761_v5 = vld [vmem:[%s12435_s6 + $0x11] ss:$0 sm:$0xff] }
0x1254   : > { %8761 = vmatprep.mubr.msk.f32.mxu1 %vm3082_vm7, %v9746_v20  ;;  %9338 = vmatpush3.bf16.msra.mxu0 %v9335_v34 }
0x1255   : > { %9340 = vmatprep.subr.bf16.mxu0 %v9339_v36 }
0x1257   : > { %8762 = vmatmul.mubr.msk.f32.gmra.mrb[22].mxu1 %vm3082_vm7, %v9748_v21 }
0x1258   : > { %8808 = vmatprep.mubr.msk.f32.mxu1 %vm10013_vm2, %v10014_v13  ;;  %9342 = vmatpush3.bf16.msra.mxu0 %v9339_v36 }
0x1259   : > { %9344 = vmatprep.subr.bf16.mxu0 %v9343_v44 }
0x130e   : > { %v10918_v46 = vpop.f32.mrb[18].mxu1 }
0x130f   : > { %v10920_v60 = vpop.f32.mrb[19].mxu1 }
0x131e   : > { %v10922_v47 = vpop.f32.mrb[30].mxu0 }
0x131f   : > { %v10924_v48 = vpop.f32.mrb[31].mxu0 }
0x1326   : > { %v8760_v51 = vpop.f32.mrb[20].mxu1 }
0x1327   : > { %v3270_v38 = vadd.f32 %v8760_v51, %v7737_v50  ;;  %v3264_v53 = vpop.f32.mrb[21].mxu1 }
0x1328   : > { %v3265_v37 = vadd.f32 %v7737_v50, %v3264_v53 }
0x132a   : > { %9749 = vtanh.f32 %v3265_v37  ;;  %v8763_v63 = vpop.f32.mrb[22].mxu1 }
0x132b   : > { %9751 = vtanh.f32 %v3270_v38  ;;  %v3280_v54 = vadd.f32 %v8763_v63, %v7737_v50  ;;  %v3274_v59 = vpop.f32.mrb[23].mxu1 }
0x132c   : > { %v3275_v56 = vadd.f32 %v7737_v50, %v3274_v59 }
0x132e   : > { %9753 = vtanh.f32 %v3275_v56 }
0x132f   : > { %9755 = vtanh.f32 %v3280_v54 }
0x1334   : > { %v9750_v55 = vpop.eup %9749 }
0x1335   : > { %v9752_v12 = vpop.eup %9751  ;;  %8780 = vmatprep.mubr.msk.f32.mxu0 %vm528_vm1, %v9750_v55 }
0x1336   : > { %8781 = vmatmul.mubr.msk.f32.vlgmr.msra.gmra.mrb[32].mxu0 %vm528_vm1, %v9752_v12 }
0x1337   : > { %9346 = vmatpush3.bf16.msra.mxu0 %v9343_v44 }
0x1338   : > { %v9754_v58 = vpop.eup %9753  ;;  %9348 = vmatprep.subr.bf16.mxu0 %v9347_v35 }
0x1339   : > { %v9756_v3 = vpop.eup %9755  ;;  %8783 = vmatprep.mubr.msk.f32.mxu0 %vm528_vm1, %v9754_v58 }
0x133a   : > { %8784 = vmatmul.mubr.msk.f32.gmra.mrb[34].mxu0 %vm528_vm1, %v9756_v3 }
0x133b   : > { %9350 = vmatpush3.bf16.msra.mxu0 %v9347_v35 }
0x133c   : > { %9357 = vmatprep.subr.bf16.mxu0 %v10012_v10 }
0x1409   : > { %v8782_v11 = vpop.f32.mrb[32].mxu0 }
0x140a   : > { %v3379_v15 = vpop.f32.mrb[33].mxu0  ;;  %v3385_v8 = vadd.f32 %v8782_v11, %v7751_v7 }
0x140b   : > { %v3380_v16 = vadd.f32 %v7751_v7, %v3379_v15 }
0x140d   : > { %v8785_v2 = vpop.f32.mrb[34].mxu0  ;;  %8794 = vmatprep.mubr.msk.f32.mxu0 %vm320_vm0, %v3380_v16 }
0x140e   : > { %v3389_v57 = vpop.f32.mrb[35].mxu0  ;;  %8795 = vmatmul.mubr.msk.f32.vlgmr.msra.gmra.mrb[36].mxu0 %vm320_vm0, %v3385_v8  ;;  %v3395_v17 = vadd.f32 %v8785_v2, %v7751_v7 }
0x140f   : > { %v3390_v62 = vadd.f32 %v7751_v7, %v3389_v57 }
0x1411   : > { %8797 = vmatprep.mubr.msk.f32.mxu0 %vm320_vm0, %v3390_v62 }
0x1412   : > { %8798 = vmatmul.mubr.msk.f32.gmra.mrb[38].mxu0 %vm320_vm0, %v3395_v17 }
0x1413   : > { %8827 = vmatprep.mubr.msk.f32.mxu0 %vm10013_vm2, %v10014_v13 }
0x14e1   : > { %v8796_v20 = vpop.f32.mrb[36].mxu0 }
0x14e2   : > { %v3492_v21 = vadd.f32 %v8796_v20, %v7761_v5  ;;  %v3486_v22 = vpop.f32.mrb[37].mxu0 }
0x14e3   : > { %v3487_v25 = vadd.f32 %v7761_v5, %v3486_v22 }
0x14e4   : > { %v7767_v0 = vmul.f32 -1.442695, %v3492_v21 }
0x14e5   : > { %v7766_v1 = vmul.f32 -1.442695, %v3487_v25  ;;  %v8799_v26 = vpop.f32.mrb[38].mxu0 }
0x14e6   : > { %9757 = vpow2.f32 %v7767_v0  ;;  %v3502_v27 = vadd.f32 %v8799_v26, %v7761_v5  ;;  %v3496_v30 = vpop.f32.mrb[39].mxu0 }
0x14e7   : > { %9759 = vpow2.f32 %v7766_v1  ;;  %v3497_v4 = vadd.f32 %v7761_v5, %v3496_v30 }
0x14e8   : > { %v7769_v34 = vmul.f32 -1.442695, %v3502_v27 }
0x14e9   : > { %v7768_v31 = vmul.f32 -1.442695, %v3497_v4 }
0x14ea   : > { %9761 = vpow2.f32 %v7769_v34 }
0x14eb   : > { %9763 = vpow2.f32 %v7768_v31 }
0x14f0   : > { %v9758_v14 = vpop.eup %9757 }
0x14f1   : > { %v9760_v36 = vpop.eup %9759  ;;  %v3518_v41 = vadd.f32 1.0, %v9758_v14 }
0x14f2   : > { %v3517_v42 = vadd.f32 1.0, %v9760_v36 }
0x14f3   : > { %9765 = vrcp.f32 %v3518_v41 }
0x14f4   : > { %v9762_v44 = vpop.eup %9761  ;;  %9767 = vrcp.f32 %v3517_v42 }
0x14f5   : > { %v9764_v50 = vpop.eup %9763  ;;  %v3520_v51 = vadd.f32 1.0, %v9762_v44 }
0x14f6   : > { %v3519_v38 = vadd.f32 1.0, %v9764_v50 }
0x14f7   : > { %9769 = vrcp.f32 %v3520_v51 }
0x14f8   : > { %9771 = vrcp.f32 %v3519_v38 }
0x14fd   : > { %v9766_v53 = vpop.eup %9765 }
0x14fe   : > { %v9768_v37 = vpop.eup %9767  ;;  %3535 = vrot.lane.b32.xlu1 %v9766_v53, %s10011_s30 }
0x14ff   : > { %3533 = vrot.lane.b32.xlu0 %v9768_v37, %s10011_s30 }
0x1501   : > { %v9770_v63 = vpop.eup %9769 }
0x1502   : > { %v9772_v54 = vpop.eup %9771  ;;  %3539 = vrot.lane.b32.xlu1 %v9770_v63, %s10011_s30 }
0x1503   : > { %3537 = vrot.lane.b32.xlu0 %v9772_v54, %s10011_s30 }
0x1570   : > { %v3536_v59 = vpop.permute.xlu1 %3535 }
0x1571   : > { %v3546_v56 = vmul.f32 %v3536_v59, %v3492_v21  ;;  %v3534_v55 = vpop.permute.xlu0 %3533 }
0x1572   : > { %v3545_v12 = vmul.f32 %v3534_v55, %v3487_v25  ;;  %v7775_v55 = vld [vmem:[%s12433_s4 + $0x108] sm:$0xff] }
0x1573   : > { %v3558_v58 = vsel %vm320_vm0, %v3546_v56, 0.0 }
0x1574   : > { %3559 = vadd.xlane.f32.xlu1 %v3558_v58  ;;  %v3555_v3 = vsel %vm320_vm0, %v3545_v12, 0.0  ;;  %v3540_v9 = vpop.permute.xlu1 %3539 }
0x1575   : > { %3556 = vadd.xlane.f32.xlu0 %v3555_v3  ;;  %v3538_v6 = vpop.permute.xlu0 %3537  ;;  %v3548_v7 = vmul.f32 %v3540_v9, %v3502_v27  ;;  %v7777_v3 = vld [vmem:[%s12433_s4 + $0x118] sm:$0xff] }
0x1576   : > { %v3547_v35 = vmul.f32 %v3538_v6, %v3497_v4  ;;  %v7781_v6 = vld [vmem:[%s12432_s3 + $0x140] sm:$0xff] }
0x1577   : > { %v3564_v15 = vsel %vm320_vm0, %v3548_v7, 0.0 }
0x1578   : > { %v3561_v11 = vsel %vm320_vm0, %v3547_v35, 0.0 }
0x1579   : > { %3562 = vadd.xlane.f32.xlu0 %v3561_v11 }
0x157d   : > { %3565 = vadd.xlane.f32.xlu0 %v3564_v15  ;;  %v7784_v15 = vld [vmem:[%s12432_s3 + $0x158] sm:$0xff] }
0x1601   : > { %v3560_v16 = vpop.xlane.xlu1 %3559 }
0x1602   : > { %v3557_v8 = vpop.xlane.xlu0 %3556 }
0x1603   : > { %v3567_v2 = vadd.f32 %v3560_v16, %v3557_v8  ;;  %v7785_v8 = vld [vmem:[%s12432_s3 + $0x160] sm:$0xff] }
0x1605   : > { %v3568_v57 = vrot.slane %v3567_v2, 4 }
0x1606   : > { %v3563_v62 = vpop.xlane.xlu0 %3562 }
0x1607   : > { %v3569_v17 = vadd.f32 %v3568_v57, %v3567_v2  ;;  %v7786_v2 = vld [vmem:[%s12432_s3 + $0x168] sm:$0xff] }
0x1608   : > { %v9364_v57 = vpack.c.bf16 %v7786_v2, %v7785_v8 }
0x1609   : > { %v3570_v5 = vrot.slane %v3569_v17, 2 }
0x160a   : > { %v3566_v20 = vpop.xlane.xlu0 %3565 }
0x160b   : > { %v3571_v21 = vadd.f32 %v3570_v5, %v3569_v17  ;;  %v3574_v22 = vadd.f32 %v3566_v20, %v3563_v62 }
0x160d   : > { %v3572_v25 = vrot.slane %v3571_v21, 1  ;;  %v3575_v0 = vrot.slane %v3574_v22, 4 }
0x160f   : > { %v3576_v1 = vadd.f32 %v3575_v0, %v3574_v22  ;;  %v3573_v26 = vadd.f32 %v3572_v25, %v3571_v21 }
0x1611   : > { %v3577_v27 = vrot.slane %v3576_v1, 2  ;;  %v3581_v30 = vmul.f32 0.001953125, %v3573_v26 }
0x1613   : > { %v3578_v4 = vadd.f32 %v3577_v27, %v3576_v1  ;;  %v10960_v34 = vsub.f32 %v3546_v56, %v3581_v30  ;;  %v10962_v31 = vsub.f32 %v3545_v12, %v3581_v30  ;;  %v7774_v56 = vld [vmem:[%s12433_s4 + $0x100] sm:$0xff]  ;;  %v7776_v12 = vld [vmem:[%s12433_s4 + $0x110] sm:$0xff] }
0x1614   : > { %v9352_v58 = vpack.c.bf16 %v7775_v55, %v7774_v56  ;;  %v9355_v9 = vpack.c.bf16 %v7777_v3, %v7776_v12  ;;  %v7771_v56 = vld [vmem:[%s12436_s7 + $0x88] sm:$0xff]  ;;  %v7773_v3 = vld [vmem:[%s12436_s7 + $0x98] sm:$0xff] }
0x1615   : > { %v3579_v14 = vrot.slane %v3578_v4, 1  ;;  %v3588_v36 = vmul.f32 %v10960_v34, %v10960_v34  ;;  %v3587_v41 = vmul.f32 %v10962_v31, %v10962_v31 }
0x1616   : > { %9353 = vmatpush3.bf16.msra.mxu1 %v9352_v58  ;;  %v7772_v58 = vld [vmem:[%s12436_s7 + $0x90] sm:$0xff] }
0x1617   : > { %v3580_v42 = vadd.f32 %v3579_v14, %v3578_v4  ;;  %v3594_v44 = vsel %vm320_vm0, %v3588_v36, 0.0  ;;  %v3591_v50 = vsel %vm320_vm0, %v3587_v41, 0.0  ;;  %9354 = vmatprep.subr.bf16.mxu1 %v10012_v10 }
0x1618   : > { %3595 = vadd.xlane.f32.xlu1 %v3594_v44  ;;  %3592 = vadd.xlane.f32.xlu0 %v3591_v50 }
0x1619   : > { %v3582_v51 = vmul.f32 0.001953125, %v3580_v42 }
0x161a   : > { %9356 = vmatpush3.bf16.msra.mxu1 %v9355_v9 }
0x161b   : > { %v10970_v38 = vsub.f32 %v3548_v7, %v3582_v51  ;;  %v10972_v53 = vsub.f32 %v3547_v35, %v3582_v51  ;;  %9369 = vmatprep.subr.bf16.mxu1 %v10012_v10  ;;  %v7782_v35 = vld [vmem:[%s12432_s3 + $0x148] sm:$0xff]  ;;  %v7783_v7 = vld [vmem:[%s12432_s3 + $0x150] sm:$0xff] }
0x161c   : > { %v9358_v11 = vpack.c.bf16 %v7782_v35, %v7781_v6  ;;  %v9361_v16 = vpack.c.bf16 %v7784_v15, %v7783_v7 }
0x161d   : > { %v3590_v37 = vmul.f32 %v10970_v38, %v10970_v38  ;;  %v3589_v63 = vmul.f32 %v10972_v53, %v10972_v53 }
0x161e   : > { %9359 = vmatpush3.bf16.msra.mxu0 %v9358_v11 }
0x161f   : > { %v3600_v54 = vsel %vm320_vm0, %v3590_v37, 0.0  ;;  %v3597_v59 = vsel %vm320_vm0, %v3589_v63, 0.0  ;;  %9360 = vmatprep.subr.bf16.mxu0 %v10012_v10 }
0x1620   : > { %3601 = vadd.xlane.f32.xlu1 %v3600_v54  ;;  %3598 = vadd.xlane.f32.xlu0 %v3597_v59  ;;  %v7770_v59 = vld [vmem:[%s12436_s7 + $0x80] sm:$0xff] }
0x1622   : > { %9362 = vmatpush3.bf16.msra.mxu0 %v9361_v16 }
0x1623   : > { %9363 = vmatprep.subr.bf16.mxu0 %v10012_v10 }
0x1626   : > { %9365 = vmatpush3.bf16.msra.mxu0 %v9364_v57 }
0x1627   : > { %9366 = vmatprep.subr.bf16.mxu0 %v10012_v10 }
0x16a5   : > { %v3596_v62 = vpop.xlane.xlu1 %3595  ;;  %v3593_v17 = vpop.xlane.xlu0 %3592 }
0x16a6   : > { %v3603_v5 = vadd.f32 %v3596_v62, %v3593_v17 }
0x16a8   : > { %v3604_v20 = vrot.slane %v3603_v5, 4 }
0x16aa   : > { %v3605_v21 = vadd.f32 %v3604_v20, %v3603_v5 }
0x16ac   : > { %v3606_v22 = vrot.slane %v3605_v21, 2 }
0x16ad   : > { %v3602_v25 = vpop.xlane.xlu1 %3601  ;;  %v3599_v0 = vpop.xlane.xlu0 %3598 }
0x16ae   : > { %v3607_v1 = vadd.f32 %v3606_v22, %v3605_v21  ;;  %v3610_v26 = vadd.f32 %v3602_v25, %v3599_v0 }
0x16b0   : > { %v3608_v27 = vrot.slane %v3607_v1, 1  ;;  %v3611_v30 = vrot.slane %v3610_v26, 4 }
0x16b2   : > { %v3609_v4 = vadd.f32 %v3608_v27, %v3607_v1  ;;  %v3612_v14 = vadd.f32 %v3611_v30, %v3610_v26 }
0x16b4   : > { %v3617_v36 = vmul.f32 0.001953125, %v3609_v4  ;;  %v3613_v41 = vrot.slane %v3612_v14, 2 }
0x16b6   : > { %v3619_v42 = vadd.f32 1e-05, %v3617_v36  ;;  %v3614_v44 = vadd.f32 %v3613_v41, %v3612_v14 }
0x16b8   : > { %9773 = vrsqrt.f32 %v3619_v42  ;;  %v3615_v50 = vrot.slane %v3614_v44, 1 }
0x16ba   : > { %v3616_v51 = vadd.f32 %v3615_v50, %v3614_v44 }
0x16bc   : > { %v3618_v37 = vmul.f32 0.001953125, %v3616_v51 }
0x16be   : > { %v3620_v63 = vadd.f32 1e-05, %v3618_v37 }
0x16c0   : > { %9775 = vrsqrt.f32 %v3620_v63 }
0x16c2   : > { %v9774_v54 = vpop.eup %9773 }
0x16c3   : > { %v3623_v55 = vmul.f32 %v9774_v54, %v10962_v31  ;;  %v3624_v12 = vmul.f32 %v9774_v54, %v10960_v34 }
0x16c5   : > { %v3627_v9 = vmul.f32 %v7770_v59, %v3623_v55  ;;  %v3628_v6 = vmul.f32 %v7771_v56, %v3624_v12 }
0x16c7   : > { %v11029_v35 = vadd.f32 %v7772_v58, %v3627_v9  ;;  %v11031_v7 = vadd.f32 %v7773_v3, %v3628_v6 }
0x16c9   : > { %v3635_v11 = vsel %vm320_vm0, %v11029_v35, 0.0  ;;  %v3636_v34 = vsel %vm320_vm0, %v11031_v7, 0.0  ;;  %v3655_v31 = vsel %vm320_vm0, %v11029_v35, -inf  ;;  %v3656_v15 = vsel %vm320_vm0, %v11031_v7, -inf }
0x16ca   : > { %v9776_v16 = vpop.eup %9775  ;;  %v3637_v8 = vadd.f32 %v3636_v34, %v3635_v11  ;;  %v3657_v2 = vmax.f32 %v3655_v31, %v3656_v15 }
0x16cb   : > { %v3625_v57 = vmul.f32 %v9776_v16, %v10972_v53  ;;  %v3626_v62 = vmul.f32 %v9776_v16, %v10970_v38 }
0x16cc   : > { %v3638_v17 = vrot.slane %v3637_v8, 4  ;;  %v3658_v5 = vrot.slane %v3657_v2, 4 }
0x16cd   : > { %v3629_v20 = vmul.f32 %v7770_v59, %v3625_v57  ;;  %v3630_v21 = vmul.f32 %v7771_v56, %v3626_v62  ;;  %v7787_v62 = vld [vmem:[%s12432_s3 + $0x170] sm:$0xff] }
0x16ce   : > { %v3639_v22 = vadd.f32 %v3638_v17, %v3637_v8  ;;  %v3659_v26 = vmax.f32 %v3657_v2, %v3658_v5  ;;  %v7788_v17 = vld [vmem:[%s12432_s3 + $0x178] sm:$0xff] }
0x16cf   : > { %v11043_v25 = vadd.f32 %v7772_v58, %v3629_v20  ;;  %v11045_v0 = vadd.f32 %v7773_v3, %v3630_v21  ;;  %v9367_v5 = vpack.c.bf16 %v7788_v17, %v7787_v62  ;;  %v7779_v20 = vld [vmem:[%s12435_s6 + $0x12] ss:$0 sm:$0xff] }
0x16d0   : > { %v3640_v1 = vrot.slane %v3639_v22, 2  ;;  %v3660_v44 = vrot.slane %v3659_v26, 2 }
0x16d1   : > { %v3644_v27 = vsel %vm320_vm0, %v11043_v25, 0.0  ;;  %v3645_v30 = vsel %vm320_vm0, %v11045_v0, 0.0  ;;  %v3664_v38 = vsel %vm320_vm0, %v11043_v25, -inf  ;;  %v3665_v53 = vsel %vm320_vm0, %v11045_v0, -inf  ;;  %9368 = vmatpush3.bf16.msra.mxu0 %v9367_v5 }
0x16d2   : > { %v3646_v4 = vadd.f32 %v3645_v30, %v3644_v27  ;;  %v3666_v14 = vmax.f32 %v3664_v38, %v3665_v53  ;;  %v3641_v36 = vadd.f32 %v3640_v1, %v3639_v22  ;;  %v3661_v54 = vmax.f32 %v3659_v26, %v3660_v44  ;;  %v7792_v27 = vld [vmem:[%s12433_s4 + $0xe0] sm:$0xff]  ;;  %v7793_v30 = vld [vmem:[%s12433_s4 + $0xe8] sm:$0xff]  ;;  %v7794_v53 = vld [vmem:[%s12433_s4 + $0xf0] sm:$0xff] }
0x16d3   : > { %v9370_v38 = vpack.c.bf16 %v7793_v30, %v7792_v27  ;;  %v7827_v44 = vld [vmem:[%s12429_s0 + $0x138] sm:$0xff] }
0x16d4   : > { %v3647_v41 = vrot.slane %v3646_v4, 4  ;;  %v3667_v42 = vrot.slane %v3666_v14, 4  ;;  %v3642_v50 = vrot.slane %v3641_v36, 1  ;;  %v3662_v3 = vrot.slane %v3661_v54, 1 }
0x16d6   : > { %v3648_v51 = vadd.f32 %v3647_v41, %v3646_v4  ;;  %v3668_v37 = vmax.f32 %v3666_v14, %v3667_v42  ;;  %v3643_v56 = vadd.f32 %v3642_v50, %v3641_v36  ;;  %v3663_v31 = vmax.f32 %v3661_v54, %v3662_v3  ;;  %v7795_v4 = vld [vmem:[%s12433_s4 + $0xf8] sm:$0xff]  ;;  %v7800_v36 = vld [vmem:[%s12434_s5 + $0x40] sm:$0xff]  ;;  %v7801_v41 = vld [vmem:[%s12434_s5 + $0x48] sm:$0xff] }
0x16d7   : > { %v9373_v14 = vpack.c.bf16 %v7795_v4, %v7794_v53  ;;  %v9375_v42 = vpack.c.bf16 %v7801_v41, %v7800_v36  ;;  %v7826_v50 = vld [vmem:[%s12429_s0 + $0x120] sm:$0xff]  ;;  %v11106_v54 = vld [vmem:[%s12429_s0 + $0x150] sm:$0xff] }
0x16d8   : > { %v3649_v63 = vrot.slane %v3648_v51, 2  ;;  %v3669_v59 = vrot.slane %v3668_v37, 2  ;;  %v3653_v11 = vmul.f32 0.0625, %v3643_v56  ;;  %v4488_v56 = vsel %vm3082_vm7, %v11106_v54, 0.0 }
0x16da   : > { %v3650_v55 = vadd.f32 %v3649_v63, %v3648_v51  ;;  %v3670_v12 = vmax.f32 %v3668_v37, %v3669_v59  ;;  %v3673_v16 = vsel %vm899_vm3, %v3653_v11, %v3663_v31  ;;  %v4485_v51 = vsel %vm3082_vm7, %v7827_v44, 0.0  ;;  %v11101_v63 = vld [vmem:[%s12429_s0 + $0x168] sm:$0xff] }
0x16db   : > { %v4482_v37 = vsel %vm3082_vm7, %v7826_v50, 0.0  ;;  %4486 = vadd.xlane.f32.xlu1 %v4485_v51  ;;  %v4491_v59 = vsel %vm3082_vm7, %v11101_v63, 0.0 }
0x16dc   : > { %v3651_v58 = vrot.slane %v3650_v55, 1  ;;  %v3671_v9 = vrot.slane %v3670_v12, 1  ;;  %4483 = vadd.xlane.f32.xlu0 %v4482_v37 }
0x16de   : > { %v3652_v6 = vadd.f32 %v3651_v58, %v3650_v55  ;;  %v3672_v15 = vmax.f32 %v3670_v12, %v3671_v9  ;;  %v7790_v55 = vld [vmem:[%s12435_s6 + $0x15] ss:$0 sm:$0xff] }
0x16df   : > { %4492 = vadd.xlane.f32.xlu1 %v4491_v59 }
0x16e0   : > { %v3654_v34 = vmul.f32 0.0625, %v3652_v6  ;;  %4489 = vadd.xlane.f32.xlu0 %v4488_v56 }
0x16e2   : > { %v3674_v8 = vsel %vm899_vm3, %v3654_v34, %v3672_v15 }
0x16e3   : > { %v3687_v2 = vcombine.low %v3673_v16, %v3674_v8 }
0x16e5   : > { %v3694_v57 = vrot.slane %v3687_v2, %v10319_v45 }
0x16e7   : > { %8809 = vmatmul.mubr.msk.f32.vlgmr.msra.gmra.mrb[24].mxu1 %vm320_vm0, %v3694_v57 }
0x16e8   : > { %8838 = vmatprep.mubr.msk.f32.mxu1 %vm10013_vm2, %v10014_v13  ;;  %9371 = vmatpush3.bf16.msra.mxu1 %v9370_v38 }
0x16e9   : > { %9372 = vmatprep.subr.bf16.mxu1 %v10012_v10 }
0x16ec   : > { %9374 = vmatpush3.bf16.msra.mxu1 %v9373_v14 }
0x16ed   : > { %9376 = vmatprep.subr.bf16.mxu1 %v9375_v42 }
0x1768   : > { %v4487_v38 = vpop.xlane.xlu1 %4486 }
0x1769   : > { %v4484_v53 = vpop.xlane.xlu0 %4483 }
0x176a   : > { %v4494_v4 = vadd.f32 %v4487_v38, %v4484_v53 }
0x176c   : > { %v4495_v14 = vrot.slane %v4494_v4, 4 }
0x176d   : > { %v4490_v51 = vpop.xlane.xlu0 %4489 }
0x176e   : > { %v4496_v36 = vadd.f32 %v4495_v14, %v4494_v4 }
0x1770   : > { %v4497_v41 = vrot.slane %v4496_v36, 2 }
0x17ba   : > { %v3763_v21 = vpop.f32.mrb[24].mxu1 }
0x17bb   : > { %v3764_v22 = vadd.f32 %v7779_v20, %v3763_v21  ;;  %v8810_v1 = vpop.f32.mrb[25].mxu1  ;;  %v7802_v21 = vld [vmem:[%s12434_s5 + $0x50] sm:$0xff] }
0x17bd   : > { %v3767_v26 = vmax.f32 %v3764_v22, 0.0  ;;  %v7803_v22 = vld [vmem:[%s12434_s5 + $0x58] sm:$0xff] }
0x17be   : > { %v9379_v27 = vpack.c.bf16 %v7803_v22, %v7802_v21 }
0x17bf   : > { %8828 = vmatmul.mubr.msk.f32.vlgmr.msra.gmra.mrb[40].mxu0 %vm528_vm1, %v3767_v26 }
0x1892   : > { %v3851_v12 = vpop.f32.mrb[40].mxu0 }
0x1893   : > { %v3852_v58 = vadd.f32 %v7790_v55, %v3851_v12  ;;  %v8829_v3 = vpop.f32.mrb[41].mxu0 }
0x1895   : > { %v3862_v9 = vrot.slane %v3852_v58, %v10319_v45 }
0x1897   : > { %v3863_v6 = vcombine.high %v3862_v9, %v3862_v9  ;;  %v3866_v11 = vsel %vm1093_vm5, %v3862_v9, 0.0 }
0x1898   : > { %v3867_v34 = vrot.slane %v3866_v11, 4 }
0x1899   : > { %v3873_v31 = vsel %vm1093_vm5, %v3863_v6, 0.0 }
0x189a   : > { %v3868_v15 = vadd.f32 %v3867_v34, %v3866_v11  ;;  %v3874_v16 = vrot.slane %v3873_v31, 4 }
0x189c   : > { %v3869_v8 = vrot.slane %v3868_v15, 2  ;;  %v3875_v2 = vadd.f32 %v3874_v16, %v3873_v31 }
0x189e   : > { %v3870_v57 = vadd.f32 %v3869_v8, %v3868_v15  ;;  %v3876_v62 = vrot.slane %v3875_v2, 2 }
0x18a0   : > { %v3871_v17 = vrot.slane %v3870_v57, 1  ;;  %v3877_v5 = vadd.f32 %v3876_v62, %v3875_v2 }
0x18a2   : > { %v3878_v20 = vrot.slane %v3877_v5, 1  ;;  %v3872_v1 = vadd.f32 %v3871_v17, %v3870_v57 }
0x18a4   : > { %v3879_v26 = vadd.f32 %v3878_v20, %v3877_v5 }
0x18a6   : > { %v3892_v30 = vsel %vm1120_vm6, %v3879_v26, %v3872_v1 }
0x18a7   : > { %8839 = vmatmul.mubr.msk.f32.vlgmr.msra.gmra.mrb[26].mxu1 %vm320_vm0, %v3892_v30 }
0x18a8   : > { %9378 = vmatpush3.bf16.msra.mxu1 %v9375_v42  ;;  %8849 = vmatprep.mubr.msk.f32.mxu1 %vm320_vm0, %v11029_v35  ;;  %v4493_v42 = vpop.xlane.xlu1 %4492  ;;  %v4498_v35 = vadd.f32 %v4497_v41, %v4496_v36  ;;  %v7805_v36 = vld [vmem:[%s12435_s6 + $0x16] ss:$0 sm:$0xff] }
0x18a9   : > { %9380 = vmatprep.subr.bf16.mxu1 %v9379_v27  ;;  %v4501_v37 = vadd.f32 %v4493_v42, %v4490_v51 }
0x18aa   : > { %v4499_v59 = vrot.slane %v4498_v35, 1 }
0x18ab   : > { %v4502_v56 = vrot.slane %v4501_v37, 4 }
0x18ac   : > { %9382 = vmatpush3.bf16.msra.mxu1 %v9379_v27  ;;  %v4500_v55 = vadd.f32 %v4499_v59, %v4498_v35 }
0x18ae   : > { %v4508_v58 = vmul.f32 0.0006510417, %v4500_v55 }
0x18af   : > { %8850 = vmatmul.mubr.msk.f32.vlgmr.msra.gmra.mrb[28].mxu1 %vm320_vm0, %v11031_v7  ;;  %v4503_v7 = vadd.f32 %v4502_v56, %v4501_v37 }
0x18b0   : > { %8852 = vmatprep.mubr.msk.f32.mxu1 %vm320_vm0, %v11043_v25  ;;  %v11134_v3 = vsub.f32 %v7826_v50, %v4508_v58 }
0x18b1   : > { %v4504_v12 = vrot.slane %v4503_v7, 2 }
0x18b2   : > { %v4514_v6 = vmul.f32 %v11134_v3, %v11134_v3 }
0x18b3   : > { %8853 = vmatmul.mubr.msk.f32.gmra.mrb[30].mxu1 %vm320_vm0, %v11045_v0  ;;  %v4505_v25 = vadd.f32 %v4504_v12, %v4503_v7  ;;  %v11136_v0 = vsub.f32 %v7827_v44, %v4508_v58 }
0x18b4   : > { %v4518_v31 = vsel %vm3082_vm7, %v4514_v6, 0.0 }
0x18b5   : > { %v4506_v9 = vrot.slane %v4505_v25, 1  ;;  %v4515_v11 = vmul.f32 %v11136_v0, %v11136_v0  ;;  %4519 = vadd.xlane.f32.xlu1 %v4518_v31 }
0x18b7   : > { %v4507_v34 = vadd.f32 %v4506_v9, %v4505_v25  ;;  %v4521_v15 = vsel %vm3082_vm7, %v4515_v11, 0.0 }
0x18b9   : > { %v4509_v16 = vmul.f32 0.0006510417, %v4507_v34  ;;  %4522 = vadd.xlane.f32.xlu1 %v4521_v15 }
0x18bb   : > { %v11145_v8 = vsub.f32 %v11106_v54, %v4509_v16  ;;  %v11148_v44 = vsub.f32 %v11101_v63, %v4509_v16  ;;  %v7797_v54 = vld [vmem:[%s12435_s6 + $0x13] ss:$0 sm:$0xff] }
0x18bd   : > { %v4516_v50 = vmul.f32 %v11145_v8, %v11145_v8  ;;  %v4517_v2 = vmul.f32 %v11148_v44, %v11148_v44 }
0x18bf   : > { %v4524_v57 = vsel %vm3082_vm7, %v4516_v50, 0.0  ;;  %v4527_v62 = vsel %vm3082_vm7, %v4517_v2, 0.0 }
0x18c0   : > { %4525 = vadd.xlane.f32.xlu1 %v4524_v57  ;;  %v7810_v57 = vld [vmem:[%s12437_s8 + $0x20] sm:$0xff] }
0x18c1   : > { %8863 = vmatprep.mubr.msk.f32.mxu0 %vm320_vm0, %v7810_v57  ;;  %8874 = vmatprep.mubr.msk.f32.mxu1 %vm320_vm0, %v7810_v57  ;;  %v7834_v57 = vld [vmem:[%s12431_s2 + $0x360] sm:$0xff] }
0x18c4   : > { %4528 = vadd.xlane.f32.xlu1 %v4527_v62 }
0x1942   : > { %v4520_v62 = vpop.xlane.xlu1 %4519 }
0x197a   : > { %v3961_v17 = vpop.f32.mrb[26].mxu1 }
0x197b   : > { %v3962_v63 = vadd.f32 %v7797_v54, %v3961_v17  ;;  %v8840_v5 = vpop.f32.mrb[27].mxu1  ;;  %v4523_v54 = vpop.xlane.xlu1 %4522 }
0x197c   : > { %v4530_v17 = vadd.f32 %v4523_v54, %v4520_v62  ;;  %v7835_v62 = vld [vmem:[%s12431_s2 + $0x368] sm:$0xff] }
0x197d   : > { %v7799_v20 = vmul.f32 -1.442695, %v3962_v63 }
0x197f   : > { %9777 = vpow2.f32 %v7799_v20 }
0x1982   : > { %v8851_v21 = vpop.f32.mrb[28].mxu1 }
0x1983   : > { %v4064_v22 = vpop.f32.mrb[29].mxu1  ;;  %v4070_v37 = vadd.f32 %v8851_v21, %v7805_v36  ;;  %v4526_v21 = vpop.xlane.xlu1 %4525 }
0x1984   : > { %v4065_v42 = vadd.f32 %v7805_v36, %v4064_v22 }
0x1986   : > { %v8854_v1 = vpop.f32.mrb[30].mxu1 }
0x1987   : > { %v4074_v26 = vpop.f32.mrb[31].mxu1  ;;  %v4080_v34 = vadd.f32 %v8854_v1, %v7805_v36 }
0x1988   : > { %v4075_v9 = vadd.f32 %v7805_v36, %v4074_v26  ;;  %v4529_v26 = vpop.xlane.xlu1 %4528 }
0x1989   : > { %v9778_v27 = vpop.eup %9777 }
0x198a   : > { %v3968_v30 = vadd.f32 1.0, %v9778_v27 }
0x198c   : > { %9779 = vrcp.f32 %v3968_v30  ;;  %v4537_v30 = vadd.f32 %v4529_v26, %v4526_v21  ;;  %v7811_v21 = vld [vmem:[%s12437_s8 + $0x28] sm:$0xff] }
0x1996   : > { %v9780_v38 = vpop.eup %9779 }
0x1997   : > { %3972 = vrot.lane.b32.xlu0 %v9780_v38, %s10011_s30 }
0x1a09   : > { %v3973_v53 = vpop.permute.xlu0 %3972 }
0x1a0a   : > { %v3975_v4 = vmul.f32 %v3973_v53, %v3962_v63  ;;  %v4531_v63 = vrot.slane %v4530_v17, 4  ;;  %v4538_v53 = vrot.slane %v4537_v30, 4 }
0x1a0c   : > { %v4090_v14 = vrot.slane %v3975_v4, %v10435_v28  ;;  %v4532_v5 = vadd.f32 %v4531_v63, %v4530_v17  ;;  %v9399_v17 = vpack.c.bf16 %v7835_v62, %v7834_v57  ;;  %v7845_v57 = vld [vmem:[%s12431_s2 + $0x3b8] sm:$0xff] }
0x1a0e   : > { %v4098_v41 = vrot.slane %v4090_v14, %v10435_v28  ;;  %v4091_v51 = vcombine.high %v4090_v14, %v4090_v14  ;;  %v4533_v20 = vrot.slane %v4532_v5, 2  ;;  %v4539_v14 = vadd.f32 %v4538_v53, %v4537_v30  ;;  %v7839_v30 = vld [vmem:[%s12431_s2 + $0x388] sm:$0xff] }
0x1a10   : > { %v4109_v35 = vrot.slane %v4098_v41, %v10439_v32  ;;  %v4105_v56 = vrot.slane %v4091_v51, %v10435_v28  ;;  %v4534_v22 = vadd.f32 %v4533_v20, %v4532_v5  ;;  %v4540_v36 = vrot.slane %v4539_v14, 2  ;;  %v7836_v5 = vld [vmem:[%s12431_s2 + $0x370] sm:$0xff]  ;;  %v7837_v20 = vld [vmem:[%s12431_s2 + $0x378] sm:$0xff] }
0x1a12   : > { %v11166_v59 = vmul.f32 %v4109_v35, %v4065_v42  ;;  %v11173_v12 = vmul.f32 %v4109_v35, %v4070_v37  ;;  %v4113_v25 = vrot.slane %v4105_v56, %v10439_v32  ;;  %v4535_v1 = vrot.slane %v4534_v22, 1  ;;  %v7830_v56 = vld [vmem:[%s12430_s1 + $0x120] sm:$0xff] }
0x1a13   : > { %v4541_v41 = vadd.f32 %v4540_v36, %v4539_v14  ;;  %v7831_v36 = vld [vmem:[%s12430_s1 + $0x138] sm:$0xff] }
0x1a14   : > { %v4136_v55 = vsel %vm320_vm0, %v11166_v59, -inf  ;;  %v4120_v7 = vsel %vm320_vm0, %v11166_v59, 0.0  ;;  %v4123_v58 = vsel %vm320_vm0, %v11173_v12, 0.0  ;;  %v4139_v6 = vsel %vm320_vm0, %v11173_v12, -inf }
0x1a15   : > { %4137 = vmax.xlane.f32.xlu0 %v4136_v55  ;;  %4121 = vadd.xlane.f32.xlu1 %v4120_v7  ;;  %v11180_v11 = vmul.f32 %v4113_v25, %v4075_v9  ;;  %v11184_v15 = vmul.f32 %v4113_v25, %v4080_v34  ;;  %v4536_v27 = vadd.f32 %v4535_v1, %v4534_v22  ;;  %v4542_v42 = vrot.slane %v4541_v41, 1 }
0x1a16   : > { %v9403_v22 = vpack.c.bf16 %v7837_v20, %v7836_v5  ;;  %v7852_v5 = vld [vmem:[%s12432_s3 + $0x180] sm:$0xff]  ;;  %v7853_v20 = vld [vmem:[%s12432_s3 + $0x188] sm:$0xff] }
0x1a17   : > { %v4126_v31 = vsel %vm320_vm0, %v11180_v11, 0.0  ;;  %v4129_v16 = vsel %vm320_vm0, %v11184_v15, 0.0  ;;  %v4142_v50 = vsel %vm320_vm0, %v11180_v11, -inf  ;;  %v4145_v2 = vsel %vm320_vm0, %v11184_v15, -inf }
0x1a18   : > { %v4544_v38 = vmul.f32 0.0006510417, %v4536_v27  ;;  %v4543_v35 = vadd.f32 %v4542_v42, %v4541_v41  ;;  %v7838_v27 = vld [vmem:[%s12431_s2 + $0x380] sm:$0xff] }
0x1a19   : > { %4124 = vadd.xlane.f32.xlu1 %v4123_v58  ;;  %v7832_v58 = vld [vmem:[%s12430_s1 + $0x150] sm:$0xff] }
0x1a1a   : > { %v4546_v4 = vadd.f32 1e-05, %v4544_v38  ;;  %v4545_v55 = vmul.f32 0.0006510417, %v4543_v35  ;;  %v9407_v35 = vpack.c.bf16 %v7839_v30, %v7838_v27  ;;  %v7856_v27 = vld [vmem:[%s12432_s3 + $0x1a0] sm:$0xff]  ;;  %v7857_v30 = vld [vmem:[%s12432_s3 + $0x1a8] sm:$0xff] }
0x1a1c   : > { %9781 = vrsqrt.f32 %v4546_v4  ;;  %v4547_v9 = vadd.f32 1e-05, %v4545_v55  ;;  %v7840_v55 = vld [vmem:[%s12431_s2 + $0x390] sm:$0xff] }
0x1a1d   : > { %4140 = vmax.xlane.f32.xlu1 %v4139_v6 }
0x1a1e   : > { %9783 = vrsqrt.f32 %v4547_v9 }
0x1a21   : > { %4127 = vadd.xlane.f32.xlu1 %v4126_v31 }
0x1a25   : > { %4130 = vadd.xlane.f32.xlu1 %v4129_v16 }
0x1a26   : > { %v9782_v51 = vpop.eup %9781 }
0x1a27   : > { %v4550_v37 = vmul.f32 %v9782_v51, %v11134_v3  ;;  %v4551_v14 = vmul.f32 %v9782_v51, %v11136_v0  ;;  %v7841_v0 = vld [vmem:[%s12431_s2 + $0x398] sm:$0xff] }
0x1a28   : > { %v9784_v1 = vpop.eup %9783  ;;  %v9411_v9 = vpack.c.bf16 %v7841_v0, %v7840_v55 }
0x1a29   : > { %4143 = vmax.xlane.f32.xlu1 %v4142_v50  ;;  %v4554_v7 = vmul.f32 %v7830_v56, %v4550_v37  ;;  %v4552_v41 = vmul.f32 %v9784_v1, %v11145_v8  ;;  %v4555_v51 = vmul.f32 %v7831_v36, %v4551_v14  ;;  %v7833_v8 = vld [vmem:[%s12430_s1 + $0x168] sm:$0xff] }
0x1a2b   : > { %v4558_v6 = vadd.f32 %v7832_v58, %v4554_v7  ;;  %v4553_v7 = vmul.f32 %v9784_v1, %v11148_v44  ;;  %v4559_v44 = vadd.f32 %v7833_v8, %v4555_v51  ;;  %v7855_v1 = vld [vmem:[%s12432_s3 + $0x198] sm:$0xff] }
0x1a2c   : > { %v7847_v51 = vld [vmem:[%s12435_s6 + $0x18] ss:$0 sm:$0xff] }
0x1a2d   : > { %4146 = vmax.xlane.f32.xlu1 %v4145_v2  ;;  %9785 = vtanh.f32 %v4558_v6 }
0x1a2e   : > { %9787 = vtanh.f32 %v4559_v44 }
0x1a37   : > { %v9786_v38 = vpop.eup %9785 }
0x1aa2   : > { %v4122_v25 = vpop.xlane.xlu1 %4121  ;;  %v4138_v3 = vpop.xlane.xlu0 %4137 }
0x1aa3   : > { %v4132_v31 = vmul.f32 0.03125, %v4122_v25  ;;  %v4556_v25 = vmul.f32 %v7830_v56, %v4552_v41  ;;  %v7844_v56 = vld [vmem:[%s12431_s2 + $0x3b0] sm:$0xff]  ;;  %v7867_v41 = vld [vmem:[%s12433_s4 + $0x128] sm:$0xff] }
0x1aa6   : > { %v4125_v34 = vpop.xlane.xlu1 %4124 }
0x1aa7   : > { %v4133_v16 = vmul.f32 0.03125, %v4125_v34  ;;  %v7842_v34 = vld [vmem:[%s12431_s2 + $0x3a0] sm:$0xff] }
0x1aa9   : > { %v9383_v50 = vpack.c.bf16 %v4133_v16, %v4132_v31  ;;  %v7843_v31 = vld [vmem:[%s12431_s2 + $0x3a8] sm:$0xff] }
0x1aaa   : > { %v4141_v2 = vpop.xlane.xlu1 %4140 }
0x1aab   : > { %v9387_v54 = vpack.c.bf16 %v4141_v2, %v4138_v3  ;;  %9384 = vmatprep.subr.bf16.mxu0 %v9383_v50  ;;  %v4560_v3 = vadd.f32 %v7832_v58, %v4556_v25  ;;  %v9415_v2 = vpack.c.bf16 %v7843_v31, %v7842_v34  ;;  %v9788_v58 = vpop.eup %9787 }
0x1aac   : > { %9386 = vmatpush3.bf16.msra.mxu0 %v9383_v50  ;;  %v4557_v50 = vmul.f32 %v7831_v36, %v4553_v7  ;;  %v7866_v36 = vld [vmem:[%s12433_s4 + $0x120] sm:$0xff] }
0x1aad   : > { %9388 = vmatprep.subr.bf16.mxu0 %v9387_v54  ;;  %9789 = vtanh.f32 %v4560_v3 }
0x1aae   : > { %v4128_v63 = vpop.xlane.xlu1 %4127  ;;  %v4561_v62 = vadd.f32 %v7833_v8, %v4557_v50 }
0x1aaf   : > { %v4134_v53 = vmul.f32 0.03125, %v4128_v63 }
0x1ab0   : > { %9390 = vmatpush3.bf16.msra.mxu0 %v9387_v54  ;;  %v9419_v54 = vpack.c.bf16 %v7845_v57, %v7844_v56  ;;  %9791 = vtanh.f32 %v4561_v62  ;;  %v7868_v56 = vld [vmem:[%s12433_s4 + $0x130] sm:$0xff]  ;;  %v7869_v57 = vld [vmem:[%s12433_s4 + $0x138] sm:$0xff] }
0x1ab1   : > { %9400 = vmatprep.subr.bf16.mxu0 %v9399_v17  ;;  %v9443_v62 = vpack.c.bf16 %v7869_v57, %v7868_v56 }
0x1ab2   : > { %v4131_v26 = vpop.xlane.xlu1 %4130 }
0x1ab3   : > { %v4135_v4 = vmul.f32 0.03125, %v4131_v26  ;;  %8864 = vmatmul.mubr.msk.f32.vlgmr.msra.gmra.mrb[42].mxu0 %vm320_vm0, %v7811_v21 }
0x1ab4   : > { %9402 = vmatpush3.bf16.msra.mxu0 %v9399_v17  ;;  %8901 = vmatprep.mubr.msk.f32.mxu0 %vm3082_vm7, %v9786_v38  ;;  %v9431_v38 = vpack.c.bf16 %v7857_v30, %v7856_v27 }
0x1ab5   : > { %v9391_v42 = vpack.c.bf16 %v4135_v4, %v4134_v53  ;;  %9404 = vmatprep.subr.bf16.mxu0 %v9403_v22  ;;  %v7858_v53 = vld [vmem:[%s12432_s3 + $0x1b0] sm:$0xff]  ;;  %v7859_v4 = vld [vmem:[%s12432_s3 + $0x1b8] sm:$0xff] }
0x1ab6   : > { %v4144_v37 = vpop.xlane.xlu1 %4143  ;;  %v9435_v14 = vpack.c.bf16 %v7859_v4, %v7858_v53 }
0x1ab7   : > { %9392 = vmatprep.subr.bf16.mxu1 %v9391_v42  ;;  %v9790_v17 = vpop.eup %9789 }
0x1ab8   : > { %9394 = vmatpush3.bf16.msra.mxu1 %v9391_v42  ;;  %9406 = vmatpush3.bf16.msra.mxu0 %v9403_v22  ;;  %v7854_v22 = vld [vmem:[%s12432_s3 + $0x190] sm:$0xff]  ;;  %v9439_v42 = vpack.c.bf16 %v7867_v41, %v7866_v36 }
0x1ab9   : > { %9408 = vmatprep.subr.bf16.mxu0 %v9407_v35  ;;  %v9427_v26 = vpack.c.bf16 %v7855_v1, %v7854_v22 }
0x1aba   : > { %v4147_v6 = vpop.xlane.xlu1 %4146  ;;  %v9792_v63 = vpop.eup %9791 }
0x1abb   : > { %v9395_v16 = vpack.c.bf16 %v4147_v6, %v4144_v37 }
0x1abc   : > { %9410 = vmatpush3.bf16.msra.mxu0 %v9407_v35 }
0x1abd   : > { %9396 = vmatprep.subr.bf16.mxu1 %v9395_v16  ;;  %9412 = vmatprep.subr.bf16.mxu0 %v9411_v9 }
0x1abe   : > { %9398 = vmatpush3.bf16.msra.mxu1 %v9395_v16 }
0x1ac0   : > { %9414 = vmatpush3.bf16.msra.mxu0 %v9411_v9 }
0x1ac1   : > { %9416 = vmatprep.subr.bf16.mxu0 %v9415_v2  ;;  %8875 = vmatmul.mubr.msk.f32.vlgmr.msra.gmra.mrb[32].mxu1 %vm320_vm0, %v7811_v21  ;;  %v9423_v21 = vpack.c.bf16 %v7853_v20, %v7852_v5 }
0x1ac3   : > { %9424 = vmatprep.subr.bf16.mxu1 %v9423_v21 }
0x1ac4   : > { %9418 = vmatpush3.bf16.msra.mxu0 %v9415_v2  ;;  %9426 = vmatpush3.bf16.msra.mxu1 %v9423_v21 }
0x1ac5   : > { %9420 = vmatprep.subr.bf16.mxu0 %v9419_v54  ;;  %9428 = vmatprep.subr.bf16.mxu1 %v9427_v26 }
0x1ac8   : > { %9422 = vmatpush3.bf16.msra.mxu0 %v9419_v54  ;;  %9430 = vmatpush3.bf16.msra.mxu1 %v9427_v26  ;;  %v7861_v54 = vld [vmem:[%s12435_s6 + $0x1c] ss:$0 sm:$0xff]  ;;  %v7871_v26 = vld [vmem:[%s12435_s6 + $0x19] ss:$0 sm:$0xff] }
0x1ac9   : > { %9447 = vmatprep.subr.bf16.mxu0 %v10012_v10  ;;  %9432 = vmatprep.subr.bf16.mxu1 %v9431_v38 }
0x1acb   : > { %8902 = vmatmul.mubr.msk.f32.vlgmr.msra.gmra.mrb[44].mxu0 %vm3082_vm7, %v9788_v58 }
0x1acc   : > { %8904 = vmatprep.mubr.msk.f32.mxu0 %vm3082_vm7, %v9790_v17  ;;  %9434 = vmatpush3.bf16.msra.mxu1 %v9431_v38 }
0x1acd   : > { %9436 = vmatprep.subr.bf16.mxu1 %v9435_v14 }
0x1acf   : > { %8905 = vmatmul.mubr.msk.f32.gmra.mrb[46].mxu0 %vm3082_vm7, %v9792_v63 }
0x1ad0   : > { %8951 = vmatprep.mubr.msk.f32.mxu0 %vm10013_vm2, %v10014_v13  ;;  %9438 = vmatpush3.bf16.msra.mxu1 %v9435_v14 }
0x1ad1   : > { %9440 = vmatprep.subr.bf16.mxu1 %v9439_v42 }
0x1b86   : > { %v11291_v35 = vpop.f32.mrb[42].mxu0 }
0x1b87   : > { %v11293_v37 = vpop.f32.mrb[43].mxu0 }
0x1b94   : > { %v11295_v55 = vpop.f32.mrb[32].mxu1 }
0x1b95   : > { %v11297_v0 = vpop.f32.mrb[33].mxu1 }
0x1b9e   : > { %v8903_v7 = vpop.f32.mrb[44].mxu0 }
0x1b9f   : > { %v4669_v8 = vadd.f32 %v8903_v7, %v7847_v51  ;;  %v4663_v25 = vpop.f32.mrb[45].mxu0 }
0x1ba0   : > { %v4664_v9 = vadd.f32 %v7847_v51, %v4663_v25 }
0x1ba2   : > { %9793 = vtanh.f32 %v4664_v9  ;;  %v8906_v6 = vpop.f32.mrb[46].mxu0 }
0x1ba3   : > { %9795 = vtanh.f32 %v4669_v8  ;;  %v4679_v34 = vadd.f32 %v8906_v6, %v7847_v51  ;;  %v4673_v31 = vpop.f32.mrb[47].mxu0 }
0x1ba4   : > { %v4674_v16 = vadd.f32 %v7847_v51, %v4673_v31 }
0x1ba6   : > { %9797 = vtanh.f32 %v4674_v16 }
0x1ba7   : > { %9799 = vtanh.f32 %v4679_v34 }
0x1bac   : > { %v9794_v44 = vpop.eup %9793 }
0x1bad   : > { %v9796_v50 = vpop.eup %9795  ;;  %8923 = vmatprep.mubr.msk.f32.mxu1 %vm528_vm1, %v9794_v44 }
0x1bae   : > { %8924 = vmatmul.mubr.msk.f32.vlgmr.msra.gmra.mrb[34].mxu1 %vm528_vm1, %v9796_v50 }
0x1baf   : > { %9442 = vmatpush3.bf16.msra.mxu1 %v9439_v42 }
0x1bb0   : > { %v9798_v3 = vpop.eup %9797  ;;  %9444 = vmatprep.subr.bf16.mxu1 %v9443_v62 }
0x1bb1   : > { %v9800_v2 = vpop.eup %9799  ;;  %8926 = vmatprep.mubr.msk.f32.mxu1 %vm528_vm1, %v9798_v3 }
0x1bb2   : > { %8927 = vmatmul.mubr.msk.f32.gmra.mrb[36].mxu1 %vm528_vm1, %v9800_v2 }
0x1bb3   : > { %9446 = vmatpush3.bf16.msra.mxu1 %v9443_v62 }
0x1bb4   : > { %9453 = vmatprep.subr.bf16.mxu1 %v10012_v10 }
0x1c81   : > { %v8925_v58 = vpop.f32.mrb[34].mxu1 }
0x1c82   : > { %v4778_v17 = vpop.f32.mrb[35].mxu1  ;;  %v4784_v5 = vadd.f32 %v8925_v58, %v7861_v54 }
0x1c83   : > { %v4779_v63 = vadd.f32 %v7861_v54, %v4778_v17 }
0x1c85   : > { %v8928_v20 = vpop.f32.mrb[36].mxu1  ;;  %8937 = vmatprep.mubr.msk.f32.mxu1 %vm320_vm0, %v4779_v63 }
0x1c86   : > { %v4788_v21 = vpop.f32.mrb[37].mxu1  ;;  %8938 = vmatmul.mubr.msk.f32.vlgmr.msra.gmra.mrb[38].mxu1 %vm320_vm0, %v4784_v5  ;;  %v4794_v1 = vadd.f32 %v8928_v20, %v7861_v54 }
0x1c87   : > { %v4789_v22 = vadd.f32 %v7861_v54, %v4788_v21 }
0x1c89   : > { %8940 = vmatprep.mubr.msk.f32.mxu1 %vm320_vm0, %v4789_v22 }
0x1c8a   : > { %8941 = vmatmul.mubr.msk.f32.gmra.mrb[40].mxu1 %vm320_vm0, %v4794_v1 }
0x1c8b   : > { %8970 = vmatprep.mubr.msk.f32.mxu1 %vm10013_vm2, %v10014_v13 }
0x1d59   : > { %v8939_v27 = vpop.f32.mrb[38].mxu1 }
0x1d5a   : > { %v4891_v30 = vadd.f32 %v8939_v27, %v7871_v26  ;;  %v4885_v38 = vpop.f32.mrb[39].mxu1 }
0x1d5b   : > { %v4886_v53 = vadd.f32 %v7871_v26, %v4885_v38 }
0x1d5c   : > { %v7877_v4 = vmul.f32 -1.442695, %v4891_v30 }
0x1d5d   : > { %v7876_v14 = vmul.f32 -1.442695, %v4886_v53  ;;  %v8942_v36 = vpop.f32.mrb[40].mxu1 }
0x1d5e   : > { %9801 = vpow2.f32 %v7877_v4  ;;  %v4901_v41 = vadd.f32 %v8942_v36, %v7871_v26  ;;  %v4895_v42 = vpop.f32.mrb[41].mxu1 }
0x1d5f   : > { %9803 = vpow2.f32 %v7876_v14  ;;  %v4896_v51 = vadd.f32 %v7871_v26, %v4895_v42 }
0x1d60   : > { %v7879_v7 = vmul.f32 -1.442695, %v4901_v41 }
0x1d61   : > { %v7878_v8 = vmul.f32 -1.442695, %v4896_v51 }
0x1d62   : > { %9805 = vpow2.f32 %v7879_v7 }
0x1d63   : > { %9807 = vpow2.f32 %v7878_v8 }
0x1d68   : > { %v9802_v25 = vpop.eup %9801 }
0x1d69   : > { %v9804_v9 = vpop.eup %9803  ;;  %v4917_v6 = vadd.f32 1.0, %v9802_v25 }
0x1d6a   : > { %v4916_v34 = vadd.f32 1.0, %v9804_v9 }
0x1d6b   : > { %9809 = vrcp.f32 %v4917_v6 }
0x1d6c   : > { %v9806_v31 = vpop.eup %9805  ;;  %9811 = vrcp.f32 %v4916_v34 }
0x1d6d   : > { %v9808_v16 = vpop.eup %9807  ;;  %v4919_v50 = vadd.f32 1.0, %v9806_v31 }
0x1d6e   : > { %v4918_v44 = vadd.f32 1.0, %v9808_v16 }
0x1d70   : > { %9813 = vrcp.f32 %v4918_v44 }
0x1d71   : > { %9815 = vrcp.f32 %v4919_v50 }
0x1d75   : > { %v9810_v3 = vpop.eup %9809 }
0x1d76   : > { %v9812_v2 = vpop.eup %9811  ;;  %4934 = vrot.lane.b32.xlu0 %v9810_v3, %s10011_s30 }
0x1d77   : > { %4932 = vrot.lane.b32.xlu1 %v9812_v2, %s10011_s30 }
0x1d7a   : > { %v9814_v56 = vpop.eup %9813 }
0x1d7b   : > { %4936 = vrot.lane.b32.xlu1 %v9814_v56, %s10011_s30  ;;  %v9816_v57 = vpop.eup %9815 }
0x1d7f   : > { %4938 = vrot.lane.b32.xlu1 %v9816_v57, %s10011_s30 }
0x1de8   : > { %v4935_v62 = vpop.permute.xlu0 %4934 }
0x1de9   : > { %v4945_v54 = vmul.f32 %v4935_v62, %v4891_v30  ;;  %v4933_v58 = vpop.permute.xlu1 %4932 }
0x1dea   : > { %v4944_v17 = vmul.f32 %v4933_v58, %v4886_v53 }
0x1deb   : > { %v4957_v63 = vsel %vm320_vm0, %v4945_v54, 0.0 }
0x1dec   : > { %4958 = vadd.xlane.f32.xlu0 %v4957_v63  ;;  %v4954_v5 = vsel %vm320_vm0, %v4944_v17, 0.0 }
0x1ded   : > { %4955 = vadd.xlane.f32.xlu1 %v4954_v5  ;;  %v4937_v20 = vpop.permute.xlu1 %4936 }
0x1dee   : > { %v4946_v21 = vmul.f32 %v4937_v20, %v4896_v51 }
0x1df0   : > { %v4960_v22 = vsel %vm320_vm0, %v4946_v21, 0.0 }
0x1df1   : > { %4961 = vadd.xlane.f32.xlu1 %v4960_v22  ;;  %v4939_v1 = vpop.permute.xlu1 %4938 }
0x1df2   : > { %v4947_v26 = vmul.f32 %v4939_v1, %v4901_v41 }
0x1df4   : > { %v4963_v27 = vsel %vm320_vm0, %v4947_v26, 0.0 }
0x1df5   : > { %4964 = vadd.xlane.f32.xlu0 %v4963_v27  ;;  %v7884_v27 = vld [vmem:[%s12433_s4 + $0x160] sm:$0xff] }
0x1e79   : > { %v4959_v38 = vpop.xlane.xlu0 %4958 }
0x1e7a   : > { %v4956_v30 = vpop.xlane.xlu1 %4955 }
0x1e7b   : > { %v4966_v4 = vadd.f32 %v4959_v38, %v4956_v30  ;;  %v7887_v30 = vld [vmem:[%s12433_s4 + $0x178] sm:$0xff] }
0x1e7d   : > { %v4967_v53 = vrot.slane %v4966_v4, 4 }
0x1e7e   : > { %v4962_v42 = vpop.xlane.xlu1 %4961 }
0x1e7f   : > { %v4968_v14 = vadd.f32 %v4967_v53, %v4966_v4  ;;  %v7891_v53 = vld [vmem:[%s12432_s3 + $0x1c0] sm:$0xff] }
0x1e81   : > { %v4969_v36 = vrot.slane %v4968_v14, 2 }
0x1e82   : > { %v4965_v7 = vpop.xlane.xlu0 %4964 }
0x1e83   : > { %v4970_v8 = vadd.f32 %v4969_v36, %v4968_v14  ;;  %v4973_v25 = vadd.f32 %v4965_v7, %v4962_v42  ;;  %v7892_v14 = vld [vmem:[%s12432_s3 + $0x1c8] sm:$0xff]  ;;  %v7893_v36 = vld [vmem:[%s12432_s3 + $0x1d0] sm:$0xff]  ;;  %v7894_v7 = vld [vmem:[%s12432_s3 + $0x1d8] sm:$0xff] }
0x1e84   : > { %v9454_v42 = vpack.c.bf16 %v7892_v14, %v7891_v53  ;;  %v7880_v14 = vld [vmem:[%s12436_s7 + $0xc0] sm:$0xff] }
0x1e85   : > { %v4971_v9 = vrot.slane %v4970_v8, 1  ;;  %v4974_v51 = vrot.slane %v4973_v25, 4 }
0x1e86   : > { %9455 = vmatpush3.bf16.msra.mxu1 %v9454_v42 }
0x1e87   : > { %v4972_v6 = vadd.f32 %v4971_v9, %v4970_v8  ;;  %v4975_v34 = vadd.f32 %v4974_v51, %v4973_v25  ;;  %v9457_v8 = vpack.c.bf16 %v7894_v7, %v7893_v36  ;;  %9456 = vmatprep.subr.bf16.mxu1 %v10012_v10  ;;  %v7895_v25 = vld [vmem:[%s12432_s3 + $0x1e0] sm:$0xff]  ;;  %v7896_v9 = vld [vmem:[%s12432_s3 + $0x1e8] sm:$0xff] }
0x1e88   : > { %v9460_v51 = vpack.c.bf16 %v7896_v9, %v7895_v25  ;;  %v7881_v36 = vld [vmem:[%s12436_s7 + $0xc8] sm:$0xff]  ;;  %v7883_v25 = vld [vmem:[%s12436_s7 + $0xd8] sm:$0xff] }
0x1e89   : > { %v4976_v31 = vrot.slane %v4975_v34, 2  ;;  %v4980_v16 = vmul.f32 0.001953125, %v4972_v6 }
0x1e8a   : > { %9458 = vmatpush3.bf16.msra.mxu1 %v9457_v8  ;;  %v7882_v8 = vld [vmem:[%s12436_s7 + $0xd0] sm:$0xff] }
0x1e8b   : > { %v4977_v41 = vadd.f32 %v4976_v31, %v4975_v34  ;;  %v11333_v44 = vsub.f32 %v4945_v54, %v4980_v16  ;;  %v11335_v50 = vsub.f32 %v4944_v17, %v4980_v16  ;;  %9459 = vmatprep.subr.bf16.mxu1 %v10012_v10 }
0x1e8d   : > { %v4978_v3 = vrot.slane %v4977_v41, 1  ;;  %v4987_v2 = vmul.f32 %v11333_v44, %v11333_v44  ;;  %v4986_v56 = vmul.f32 %v11335_v50, %v11335_v50 }
0x1e8e   : > { %9461 = vmatpush3.bf16.msra.mxu1 %v9460_v51 }
0x1e8f   : > { %v4979_v57 = vadd.f32 %v4978_v3, %v4977_v41  ;;  %v4993_v62 = vsel %vm320_vm0, %v4987_v2, 0.0  ;;  %v4990_v58 = vsel %vm320_vm0, %v4986_v56, 0.0  ;;  %9462 = vmatprep.subr.bf16.mxu1 %v10012_v10 }
0x1e90   : > { %4994 = vadd.xlane.f32.xlu0 %v4993_v62  ;;  %4991 = vadd.xlane.f32.xlu1 %v4990_v58 }
0x1e91   : > { %v4981_v63 = vmul.f32 0.001953125, %v4979_v57 }
0x1e93   : > { %v11343_v5 = vsub.f32 %v4947_v26, %v4981_v63  ;;  %v11345_v54 = vsub.f32 %v4946_v21, %v4981_v63  ;;  %v7885_v21 = vld [vmem:[%s12433_s4 + $0x168] sm:$0xff]  ;;  %v7886_v26 = vld [vmem:[%s12433_s4 + $0x170] sm:$0xff] }
0x1e94   : > { %v9448_v38 = vpack.c.bf16 %v7885_v21, %v7884_v27  ;;  %v9451_v4 = vpack.c.bf16 %v7887_v30, %v7886_v26 }
0x1e95   : > { %v4989_v17 = vmul.f32 %v11343_v5, %v11343_v5  ;;  %v4988_v20 = vmul.f32 %v11345_v54, %v11345_v54 }
0x1e96   : > { %9449 = vmatpush3.bf16.msra.mxu0 %v9448_v38 }
0x1e97   : > { %v4999_v22 = vsel %vm320_vm0, %v4989_v17, 0.0  ;;  %v4996_v1 = vsel %vm320_vm0, %v4988_v20, 0.0  ;;  %9450 = vmatprep.subr.bf16.mxu0 %v10012_v10 }
0x1e98   : > { %5000 = vadd.xlane.f32.xlu0 %v4999_v22  ;;  %4997 = vadd.xlane.f32.xlu1 %v4996_v1 }
0x1e9a   : > { %9452 = vmatpush3.bf16.msra.mxu0 %v9451_v4 }
0x1e9b   : > { %9465 = vmatprep.subr.bf16.mxu0 %v10012_v10 }
0x1f1d   : > { %v4995_v6 = vpop.xlane.xlu0 %4994  ;;  %v4992_v34 = vpop.xlane.xlu1 %4991 }
0x1f1e   : > { %v5002_v31 = vadd.f32 %v4995_v6, %v4992_v34 }
0x1f20   : > { %v5003_v16 = vrot.slane %v5002_v31, 4 }
0x1f22   : > { %v5004_v41 = vadd.f32 %v5003_v16, %v5002_v31 }
0x1f24   : > { %v5005_v3 = vrot.slane %v5004_v41, 2 }
0x1f25   : > { %v5001_v2 = vpop.xlane.xlu0 %5000  ;;  %v4998_v56 = vpop.xlane.xlu1 %4997 }
0x1f26   : > { %v5006_v57 = vadd.f32 %v5005_v3, %v5004_v41  ;;  %v5009_v62 = vadd.f32 %v5001_v2, %v4998_v56 }
0x1f28   : > { %v5007_v58 = vrot.slane %v5006_v57, 1  ;;  %v5010_v63 = vrot.slane %v5009_v62, 4 }
0x1f2a   : > { %v5008_v17 = vadd.f32 %v5007_v58, %v5006_v57  ;;  %v5011_v20 = vadd.f32 %v5010_v63, %v5009_v62 }
0x1f2c   : > { %v5016_v22 = vmul.f32 0.001953125, %v5008_v17  ;;  %v5012_v1 = vrot.slane %v5011_v20, 2 }
0x1f2e   : > { %v5018_v27 = vadd.f32 1e-05, %v5016_v22  ;;  %v5013_v21 = vadd.f32 %v5012_v1, %v5011_v20 }
0x1f30   : > { %9817 = vrsqrt.f32 %v5018_v27  ;;  %v5014_v26 = vrot.slane %v5013_v21, 1 }
0x1f32   : > { %v5015_v38 = vadd.f32 %v5014_v26, %v5013_v21 }
0x1f34   : > { %v5017_v30 = vmul.f32 0.001953125, %v5015_v38 }
0x1f36   : > { %v5019_v4 = vadd.f32 1e-05, %v5017_v30 }
0x1f38   : > { %9819 = vrsqrt.f32 %v5019_v4 }
0x1f3a   : > { %v9818_v53 = vpop.eup %9817 }
0x1f3b   : > { %v5022_v42 = vmul.f32 %v9818_v53, %v11335_v50  ;;  %v5023_v7 = vmul.f32 %v9818_v53, %v11333_v44 }
0x1f3d   : > { %v5026_v9 = vmul.f32 %v7880_v14, %v5022_v42  ;;  %v5027_v51 = vmul.f32 %v7881_v36, %v5023_v7 }
0x1f3f   : > { %v11402_v6 = vadd.f32 %v7882_v8, %v5026_v9  ;;  %v11404_v34 = vadd.f32 %v7883_v25, %v5027_v51 }
0x1f41   : > { %v5034_v31 = vsel %vm320_vm0, %v11402_v6, 0.0  ;;  %v5035_v44 = vsel %vm320_vm0, %v11404_v34, 0.0  ;;  %v5054_v50 = vsel %vm320_vm0, %v11402_v6, -inf  ;;  %v5055_v16 = vsel %vm320_vm0, %v11404_v34, -inf }
0x1f42   : > { %v9820_v41 = vpop.eup %9819  ;;  %v5036_v3 = vadd.f32 %v5035_v44, %v5034_v31  ;;  %v5056_v2 = vmax.f32 %v5054_v50, %v5055_v16 }
0x1f43   : > { %v5024_v56 = vmul.f32 %v9820_v41, %v11345_v54  ;;  %v5025_v57 = vmul.f32 %v9820_v41, %v11343_v5 }
0x1f44   : > { %v5037_v62 = vrot.slane %v5036_v3, 4  ;;  %v5057_v58 = vrot.slane %v5056_v2, 4 }
0x1f45   : > { %v5028_v63 = vmul.f32 %v7880_v14, %v5024_v56  ;;  %v5029_v17 = vmul.f32 %v7881_v36, %v5025_v57 }
0x1f46   : > { %v5038_v20 = vadd.f32 %v5037_v62, %v5036_v3  ;;  %v5058_v21 = vmax.f32 %v5056_v2, %v5057_v58 }
0x1f47   : > { %v11416_v22 = vadd.f32 %v7882_v8, %v5028_v63  ;;  %v11418_v1 = vadd.f32 %v7883_v25, %v5029_v17 }
0x1f48   : > { %v5039_v27 = vrot.slane %v5038_v20, 2  ;;  %v5059_v42 = vrot.slane %v5058_v21, 2 }
0x1f49   : > { %v5043_v26 = vsel %vm320_vm0, %v11416_v22, 0.0  ;;  %v5044_v38 = vsel %vm320_vm0, %v11418_v1, 0.0  ;;  %v5063_v5 = vsel %vm320_vm0, %v11416_v22, -inf  ;;  %v5064_v54 = vsel %vm320_vm0, %v11418_v1, -inf }
0x1f4a   : > { %v5045_v30 = vadd.f32 %v5044_v38, %v5043_v26  ;;  %v5065_v4 = vmax.f32 %v5063_v5, %v5064_v54  ;;  %v5040_v53 = vadd.f32 %v5039_v27, %v5038_v20  ;;  %v5060_v51 = vmax.f32 %v5058_v21, %v5059_v42  ;;  %v7897_v21 = vld [vmem:[%s12432_s3 + $0x1f0] sm:$0xff]  ;;  %v7898_v38 = vld [vmem:[%s12432_s3 + $0x1f8] sm:$0xff] }
0x1f4b   : > { %v9463_v5 = vpack.c.bf16 %v7898_v38, %v7897_v21  ;;  %v7889_v54 = vld [vmem:[%s12435_s6 + $0x1a] ss:$0 sm:$0xff] }
0x1f4c   : > { %v5046_v14 = vrot.slane %v5045_v30, 4  ;;  %v5066_v36 = vrot.slane %v5065_v4, 4  ;;  %v5041_v7 = vrot.slane %v5040_v53, 1  ;;  %v5061_v3 = vrot.slane %v5060_v51, 1 }
0x1f4d   : > { %9464 = vmatpush3.bf16.msra.mxu1 %v9463_v5  ;;  %v7912_v5 = vld [vmem:[%s12434_s5 + $0x70] sm:$0xff] }
0x1f4e   : > { %v5047_v8 = vadd.f32 %v5046_v14, %v5045_v30  ;;  %v5067_v25 = vmax.f32 %v5065_v4, %v5066_v36  ;;  %v5042_v44 = vadd.f32 %v5041_v7, %v5040_v53  ;;  %v5062_v58 = vmax.f32 %v5060_v51, %v5061_v3  ;;  %v7903_v36 = vld [vmem:[%s12433_s4 + $0x148] sm:$0xff]  ;;  %v7904_v7 = vld [vmem:[%s12433_s4 + $0x150] sm:$0xff] }
0x1f4f   : > { %v7911_v51 = vld [vmem:[%s12434_s5 + $0x68] sm:$0xff] }
0x1f50   : > { %v5048_v9 = vrot.slane %v5047_v8, 2  ;;  %v5068_v31 = vrot.slane %v5067_v25, 2  ;;  %v5052_v57 = vmul.f32 0.0625, %v5042_v44 }
0x1f52   : > { %v5049_v50 = vadd.f32 %v5048_v9, %v5047_v8  ;;  %v5069_v16 = vmax.f32 %v5067_v25, %v5068_v31  ;;  %v5072_v17 = vsel %vm899_vm3, %v5052_v57, %v5062_v58  ;;  %v7905_v8 = vld [vmem:[%s12433_s4 + $0x158] sm:$0xff]  ;;  %v7910_v9 = vld [vmem:[%s12434_s5 + $0x60] sm:$0xff] }
0x1f53   : > { %v9469_v25 = vpack.c.bf16 %v7905_v8, %v7904_v7  ;;  %v9471_v31 = vpack.c.bf16 %v7911_v51, %v7910_v9 }
0x1f54   : > { %v5050_v41 = vrot.slane %v5049_v50, 1  ;;  %v5070_v2 = vrot.slane %v5069_v16, 1 }
0x1f56   : > { %v5051_v56 = vadd.f32 %v5050_v41, %v5049_v50  ;;  %v5071_v63 = vmax.f32 %v5069_v16, %v5070_v2 }
0x1f58   : > { %v5053_v62 = vmul.f32 0.0625, %v5051_v56 }
0x1f5a   : > { %v5073_v20 = vsel %vm899_vm3, %v5053_v62, %v5071_v63 }
0x1f5b   : > { %v5086_v27 = vcombine.low %v5072_v17, %v5073_v20 }
0x1f5d   : > { %v5093_v26 = vrot.slane %v5086_v27, %v10319_v45 }
0x1f5f   : > { %8952 = vmatmul.mubr.msk.f32.vlgmr.msra.gmra.mrb[48].mxu0 %vm320_vm0, %v5093_v26 }
0x1f60   : > { %8981 = vmatprep.mubr.msk.f32.mxu0 %vm10013_vm2, %v10014_v13  ;;  %v7902_v13 = vld [vmem:[%s12433_s4 + $0x140] sm:$0xff] }
0x1f61   : > { %v9466_v42 = vpack.c.bf16 %v7903_v36, %v7902_v13 }
0x1f63   : > { %9467 = vmatpush3.bf16.msra.mxu0 %v9466_v42 }
0x1f64   : > { %9468 = vmatprep.subr.bf16.mxu0 %v10012_v10  ;;  %v7900_v10 = vld [vmem:[%s12435_s6 + $0x1d] ss:$0 sm:$0xff] }
0x1f67   : > { %9470 = vmatpush3.bf16.msra.mxu0 %v9469_v25 }
0x1f68   : > { %9472 = vmatprep.subr.bf16.mxu0 %v9471_v31 }
0x2032   : > { %v5162_v30 = vpop.f32.mrb[48].mxu0 }
0x2033   : > { %v5163_v4 = vadd.f32 %v7889_v54, %v5162_v30  ;;  %v8953_v53 = vpop.f32.mrb[49].mxu0 }
0x2035   : > { %v5166_v14 = vmax.f32 %v5163_v4, 0.0 }
0x2037   : > { %8971 = vmatmul.mubr.msk.f32.vlgmr.msra.gmra.mrb[42].mxu1 %vm528_vm1, %v5166_v14  ;;  %v7907_v14 = vld [vmem:[%s12435_s6 + $0x1b] ss:$0 sm:$0xff] }
0x210a   : > { %v5250_v44 = vpop.f32.mrb[42].mxu1 }
0x210b   : > { %v5251_v50 = vadd.f32 %v7900_v10, %v5250_v44  ;;  %v8972_v16 = vpop.f32.mrb[43].mxu1 }
0x210d   : > { %v5261_v41 = vrot.slane %v5251_v50, %v10319_v45  ;;  %v7913_v45 = vld [vmem:[%s12434_s5 + $0x78] sm:$0xff] }
0x210e   : > { %v9475_v4 = vpack.c.bf16 %v7913_v45, %v7912_v5 }
0x210f   : > { %v5262_v3 = vcombine.high %v5261_v41, %v5261_v41  ;;  %v5265_v2 = vsel %vm1093_vm5, %v5261_v41, 0.0 }
0x2110   : > { %v5266_v56 = vrot.slane %v5265_v2, 4 }
0x2111   : > { %v5272_v57 = vsel %vm1093_vm5, %v5262_v3, 0.0 }
0x2112   : > { %v5267_v62 = vadd.f32 %v5266_v56, %v5265_v2  ;;  %v5273_v58 = vrot.slane %v5272_v57, 4  ;;  %v11498_v56 = vld [vmem:[%s12435_s6 + $0x17] ss:$0 sm:$0xff] }
0x2114   : > { %v5268_v63 = vrot.slane %v5267_v62, 2  ;;  %v5274_v17 = vadd.f32 %v5273_v58, %v5272_v57 }
0x2116   : > { %v5269_v20 = vadd.f32 %v5268_v63, %v5267_v62  ;;  %v5275_v27 = vrot.slane %v5274_v17, 2 }
0x2118   : > { %v5270_v26 = vrot.slane %v5269_v20, 1  ;;  %v5276_v21 = vadd.f32 %v5275_v27, %v5274_v17 }
0x211a   : > { %v5277_v38 = vrot.slane %v5276_v21, 1  ;;  %v5271_v54 = vadd.f32 %v5270_v26, %v5269_v20  ;;  %v4315_v26 = vadd.f32 %v11295_v55, %v11498_v56 }
0x211c   : > { %v5278_v30 = vadd.f32 %v5277_v38, %v5276_v21 }
0x211e   : > { %v5291_v53 = vsel %vm1120_vm6, %v5278_v30, %v5271_v54  ;;  %v7821_v30 = vmul.f32 -1.442695, %v4315_v26 }
0x211f   : > { %8982 = vmatmul.mubr.msk.f32.vlgmr.msra.gmra.mrb[50].mxu0 %vm320_vm0, %v5291_v53 }
0x2120   : > { %9474 = vmatpush3.bf16.msra.mxu0 %v9471_v31  ;;  %8992 = vmatprep.mubr.msk.f32.mxu0 %vm320_vm0, %v11402_v6  ;;  %v7707_v31 = vld [vmem:[%s12435_s6 + $0xf] ss:$0 sm:$0xff] }
0x2121   : > { %9476 = vmatprep.subr.bf16.mxu0 %v9475_v4  ;;  %v2912_v10 = vadd.f32 %v7707_v31, %v10920_v60  ;;  %v2913_v44 = vadd.f32 %v10918_v46, %v7707_v31  ;;  %v2915_v16 = vadd.f32 %v10922_v47, %v7707_v31  ;;  %v7915_v60 = vld [vmem:[%s12435_s6 + $0x1e] ss:$0 sm:$0xff]  ;;  %v4313_v46 = vadd.f32 %v11291_v35, %v11498_v56 }
0x2123   : > { %v7708_v50 = vmul.f32 -1.442695, %v2912_v10  ;;  %v7709_v3 = vmul.f32 -1.442695, %v2913_v44  ;;  %v7711_v62 = vmul.f32 -1.442695, %v2915_v16  ;;  %v2914_v10 = vadd.f32 %v7707_v31, %v10924_v48 }
0x2124   : > { %9478 = vmatpush3.bf16.msra.mxu0 %v9475_v4  ;;  %v7819_v27 = vmul.f32 -1.442695, %v4313_v46 }
0x2127   : > { %8993 = vmatmul.mubr.msk.f32.vlgmr.msra.gmra.mrb[52].mxu0 %vm320_vm0, %v11404_v34 }
0x2128   : > { %8995 = vmatprep.mubr.msk.f32.mxu0 %vm320_vm0, %v11416_v22 }
0x212b   : > { %8996 = vmatmul.mubr.msk.f32.gmra.mrb[54].mxu0 %vm320_vm0, %v11418_v1  ;;  %v10017_v1 = vmov 0  }
0x212c   : > { %9648 = vset.pattern.permute.xlu1 %v10017_v1  ;;  %9647 = vset.pattern.permute.xlu0 %v10017_v1 }
0x21f2   : > { %v5360_v13 = vpop.f32.mrb[50].mxu0 }
0x21f3   : > { %v5361_v36 = vadd.f32 %v7907_v14, %v5360_v13  ;;  %v8983_v42 = vpop.f32.mrb[51].mxu0 }
0x21f5   : > { %v7909_v7 = vmul.f32 -1.442695, %v5361_v36 }
0x21f7   : > { %9821 = vpow2.f32 %v7909_v7 }
0x21fa   : > { %v8994_v6 = vpop.f32.mrb[52].mxu0 }
0x21fb   : > { %v5463_v8 = vpop.f32.mrb[53].mxu0  ;;  %v5469_v58 = vadd.f32 %v8994_v6, %v7915_v60 }
0x21fc   : > { %v5464_v63 = vadd.f32 %v7915_v60, %v5463_v8 }
0x21fe   : > { %v8997_v25 = vpop.f32.mrb[54].mxu0 }
0x21ff   : > { %v5473_v9 = vpop.f32.mrb[55].mxu0  ;;  %v5479_v8 = vadd.f32 %v8997_v25, %v7915_v60  ;;  %v7710_v25 = vmul.f32 -1.442695, %v2914_v10 }
0x2201   : > { %v9822_v34 = vpop.eup %9821 }
0x2202   : > { %v5367_v51 = vadd.f32 1.0, %v9822_v34 }
0x2204   : > { %9823 = vrcp.f32 %v5367_v51 }
0x2205   : > { %9825 = vpow2.f32 %v7708_v50 }
0x2206   : > { %9827 = vpow2.f32 %v7709_v3 }
0x2207   : > { %9829 = vpow2.f32 %v7711_v62 }
0x2208   : > { %9831 = vpow2.f32 %v7819_v27 }
0x2209   : > { %9833 = vpow2.f32 %v7821_v30 }
0x220e   : > { %v9824_v22 = vpop.eup %9823 }
0x220f   : > { %5371 = vrot.lane.b32.xlu1 %v9824_v22, %s10011_s30  ;;  %v9826_v5 = vpop.eup %9825 }
0x2210   : > { %v2928_v4 = vadd.f32 1.0, %v9826_v5  ;;  %v9828_v53 = vpop.eup %9827 }
0x2211   : > { %v9830_v13 = vpop.eup %9829  ;;  %v2929_v42 = vadd.f32 1.0, %v9828_v53 }
0x2212   : > { %9835 = vrcp.f32 %v2928_v4  ;;  %v9832_v34 = vpop.eup %9831 }
0x2213   : > { %9837 = vrcp.f32 %v2929_v42  ;;  %v4329_v44 = vadd.f32 1.0, %v9832_v34  ;;  %v9834_v50 = vpop.eup %9833 }
0x2214   : > { %v4331_v3 = vadd.f32 1.0, %v9834_v50 }
0x2281   : > { %v5372_v41 = vpop.permute.xlu1 %5371 }
0x2282   : > { %v5374_v2 = vmul.f32 %v5372_v41, %v5361_v36  ;;  %v11525_v36 = vld [vmem:[%s12435_s6 + $0x7] ss:$0 sm:$0xff]  ;;  %v4312_v41 = vadd.f32 %v11498_v56, %v11293_v37 }
0x2284   : > { %v5489_v57 = vrot.slane %v5374_v2, %v10435_v28  ;;  %v7818_v31 = vmul.f32 -1.442695, %v4312_v41 }
0x2286   : > { %v5497_v47 = vrot.slane %v5489_v57, %v10435_v28  ;;  %v5490_v17 = vcombine.high %v5489_v57, %v5489_v57  ;;  %v4314_v57 = vadd.f32 %v11498_v56, %v11297_v0 }
0x2288   : > { %v5508_v20 = vrot.slane %v5497_v47, %v10439_v32  ;;  %v5504_v45 = vrot.slane %v5490_v17, %v10435_v28  ;;  %v5474_v28 = vadd.f32 %v7915_v60, %v5473_v9  ;;  %v2931_v9 = vadd.f32 1.0, %v9830_v13  ;;  %v7920_v47 = vld [vmem:[%s12437_s8 + $0x30] sm:$0xff] }
0x2289   : > { %v7820_v37 = vmul.f32 -1.442695, %v4314_v57  ;;  %9006 = vmatprep.mubr.msk.f32.mxu1 %vm320_vm0, %v7920_v47  ;;  %9017 = vmatprep.mubr.msk.f32.mxu0 %vm320_vm0, %v7920_v47 }
0x228a   : > { %v11510_v21 = vmul.f32 %v5508_v20, %v5469_v58  ;;  %v11512_v38 = vmul.f32 %v5508_v20, %v5464_v63  ;;  %v5512_v14 = vrot.slane %v5504_v45, %v10439_v32  ;;  %v1539_v32 = vadd.f32 %v11525_v36, %v10541_v24  ;;  %v9836_v24 = vpop.eup %9835 }
0x228b   : > { %9839 = vrcp.f32 %v2931_v9  ;;  %v9838_v48 = vpop.eup %9837 }
0x228c   : > { %v5538_v35 = vsel %vm320_vm0, %v11510_v21, -inf  ;;  %v5519_v54 = vsel %vm320_vm0, %v11512_v38, 0.0  ;;  %v5522_v55 = vsel %vm320_vm0, %v11510_v21, 0.0  ;;  %v5535_v7 = vsel %vm320_vm0, %v11512_v38, -inf }
0x228d   : > { %5539 = vmax.xlane.f32.xlu1 %v5538_v35  ;;  %5520 = vadd.xlane.f32.xlu0 %v5519_v54  ;;  %v11529_v6 = vmul.f32 %v5512_v14, %v5474_v28  ;;  %v11535_v22 = vmul.f32 %v5512_v14, %v5479_v8  ;;  %v7608_v1 = vmul.f32 -1.442695, %v1539_v32  ;;  %v7921_v8 = vld [vmem:[%s12437_s8 + $0x38] sm:$0xff] }
0x228f   : > { %v5525_v51 = vsel %vm320_vm0, %v11529_v6, 0.0  ;;  %v5528_v16 = vsel %vm320_vm0, %v11535_v22, 0.0  ;;  %9841 = vpow2.f32 %v7608_v1  ;;  %v5541_v2 = vsel %vm320_vm0, %v11529_v6, -inf }
0x2290   : > { %9843 = vrcp.f32 %v4329_v44  ;;  %v5544_v62 = vsel %vm320_vm0, %v11535_v22, -inf }
0x2291   : > { %5523 = vadd.xlane.f32.xlu0 %v5522_v55  ;;  %9845 = vpow2.f32 %v7710_v25 }
0x2292   : > { %9847 = vrcp.f32 %v4331_v3 }
0x2293   : > { %9849 = vpow2.f32 %v7818_v31 }
0x2294   : > { %9851 = vpow2.f32 %v7820_v37 }
0x2295   : > { %5536 = vmax.xlane.f32.xlu0 %v5535_v7  ;;  %v9840_v60 = vpop.eup %9839 }
0x2299   : > { %5526 = vadd.xlane.f32.xlu0 %v5525_v51  ;;  %v9842_v46 = vpop.eup %9841 }
0x229a   : > { %v9844_v58 = vpop.eup %9843  ;;  %v1555_v56 = vadd.f32 1.0, %v9842_v46 }
0x229b   : > { %v9846_v0 = vpop.eup %9845 }
0x229c   : > { %v9848_v63 = vpop.eup %9847  ;;  %9853 = vrcp.f32 %v1555_v56  ;;  %v2930_v17 = vadd.f32 1.0, %v9846_v0 }
0x229d   : > { %5529 = vadd.xlane.f32.xlu0 %v5528_v16  ;;  %v9850_v20 = vpop.eup %9849  ;;  %v1540_v16 = vadd.f32 %v10539_v23, %v11525_v36  ;;  %v1541_v23 = vadd.f32 %v11525_v36, %v10561_v39 }
0x229e   : > { %2942 = vperm.xlu1 %9648, %v9836_v24   ;;  %9855 = vrcp.f32 %v2930_v17  ;;  %v4328_v27 = vadd.f32 1.0, %v9850_v20  ;;  %v9852_v26 = vpop.eup %9851  ;;  %v7927_v24 = vld [vmem:[%s12435_s6 + $0x1f] ss:$0 sm:$0xff] }
0x229f   : > { %v4330_v5 = vadd.f32 1.0, %v9852_v26  ;;  %v7609_v25 = vmul.f32 -1.442695, %v1540_v16  ;;  %v7610_v37 = vmul.f32 -1.442695, %v1541_v23 }
0x22a0   : > { %9857 = vrcp.f32 %v4328_v27 }
0x22a1   : > { %5542 = vmax.xlane.f32.xlu0 %v5541_v2  ;;  %9859 = vrcp.f32 %v4330_v5 }
0x22a2   : > { %2947 = vperm.xlu1 %9648, %v9838_v48   ;;  %9861 = vpow2.f32 %v7609_v25 }
0x22a5   : > { %5545 = vmax.xlane.f32.xlu0 %v5544_v62  ;;  %v1542_v62 = vadd.f32 %v10559_v61, %v11525_v36 }
0x22a6   : > { %2957 = vperm.xlu1 %9648, %v9840_v60   ;;  %v9854_v45 = vpop.eup %9853 }
0x22a7   : > { %v7611_v60 = vmul.f32 -1.442695, %v1542_v62 }
0x22a8   : > { %v9856_v35 = vpop.eup %9855 }
0x22aa   : > { %4347 = vperm.xlu1 %9648, %v9844_v58   ;;  %v9858_v54 = vpop.eup %9857 }
0x22ab   : > { %v9860_v30 = vpop.eup %9859 }
0x22ac   : > { %v9862_v46 = vpop.eup %9861 }
0x22ad   : > { %v1556_v61 = vadd.f32 1.0, %v9862_v46 }
0x22ae   : > { %4357 = vperm.xlu1 %9648, %v9848_v63  }
0x22bb   : > { %1569 = vperm.xlu0 %9647, %v9854_v45  }
0x22bf   : > { %2952 = vperm.xlu0 %9647, %v9856_v35  }
0x22c3   : > { %4342 = vperm.xlu0 %9647, %v9858_v54  }
0x22c7   : > { %4352 = vperm.xlu0 %9647, %v9860_v30  }
0x231a   : > { %v5521_v4 = vpop.xlane.xlu0 %5520  ;;  %v5540_v13 = vpop.xlane.xlu1 %5539 }
0x231b   : > { %v5531_v55 = vmul.f32 0.03125, %v5521_v4 }
0x231e   : > { %v5524_v53 = vpop.xlane.xlu0 %5523 }
0x231f   : > { %v5532_v14 = vmul.f32 0.03125, %v5524_v53 }
0x2321   : > { %v9479_v28 = vpack.c.bf16 %v5532_v14, %v5531_v55 }
0x2322   : > { %v5537_v42 = vpop.xlane.xlu0 %5536 }
0x2323   : > { %v9483_v7 = vpack.c.bf16 %v5540_v13, %v5537_v42  ;;  %9480 = vmatprep.subr.bf16.mxu1 %v9479_v28 }
0x2324   : > { %9482 = vmatpush3.bf16.msra.mxu1 %v9479_v28 }
0x2325   : > { %9484 = vmatprep.subr.bf16.mxu1 %v9483_v7 }
0x2326   : > { %v5527_v32 = vpop.xlane.xlu0 %5526 }
0x2327   : > { %v5533_v34 = vmul.f32 0.03125, %v5527_v32 }
0x2328   : > { %9486 = vmatpush3.bf16.msra.mxu1 %v9483_v7 }
0x232a   : > { %v5530_v9 = vpop.xlane.xlu0 %5529 }
0x232b   : > { %v5534_v51 = vmul.f32 0.03125, %v5530_v9  ;;  %9007 = vmatmul.mubr.msk.f32.vlgmr.msra.gmra.mrb[44].mxu1 %vm320_vm0, %v7921_v8 }
0x232d   : > { %v9487_v1 = vpack.c.bf16 %v5534_v51, %v5533_v34 }
0x232e   : > { %v5543_v10 = vpop.xlane.xlu0 %5542 }
0x232f   : > { %9488 = vmatprep.subr.bf16.mxu0 %v9487_v1 }
0x2330   : > { %9490 = vmatpush3.bf16.msra.mxu0 %v9487_v1 }
0x2332   : > { %v5546_v44 = vpop.xlane.xlu0 %5545 }
0x2333   : > { %v9491_v50 = vpack.c.bf16 %v5546_v44, %v5543_v10 }
0x2335   : > { %9492 = vmatprep.subr.bf16.mxu0 %v9491_v50 }
0x2336   : > { %9494 = vmatpush3.bf16.msra.mxu0 %v9491_v50 }
0x2339   : > { %9018 = vmatmul.mubr.msk.f32.vlgmr.msra.gmra.mrb[56].mxu0 %vm320_vm0, %v7921_v8  ;;  %v2943_v8 = vpop.permute.xlu1 %2942 }
0x233a   : > { %v1570_v9 = vpop.permute.xlu0 %1569  ;;  %v11571_v50 = vmul.f32 %v2943_v8, %v10795_v19 }
0x233c   : > { %v2970_v19 = vsel %vm320_vm0, %v11571_v50, 0.0 }
0x233d   : > { %v2948_v34 = vpop.permute.xlu1 %2947 }
0x233e   : > { %v2953_v51 = vpop.permute.xlu0 %2952  ;;  %v11568_v1 = vmul.f32 %v2948_v34, %v10793_v18 }
0x233f   : > { %v11574_v16 = vmul.f32 %v2953_v51, %v10807_v29 }
0x2341   : > { %v2958_v10 = vpop.permute.xlu1 %2957  ;;  %v2976_v18 = vsel %vm320_vm0, %v11574_v16, 0.0 }
0x2342   : > { %v4343_v44 = vpop.permute.xlu0 %4342 }
0x2345   : > { %v4348_v25 = vpop.permute.xlu1 %4347 }
0x2346   : > { %v11589_v29 = vmul.f32 %v4348_v25, %v11173_v12 }
0x2348   : > { %v4373_v12 = vsel %vm320_vm0, %v11589_v29, 0.0 }
0x23fe   : > { %v9008_v41 = vpop.f32.mrb[44].mxu1 }
0x23ff   : > { %v5712_v3 = vadd.f32 %v9008_v41, %v7927_v24  ;;  %v5622_v2 = vpop.f32.mrb[45].mxu1  ;;  %v11579_v41 = vmul.f32 %v2958_v10, %v10811_v33 }
0x2400   : > { %v5711_v48 = vadd.f32 %v7927_v24, %v5622_v2  ;;  %v4353_v2 = vpop.permute.xlu0 %4352 }
0x2401   : > { %v7929_v31 = vmul.f32 -1.442695, %v5712_v3  ;;  %v11582_v3 = vmul.f32 %v4343_v44, %v11166_v59  ;;  %v2979_v59 = vsel %vm320_vm0, %v11579_v41, 0.0 }
0x2402   : > { %v7928_v57 = vmul.f32 -1.442695, %v5711_v48  ;;  %v11592_v48 = vmul.f32 %v4353_v2, %v11180_v11 }
0x2403   : > { %9863 = vpow2.f32 %v7929_v31  ;;  %v4370_v33 = vsel %vm320_vm0, %v11582_v3, 0.0  ;;  %v4358_v31 = vpop.permute.xlu1 %4357 }
0x2404   : > { %9865 = vpow2.f32 %v7928_v57  ;;  %v11599_v57 = vmul.f32 %v4358_v31, %v11184_v15  ;;  %v4376_v62 = vsel %vm320_vm0, %v11592_v48, 0.0 }
0x2405   : > { %9867 = vpow2.f32 %v7611_v60 }
0x2406   : > { %9869 = vpow2.f32 %v7610_v37  ;;  %v4379_v11 = vsel %vm320_vm0, %v11599_v57, 0.0 }
0x240c   : > { %v9019_v47 = vpop.f32.mrb[56].mxu0 }
0x240d   : > { %v9864_v58 = vpop.eup %9863  ;;  %v5714_v0 = vadd.f32 %v9019_v47, %v7927_v24  ;;  %v5697_v56 = vpop.f32.mrb[57].mxu0 }
0x240e   : > { %v9866_v63 = vpop.eup %9865  ;;  %v5728_v17 = vadd.f32 1.0, %v9864_v58  ;;  %v5713_v20 = vadd.f32 %v7927_v24, %v5697_v56  ;;  %v2973_v24 = vsel %vm320_vm0, %v11568_v1, 0.0 }
0x240f   : > { %v5727_v27 = vadd.f32 1.0, %v9866_v63  ;;  %v7931_v26 = vmul.f32 -1.442695, %v5714_v0  ;;  %v9868_v39 = vpop.eup %9867 }
0x2410   : > { %9871 = vrcp.f32 %v5728_v17  ;;  %v7930_v5 = vmul.f32 -1.442695, %v5713_v20  ;;  %v9870_v36 = vpop.eup %9869  ;;  %v1558_v28 = vadd.f32 1.0, %v9868_v39  ;;  %v11629_v20 = vmul.f32 %v1570_v9, %v10446_v40 }
0x2411   : > { %9873 = vrcp.f32 %v5727_v27  ;;  %v1557_v14 = vadd.f32 1.0, %v9870_v36 }
0x2412   : > { %9875 = vpow2.f32 %v7931_v26  ;;  %v1597_v40 = vsel %vm320_vm0, %v11629_v20, 0.0 }
0x2413   : > { %9877 = vpow2.f32 %v7930_v5 }
0x2414   : > { %9879 = vrcp.f32 %v1556_v61 }
0x241a   : > { %v9872_v45 = vpop.eup %9871 }
0x241b   : > { %v9874_v35 = vpop.eup %9873  ;;  %5746 = vperm.xlu1 %9648, %v9872_v45  }
0x241c   : > { %v9876_v54 = vpop.eup %9875  ;;  %5741 = vperm.xlu0 %9647, %v9874_v35  }
0x241d   : > { %v9878_v30 = vpop.eup %9877  ;;  %v5730_v4 = vadd.f32 1.0, %v9876_v54 }
0x241e   : > { %v5729_v53 = vadd.f32 1.0, %v9878_v30  ;;  %v9880_v55 = vpop.eup %9879 }
0x241f   : > { %9881 = vrcp.f32 %v5730_v4 }
0x2420   : > { %9883 = vrcp.f32 %v5729_v53  ;;  %1574 = vperm.xlu0 %9647, %v9880_v55  }
0x2421   : > { %9885 = vrcp.f32 %v1557_v14 }
0x2422   : > { %9887 = vrcp.f32 %v1558_v28 }
0x2429   : > { %v9882_v13 = vpop.eup %9881 }
0x242a   : > { %v9884_v42 = vpop.eup %9883  ;;  %5756 = vperm.xlu1 %9648, %v9882_v13  }
0x242b   : > { %5751 = vperm.xlu0 %9647, %v9884_v42   ;;  %v9886_v7 = vpop.eup %9885 }
0x242c   : > { %v9888_v32 = vpop.eup %9887 }
0x242e   : > { %1579 = vperm.xlu1 %9648, %v9886_v7  }
0x242f   : > { %1584 = vperm.xlu0 %9647, %v9888_v32  }
0x244e   : > { %2974 = vadd.xlane.f32.xlu0 %v2973_v24 }
0x2452   : > { %2977 = vadd.xlane.f32.xlu0 %v2976_v18  ;;  %2971 = vadd.xlane.f32.xlu1 %v2970_v19 }
0x2456   : > { %4371 = vadd.xlane.f32.xlu0 %v4370_v33  ;;  %2980 = vadd.xlane.f32.xlu1 %v2979_v59 }
0x245a   : > { %4377 = vadd.xlane.f32.xlu0 %v4376_v62  ;;  %4374 = vadd.xlane.f32.xlu1 %v4373_v12 }
0x245e   : > { %4380 = vadd.xlane.f32.xlu1 %v4379_v11 }
0x249a   : > { %v5747_v23 = vpop.permute.xlu1 %5746 }
0x249b   : > { %v11608_v60 = vmul.f32 %v5747_v23, %v11510_v21  ;;  %v5742_v37 = vpop.permute.xlu0 %5741 }
0x249c   : > { %v11611_v15 = vmul.f32 %v5742_v37, %v11512_v38 }
0x249d   : > { %v5772_v46 = vsel %vm320_vm0, %v11608_v60, 0.0 }
0x249e   : > { %5773 = vadd.xlane.f32.xlu1 %v5772_v46  ;;  %v5769_v47 = vsel %vm320_vm0, %v11611_v15, 0.0 }
0x249f   : > { %5770 = vadd.xlane.f32.xlu0 %v5769_v47  ;;  %v1575_v58 = vpop.permute.xlu0 %1574 }
0x24a0   : > { %v11624_v38 = vmul.f32 %v1575_v58, %v10453_v43 }
0x24a2   : > { %v1600_v43 = vsel %vm320_vm0, %v11624_v38, 0.0 }
0x24a9   : > { %v5757_v0 = vpop.permute.xlu1 %5756 }
0x24aa   : > { %v11618_v56 = vmul.f32 %v5757_v0, %v11535_v22  ;;  %v5752_v63 = vpop.permute.xlu0 %5751 }
0x24ab   : > { %v11621_v21 = vmul.f32 %v5752_v63, %v11529_v6 }
0x24ac   : > { %v5778_v17 = vsel %vm320_vm0, %v11618_v56, 0.0 }
0x24ad   : > { %5779 = vadd.xlane.f32.xlu1 %v5778_v17  ;;  %v5775_v27 = vsel %vm320_vm0, %v11621_v21, 0.0  ;;  %v1580_v26 = vpop.permute.xlu1 %1579 }
0x24ae   : > { %5776 = vadd.xlane.f32.xlu0 %v5775_v27  ;;  %v1585_v22 = vpop.permute.xlu0 %1584  ;;  %v11639_v6 = vmul.f32 %v1580_v26, %v10460_v49 }
0x24af   : > { %v11634_v5 = vmul.f32 %v1585_v22, %v10464_v52 }
0x24b0   : > { %v1603_v39 = vsel %vm320_vm0, %v11639_v6, 0.0 }
0x24b1   : > { %1601 = vadd.xlane.f32.xlu1 %v1600_v43  ;;  %v1606_v61 = vsel %vm320_vm0, %v11634_v5, 0.0 }
0x24b2   : > { %1598 = vadd.xlane.f32.xlu0 %v1597_v40 }
0x24b5   : > { %1607 = vadd.xlane.f32.xlu1 %v1606_v61 }
0x24b6   : > { %1604 = vadd.xlane.f32.xlu0 %v1603_v39 }
0x24db   : > { %v2975_v52 = vpop.xlane.xlu0 %2974 }
0x24df   : > { %v2978_v36 = vpop.xlane.xlu0 %2977  ;;  %v2972_v45 = vpop.xlane.xlu1 %2971 }
0x24e0   : > { %v2982_v42 = vadd.f32 %v2975_v52, %v2972_v45 }
0x24e2   : > { %v2983_v7 = vrot.slane %v2982_v42, 4 }
0x24e3   : > { %v2981_v35 = vpop.xlane.xlu1 %2980  ;;  %v4372_v54 = vpop.xlane.xlu0 %4371 }
0x24e4   : > { %v2989_v32 = vadd.f32 %v2981_v35, %v2978_v36  ;;  %v2984_v9 = vadd.f32 %v2983_v7, %v2982_v42 }
0x24e6   : > { %v2990_v34 = vrot.slane %v2989_v32, 4  ;;  %v2985_v24 = vrot.slane %v2984_v9, 2 }
0x24e7   : > { %v4375_v49 = vpop.xlane.xlu1 %4374  ;;  %v4378_v4 = vpop.xlane.xlu0 %4377 }
0x24e8   : > { %v11647_v30 = vadd.f32 %v4375_v49, %v4372_v54  ;;  %v2991_v25 = vadd.f32 %v2990_v34, %v2989_v32  ;;  %v2986_v59 = vadd.f32 %v2985_v24, %v2984_v9 }
0x24ea   : > { %v2992_v31 = vrot.slane %v2991_v25, 2  ;;  %v2987_v46 = vrot.slane %v2986_v59, 1 }
0x24eb   : > { %v4381_v53 = vpop.xlane.xlu1 %4380 }
0x24ec   : > { %v11649_v55 = vadd.f32 %v4381_v53, %v4378_v4  ;;  %v2993_v47 = vadd.f32 %v2992_v31, %v2991_v25  ;;  %v2988_v27 = vadd.f32 %v2987_v46, %v2986_v59 }
0x24ee   : > { %v2994_v26 = vrot.slane %v2993_v47, 1  ;;  %v2996_v39 = vmul.f32 0.001953125, %v2988_v27 }
0x24f0   : > { %v2995_v52 = vadd.f32 %v2994_v26, %v2993_v47 }
0x24f2   : > { %v2997_v53 = vmul.f32 0.001953125, %v2995_v52 }
0x24f4   : > { %v11693_v34 = vsub.f32 %v11574_v16, %v2997_v53 }
0x24f6   : > { %v3004_v25 = vmul.f32 %v11693_v34, %v11693_v34 }
0x252b   : > { %v5774_v14 = vpop.xlane.xlu1 %5773 }
0x252c   : > { %v5771_v28 = vpop.xlane.xlu0 %5770 }
0x252d   : > { %v11651_v13 = vadd.f32 %v5774_v14, %v5771_v28  ;;  %v11666_v14 = vsub.f32 %v11568_v1, %v2996_v39  ;;  %v11669_v28 = vsub.f32 %v11571_v50, %v2996_v39 }
0x252f   : > { %v3003_v50 = vmul.f32 %v11666_v14, %v11666_v14 }
0x253a   : > { %v5780_v8 = vpop.xlane.xlu1 %5779 }
0x253b   : > { %v5777_v51 = vpop.xlane.xlu0 %5776 }
0x253c   : > { %v11653_v10 = vadd.f32 %v5780_v8, %v5777_v51  ;;  %v3002_v8 = vmul.f32 %v11669_v28, %v11669_v28  ;;  %v3009_v51 = vsel %vm320_vm0, %v3003_v50, 0.0 }
0x253e   : > { %v1602_v44 = vpop.xlane.xlu1 %1601 }
0x253f   : > { %v1599_v18 = vpop.xlane.xlu0 %1598 }
0x2540   : > { %v1609_v19 = vadd.f32 %v1602_v44, %v1599_v18  ;;  %v3006_v44 = vsel %vm320_vm0, %v3002_v8, 0.0  ;;  %v3012_v18 = vsel %vm320_vm0, %v3004_v25, 0.0 }
0x2542   : > { %v1610_v2 = vrot.slane %v1609_v19, 4  ;;  %v1608_v33 = vpop.xlane.xlu1 %1607 }
0x2543   : > { %v1605_v62 = vpop.xlane.xlu0 %1604 }
0x2544   : > { %v1611_v12 = vadd.f32 %v1610_v2, %v1609_v19  ;;  %v1616_v11 = vadd.f32 %v1608_v33, %v1605_v62 }
0x2546   : > { %v1612_v23 = vrot.slane %v1611_v12, 2  ;;  %v1617_v37 = vrot.slane %v1616_v11, 4 }
0x2548   : > { %v1613_v58 = vadd.f32 %v1612_v23, %v1611_v12  ;;  %v1618_v0 = vadd.f32 %v1617_v37, %v1616_v11 }
0x254a   : > { %v1614_v63 = vrot.slane %v1613_v58, 1  ;;  %v1619_v17 = vrot.slane %v1618_v0, 2 }
0x254c   : > { %v1615_v22 = vadd.f32 %v1614_v63, %v1613_v58  ;;  %v1620_v43 = vadd.f32 %v1619_v17, %v1618_v0 }
0x254e   : > { %v1623_v40 = vmul.f32 0.001953125, %v1615_v22  ;;  %v1621_v61 = vrot.slane %v1620_v43, 1 }
0x2550   : > { %v1622_v36 = vadd.f32 %v1621_v61, %v1620_v43  ;;  %v11656_v45 = vsub.f32 %v11624_v38, %v1623_v40  ;;  %v11659_v35 = vsub.f32 %v11629_v20, %v1623_v40 }
0x2552   : > { %v1624_v54 = vmul.f32 0.001953125, %v1622_v36  ;;  %v1630_v49 = vmul.f32 %v11656_v45, %v11656_v45  ;;  %v1629_v4 = vmul.f32 %v11659_v35, %v11659_v35 }
0x2554   : > { %v1636_v38 = vsel %vm320_vm0, %v1630_v49, 0.0  ;;  %v1633_v42 = vsel %vm320_vm0, %v1629_v4, 0.0  ;;  %v11674_v20 = vsub.f32 %v11634_v5, %v1624_v54  ;;  %v11677_v7 = vsub.f32 %v11639_v6, %v1624_v54 }
0x2555   : > { %1637 = vadd.xlane.f32.xlu1 %v1636_v38  ;;  %1634 = vadd.xlane.f32.xlu0 %v1633_v42  ;;  %v11690_v6 = vsub.f32 %v11579_v41, %v2997_v53 }
0x2556   : > { %v1632_v32 = vmul.f32 %v11674_v20, %v11674_v20  ;;  %v1631_v1 = vmul.f32 %v11677_v7, %v11677_v7 }
0x2557   : > { %v3005_v24 = vmul.f32 %v11690_v6, %v11690_v6 }
0x2558   : > { %v1642_v5 = vsel %vm320_vm0, %v1632_v32, 0.0  ;;  %v1639_v9 = vsel %vm320_vm0, %v1631_v1, 0.0 }
0x2559   : > { %1643 = vadd.xlane.f32.xlu1 %v1642_v5  ;;  %1640 = vadd.xlane.f32.xlu0 %v1639_v9  ;;  %v3015_v41 = vsel %vm320_vm0, %v3005_v24, 0.0 }
0x255d   : > { %3010 = vadd.xlane.f32.xlu1 %v3009_v51  ;;  %3007 = vadd.xlane.f32.xlu0 %v3006_v44 }
0x2561   : > { %3016 = vadd.xlane.f32.xlu1 %v3015_v41  ;;  %3013 = vadd.xlane.f32.xlu0 %v3012_v18 }
0x25e2   : > { %v1635_v16 = vpop.xlane.xlu0 %1634  ;;  %v1638_v19 = vpop.xlane.xlu1 %1637 }
0x25e3   : > { %v1645_v2 = vadd.f32 %v1638_v19, %v1635_v16  ;;  %v7612_v19 = vld [vmem:[%s12436_s7 + $0x20] sm:$0xff] }
0x25e5   : > { %v1646_v33 = vrot.slane %v1645_v2, 4 }
0x25e6   : > { %v1641_v59 = vpop.xlane.xlu0 %1640  ;;  %v1644_v31 = vpop.xlane.xlu1 %1643 }
0x25e7   : > { %v1647_v62 = vadd.f32 %v1646_v33, %v1645_v2  ;;  %v1652_v12 = vadd.f32 %v1644_v31, %v1641_v59  ;;  %v7613_v2 = vld [vmem:[%s12436_s7 + $0x28] sm:$0xff]  ;;  %v7614_v31 = vld [vmem:[%s12436_s7 + $0x30] sm:$0xff] }
0x25e9   : > { %v1648_v11 = vrot.slane %v1647_v62, 2  ;;  %v1653_v23 = vrot.slane %v1652_v12, 4 }
0x25ea   : > { %v3008_v37 = vpop.xlane.xlu0 %3007  ;;  %v3011_v46 = vpop.xlane.xlu1 %3010 }
0x25eb   : > { %v1649_v47 = vadd.f32 %v1648_v11, %v1647_v62  ;;  %v1654_v58 = vadd.f32 %v1653_v23, %v1652_v12  ;;  %v3018_v0 = vadd.f32 %v3011_v46, %v3008_v37  ;;  %v7615_v62 = vld [vmem:[%s12436_s7 + $0x38] sm:$0xff] }
0x25ed   : > { %v1650_v63 = vrot.slane %v1649_v47, 1  ;;  %v1655_v17 = vrot.slane %v1654_v58, 2  ;;  %v3019_v27 = vrot.slane %v3018_v0, 4 }
0x25ee   : > { %v3014_v26 = vpop.xlane.xlu0 %3013  ;;  %v3017_v22 = vpop.xlane.xlu1 %3016 }
0x25ef   : > { %v1651_v43 = vadd.f32 %v1650_v63, %v1649_v47  ;;  %v1656_v40 = vadd.f32 %v1655_v17, %v1654_v58  ;;  %v3020_v61 = vadd.f32 %v3019_v27, %v3018_v0  ;;  %v3025_v39 = vadd.f32 %v3017_v22, %v3014_v26  ;;  %v7713_v63 = vld [vmem:[%s12436_s7 + $0x68] sm:$0xff]  ;;  %v7712_v17 = vld [vmem:[%s12436_s7 + $0x60] sm:$0xff]  ;;  %v7715_v22 = vld [vmem:[%s12436_s7 + $0x78] sm:$0xff] }
0x25f1   : > { %v1659_v52 = vmul.f32 0.001953125, %v1651_v43  ;;  %v1657_v36 = vrot.slane %v1656_v40, 1  ;;  %v3021_v54 = vrot.slane %v3020_v61, 2  ;;  %v3026_v49 = vrot.slane %v3025_v39, 4  ;;  %v7714_v43 = vld [vmem:[%s12436_s7 + $0x70] sm:$0xff] }
0x25f3   : > { %v1661_v4 = vadd.f32 1e-05, %v1659_v52  ;;  %v1658_v53 = vadd.f32 %v1657_v36, %v1656_v40  ;;  %v3022_v38 = vadd.f32 %v3021_v54, %v3020_v61  ;;  %v3027_v42 = vadd.f32 %v3026_v49, %v3025_v39 }
0x25f5   : > { %9889 = vrsqrt.f32 %v1661_v4  ;;  %v1660_v32 = vmul.f32 0.001953125, %v1658_v53  ;;  %v3023_v1 = vrot.slane %v3022_v38, 1  ;;  %v3028_v50 = vrot.slane %v3027_v42, 2 }
0x25f7   : > { %v1662_v8 = vadd.f32 1e-05, %v1660_v32  ;;  %v3024_v5 = vadd.f32 %v3023_v1, %v3022_v38  ;;  %v3029_v9 = vadd.f32 %v3028_v50, %v3027_v42  ;;  %v4390_v38 = vrot.slane %v11649_v55, 4 }
0x25f9   : > { %9891 = vrsqrt.f32 %v1662_v8  ;;  %v3032_v51 = vmul.f32 0.001953125, %v3024_v5  ;;  %v3030_v44 = vrot.slane %v3029_v9, 1  ;;  %v4391_v50 = vadd.f32 %v4390_v38, %v11649_v55 }
0x25fb   : > { %v3034_v24 = vadd.f32 1e-05, %v3032_v51  ;;  %v3031_v25 = vadd.f32 %v3030_v44, %v3029_v9  ;;  %v5789_v9 = vrot.slane %v11653_v10, 4 }
0x25fd   : > { %9893 = vrsqrt.f32 %v3034_v24  ;;  %v3033_v41 = vmul.f32 0.001953125, %v3031_v25  ;;  %v5790_v24 = vadd.f32 %v5789_v9, %v11653_v10 }
0x25ff   : > { %v9890_v18 = vpop.eup %9889  ;;  %v3035_v16 = vadd.f32 1e-05, %v3033_v41 }
0x2600   : > { %v1665_v33 = vmul.f32 %v9890_v18, %v11659_v35  ;;  %v1666_v59 = vmul.f32 %v9890_v18, %v11656_v45 }
0x2601   : > { %9895 = vrsqrt.f32 %v3035_v16  ;;  %v5791_v16 = vrot.slane %v5790_v24, 2 }
0x2602   : > { %v1669_v12 = vmul.f32 %v7612_v19, %v1665_v33  ;;  %v1670_v11 = vmul.f32 %v7613_v2, %v1666_v59 }
0x2603   : > { %v9892_v23 = vpop.eup %9891  ;;  %v5792_v33 = vadd.f32 %v5791_v16, %v5790_v24 }
0x2604   : > { %v1673_v37 = vadd.f32 %v7614_v31, %v1669_v12  ;;  %v1674_v46 = vadd.f32 %v7615_v62, %v1670_v11  ;;  %v1668_v47 = vmul.f32 %v9892_v23, %v11674_v20  ;;  %v1667_v35 = vmul.f32 %v9892_v23, %v11677_v7 }
0x2606   : > { %1677 = vst.msk [vmem:[%s10103_s20] sm:$0xff] %vm320_vm0, %v1673_v37  ;;  %1678 = vst.msk [vmem:[%s10103_s20 + $0x8] sm:$0xff] %vm320_vm0, %v1674_v46  ;;  %v1672_v45 = vmul.f32 %v7613_v2, %v1668_v47  ;;  %v1671_v58 = vmul.f32 %v7612_v19, %v1667_v35 }
0x2607   : > { %v9894_v0 = vpop.eup %9893 }
0x2608   : > { %v3039_v20 = vmul.f32 %v9894_v0, %v11666_v14  ;;  %v3038_v7 = vmul.f32 %v9894_v0, %v11669_v28  ;;  %v1676_v27 = vadd.f32 %v7615_v62, %v1672_v45  ;;  %v1675_v26 = vadd.f32 %v7614_v31, %v1671_v58 }
0x2609   : > { %v4383_v14 = vrot.slane %v11647_v30, 4  ;;  %v5793_v62 = vrot.slane %v5792_v33, 1 }
0x260a   : > { %v3043_v40 = vmul.f32 %v7713_v63, %v3039_v20  ;;  %v3042_v61 = vmul.f32 %v7712_v17, %v3038_v7  ;;  %1680 = vst.msk [vmem:[%s10103_s20 + $0x18] sm:$0xff] %vm320_vm0, %v1676_v27  ;;  %1679 = vst.msk [vmem:[%s10103_s20 + $0x10] sm:$0xff] %vm320_vm0, %v1675_v26 }
0x260b   : > { %v9896_v39 = vpop.eup %9895  ;;  %v4384_v53 = vadd.f32 %v4383_v14, %v11647_v30  ;;  %v5794_v11 = vadd.f32 %v5793_v62, %v5792_v33 }
0x260c   : > { %v3047_v28 = vadd.f32 %v7715_v22, %v3043_v40  ;;  %v3046_v52 = vadd.f32 %v7714_v43, %v3042_v61  ;;  %v3041_v36 = vmul.f32 %v9896_v39, %v11690_v6  ;;  %v3040_v54 = vmul.f32 %v9896_v39, %v11693_v34 }
0x260d   : > { %v4385_v1 = vrot.slane %v4384_v53, 2  ;;  %v5782_v6 = vrot.slane %v11651_v13, 4  ;;  %v4392_v34 = vrot.slane %v4391_v50, 2  ;;  %v5796_v46 = vmul.f32 0.001953125, %v5794_v11 }
0x260e   : > { %3056 = vrot.lane.b32.xlu1 %v3047_v28, %s10018_s22  ;;  %3054 = vrot.lane.b32.xlu0 %v3046_v52, %s10018_s22  ;;  %v3045_v49 = vmul.f32 %v7713_v63, %v3041_v36  ;;  %v3044_v4 = vmul.f32 %v7712_v17, %v3040_v54 }
0x260f   : > { %v4386_v8 = vadd.f32 %v4385_v1, %v4384_v53  ;;  %v5783_v5 = vadd.f32 %v5782_v6, %v11651_v13  ;;  %v4393_v44 = vadd.f32 %v4392_v34, %v4391_v50  ;;  %v11777_v0 = vsub.f32 %v11621_v21, %v5796_v46 }
0x2610   : > { %v3049_v42 = vadd.f32 %v7715_v22, %v3045_v49  ;;  %v3048_v32 = vadd.f32 %v7714_v43, %v3044_v4  ;;  %v11792_v27 = vsub.f32 %v11618_v56, %v5796_v46 }
0x2611   : > { %v4387_v51 = vrot.slane %v4386_v8, 1  ;;  %v5784_v30 = vrot.slane %v5783_v5, 2  ;;  %v4394_v41 = vrot.slane %v4393_v44, 1  ;;  %v5803_v20 = vmul.f32 %v11777_v0, %v11777_v0 }
0x2612   : > { %3060 = vrot.lane.b32.xlu0 %v3049_v42, %s10018_s22  ;;  %3058 = vrot.lane.b32.xlu1 %v3048_v32, %s10018_s22  ;;  %v5804_v22 = vmul.f32 %v11792_v27, %v11792_v27 }
0x2613   : > { %v4388_v25 = vadd.f32 %v4387_v51, %v4386_v8  ;;  %v5785_v18 = vadd.f32 %v5784_v30, %v5783_v5  ;;  %v4395_v2 = vadd.f32 %v4394_v41, %v4393_v44 }
0x2614   : > { %v5814_v43 = vsel %vm320_vm0, %v5804_v22, 0.0  ;;  %v7824_v22 = vld [vmem:[%s12436_s7 + $0xb0] sm:$0xff] }
0x2615   : > { %v4396_v19 = vmul.f32 0.001953125, %v4388_v25  ;;  %v5786_v55 = vrot.slane %v5785_v18, 1  ;;  %v4397_v59 = vmul.f32 0.001953125, %v4395_v2 }
0x2617   : > { %v5787_v31 = vadd.f32 %v5786_v55, %v5785_v18  ;;  %v11752_v13 = vsub.f32 %v11589_v29, %v4396_v19  ;;  %v11757_v10 = vsub.f32 %v11592_v48, %v4397_v59  ;;  %v11760_v37 = vsub.f32 %v11582_v3, %v4396_v19 }
0x2618   : > { %v11771_v58 = vsub.f32 %v11599_v57, %v4397_v59 }
0x2619   : > { %v5795_v12 = vmul.f32 0.001953125, %v5787_v31  ;;  %v4403_v23 = vmul.f32 %v11752_v13, %v11752_v13  ;;  %v4404_v35 = vmul.f32 %v11757_v10, %v11757_v10  ;;  %v4402_v45 = vmul.f32 %v11760_v37, %v11760_v37 }
0x261b   : > { %v4409_v47 = vsel %vm320_vm0, %v4403_v23, 0.0  ;;  %v11766_v29 = vsub.f32 %v11611_v15, %v5795_v12  ;;  %v4412_v48 = vsel %vm320_vm0, %v4404_v35, 0.0  ;;  %v4406_v63 = vsel %vm320_vm0, %v4402_v45, 0.0 }
0x261c   : > { %v4405_v15 = vmul.f32 %v11771_v58, %v11771_v58  ;;  %v11783_v17 = vsub.f32 %v11608_v60, %v5795_v12  ;;  %v5811_v60 = vsel %vm320_vm0, %v5803_v20, 0.0  ;;  %v7823_v20 = vld [vmem:[%s12436_s7 + $0xa8] sm:$0xff] }
0x261d   : > { %v5801_v3 = vmul.f32 %v11766_v29, %v11766_v29 }
0x261e   : > { %v4415_v21 = vsel %vm320_vm0, %v4405_v15, 0.0  ;;  %v5802_v7 = vmul.f32 %v11783_v17, %v11783_v17 }
0x261f   : > { %v5805_v57 = vsel %vm320_vm0, %v5801_v3, 0.0 }
0x2620   : > { %v5808_v26 = vsel %vm320_vm0, %v5802_v7, 0.0 }
0x2631   : > { %4410 = vadd.xlane.f32.xlu0 %v4409_v47 }
0x2635   : > { %4413 = vadd.xlane.f32.xlu0 %v4412_v48 }
0x2636   : > { %4407 = vadd.xlane.f32.xlu1 %v4406_v63 }
0x2639   : > { %5806 = vadd.xlane.f32.xlu0 %v5805_v57 }
0x263a   : > { %4416 = vadd.xlane.f32.xlu1 %v4415_v21  ;;  %v7822_v21 = vld [vmem:[%s12436_s7 + $0xa0] sm:$0xff] }
0x263d   : > { %5812 = vadd.xlane.f32.xlu0 %v5811_v60 }
0x263e   : > { %5809 = vadd.xlane.f32.xlu1 %v5808_v26  ;;  %v7825_v26 = vld [vmem:[%s12436_s7 + $0xb8] sm:$0xff] }
0x2642   : > { %5815 = vadd.xlane.f32.xlu1 %v5814_v43 }
0x2680   : > { %v3055_v40 = vpop.permute.xlu0 %3054  ;;  %v3057_v61 = vpop.permute.xlu1 %3056 }
0x2681   : > { %3067 = vst.msk [vmem:[%s10103_s20] sm:$0xff] %vm3066_vm8, %v3055_v40  ;;  %3068 = vst.msk [vmem:[%s10103_s20 + $0x8] sm:$0xff] %vm3066_vm8, %v3057_v61 }
0x2684   : > { %v3061_v56 = vpop.permute.xlu0 %3060  ;;  %v3059_v39 = vpop.permute.xlu1 %3058 }
0x2685   : > { %3070 = vst.msk [vmem:[%s10103_s20 + $0x18] sm:$0xff] %vm3066_vm8, %v3061_v56  ;;  %3069 = vst.msk [vmem:[%s10103_s20 + $0x10] sm:$0xff] %vm3066_vm8, %v3059_v39 }
0x26be   : > { %v4411_v14 = vpop.xlane.xlu0 %4410 }
0x26c2   : > { %v4414_v28 = vpop.xlane.xlu0 %4413 }
0x26c3   : > { %v4408_v52 = vpop.xlane.xlu1 %4407 }
0x26c4   : > { %v4418_v36 = vadd.f32 %v4411_v14, %v4408_v52 }
0x26c6   : > { %v4419_v54 = vrot.slane %v4418_v36, 4  ;;  %v5807_v38 = vpop.xlane.xlu0 %5806 }
0x26c7   : > { %v4417_v49 = vpop.xlane.xlu1 %4416 }
0x26c8   : > { %v4420_v4 = vadd.f32 %v4419_v54, %v4418_v36  ;;  %v4425_v53 = vadd.f32 %v4417_v49, %v4414_v28  ;;  %v7933_v36 = vld [vmem:[%s12436_s7 + $0xe8] sm:$0xff]  ;;  %v7932_v54 = vld [vmem:[%s12436_s7 + $0xe0] sm:$0xff] }
0x26ca   : > { %v4421_v42 = vrot.slane %v4420_v4, 2  ;;  %v4426_v32 = vrot.slane %v4425_v53, 4  ;;  %v5813_v51 = vpop.xlane.xlu0 %5812 }
0x26cb   : > { %v5810_v1 = vpop.xlane.xlu1 %5809 }
0x26cc   : > { %v4422_v50 = vadd.f32 %v4421_v42, %v4420_v4  ;;  %v4427_v6 = vadd.f32 %v4426_v32, %v4425_v53  ;;  %v5817_v8 = vadd.f32 %v5810_v1, %v5807_v38  ;;  %v7935_v53 = vld [vmem:[%s12436_s7 + $0xf8] sm:$0xff]  ;;  %v7934_v38 = vld [vmem:[%s12436_s7 + $0xf0] sm:$0xff] }
0x26ce   : > { %v4423_v34 = vrot.slane %v4422_v50, 1  ;;  %v4428_v5 = vrot.slane %v4427_v6, 2  ;;  %v5818_v9 = vrot.slane %v5817_v8, 4 }
0x26cf   : > { %v5816_v44 = vpop.xlane.xlu1 %5815 }
0x26d0   : > { %v4424_v30 = vadd.f32 %v4423_v34, %v4422_v50  ;;  %v4429_v24 = vadd.f32 %v4428_v5, %v4427_v6  ;;  %v5819_v25 = vadd.f32 %v5818_v9, %v5817_v8  ;;  %v5824_v41 = vadd.f32 %v5816_v44, %v5813_v51 }
0x26d2   : > { %v4432_v18 = vmul.f32 0.001953125, %v4424_v30  ;;  %v4430_v16 = vrot.slane %v4429_v24, 1  ;;  %v5820_v19 = vrot.slane %v5819_v25, 2  ;;  %v5825_v2 = vrot.slane %v5824_v41, 4 }
0x26d4   : > { %v4434_v55 = vadd.f32 1e-05, %v4432_v18  ;;  %v4431_v33 = vadd.f32 %v4430_v16, %v4429_v24  ;;  %v5821_v59 = vadd.f32 %v5820_v19, %v5819_v25  ;;  %v5826_v31 = vadd.f32 %v5825_v2, %v5824_v41 }
0x26d6   : > { %9897 = vrsqrt.f32 %v4434_v55  ;;  %v4433_v62 = vmul.f32 0.001953125, %v4431_v33  ;;  %v5822_v12 = vrot.slane %v5821_v59, 1  ;;  %v5827_v11 = vrot.slane %v5826_v31, 2 }
0x26d8   : > { %v4435_v23 = vadd.f32 1e-05, %v4433_v62  ;;  %v5823_v46 = vadd.f32 %v5822_v12, %v5821_v59  ;;  %v5828_v47 = vadd.f32 %v5827_v11, %v5826_v31 }
0x26da   : > { %9899 = vrsqrt.f32 %v4435_v23  ;;  %v5831_v35 = vmul.f32 0.001953125, %v5823_v46  ;;  %v5829_v45 = vrot.slane %v5828_v47, 1 }
0x26dc   : > { %v5833_v48 = vadd.f32 1e-05, %v5831_v35  ;;  %v5830_v3 = vadd.f32 %v5829_v45, %v5828_v47 }
0x26de   : > { %9901 = vrsqrt.f32 %v5833_v48  ;;  %v5832_v63 = vmul.f32 0.001953125, %v5830_v3 }
0x26e0   : > { %v9898_v15 = vpop.eup %9897  ;;  %v5834_v57 = vadd.f32 1e-05, %v5832_v63 }
0x26e1   : > { %v4439_v7 = vmul.f32 %v9898_v15, %v11752_v13  ;;  %v4438_v60 = vmul.f32 %v9898_v15, %v11760_v37 }
0x26e2   : > { %9903 = vrsqrt.f32 %v5834_v57 }
0x26e3   : > { %v4443_v43 = vmul.f32 %v7823_v20, %v4439_v7  ;;  %v4442_v40 = vmul.f32 %v7822_v21, %v4438_v60 }
0x26e4   : > { %v9900_v61 = vpop.eup %9899 }
0x26e5   : > { %v4447_v56 = vadd.f32 %v7825_v26, %v4443_v43  ;;  %v4446_v39 = vadd.f32 %v7824_v22, %v4442_v40  ;;  %v4441_v14 = vmul.f32 %v9900_v61, %v11771_v58  ;;  %v4440_v13 = vmul.f32 %v9900_v61, %v11757_v10 }
0x26e7   : > { %4456 = vrot.lane.b32.xlu1 %v4447_v56, %s10019_s14  ;;  %4454 = vrot.lane.b32.xlu0 %v4446_v39, %s10019_s14  ;;  %v4445_v37 = vmul.f32 %v7823_v20, %v4441_v14  ;;  %v4444_v28 = vmul.f32 %v7822_v21, %v4440_v13 }
0x26e8   : > { %v9902_v52 = vpop.eup %9901 }
0x26e9   : > { %v4449_v49 = vadd.f32 %v7825_v26, %v4445_v37  ;;  %v4448_v4 = vadd.f32 %v7824_v22, %v4444_v28  ;;  %v5838_v58 = vmul.f32 %v9902_v52, %v11783_v17  ;;  %v5837_v10 = vmul.f32 %v9902_v52, %v11766_v29 }
0x26eb   : > { %4460 = vrot.lane.b32.xlu0 %v4449_v49, %s10019_s14  ;;  %4458 = vrot.lane.b32.xlu1 %v4448_v4, %s10019_s14  ;;  %v5842_v42 = vmul.f32 %v7933_v36, %v5838_v58  ;;  %v5841_v32 = vmul.f32 %v7932_v54, %v5837_v10 }
0x26ec   : > { %v9904_v1 = vpop.eup %9903 }
0x26ed   : > { %v5846_v50 = vadd.f32 %v7935_v53, %v5842_v42  ;;  %v5845_v6 = vadd.f32 %v7934_v38, %v5841_v32  ;;  %v5840_v17 = vmul.f32 %v9904_v1, %v11792_v27  ;;  %v5839_v29 = vmul.f32 %v9904_v1, %v11777_v0 }
0x26ef   : > { %5855 = vrot.lane.b32.xlu0 %v5846_v50, %s10011_s30  ;;  %5853 = vrot.lane.b32.xlu1 %v5845_v6, %s10011_s30  ;;  %v5844_v8 = vmul.f32 %v7933_v36, %v5840_v17  ;;  %v5843_v34 = vmul.f32 %v7932_v54, %v5839_v29 }
0x26f1   : > { %v5848_v5 = vadd.f32 %v7935_v53, %v5844_v8  ;;  %v5847_v9 = vadd.f32 %v7934_v38, %v5843_v34 }
0x26f3   : > { %5859 = vrot.lane.b32.xlu0 %v5848_v5, %s10011_s30  ;;  %5857 = vrot.lane.b32.xlu1 %v5847_v9, %s10011_s30 }
0x2759   : > { %v4455_v27 = vpop.permute.xlu0 %4454  ;;  %v4457_v0 = vpop.permute.xlu1 %4456 }
0x275a   : > { %4467 = vst.msk [vmem:[%s10103_s20] sm:$0xff] %vm4466_vm9, %v4455_v27  ;;  %4468 = vst.msk [vmem:[%s10103_s20 + $0x8] sm:$0xff] %vm4466_vm9, %v4457_v0 }
0x275d   : > { %v4461_v51 = vpop.permute.xlu0 %4460  ;;  %v4459_v44 = vpop.permute.xlu1 %4458 }
0x275e   : > { %4470 = vst.msk [vmem:[%s10103_s20 + $0x18] sm:$0xff] %vm4466_vm9, %v4461_v51  ;;  %4469 = vst.msk [vmem:[%s10103_s20 + $0x10] sm:$0xff] %vm4466_vm9, %v4459_v44 }
0x2761   : > { %v5856_v30 = vpop.permute.xlu0 %5855  ;;  %v5854_v24 = vpop.permute.xlu1 %5853 }
0x2762   : > { %5867 = vst.msk [vmem:[%s10103_s20 + $0x8] sm:$0xff] %vm5865_vm10, %v5856_v30  ;;  %5866 = vst.msk [vmem:[%s10103_s20] sm:$0xff] %vm5865_vm10, %v5854_v24 }
0x2765   : > { %v5860_v25 = vpop.permute.xlu0 %5859  ;;  %v5858_v41 = vpop.permute.xlu1 %5857 }
0x2766   : > { %5869 = vst.msk [vmem:[%s10103_s20 + $0x18] sm:$0xff] %vm5865_vm10, %v5860_v25  ;;  %5868 = vst.msk [vmem:[%s10103_s20 + $0x10] sm:$0xff] %vm5865_vm10, %v5858_v41 }
0x2767 PF: > { %p7936_p8 = scmp.ne.s32.totalorder %s10088_s12, 1 }
0x2768   : > { %v7943_v18 = vld [vmem:[%s12429_s0 + $0x1b0] sm:$0xff] (!%p7936_p8)  ;;  %v11854_v16 = vld [vmem:[%s12429_s0 + $0x1b8] sm:$0xff] (!%p7936_p8)  ;;  %v11859_v19 = vld [vmem:[%s12429_s0 + $0x1c0] sm:$0xff] (!%p7936_p8)  ;;  %vm5907_vm11 = vcmask (!%p7936_p8), 261120   ;;  %vm6298_vm12 = vcmask (!%p7936_p8), 523264   ;;  %s10020_s30 = smov (!%p7936_p8), 96  }
0x2769   : > { %5873 = sbr.rel (%p7936_p8) target bundleno = 13349 (0x3425), region = 64  ;;  %v5917_v2 = vadd.f32 (!%p7936_p8), %v11854_v16, %v7943_v18  ;;  %v5918_v55 = vsel (!%p7936_p8), %vm5907_vm11, %v11859_v19, 0.0  ;;  %v7937_v33 = vld [vmem:[%s12429_s0 + $0x180] sm:$0xff] (!%p7936_p8)  ;;  %v7938_v59 = vld [vmem:[%s12429_s0 + $0x188] sm:$0xff] (!%p7936_p8)  ;;  %v7939_v31 = vld [vmem:[%s12429_s0 + $0x190] sm:$0xff] (!%p7936_p8)  ;;  %vm5874_vm13 = vcmask (!%p7936_p8), 1047808  }
0x276a   : > { %v5906_v62 = vadd.f32 (!%p7936_p8), %v7938_v59, %v7937_v33  ;;  %v5908_v12 = vsel (!%p7936_p8), %vm5907_vm11, %v7939_v31, 0.0  ;;  %v7946_v11 = vld [vmem:[%s12429_s0 + $0x1c8] sm:$0xff] (!%p7936_p8)  ;;  %v7947_v23 = vld [vmem:[%s12429_s0 + $0x1d0] sm:$0xff] (!%p7936_p8)  ;;  %v7948_v46 = vld [vmem:[%s12429_s0 + $0x1d8] sm:$0xff] (!%p7936_p8)  ;;  %vm10023_vm14 = vmmov (!%p7936_p8), 0   ;;  %vm6671_vm15 = vcmask (!%p7936_p8), 1040384  }
0x276b   : > { %v5919_v47 = vadd.f32 (!%p7936_p8), %v5918_v55, %v5917_v2  ;;  %v5922_v35 = vadd.f32 (!%p7936_p8), %v7947_v23, %v7946_v11  ;;  %v5923_v45 = vsel (!%p7936_p8), %vm5907_vm11, %v7948_v46, 0.0  ;;  %v7940_v48 = vld [vmem:[%s12429_s0 + $0x198] sm:$0xff] (!%p7936_p8)  ;;  %v7941_v3 = vld [vmem:[%s12429_s0 + $0x1a0] sm:$0xff] (!%p7936_p8)  ;;  %v7942_v63 = vld [vmem:[%s12429_s0 + $0x1a8] sm:$0xff] (!%p7936_p8)  ;;  %vm6865_vm0 = vcmask (!%p7936_p8), 254976  }
0x276c   : > { %v5909_v15 = vadd.f32 (!%p7936_p8), %v5908_v12, %v5906_v62  ;;  %v5912_v57 = vadd.f32 (!%p7936_p8), %v7941_v3, %v7940_v48  ;;  %v5913_v20 = vsel (!%p7936_p8), %vm5907_vm11, %v7942_v63, 0.0  ;;  %vm6892_vm1 = vcmask (!%p7936_p8), 1041409  }
0x276d   : > { %5920 = vadd.xlane.f32.xlu1 (!%p7936_p8), %v5919_v47  ;;  %v5924_v21 = vadd.f32 (!%p7936_p8), %v5923_v45, %v5922_v35 }
0x276e   : > { %5910 = vadd.xlane.f32.xlu0 (!%p7936_p8), %v5909_v15  ;;  %v5914_v7 = vadd.f32 (!%p7936_p8), %v5913_v20, %v5912_v57  ;;  %v7961_v15 = vld [vmem:[%s12431_s2 + $0x480] sm:$0xff] (!%p7936_p8)  ;;  %v7962_v57 = vld [vmem:[%s12431_s2 + $0x488] sm:$0xff] (!%p7936_p8) }
0x276f   : > { %v9497_v20 = vpack.c.bf16 (!%p7936_p8), %v7962_v57, %v7961_v15 }
0x2771   : > { %5925 = vadd.xlane.f32.xlu1 %v5924_v21  ;;  %v7979_v21 = vld [vmem:[%s12431_s2 + $0x510] sm:$0xff] }
0x2772   : > { %5915 = vadd.xlane.f32.xlu0 %v5914_v7  ;;  %v7980_v7 = vld [vmem:[%s12431_s2 + $0x518] sm:$0xff] }
0x27fa   : > { %v5921_v60 = vpop.xlane.xlu1 %5920 }
0x27fb   : > { %v5911_v26 = vpop.xlane.xlu0 %5910 }
0x27fe   : > { %v5926_v22 = vpop.xlane.xlu1 %5925 }
0x27ff   : > { %v5934_v43 = vadd.f32 %v5926_v22, %v5921_v60  ;;  %v5916_v40 = vpop.xlane.xlu0 %5915  ;;  %v9499_v60 = vpack.c.bf16 %v7980_v7, %v7979_v21  ;;  %v7964_v22 = vld [vmem:[%s12431_s2 + $0x498] sm:$0xff] }
0x2800   : > { %v5927_v61 = vadd.f32 %v5916_v40, %v5911_v26  ;;  %v7963_v26 = vld [vmem:[%s12431_s2 + $0x490] sm:$0xff]  ;;  %v7981_v40 = vld [vmem:[%s12431_s2 + $0x520] sm:$0xff] }
0x2801   : > { %v5935_v56 = vrot.slane %v5934_v43, 4 }
0x2802   : > { %v5928_v39 = vrot.slane %v5927_v61, 4 }
0x2803   : > { %v5936_v14 = vadd.f32 %v5935_v56, %v5934_v43  ;;  %v9501_v43 = vpack.c.bf16 %v7964_v22, %v7963_v26  ;;  %v7965_v56 = vld [vmem:[%s12431_s2 + $0x4a0] sm:$0xff] }
0x2804   : > { %v5929_v13 = vadd.f32 %v5928_v39, %v5927_v61  ;;  %v7982_v61 = vld [vmem:[%s12431_s2 + $0x528] sm:$0xff] }
0x2805   : > { %v5937_v37 = vrot.slane %v5936_v14, 2  ;;  %v9503_v39 = vpack.c.bf16 %v7982_v61, %v7981_v40 }
0x2806   : > { %v5930_v28 = vrot.slane %v5929_v13, 2 }
0x2807   : > { %v5938_v52 = vadd.f32 %v5937_v37, %v5936_v14  ;;  %v7966_v14 = vld [vmem:[%s12431_s2 + $0x4a8] sm:$0xff]  ;;  %v7984_v37 = vld [vmem:[%s12431_s2 + $0x538] sm:$0xff] }
0x2808   : > { %v5931_v36 = vadd.f32 %v5930_v28, %v5929_v13  ;;  %v7983_v13 = vld [vmem:[%s12431_s2 + $0x530] sm:$0xff]  ;;  %v9505_v28 = vpack.c.bf16 %v7966_v14, %v7965_v56 }
0x2809   : > { %v5939_v54 = vrot.slane %v5938_v52, 1 }
0x280a   : > { %v5932_v49 = vrot.slane %v5931_v36, 1 }
0x280b   : > { %v5940_v4 = vadd.f32 %v5939_v54, %v5938_v52  ;;  %v9507_v52 = vpack.c.bf16 %v7984_v37, %v7983_v13  ;;  %v7968_v54 = vld [vmem:[%s12431_s2 + $0x4b8] sm:$0xff] }
0x280c   : > { %v5933_v58 = vadd.f32 %v5932_v49, %v5931_v36  ;;  %v7967_v36 = vld [vmem:[%s12431_s2 + $0x4b0] sm:$0xff]  ;;  %v7985_v49 = vld [vmem:[%s12431_s2 + $0x540] sm:$0xff] }
0x280d   : > { %v5942_v10 = vmul.f32 0.00021701389, %v5940_v4  ;;  %v7986_v4 = vld [vmem:[%s12431_s2 + $0x548] sm:$0xff] }
0x280e   : > { %v5941_v53 = vmul.f32 0.00021701389, %v5933_v58  ;;  %v9509_v58 = vpack.c.bf16 %v7968_v54, %v7967_v36 }
0x280f   : > { %v11894_v38 = vsub.f32 %v7946_v11, %v5942_v10  ;;  %v11896_v42 = vsub.f32 %v7947_v23, %v5942_v10  ;;  %v11898_v32 = vsub.f32 %v7948_v46, %v5942_v10  ;;  %v11900_v1 = vsub.f32 %v7943_v18, %v5942_v10 }
0x2810   : > { %v11902_v50 = vsub.f32 %v7940_v48, %v5941_v53  ;;  %v11904_v6 = vsub.f32 %v7941_v3, %v5941_v53  ;;  %v11906_v17 = vsub.f32 %v7942_v63, %v5941_v53  ;;  %v11908_v29 = vsub.f32 %v7937_v33, %v5941_v53  ;;  %v7977_v48 = vld [vmem:[%s12431_s2 + $0x500] sm:$0xff]  ;;  %v7978_v3 = vld [vmem:[%s12431_s2 + $0x508] sm:$0xff] }
0x2811   : > { %v11910_v8 = vsub.f32 %v7938_v59, %v5941_v53  ;;  %v11912_v34 = vsub.f32 %v7939_v31, %v5941_v53  ;;  %v5964_v5 = vmul.f32 %v11894_v38, %v11894_v38  ;;  %v5965_v9 = vmul.f32 %v11896_v42, %v11896_v42 }
0x2812   : > { %v5958_v27 = vmul.f32 %v11902_v50, %v11902_v50  ;;  %v5959_v0 = vmul.f32 %v11904_v6, %v11904_v6  ;;  %v5960_v51 = vmul.f32 %v11906_v17, %v11906_v17  ;;  %v5955_v44 = vmul.f32 %v11908_v29, %v11908_v29 }
0x2813   : > { %v5956_v30 = vmul.f32 %v11910_v8, %v11910_v8  ;;  %v5957_v24 = vmul.f32 %v11912_v34, %v11912_v34  ;;  %v5966_v25 = vmul.f32 %v11898_v32, %v11898_v32  ;;  %v11934_v2 = vsub.f32 %v11854_v16, %v5942_v10 }
0x2814   : > { %v5972_v41 = vadd.f32 %v5959_v0, %v5958_v27  ;;  %v5973_v18 = vsel %vm5907_vm11, %v5960_v51, 0.0  ;;  %v11937_v55 = vsub.f32 %v11859_v19, %v5942_v10  ;;  %v5961_v31 = vmul.f32 %v11900_v1, %v11900_v1  ;;  %v7969_v10 = vld [vmem:[%s12431_s2 + $0x4c0] sm:$0xff]  ;;  %v7994_v27 = vld [vmem:[%s12431_s2 + $0x588] sm:$0xff]  ;;  %v7987_v0 = vld [vmem:[%s12431_s2 + $0x550] sm:$0xff] }
0x2815   : > { %v5967_v33 = vadd.f32 %v5956_v30, %v5955_v44  ;;  %v5968_v59 = vsel %vm5907_vm11, %v5957_v24, 0.0  ;;  %v5982_v12 = vadd.f32 %v5965_v9, %v5964_v5  ;;  %v5962_v11 = vmul.f32 %v11934_v2, %v11934_v2  ;;  %v7970_v5 = vld [vmem:[%s12431_s2 + $0x4c8] sm:$0xff]  ;;  %v7993_v9 = vld [vmem:[%s12431_s2 + $0x580] sm:$0xff]  ;;  %v7988_v51 = vld [vmem:[%s12431_s2 + $0x558] sm:$0xff] }
0x2816   : > { %v5974_v62 = vadd.f32 %v5973_v18, %v5972_v41  ;;  %v5963_v23 = vmul.f32 %v11937_v55, %v11937_v55  ;;  %v5983_v16 = vsel %vm5907_vm11, %v5966_v25, 0.0  ;;  %v9495_v63 = vpack.c.bf16 %v7978_v3, %v7977_v48  ;;  %v7995_v30 = vld [vmem:[%s12431_s2 + $0x590] sm:$0xff]  ;;  %v7996_v24 = vld [vmem:[%s12431_s2 + $0x598] sm:$0xff] }
0x2817   : > { %v5969_v46 = vadd.f32 %v5968_v59, %v5967_v33  ;;  %v5977_v19 = vadd.f32 %v5962_v11, %v5961_v31  ;;  %v5984_v35 = vadd.f32 %v5983_v16, %v5982_v12  ;;  %v9511_v53 = vpack.c.bf16 %v7986_v4, %v7985_v49  ;;  %v7971_v33 = vld [vmem:[%s12431_s2 + $0x4d0] sm:$0xff]  ;;  %v7972_v59 = vld [vmem:[%s12431_s2 + $0x4d8] sm:$0xff]  ;;  %v7989_v31 = vld [vmem:[%s12431_s2 + $0x560] sm:$0xff] }
0x2818   : > { %5975 = vadd.xlane.f32.xlu1 %v5974_v62  ;;  %v5978_v47 = vsel %vm5907_vm11, %v5963_v23, 0.0  ;;  %9496 = vmatprep.subr.bf16.mxu0 %v9495_v63  ;;  %v9527_v44 = vpack.c.bf16 %v7994_v27, %v7993_v9  ;;  %v9513_v25 = vpack.c.bf16 %v7970_v5, %v7969_v10  ;;  %v9531_v41 = vpack.c.bf16 %v7996_v24, %v7995_v30  ;;  %v7990_v62 = vld [vmem:[%s12431_s2 + $0x568] sm:$0xff]  ;;  %v7973_v23 = vld [vmem:[%s12431_s2 + $0x4e0] sm:$0xff]  ;;  %v7991_v16 = vld [vmem:[%s12431_s2 + $0x570] sm:$0xff] }
0x2819   : > { %5970 = vadd.xlane.f32.xlu0 %v5969_v46  ;;  %v5979_v45 = vadd.f32 %v5978_v47, %v5977_v19  ;;  %9498 = vmatpush3.bf16.msra.mxu0 %v9497_v20  ;;  %v9515_v18 = vpack.c.bf16 %v7988_v51, %v7987_v0  ;;  %v9517_v12 = vpack.c.bf16 %v7972_v59, %v7971_v33  ;;  %v7974_v46 = vld [vmem:[%s12431_s2 + $0x4e8] sm:$0xff]  ;;  %v7992_v19 = vld [vmem:[%s12431_s2 + $0x578] sm:$0xff]  ;;  %v7951_v10 = vld [vmem:[%s12430_s1 + $0x190] sm:$0xff] }
0x281a   : > { %9500 = vmatprep.subr.bf16.mxu0 %v9499_v60  ;;  %9528 = vmatprep.subr.bf16.mxu1 %v9527_v44  ;;  %v9519_v11 = vpack.c.bf16 %v7990_v62, %v7989_v31  ;;  %v9521_v47 = vpack.c.bf16 %v7974_v46, %v7973_v23  ;;  %v7976_v48 = vld [vmem:[%s12431_s2 + $0x4f8] sm:$0xff]  ;;  %v7950_v4 = vld [vmem:[%s12430_s1 + $0x188] sm:$0xff]  ;;  %v7957_v24 = vld [vmem:[%s12430_s1 + $0x1c0] sm:$0xff] }
0x281b   : > { %9530 = vmatpush3.bf16.msra.mxu1 %v9527_v44  ;;  %v7954_v5 = vld [vmem:[%s12430_s1 + $0x1a8] sm:$0xff]  ;;  %v7953_v44 = vld [vmem:[%s12430_s1 + $0x1a0] sm:$0xff]  ;;  %v7956_v30 = vld [vmem:[%s12430_s1 + $0x1b8] sm:$0xff] }
0x281c   : > { %5985 = vadd.xlane.f32.xlu1 %v5984_v35  ;;  %9532 = vmatprep.subr.bf16.mxu1 %v9531_v41  ;;  %v9523_v35 = vpack.c.bf16 %v7992_v19, %v7991_v16  ;;  %v7952_v59 = vld [vmem:[%s12430_s1 + $0x198] sm:$0xff]  ;;  %v7959_v23 = vld [vmem:[%s12430_s1 + $0x1d0] sm:$0xff] }
0x281d   : > { %5980 = vadd.xlane.f32.xlu0 %v5979_v45  ;;  %9502 = vmatpush3.bf16.msra.mxu0 %v9501_v43  ;;  %v7975_v45 = vld [vmem:[%s12431_s2 + $0x4f0] sm:$0xff] }
0x281e   : > { %9504 = vmatprep.subr.bf16.mxu0 %v9503_v39  ;;  %v9525_v3 = vpack.c.bf16 %v7976_v48, %v7975_v45  ;;  %v7958_v45 = vld [vmem:[%s12430_s1 + $0x1c8] sm:$0xff] }
0x281f   : > { %9534 = vmatpush3.bf16.msra.mxu1 %v9531_v41 }
0x2821   : > { %9506 = vmatpush3.bf16.msra.mxu0 %v9505_v28 }
0x2822   : > { %9508 = vmatprep.subr.bf16.mxu0 %v9507_v52 }
0x2825   : > { %9510 = vmatpush3.bf16.msra.mxu0 %v9509_v58 }
0x2826   : > { %9512 = vmatprep.subr.bf16.mxu0 %v9511_v53  ;;  %v7949_v53 = vld [vmem:[%s12430_s1 + $0x180] sm:$0xff] }
0x2829   : > { %9514 = vmatpush3.bf16.msra.mxu0 %v9513_v25 }
0x282a   : > { %9516 = vmatprep.subr.bf16.mxu0 %v9515_v18  ;;  %v7960_v18 = vld [vmem:[%s12430_s1 + $0x1d8] sm:$0xff] }
0x282d   : > { %9518 = vmatpush3.bf16.msra.mxu0 %v9517_v12 }
0x282e   : > { %9520 = vmatprep.subr.bf16.mxu0 %v9519_v11 }
0x2831   : > { %9522 = vmatpush3.bf16.msra.mxu0 %v9521_v47 }
0x2832   : > { %9524 = vmatprep.subr.bf16.mxu0 %v9523_v35 }
0x2835   : > { %9526 = vmatpush3.bf16.msra.mxu0 %v9525_v3 }
0x28a5   : > { %v5976_v63 = vpop.xlane.xlu1 %5975 }
0x28a6   : > { %v5971_v15 = vpop.xlane.xlu0 %5970 }
0x28a7   : > { %v5987_v57 = vadd.f32 %v5976_v63, %v5971_v15 }
0x28a9   : > { %v5988_v20 = vrot.slane %v5987_v57, 4  ;;  %v5986_v21 = vpop.xlane.xlu1 %5985 }
0x28aa   : > { %v5981_v7 = vpop.xlane.xlu0 %5980 }
0x28ab   : > { %v5989_v60 = vadd.f32 %v5988_v20, %v5987_v57  ;;  %v5994_v26 = vadd.f32 %v5986_v21, %v5981_v7 }
0x28ad   : > { %v5990_v22 = vrot.slane %v5989_v60, 2  ;;  %v5995_v43 = vrot.slane %v5994_v26, 4 }
0x28af   : > { %v5991_v40 = vadd.f32 %v5990_v22, %v5989_v60  ;;  %v5996_v61 = vadd.f32 %v5995_v43, %v5994_v26 }
0x28b1   : > { %v5992_v56 = vrot.slane %v5991_v40, 1  ;;  %v5997_v39 = vrot.slane %v5996_v61, 2 }
0x28b3   : > { %v5993_v14 = vadd.f32 %v5992_v56, %v5991_v40  ;;  %v5998_v13 = vadd.f32 %v5997_v39, %v5996_v61 }
0x28b5   : > { %v6001_v37 = vmul.f32 0.00021701389, %v5993_v14  ;;  %v5999_v28 = vrot.slane %v5998_v13, 1 }
0x28b7   : > { %v6003_v52 = vadd.f32 1e-05, %v6001_v37  ;;  %v6000_v36 = vadd.f32 %v5999_v28, %v5998_v13 }
0x28b9   : > { %9907 = vrsqrt.f32 %v6003_v52  ;;  %v6002_v54 = vmul.f32 0.00021701389, %v6000_v36 }
0x28bb   : > { %v6004_v49 = vadd.f32 1e-05, %v6002_v54  ;;  %v8003_v54 = vld [vmem:[%s12432_s3 + $0x200] sm:$0xff] }
0x28bd   : > { %9909 = vrsqrt.f32 %v6004_v49  ;;  %v8004_v49 = vld [vmem:[%s12432_s3 + $0x208] sm:$0xff] }
0x28c3   : > { %v9908_v58 = vpop.eup %9907 }
0x28c4   : > { %v6008_v9 = vmul.f32 %v9908_v58, %v11910_v8  ;;  %v6009_v27 = vmul.f32 %v9908_v58, %v11912_v34  ;;  %v6007_v0 = vmul.f32 %v9908_v58, %v11908_v29  ;;  %v6012_v51 = vmul.f32 %v9908_v58, %v11906_v17  ;;  %v7955_v17 = vld [vmem:[%s12430_s1 + $0x1b0] sm:$0xff] }
0x28c5   : > { %v6011_v8 = vmul.f32 %v9908_v58, %v11904_v6  ;;  %v6010_v34 = vmul.f32 %v9908_v58, %v11902_v50  ;;  %v8005_v58 = vld [vmem:[%s12432_s3 + $0x210] sm:$0xff] }
0x28c6   : > { %v6020_v25 = vmul.f32 %v7950_v4, %v6008_v9  ;;  %v6021_v29 = vmul.f32 %v7951_v10, %v6009_v27  ;;  %v6019_v41 = vmul.f32 %v7949_v53, %v6007_v0  ;;  %v6024_v33 = vmul.f32 %v7954_v5, %v6012_v51  ;;  %v8008_v9 = vld [vmem:[%s12432_s3 + $0x228] sm:$0xff]  ;;  %v8009_v0 = vld [vmem:[%s12432_s3 + $0x230] sm:$0xff]  ;;  %v8010_v51 = vld [vmem:[%s12432_s3 + $0x238] sm:$0xff] }
0x28c7   : > { %v9910_v31 = vpop.eup %9909  ;;  %v6023_v6 = vmul.f32 %v7953_v44, %v6011_v8  ;;  %v6022_v19 = vmul.f32 %v7952_v59, %v6010_v34 }
0x28c8   : > { %v6014_v50 = vmul.f32 %v9910_v31, %v11934_v2  ;;  %v6032_v62 = vadd.f32 %v7956_v30, %v6020_v25  ;;  %v6015_v12 = vmul.f32 %v9910_v31, %v11937_v55  ;;  %v6033_v11 = vadd.f32 %v7957_v24, %v6021_v29 }
0x28c9   : > { %v6031_v46 = vadd.f32 %v7955_v17, %v6019_v41  ;;  %v6036_v16 = vadd.f32 %v7960_v18, %v6024_v33  ;;  %v6018_v2 = vmul.f32 %v9910_v31, %v11898_v32  ;;  %v6035_v48 = vadd.f32 %v7959_v23, %v6023_v6 }
0x28ca   : > { %v6026_v47 = vmul.f32 %v7950_v4, %v6014_v50  ;;  %9911 = vtanh.f32 %v6032_v62  ;;  %v6027_v35 = vmul.f32 %v7951_v10, %v6015_v12  ;;  %v6013_v55 = vmul.f32 %v9910_v31, %v11900_v1  ;;  %v8006_v10 = vld [vmem:[%s12432_s3 + $0x218] sm:$0xff] }
0x28cb   : > { %9913 = vtanh.f32 %v6033_v11  ;;  %v6017_v3 = vmul.f32 %v9910_v31, %v11896_v42  ;;  %v6030_v57 = vmul.f32 %v7954_v5, %v6018_v2  ;;  %v6034_v20 = vadd.f32 %v7958_v45, %v6022_v19  ;;  %v8007_v5 = vld [vmem:[%s12432_s3 + $0x220] sm:$0xff] }
0x28cc   : > { %v6038_v63 = vadd.f32 %v7956_v30, %v6026_v47  ;;  %v6039_v15 = vadd.f32 %v7957_v24, %v6027_v35  ;;  %9915 = vtanh.f32 %v6031_v46  ;;  %v6025_v21 = vmul.f32 %v7949_v53, %v6013_v55  ;;  %v8017_v30 = vld [vmem:[%s12433_s4 + $0x180] sm:$0xff]  ;;  %v8018_v24 = vld [vmem:[%s12433_s4 + $0x188] sm:$0xff] }
0x28cd   : > { %9917 = vtanh.f32 %v6036_v16  ;;  %v6016_v7 = vmul.f32 %v9910_v31, %v11894_v38  ;;  %v6042_v60 = vadd.f32 %v7960_v18, %v6030_v57  ;;  %v6029_v26 = vmul.f32 %v7953_v44, %v6017_v3 }
0x28ce   : > { %9919 = vtanh.f32 %v6038_v63  ;;  %v6037_v32 = vadd.f32 %v7955_v17, %v6025_v21  ;;  %v9535_v4 = vpack.c.bf16 %v8004_v49, %v8003_v54  ;;  %v9539_v53 = vpack.c.bf16 %v8006_v10, %v8005_v58  ;;  %v7998_v17 = vld [vmem:[%s12435_s6 + $0x20] ss:$0 sm:$0xff]  ;;  %v8019_v21 = vld [vmem:[%s12433_s4 + $0x190] sm:$0xff] }
0x28cf   : > { %9921 = vtanh.f32 %v6039_v15  ;;  %v6028_v22 = vmul.f32 %v7952_v59, %v6016_v7  ;;  %v6041_v1 = vadd.f32 %v7959_v23, %v6029_v26  ;;  %v9543_v27 = vpack.c.bf16 %v8008_v9, %v8007_v5  ;;  %v8020_v7 = vld [vmem:[%s12433_s4 + $0x198] sm:$0xff]  ;;  %v8012_v26 = vld [vmem:[%s12435_s6 + $0x24] ss:$0 sm:$0xff] }
0x28d0   : > { %9923 = vtanh.f32 %v6035_v48  ;;  %9536 = vmatprep.subr.bf16.mxu1 %v9535_v4  ;;  %v9547_v44 = vpack.c.bf16 %v8010_v51, %v8009_v0  ;;  %v9551_v8 = vpack.c.bf16 %v8018_v24, %v8017_v30 }
0x28d1   : > { %9925 = vtanh.f32 %v6034_v20  ;;  %v6040_v40 = vadd.f32 %v7958_v45, %v6028_v22 }
0x28d2   : > { %9927 = vtanh.f32 %v6042_v60  ;;  %v9555_v60 = vpack.c.bf16 %v8020_v7, %v8019_v21 }
0x28d3   : > { %9929 = vtanh.f32 %v6037_v32 }
0x28d4   : > { %v9912_v42 = vpop.eup %9911  ;;  %9931 = vtanh.f32 %v6041_v1 }
0x28d5   : > { %v9914_v43 = vpop.eup %9913  ;;  %6174 = vmatprep.mubr.f32.mxu0 %v9912_v42  ;;  %9933 = vtanh.f32 %v6040_v40 }
0x28d6   : > { %v9916_v61 = vpop.eup %9915  ;;  %9028 = vmatprep.mubr.msk.f32.mxu1 %vm5907_vm11, %v9914_v43 }
0x28d7   : > { %v9918_v38 = vpop.eup %9917  ;;  %6175 = vmatmul.mubr.f32.vlgmr.msra.gmra.mrb[0].mxu0 %v9916_v61 }
0x28d8   : > { %v9920_v56 = vpop.eup %9919  ;;  %9029 = vmatmul.mubr.msk.f32.vlgmr.msra.gmra.mrb[0].mxu1 %vm5907_vm11, %v9918_v38 }
0x28d9   : > { %v9922_v39 = vpop.eup %9921  ;;  %9538 = vmatpush3.bf16.msra.mxu1 %v9535_v4 }
0x28da   : > { %v9924_v14 = vpop.eup %9923  ;;  %9031 = vmatprep.mubr.msk.f32.mxu1 %vm5907_vm11, %v9922_v39  ;;  %9540 = vmatprep.subr.bf16.mxu1 %v9539_v53 }
0x28db   : > { %v9926_v13 = vpop.eup %9925  ;;  %6179 = vmatprep.mubr.f32.mxu0 %v9924_v14 }
0x28dc   : > { %v9928_v37 = vpop.eup %9927  ;;  %6180 = vmatmul.mubr.f32.gmra.mrb[2].mxu0 %v9926_v13 }
0x28dd   : > { %9032 = vmatmul.mubr.msk.f32.gmra.mrb[2].mxu1 %vm5907_vm11, %v9928_v37  ;;  %6184 = vmatprep.mubr.f32.mxu0 %v9920_v56  ;;  %v9930_v28 = vpop.eup %9929  ;;  %v8022_v56 = vld [vmem:[%s12435_s6 + $0x21] ss:$0 sm:$0xff] }
0x28de   : > { %v9932_v52 = vpop.eup %9931  ;;  %9542 = vmatpush3.bf16.msra.mxu1 %v9539_v53 }
0x28df   : > { %v9934_v36 = vpop.eup %9933  ;;  %9544 = vmatprep.subr.bf16.mxu1 %v9543_v27 }
0x28e0   : > { %6185 = vmatmul.mubr.f32.gmra.mrb[4].mxu0 %v9930_v28 }
0x28e1   : > { %6189 = vmatprep.mubr.f32.mxu0 %v9932_v52 }
0x28e2   : > { %9546 = vmatpush3.bf16.msra.mxu1 %v9543_v27 }
0x28e3   : > { %9548 = vmatprep.subr.bf16.mxu1 %v9547_v44 }
0x28e4   : > { %6190 = vmatmul.mubr.f32.gmra.mrb[6].mxu0 %v9934_v36 }
0x28e6   : > { %9550 = vmatpush3.bf16.msra.mxu1 %v9547_v44 }
0x28e7   : > { %9552 = vmatprep.subr.bf16.mxu1 %v9551_v8 }
0x29aa   : > { %v8405_v34 = vpop.f32.mrb[0].mxu0 }
0x29ab   : > { %v9030_v25 = vpop.f32.mrb[0].mxu1  ;;  %v8406_v29 = vpop.f32.mrb[1].mxu0 }
0x29ac   : > { %v8407_v41 = vadd.f32 %v8406_v29, %v8405_v34  ;;  %v6261_v18 = vpop.f32.mrb[1].mxu1 }
0x29ae   : > { %v6177_v33 = vadd.f32 %v8407_v41, %v7998_v17 }
0x29af   : > { %v8408_v59 = vpop.f32.mrb[2].mxu0 }
0x29b0   : > { %v6262_v31 = vadd.f32 %v6261_v18, %v6177_v33  ;;  %v9033_v6 = vpop.f32.mrb[2].mxu1  ;;  %v8409_v50 = vpop.f32.mrb[3].mxu0 }
0x29b1   : > { %v8410_v62 = vadd.f32 %v8409_v50, %v8408_v59  ;;  %v6271_v12 = vpop.f32.mrb[3].mxu1 }
0x29b2   : > { %9935 = vtanh.f32 %v6262_v31 }
0x29b3   : > { %v6182_v11 = vadd.f32 %v8410_v62, %v7998_v17  ;;  %v8411_v23 = vpop.f32.mrb[4].mxu0 }
0x29b4   : > { %v8412_v46 = vpop.f32.mrb[5].mxu0 }
0x29b5   : > { %v6267_v16 = vadd.f32 %v9030_v25, %v6182_v11  ;;  %v8413_v19 = vadd.f32 %v8412_v46, %v8411_v23 }
0x29b7   : > { %9937 = vtanh.f32 %v6267_v16  ;;  %v6187_v47 = vadd.f32 %v8413_v19, %v7998_v17  ;;  %v8414_v35 = vpop.f32.mrb[6].mxu0 }
0x29b8   : > { %v8415_v45 = vpop.f32.mrb[7].mxu0 }
0x29b9   : > { %v6272_v2 = vadd.f32 %v6271_v12, %v6187_v47  ;;  %v8416_v48 = vadd.f32 %v8415_v45, %v8414_v35 }
0x29bb   : > { %9939 = vtanh.f32 %v6272_v2  ;;  %v6192_v55 = vadd.f32 %v8416_v48, %v7998_v17 }
0x29bc   : > { %v9936_v3 = vpop.eup %9935 }
0x29bd   : > { %v6277_v63 = vadd.f32 %v9033_v6, %v6192_v55  ;;  %9050 = vmatprep.mubr.msk.f32.mxu1 %vm6298_vm12, %v9936_v3 }
0x29bf   : > { %9941 = vtanh.f32 %v6277_v63 }
0x29c1   : > { %v9938_v15 = vpop.eup %9937 }
0x29c2   : > { %9051 = vmatmul.mubr.msk.f32.vlgmr.msra.gmra.mrb[4].mxu1 %vm6298_vm12, %v9938_v15 }
0x29c3   : > { %9554 = vmatpush3.bf16.msra.mxu1 %v9551_v8 }
0x29c4   : > { %9556 = vmatprep.subr.bf16.mxu1 %v9555_v60 }
0x29c5   : > { %v9940_v57 = vpop.eup %9939 }
0x29c6   : > { %9053 = vmatprep.mubr.msk.f32.mxu1 %vm6298_vm12, %v9940_v57 }
0x29c7   : > { %9558 = vmatpush3.bf16.msra.mxu1 %v9555_v60 }
0x29c9   : > { %v9942_v20 = vpop.eup %9941 }
0x29ca   : > { %9054 = vmatmul.mubr.msk.f32.gmra.mrb[6].mxu1 %vm6298_vm12, %v9942_v20 }
0x2a95   : > { %v9052_v32 = vpop.f32.mrb[4].mxu1 }
0x2a96   : > { %v6377_v22 = vpop.f32.mrb[5].mxu1  ;;  %v6383_v42 = vadd.f32 %v9052_v32, %v8012_v26 }
0x2a97   : > { %v6378_v1 = vadd.f32 %v8012_v26, %v6377_v22 }
0x2a99   : > { %9064 = vmatprep.mubr.msk.f32.mxu1 %vm5907_vm11, %v6378_v1 }
0x2a9a   : > { %9065 = vmatmul.mubr.msk.f32.vlgmr.msra.gmra.mrb[8].mxu1 %vm5907_vm11, %v6383_v42 }
0x2a9d   : > { %v9055_v43 = vpop.f32.mrb[6].mxu1 }
0x2a9e   : > { %v6387_v40 = vpop.f32.mrb[7].mxu1  ;;  %v6393_v38 = vadd.f32 %v9055_v43, %v8012_v26 }
0x2a9f   : > { %v6388_v61 = vadd.f32 %v8012_v26, %v6387_v40 }
0x2aa1   : > { %9067 = vmatprep.mubr.msk.f32.mxu1 %vm5907_vm11, %v6388_v61 }
0x2aa2   : > { %9068 = vmatmul.mubr.msk.f32.gmra.mrb[10].mxu1 %vm5907_vm11, %v6393_v38 }
0x2b6d   : > { %v9066_v39 = vpop.f32.mrb[8].mxu1 }
0x2b6e   : > { %v6490_v14 = vadd.f32 %v9066_v39, %v8022_v56  ;;  %v6484_v13 = vpop.f32.mrb[9].mxu1 }
0x2b6f   : > { %v6485_v37 = vadd.f32 %v8022_v56, %v6484_v13 }
0x2b70   : > { %v8028_v28 = vmul.f32 -1.442695, %v6490_v14 }
0x2b71   : > { %v8027_v52 = vmul.f32 -1.442695, %v6485_v37 }
0x2b72   : > { %9943 = vpow2.f32 %v8028_v28  ;;  %v8035_v28 = vld [vmem:[%s12433_s4 + $0x1c0] sm:$0xff] }
0x2b73   : > { %9945 = vpow2.f32 %v8027_v52  ;;  %v8036_v52 = vld [vmem:[%s12433_s4 + $0x1c8] sm:$0xff] }
0x2b75   : > { %v9069_v36 = vpop.f32.mrb[10].mxu1 }
0x2b76   : > { %v6500_v54 = vadd.f32 %v9069_v36, %v8022_v56  ;;  %v6494_v49 = vpop.f32.mrb[11].mxu1  ;;  %v8037_v36 = vld [vmem:[%s12433_s4 + $0x1d0] sm:$0xff] }
0x2b77   : > { %v6495_v4 = vadd.f32 %v8022_v56, %v6494_v49  ;;  %v9560_v49 = vpack.c.bf16 %v8036_v52, %v8035_v28 }
0x2b78   : > { %v8030_v58 = vmul.f32 -1.442695, %v6500_v54 }
0x2b79   : > { %v8029_v10 = vmul.f32 -1.442695, %v6495_v4 }
0x2b7a   : > { %9947 = vpow2.f32 %v8030_v58  ;;  %v10022_v58 = vmov 0.0  }
0x2b7b   : > { %9949 = vpow2.f32 %v8029_v10  ;;  %5875 = vst.msk [vmem:[%s10103_s20] sm:$0xff] %vm5874_vm13, %v10022_v58  ;;  %5876 = vst.msk [vmem:[%s10103_s20 + $0x8] sm:$0xff] %vm5874_vm13, %v10022_v58  ;;  %9078 = vmatprep.mubr.msk.f32.mxu1 %vm10023_vm14, %v10022_v58  ;;  %9097 = vmatprep.mubr.msk.f32.mxu0 %vm10023_vm14, %v10022_v58 }
0x2b7c   : > { %v9944_v53 = vpop.eup %9943  ;;  %5877 = vst.msk [vmem:[%s10103_s20 + $0x10] sm:$0xff] %vm5874_vm13, %v10022_v58  ;;  %5878 = vst.msk [vmem:[%s10103_s20 + $0x18] sm:$0xff] %vm5874_vm13, %v10022_v58 }
0x2b7d   : > { %v9946_v5 = vpop.eup %9945  ;;  %v6516_v9 = vadd.f32 1.0, %v9944_v53  ;;  %v8042_v53 = vld [vmem:[%s12432_s3 + $0x240] sm:$0xff] }
0x2b7e   : > { %v6515_v27 = vadd.f32 1.0, %v9946_v5  ;;  %v8043_v5 = vld [vmem:[%s12432_s3 + $0x248] sm:$0xff] }
0x2b7f   : > { %9951 = vrcp.f32 %v6516_v9  ;;  %v8044_v9 = vld [vmem:[%s12432_s3 + $0x250] sm:$0xff] }
0x2b80   : > { %9953 = vrcp.f32 %v6515_v27  ;;  %v9566_v27 = vpack.c.bf16 %v8043_v5, %v8042_v53 }
0x2b84   : > { %v9948_v0 = vpop.eup %9947 }
0x2b85   : > { %v9950_v51 = vpop.eup %9949  ;;  %v6518_v30 = vadd.f32 1.0, %v9948_v0  ;;  %v8045_v0 = vld [vmem:[%s12432_s3 + $0x258] sm:$0xff] }
0x2b86   : > { %v6517_v44 = vadd.f32 1.0, %v9950_v51  ;;  %v9569_v51 = vpack.c.bf16 %v8045_v0, %v8044_v9 }
0x2b88   : > { %9955 = vrcp.f32 %v6517_v44  ;;  %v8046_v44 = vld [vmem:[%s12432_s3 + $0x260] sm:$0xff] }
0x2b89   : > { %v9952_v24 = vpop.eup %9951  ;;  %9957 = vrcp.f32 %v6518_v30  ;;  %v8047_v30 = vld [vmem:[%s12432_s3 + $0x268] sm:$0xff] }
0x2b8a   : > { %v9954_v8 = vpop.eup %9953  ;;  %6533 = vrot.lane.b32.xlu1 %v9952_v24, %s10020_s30  ;;  %v9572_v24 = vpack.c.bf16 %v8047_v30, %v8046_v44 }
0x2b8b   : > { %6531 = vrot.lane.b32.xlu0 %v9954_v8, %s10020_s30 }
0x2b92   : > { %v9956_v34 = vpop.eup %9955 }
0x2b93   : > { %6535 = vrot.lane.b32.xlu1 %v9956_v34, %s10020_s30  ;;  %v9958_v25 = vpop.eup %9957 }
0x2b97   : > { %6537 = vrot.lane.b32.xlu1 %v9958_v25, %s10020_s30 }
0x2bfc   : > { %v6534_v29 = vpop.permute.xlu1 %6533 }
0x2bfd   : > { %v6544_v17 = vmul.f32 %v6534_v29, %v6490_v14  ;;  %v6532_v41 = vpop.permute.xlu0 %6531 }
0x2bfe   : > { %v6543_v18 = vmul.f32 %v6532_v41, %v6485_v37 }
0x2bff   : > { %v6556_v33 = vsel %vm5907_vm11, %v6544_v17, 0.0 }
0x2c00   : > { %6557 = vadd.xlane.f32.xlu1 %v6556_v33  ;;  %v6553_v59 = vsel %vm5907_vm11, %v6543_v18, 0.0 }
0x2c01   : > { %6554 = vadd.xlane.f32.xlu0 %v6553_v59 }
0x2c05   : > { %v6536_v31 = vpop.permute.xlu1 %6535 }
0x2c06   : > { %v6545_v6 = vmul.f32 %v6536_v31, %v6495_v4  ;;  %v8038_v4 = vld [vmem:[%s12433_s4 + $0x1d8] sm:$0xff] }
0x2c07   : > { %v9563_v10 = vpack.c.bf16 %v8038_v4, %v8037_v36 }
0x2c08   : > { %v6559_v50 = vsel %vm5907_vm11, %v6545_v6, 0.0 }
0x2c09   : > { %6560 = vadd.xlane.f32.xlu0 %v6559_v50  ;;  %v6538_v62 = vpop.permute.xlu1 %6537 }
0x2c0a   : > { %v6546_v12 = vmul.f32 %v6538_v62, %v6500_v54  ;;  %v10021_v54 = vmov 0.0|0.0  }
0x2c0b   : > { %9559 = vmatprep.subr.bf16.mxu1 %v10021_v54  ;;  %9565 = vmatprep.subr.bf16.mxu0 %v10021_v54 }
0x2c0c   : > { %v6562_v11 = vsel %vm5907_vm11, %v6546_v12, 0.0  ;;  %9561 = vmatpush3.bf16.msra.mxu1 %v9560_v49  ;;  %9567 = vmatpush3.bf16.msra.mxu0 %v9566_v27 }
0x2c0d   : > { %6563 = vadd.xlane.f32.xlu0 %v6562_v11  ;;  %9562 = vmatprep.subr.bf16.mxu1 %v10021_v54 }
0x2c0e   : > { %9568 = vmatprep.subr.bf16.mxu0 %v10021_v54 }
0x2c10   : > { %9564 = vmatpush3.bf16.msra.mxu1 %v9563_v10  ;;  %9570 = vmatpush3.bf16.msra.mxu0 %v9569_v51 }
0x2c11   : > { %9577 = vmatprep.subr.bf16.mxu1 %v10021_v54  ;;  %9571 = vmatprep.subr.bf16.mxu0 %v10021_v54 }
0x2c14   : > { %9573 = vmatpush3.bf16.msra.mxu0 %v9572_v24 }
0x2c15   : > { %9574 = vmatprep.subr.bf16.mxu0 %v10021_v54 }
0x2c8d   : > { %v6558_v23 = vpop.xlane.xlu1 %6557 }
0x2c8e   : > { %v6555_v46 = vpop.xlane.xlu0 %6554 }
0x2c8f   : > { %v6565_v16 = vadd.f32 %v6558_v23, %v6555_v46 }
0x2c91   : > { %v6566_v19 = vrot.slane %v6565_v16, 4 }
0x2c93   : > { %v6567_v47 = vadd.f32 %v6566_v19, %v6565_v16 }
0x2c95   : > { %v6568_v35 = vrot.slane %v6567_v47, 2 }
0x2c96   : > { %v6561_v45 = vpop.xlane.xlu0 %6560 }
0x2c97   : > { %v6569_v2 = vadd.f32 %v6568_v35, %v6567_v47 }
0x2c99   : > { %v6570_v48 = vrot.slane %v6569_v2, 1 }
0x2c9a   : > { %v6564_v55 = vpop.xlane.xlu0 %6563 }
0x2c9b   : > { %v6571_v3 = vadd.f32 %v6570_v48, %v6569_v2  ;;  %v6572_v63 = vadd.f32 %v6564_v55, %v6561_v45  ;;  %v8031_v2 = vld [vmem:[%s12436_s7 + $0x100] sm:$0xff]  ;;  %v8032_v48 = vld [vmem:[%s12436_s7 + $0x108] sm:$0xff] }
0x2c9d   : > { %v6573_v15 = vrot.slane %v6572_v63, 4  ;;  %v6579_v57 = vmul.f32 0.001953125, %v6571_v3 }
0x2c9f   : > { %v6574_v20 = vadd.f32 %v6573_v15, %v6572_v63  ;;  %v12169_v21 = vsub.f32 %v6544_v17, %v6579_v57  ;;  %v12171_v7 = vsub.f32 %v6543_v18, %v6579_v57  ;;  %v8033_v15 = vld [vmem:[%s12436_s7 + $0x110] sm:$0xff]  ;;  %v8034_v57 = vld [vmem:[%s12436_s7 + $0x118] sm:$0xff] }
0x2ca1   : > { %v6575_v60 = vrot.slane %v6574_v20, 2  ;;  %v6586_v26 = vmul.f32 %v12169_v21, %v12169_v21  ;;  %v6585_v32 = vmul.f32 %v12171_v7, %v12171_v7 }
0x2ca3   : > { %v6576_v22 = vadd.f32 %v6575_v60, %v6574_v20  ;;  %v6592_v1 = vsel %vm5907_vm11, %v6586_v26, 0.0  ;;  %v6589_v42 = vsel %vm5907_vm11, %v6585_v32, 0.0 }
0x2ca4   : > { %6593 = vadd.xlane.f32.xlu1 %v6592_v1  ;;  %6590 = vadd.xlane.f32.xlu0 %v6589_v42 }
0x2ca5   : > { %v6577_v43 = vrot.slane %v6576_v22, 1 }
0x2ca7   : > { %v6578_v40 = vadd.f32 %v6577_v43, %v6576_v22 }
0x2ca9   : > { %v6580_v61 = vmul.f32 0.001953125, %v6578_v40 }
0x2cab   : > { %v12179_v38 = vsub.f32 %v6546_v12, %v6580_v61  ;;  %v12181_v56 = vsub.f32 %v6545_v6, %v6580_v61 }
0x2cad   : > { %v6588_v39 = vmul.f32 %v12179_v38, %v12179_v38  ;;  %v6587_v14 = vmul.f32 %v12181_v56, %v12181_v56 }
0x2caf   : > { %v6598_v13 = vsel %vm5907_vm11, %v6588_v39, 0.0  ;;  %v6595_v37 = vsel %vm5907_vm11, %v6587_v14, 0.0 }
0x2cb0   : > { %6599 = vadd.xlane.f32.xlu1 %v6598_v13  ;;  %6596 = vadd.xlane.f32.xlu0 %v6595_v37 }
0x2d31   : > { %v6594_v8 = vpop.xlane.xlu1 %6593  ;;  %v6591_v34 = vpop.xlane.xlu0 %6590 }
0x2d32   : > { %v6601_v25 = vadd.f32 %v6594_v8, %v6591_v34 }
0x2d34   : > { %v6602_v29 = vrot.slane %v6601_v25, 4 }
0x2d36   : > { %v6603_v17 = vadd.f32 %v6602_v29, %v6601_v25 }
0x2d38   : > { %v6604_v41 = vrot.slane %v6603_v17, 2 }
0x2d3a   : > { %v6605_v18 = vadd.f32 %v6604_v41, %v6603_v17  ;;  %v10024_v41 = vmov 1983009808  }
0x2d3c   : > { %v6606_v33 = vrot.slane %v6605_v18, 1 }
0x2d3d   : > { %v6600_v59 = vpop.xlane.xlu1 %6599  ;;  %v6597_v31 = vpop.xlane.xlu0 %6596 }
0x2d3e   : > { %v6607_v6 = vadd.f32 %v6606_v33, %v6605_v18  ;;  %v6608_v50 = vadd.f32 %v6600_v59, %v6597_v31  ;;  %v6688_v18 = vunpack.c.l.s4 %v10024_v41  ;;  %v6690_v33 = vlaneseq }
0x2d40   : > { %v6615_v62 = vmul.f32 0.001953125, %v6607_v6  ;;  %v6609_v12 = vrot.slane %v6608_v50, 4 }
0x2d42   : > { %v6617_v11 = vadd.f32 1e-05, %v6615_v62  ;;  %v6610_v23 = vadd.f32 %v6609_v12, %v6608_v50 }
0x2d44   : > { %9959 = vrsqrt.f32 %v6617_v11  ;;  %v6611_v46 = vrot.slane %v6610_v23, 2  ;;  %v6689_v11 = vunpack.c.0.s8 %v6688_v18 }
0x2d46   : > { %v6612_v16 = vadd.f32 %v6611_v46, %v6610_v23  ;;  %v12278_v23 = vshrl.u32 %v6690_v33, 7  ;;  %v8058_v33 = vld [vmem:[%s12435_s6 + $0x23] ss:$0 sm:$0xff] }
0x2d48   : > { %v6613_v19 = vrot.slane %v6612_v16, 1 }
0x2d4a   : > { %v6614_v47 = vadd.f32 %v6613_v19, %v6612_v16 }
0x2d4c   : > { %v6616_v35 = vmul.f32 0.001953125, %v6614_v47 }
0x2d4e   : > { %v9960_v45 = vpop.eup %9959  ;;  %v6618_v55 = vadd.f32 1e-05, %v6616_v35 }
0x2d4f   : > { %v6621_v3 = vmul.f32 %v9960_v45, %v12171_v7  ;;  %v6622_v63 = vmul.f32 %v9960_v45, %v12169_v21  ;;  %v6692_v45 = vsub.s32 %v6689_v11, %v12278_v23 }
0x2d50   : > { %9961 = vrsqrt.f32 %v6618_v55 }
0x2d51   : > { %v6625_v20 = vmul.f32 %v8031_v2, %v6621_v3  ;;  %v6626_v60 = vmul.f32 %v8032_v48, %v6622_v63  ;;  %v8048_v63 = vld [vmem:[%s12432_s3 + $0x270] sm:$0xff] }
0x2d53   : > { %v12252_v26 = vadd.f32 %v8033_v15, %v6625_v20  ;;  %v12254_v32 = vadd.f32 %v8034_v57, %v6626_v60  ;;  %v8062_v60 = vld [vmem:[%s12434_s5 + $0x88] sm:$0xff] }
0x2d55   : > { %v6633_v7 = vsel %vm5907_vm11, %v12252_v26, 0.0  ;;  %v6634_v21 = vsel %vm5907_vm11, %v12254_v32, 0.0  ;;  %v6653_v22 = vsel %vm5907_vm11, %v12252_v26, -inf  ;;  %v6654_v1 = vsel %vm5907_vm11, %v12254_v32, -inf }
0x2d56   : > { %v6635_v42 = vadd.f32 %v6634_v21, %v6633_v7  ;;  %v6655_v40 = vmax.f32 %v6653_v22, %v6654_v1  ;;  %v8063_v22 = vld [vmem:[%s12434_s5 + $0x90] sm:$0xff]  ;;  %v8064_v1 = vld [vmem:[%s12434_s5 + $0x98] sm:$0xff] }
0x2d58   : > { %v6636_v43 = vrot.slane %v6635_v42, 4  ;;  %v6656_v37 = vrot.slane %v6655_v40, 4 }
0x2d5a   : > { %v9962_v61 = vpop.eup %9961  ;;  %v6637_v39 = vadd.f32 %v6636_v43, %v6635_v42  ;;  %v6657_v10 = vmax.f32 %v6655_v40, %v6656_v37 }
0x2d5b   : > { %v6623_v14 = vmul.f32 %v9962_v61, %v12181_v56  ;;  %v6624_v13 = vmul.f32 %v9962_v61, %v12179_v38  ;;  %v9587_v61 = vpack.c.bf16 %v8064_v1, %v8063_v22 }
0x2d5c   : > { %v6638_v36 = vrot.slane %v6637_v39, 2  ;;  %v6658_v30 = vrot.slane %v6657_v10, 2 }
0x2d5d   : > { %v6627_v28 = vmul.f32 %v8031_v2, %v6623_v14  ;;  %v6628_v52 = vmul.f32 %v8032_v48, %v6624_v13  ;;  %v8054_v14 = vld [vmem:[%s12433_s4 + $0x1a8] sm:$0xff] }
0x2d5e   : > { %v6639_v0 = vadd.f32 %v6638_v36, %v6637_v39  ;;  %v6659_v29 = vmax.f32 %v6657_v10, %v6658_v30  ;;  %v8053_v39 = vld [vmem:[%s12433_s4 + $0x1a0] sm:$0xff] }
0x2d5f   : > { %v12266_v49 = vadd.f32 %v8033_v15, %v6627_v28  ;;  %v12268_v4 = vadd.f32 %v8034_v57, %v6628_v52  ;;  %v8049_v15 = vld [vmem:[%s12432_s3 + $0x278] sm:$0xff]  ;;  %v8061_v57 = vld [vmem:[%s12434_s5 + $0x80] sm:$0xff]  ;;  %v9578_v13 = vpack.c.bf16 %v8054_v14, %v8053_v39 }
0x2d60   : > { %v6640_v24 = vrot.slane %v6639_v0, 1  ;;  %v6660_v62 = vrot.slane %v6659_v29, 1  ;;  %v9575_v20 = vpack.c.bf16 %v8049_v15, %v8048_v63  ;;  %v9583_v7 = vpack.c.bf16 %v8062_v60, %v8061_v57  ;;  %v8051_v28 = vld [vmem:[%s12435_s6 + $0x25] ss:$0 sm:$0xff] }
0x2d61   : > { %v6642_v53 = vsel %vm5907_vm11, %v12266_v49, 0.0  ;;  %v6643_v5 = vsel %vm5907_vm11, %v12268_v4, 0.0  ;;  %v6662_v56 = vsel %vm5907_vm11, %v12266_v49, -inf  ;;  %v6663_v38 = vsel %vm5907_vm11, %v12268_v4, -inf }
0x2d62   : > { %v6644_v9 = vadd.f32 %v6643_v5, %v6642_v53  ;;  %v6664_v27 = vmax.f32 %v6662_v56, %v6663_v38  ;;  %v6641_v59 = vadd.f32 %v6640_v24, %v6639_v0  ;;  %v6661_v47 = vmax.f32 %v6659_v29, %v6660_v62  ;;  %9576 = vmatpush3.bf16.msra.mxu0 %v9575_v20 }
0x2d63   : > { %9584 = vmatprep.subr.bf16.mxu0 %v9583_v7 }
0x2d64   : > { %v6645_v51 = vrot.slane %v6644_v9, 4  ;;  %v6665_v44 = vrot.slane %v6664_v27, 4  ;;  %v6651_v16 = vmul.f32 0.0625, %v6641_v59 }
0x2d66   : > { %v6646_v8 = vadd.f32 %v6645_v51, %v6644_v9  ;;  %v6666_v34 = vmax.f32 %v6664_v27, %v6665_v44  ;;  %v6672_v2 = vsel %vm6671_vm15, %v6651_v16, %v6661_v47 }
0x2d68   : > { %v6647_v25 = vrot.slane %v6646_v8, 2  ;;  %v6667_v17 = vrot.slane %v6666_v34, 2 }
0x2d6a   : > { %v6648_v31 = vadd.f32 %v6647_v25, %v6646_v8  ;;  %v6668_v6 = vmax.f32 %v6666_v34, %v6667_v17 }
0x2d6c   : > { %v6649_v50 = vrot.slane %v6648_v31, 1  ;;  %v6669_v12 = vrot.slane %v6668_v6, 1 }
0x2d6e   : > { %v6650_v46 = vadd.f32 %v6649_v50, %v6648_v31  ;;  %v6670_v35 = vmax.f32 %v6668_v6, %v6669_v12 }
0x2d70   : > { %v6652_v19 = vmul.f32 0.0625, %v6650_v46  ;;  %v10025_v46 = vmov 1966171168  }
0x2d71   : > { %v7086_v16 = vunpack.c.l.s4 %v10025_v46 }
0x2d72   : > { %v6673_v48 = vsel %vm6671_vm15, %v6652_v19, %v6670_v35 }
0x2d73   : > { %v6686_v55 = vcombine.low %v6672_v2, %v6673_v48  ;;  %v7087_v19 = vunpack.c.0.s8 %v7086_v16  ;;  %v7109_v2 = vsub.s32 0, %v12278_v23 }
0x2d75   : > { %v6693_v3 = vrot.slane %v6686_v55, %v6692_v45  ;;  %v7090_v47 = vsub.s32 %v7087_v19, %v12278_v23  ;;  %v8066_v55 = vld [vmem:[%s12435_s6 + $0x26] ss:$0 sm:$0xff] }
0x2d77   : > { %9079 = vmatmul.mubr.msk.f32.vlgmr.msra.gmra.mrb[12].mxu1 %vm5907_vm11, %v6693_v3 }
0x2d78   : > { %9108 = vmatprep.mubr.msk.f32.mxu1 %vm10023_vm14, %v10022_v58  ;;  %v8040_v58 = vld [vmem:[%s12435_s6 + $0x22] ss:$0 sm:$0xff]  ;;  %9579 = vmatpush3.bf16.msra.mxu1 %v9578_v13 }
0x2d79   : > { %9580 = vmatprep.subr.bf16.mxu1 %v10021_v54 }
0x2e4a   : > { %v6762_v21 = vpop.f32.mrb[12].mxu1 }
0x2e4b   : > { %v6763_v42 = vadd.f32 %v8040_v58, %v6762_v21  ;;  %v9080_v43 = vpop.f32.mrb[13].mxu1 }
0x2e4d   : > { %v6766_v40 = vmax.f32 %v6763_v42, 0.0 }
0x2e4f   : > { %9098 = vmatmul.mubr.msk.f32.vlgmr.msra.gmra.mrb[8].mxu0 %vm6298_vm12, %v6766_v40 }
0x2e50   : > { %9586 = vmatpush3.bf16.msra.mxu0 %v9583_v7  ;;  %9119 = vmatprep.mubr.msk.f32.mxu0 %vm5907_vm11, %v12252_v26  ;;  %v8055_v26 = vld [vmem:[%s12433_s4 + $0x1b0] sm:$0xff] }
0x2e51   : > { %9588 = vmatprep.subr.bf16.mxu0 %v9587_v61 }
0x2e54   : > { %9590 = vmatpush3.bf16.msra.mxu0 %v9587_v61 }
0x2e57   : > { %9120 = vmatmul.mubr.msk.f32.vlgmr.msra.gmra.mrb[10].mxu0 %vm5907_vm11, %v12254_v32  ;;  %v8056_v32 = vld [vmem:[%s12433_s4 + $0x1b8] sm:$0xff] }
0x2e58   : > { %9122 = vmatprep.mubr.msk.f32.mxu0 %vm5907_vm11, %v12266_v49  ;;  %v9581_v37 = vpack.c.bf16 %v8056_v32, %v8055_v26 }
0x2e5a   : > { %9582 = vmatpush3.bf16.msra.mxu1 %v9581_v37  ;;  %v8071_v37 = vld [vmem:[%s12437_s8 + $0x40] sm:$0xff] }
0x2e5b   : > { %9123 = vmatmul.mubr.msk.f32.gmra.mrb[12].mxu0 %vm5907_vm11, %v12268_v4 }
0x2e5c   : > { %9144 = vmatprep.mubr.msk.f32.mxu0 %vm5907_vm11, %v8071_v37 }
0x2f22   : > { %v6850_v52 = vpop.f32.mrb[8].mxu0 }
0x2f23   : > { %v6851_v36 = vadd.f32 %v8051_v28, %v6850_v52  ;;  %v9099_v49 = vpop.f32.mrb[9].mxu0 }
0x2f25   : > { %v6861_v4 = vrot.slane %v6851_v36, %v6692_v45 }
0x2f27   : > { %v6862_v10 = vcombine.high %v6861_v4, %v6861_v4  ;;  %v6866_v53 = vsel %vm6865_vm0, %v6861_v4, 0.0 }
0x2f28   : > { %v6867_v5 = vrot.slane %v6866_v53, 4 }
0x2f29   : > { %v6873_v56 = vsel %vm6865_vm0, %v6862_v10, 0.0 }
0x2f2a   : > { %v6868_v38 = vadd.f32 %v6867_v5, %v6866_v53  ;;  %v6874_v9 = vrot.slane %v6873_v56, 4  ;;  %v9121_v27 = vpop.f32.mrb[10].mxu0 }
0x2f2b   : > { %v7065_v0 = vpop.f32.mrb[11].mxu0  ;;  %v7071_v60 = vadd.f32 %v9121_v27, %v8066_v55 }
0x2f2c   : > { %v6869_v51 = vrot.slane %v6868_v38, 2  ;;  %v6875_v54 = vadd.f32 %v6874_v9, %v6873_v56  ;;  %v7066_v15 = vadd.f32 %v8066_v55, %v7065_v0 }
0x2f2e   : > { %v6870_v44 = vadd.f32 %v6869_v51, %v6868_v38  ;;  %v6876_v30 = vrot.slane %v6875_v54, 2  ;;  %v9124_v24 = vpop.f32.mrb[12].mxu0 }
0x2f2f   : > { %v7075_v8 = vpop.f32.mrb[13].mxu0  ;;  %v7081_v61 = vadd.f32 %v9124_v24, %v8066_v55  ;;  %v10026_v24 = vmov 0  }
0x2f30   : > { %v6871_v34 = vrot.slane %v6870_v44, 1  ;;  %v6877_v25 = vadd.f32 %v6876_v30, %v6875_v54  ;;  %v7076_v7 = vadd.f32 %v8066_v55, %v7075_v8  ;;  %9905 = vset.pattern.permute.xlu1 %v10026_v24  ;;  %9906 = vset.pattern.permute.xlu0 %v10026_v24  ;;  %v8078_v8 = vld [vmem:[%s12435_s6 + $0x27] ss:$0 sm:$0xff] }
0x2f32   : > { %v6878_v29 = vrot.slane %v6877_v25, 1  ;;  %v6872_v17 = vadd.f32 %v6871_v34, %v6870_v44  ;;  %v8072_v44 = vld [vmem:[%s12437_s8 + $0x48] sm:$0xff] }
0x2f34   : > { %v6879_v41 = vadd.f32 %v6878_v29, %v6877_v25 }
0x2f36   : > { %v6893_v18 = vsel %vm6892_vm1, %v6879_v41, %v6872_v17 }
0x2f37   : > { %9109 = vmatmul.mubr.msk.f32.vlgmr.msra.gmra.mrb[14].mxu1 %vm5907_vm11, %v6893_v18 }
0x2f38   : > { %9133 = vmatprep.mubr.msk.f32.mxu1 %vm5907_vm11, %v8071_v37 }
0x300a   : > { %v6962_v59 = vpop.f32.mrb[14].mxu1 }
0x300b   : > { %v6963_v31 = vadd.f32 %v8058_v33, %v6962_v59  ;;  %v9110_v6 = vpop.f32.mrb[15].mxu1 }
0x300d   : > { %v8060_v50 = vmul.f32 -1.442695, %v6963_v31 }
0x300f   : > { %9963 = vpow2.f32 %v8060_v50 }
0x3019   : > { %v9964_v62 = vpop.eup %9963 }
0x301a   : > { %v6969_v12 = vadd.f32 1.0, %v9964_v62 }
0x301c   : > { %9965 = vrcp.f32 %v6969_v12 }
0x3026   : > { %v9966_v11 = vpop.eup %9965 }
0x3027   : > { %6973 = vrot.lane.b32.xlu0 %v9966_v11, %s10020_s30 }
0x3099   : > { %v6974_v35 = vpop.permute.xlu0 %6973 }
0x309a   : > { %v6976_v45 = vmul.f32 %v6974_v35, %v6963_v31 }
0x309c   : > { %v7091_v48 = vrot.slane %v6976_v45, %v7090_v47 }
0x309e   : > { %v7092_v3 = vcombine.high %v7091_v48, %v7091_v48  ;;  %v7099_v63 = vrot.slane %v7091_v48, %v7090_v47 }
0x30a0   : > { %v7106_v57 = vrot.slane %v7092_v3, %v7090_v47  ;;  %v7110_v20 = vrot.slane %v7099_v63, %v7109_v2 }
0x30a2   : > { %v12340_v58 = vmul.f32 %v7110_v20, %v7066_v15  ;;  %v7114_v21 = vrot.slane %v7106_v57, %v7109_v2  ;;  %v12346_v23 = vmul.f32 %v7110_v20, %v7071_v60 }
0x30a4   : > { %v7121_v22 = vsel %vm5907_vm11, %v12340_v58, 0.0  ;;  %v12344_v1 = vmul.f32 %v7114_v21, %v7076_v7  ;;  %v7124_v43 = vsel %vm5907_vm11, %v12346_v23, 0.0  ;;  %v7137_v40 = vsel %vm5907_vm11, %v12340_v58, -inf }
0x30a5   : > { %7122 = vadd.xlane.f32.xlu1 %v7121_v22  ;;  %v12356_v14 = vmul.f32 %v7114_v21, %v7081_v61  ;;  %v7140_v13 = vsel %vm5907_vm11, %v12346_v23, -inf }
0x30a6   : > { %v7143_v42 = vsel %vm5907_vm11, %v12344_v1, -inf  ;;  %v7127_v39 = vsel %vm5907_vm11, %v12344_v1, 0.0 }
0x30a7   : > { %7144 = vmax.xlane.f32.xlu0 %v7143_v42  ;;  %v7130_v26 = vsel %vm5907_vm11, %v12356_v14, 0.0  ;;  %v7146_v32 = vsel %vm5907_vm11, %v12356_v14, -inf }
0x30a9   : > { %7125 = vadd.xlane.f32.xlu1 %v7124_v43 }
0x30ad   : > { %7138 = vmax.xlane.f32.xlu1 %v7137_v40 }
0x30b1   : > { %7128 = vadd.xlane.f32.xlu1 %v7127_v39 }
0x30b5   : > { %7131 = vadd.xlane.f32.xlu1 %v7130_v26 }
0x30b9   : > { %7141 = vmax.xlane.f32.xlu1 %v7140_v13 }
0x30bd   : > { %7147 = vmax.xlane.f32.xlu1 %v7146_v32 }
0x3132   : > { %v7123_v28 = vpop.xlane.xlu1 %7122 }
0x3133   : > { %v7133_v36 = vmul.f32 0.03125, %v7123_v28 }
0x3134   : > { %v7145_v51 = vpop.xlane.xlu0 %7144 }
0x3136   : > { %v7126_v52 = vpop.xlane.xlu1 %7125 }
0x3137   : > { %v7134_v49 = vmul.f32 0.03125, %v7126_v52 }
0x3139   : > { %v9591_v4 = vpack.c.bf16 %v7134_v49, %v7133_v36 }
0x313a   : > { %v7139_v10 = vpop.xlane.xlu1 %7138 }
0x313b   : > { %9592 = vmatprep.subr.bf16.mxu1 %v9591_v4 }
0x313c   : > { %9594 = vmatpush3.bf16.msra.mxu1 %v9591_v4 }
0x313e   : > { %v7129_v53 = vpop.xlane.xlu1 %7128 }
0x313f   : > { %v7135_v56 = vmul.f32 0.03125, %v7129_v53 }
0x3142   : > { %v7132_v5 = vpop.xlane.xlu1 %7131 }
0x3143   : > { %v7136_v38 = vmul.f32 0.03125, %v7132_v5 }
0x3145   : > { %v9599_v9 = vpack.c.bf16 %v7136_v38, %v7135_v56 }
0x3146   : > { %v7142_v27 = vpop.xlane.xlu1 %7141 }
0x3147   : > { %v9595_v0 = vpack.c.bf16 %v7142_v27, %v7139_v10  ;;  %9600 = vmatprep.subr.bf16.mxu0 %v9599_v9 }
0x3148   : > { %9602 = vmatpush3.bf16.msra.mxu0 %v9599_v9 }
0x3149   : > { %9596 = vmatprep.subr.bf16.mxu1 %v9595_v0 }
0x314a   : > { %9598 = vmatpush3.bf16.msra.mxu1 %v9595_v0  ;;  %v7148_v54 = vpop.xlane.xlu1 %7147 }
0x314b   : > { %v9603_v30 = vpack.c.bf16 %v7148_v54, %v7145_v51 }
0x314d   : > { %9134 = vmatmul.mubr.msk.f32.vlgmr.msra.gmra.mrb[16].mxu1 %vm5907_vm11, %v8072_v44  ;;  %9604 = vmatprep.subr.bf16.mxu0 %v9603_v30 }
0x314e   : > { %9606 = vmatpush3.bf16.msra.mxu0 %v9603_v30 }
0x3151   : > { %9145 = vmatmul.mubr.msk.f32.vlgmr.msra.gmra.mrb[14].mxu0 %vm5907_vm11, %v8072_v44 }
0x3220   : > { %v9135_v34 = vpop.f32.mrb[16].mxu1 }
0x3221   : > { %v7314_v25 = vadd.f32 %v9135_v34, %v8078_v8  ;;  %v7224_v29 = vpop.f32.mrb[17].mxu1 }
0x3222   : > { %v7313_v17 = vadd.f32 %v8078_v8, %v7224_v29 }
0x3223   : > { %v8080_v41 = vmul.f32 -1.442695, %v7314_v25 }
0x3224   : > { %v8079_v18 = vmul.f32 -1.442695, %v7313_v17  ;;  %v9146_v33 = vpop.f32.mrb[14].mxu0 }
0x3225   : > { %9967 = vpow2.f32 %v8080_v41  ;;  %v7316_v59 = vadd.f32 %v9146_v33, %v8078_v8  ;;  %v7299_v31 = vpop.f32.mrb[15].mxu0 }
0x3226   : > { %9969 = vpow2.f32 %v8079_v18  ;;  %v7315_v6 = vadd.f32 %v8078_v8, %v7299_v31 }
0x3227   : > { %v8082_v50 = vmul.f32 -1.442695, %v7316_v59 }
0x3228   : > { %v8081_v62 = vmul.f32 -1.442695, %v7315_v6 }
0x3229   : > { %9971 = vpow2.f32 %v8082_v50 }
0x322a   : > { %9973 = vpow2.f32 %v8081_v62 }
0x322f   : > { %v9968_v12 = vpop.eup %9967 }
0x3230   : > { %v9970_v11 = vpop.eup %9969  ;;  %v7330_v46 = vadd.f32 1.0, %v9968_v12 }
0x3231   : > { %v7329_v16 = vadd.f32 1.0, %v9970_v11 }
0x3232   : > { %9975 = vrcp.f32 %v7330_v46 }
0x3233   : > { %v9972_v19 = vpop.eup %9971  ;;  %9977 = vrcp.f32 %v7329_v16 }
0x3234   : > { %v9974_v47 = vpop.eup %9973  ;;  %v7332_v35 = vadd.f32 1.0, %v9972_v19 }
0x3235   : > { %v7331_v45 = vadd.f32 1.0, %v9974_v47 }
0x3236   : > { %9979 = vrcp.f32 %v7332_v35 }
0x3237   : > { %9981 = vrcp.f32 %v7331_v45 }
0x323c   : > { %v9976_v2 = vpop.eup %9975 }
0x323d   : > { %7348 = vperm.xlu1 %9905, %v9976_v2   ;;  %v9978_v48 = vpop.eup %9977 }
0x3240   : > { %v9980_v55 = vpop.eup %9979 }
0x3241   : > { %7358 = vperm.xlu0 %9906, %v9980_v55   ;;  %7343 = vperm.xlu1 %9905, %v9978_v48   ;;  %v9982_v3 = vpop.eup %9981 }
0x3245   : > { %7353 = vperm.xlu1 %9905, %v9982_v3  }
0x32bc   : > { %v7349_v63 = vpop.permute.xlu1 %7348 }
0x32bd   : > { %v7362_v15 = vmul.f32 %v7349_v63, %v12346_v23 }
0x32bf   : > { %v7374_v57 = vsel %vm5907_vm11, %v7362_v15, 0.0 }
0x32c0   : > { %v7359_v20 = vpop.permute.xlu0 %7358  ;;  %7375 = vadd.xlane.f32.xlu1 %v7374_v57  ;;  %v7344_v60 = vpop.permute.xlu1 %7343 }
0x32c1   : > { %v7364_v7 = vmul.f32 %v7359_v20, %v12356_v14  ;;  %v7361_v21 = vmul.f32 %v7344_v60, %v12340_v58  ;;  %v8083_v20 = vld [vmem:[%s12436_s7 + $0x120] sm:$0xff]  ;;  %v8084_v60 = vld [vmem:[%s12436_s7 + $0x128] sm:$0xff] }
0x32c3   : > { %v7380_v22 = vsel %vm5907_vm11, %v7364_v7, 0.0  ;;  %v7371_v42 = vsel %vm5907_vm11, %v7361_v21, 0.0 }
0x32c4   : > { %7381 = vadd.xlane.f32.xlu0 %v7380_v22  ;;  %7372 = vadd.xlane.f32.xlu1 %v7371_v42  ;;  %v7354_v43 = vpop.permute.xlu1 %7353  ;;  %v8085_v22 = vld [vmem:[%s12436_s7 + $0x130] sm:$0xff]  ;;  %v8086_v42 = vld [vmem:[%s12436_s7 + $0x138] sm:$0xff] }
0x32c5   : > { %v7363_v40 = vmul.f32 %v7354_v43, %v12344_v1 }
0x32c7   : > { %v7377_v23 = vsel %vm5907_vm11, %v7363_v40, 0.0 }
0x32c8   : > { %7378 = vadd.xlane.f32.xlu1 %v7377_v23 }
0x334d   : > { %v7376_v61 = vpop.xlane.xlu1 %7375 }
0x3351   : > { %v7373_v39 = vpop.xlane.xlu1 %7372  ;;  %v7382_v32 = vpop.xlane.xlu0 %7381 }
0x3352   : > { %v7383_v26 = vadd.f32 %v7376_v61, %v7373_v39 }
0x3354   : > { %v7384_v13 = vrot.slane %v7383_v26, 4 }
0x3355   : > { %v7379_v14 = vpop.xlane.xlu1 %7378 }
0x3356   : > { %v7385_v37 = vadd.f32 %v7384_v13, %v7383_v26  ;;  %v7390_v58 = vadd.f32 %v7382_v32, %v7379_v14 }
0x3358   : > { %v7386_v28 = vrot.slane %v7385_v37, 2  ;;  %v7391_v52 = vrot.slane %v7390_v58, 4 }
0x335a   : > { %v7387_v36 = vadd.f32 %v7386_v28, %v7385_v37  ;;  %v7392_v49 = vadd.f32 %v7391_v52, %v7390_v58 }
0x335c   : > { %v7388_v4 = vrot.slane %v7387_v36, 1  ;;  %v7393_v10 = vrot.slane %v7392_v49, 2 }
0x335e   : > { %v7389_v53 = vadd.f32 %v7388_v4, %v7387_v36  ;;  %v7394_v5 = vadd.f32 %v7393_v10, %v7392_v49 }
0x3360   : > { %v7395_v1 = vrot.slane %v7394_v5, 1  ;;  %v7397_v56 = vmul.f32 0.001953125, %v7389_v53 }
0x3362   : > { %v7396_v38 = vadd.f32 %v7395_v1, %v7394_v5  ;;  %v7399_v9 = vsub.f32 %v7361_v21, %v7397_v56  ;;  %v7400_v27 = vsub.f32 %v7362_v15, %v7397_v56 }
0x3364   : > { %v7403_v0 = vmul.f32 %v7399_v9, %v7399_v9  ;;  %v7398_v51 = vmul.f32 0.001953125, %v7396_v38  ;;  %v7404_v44 = vmul.f32 %v7400_v27, %v7400_v27 }
0x3366   : > { %v7407_v54 = vsel %vm5907_vm11, %v7403_v0, 0.0  ;;  %v7401_v30 = vsub.f32 %v7363_v40, %v7398_v51  ;;  %v7410_v24 = vsel %vm5907_vm11, %v7404_v44, 0.0  ;;  %v7402_v34 = vsub.f32 %v7364_v7, %v7398_v51 }
0x3367   : > { %7408 = vadd.xlane.f32.xlu1 %v7407_v54 }
0x3368   : > { %v7405_v8 = vmul.f32 %v7401_v30, %v7401_v30  ;;  %v7406_v29 = vmul.f32 %v7402_v34, %v7402_v34 }
0x336a   : > { %v7413_v25 = vsel %vm5907_vm11, %v7405_v8, 0.0  ;;  %v7416_v17 = vsel %vm5907_vm11, %v7406_v29, 0.0 }
0x336b   : > { %7411 = vadd.xlane.f32.xlu1 %v7410_v24 }
0x336f   : > { %7414 = vadd.xlane.f32.xlu1 %v7413_v25 }
0x3373   : > { %7417 = vadd.xlane.f32.xlu1 %v7416_v17 }
0x33f4   : > { %v7409_v41 = vpop.xlane.xlu1 %7408 }
0x33f8   : > { %v7412_v18 = vpop.xlane.xlu1 %7411 }
0x33f9   : > { %v7419_v33 = vadd.f32 %v7412_v18, %v7409_v41 }
0x33fb   : > { %v7420_v59 = vrot.slane %v7419_v33, 4 }
0x33fc   : > { %v7415_v31 = vpop.xlane.xlu1 %7414 }
0x33fd   : > { %v7421_v6 = vadd.f32 %v7420_v59, %v7419_v33 }
0x33ff   : > { %v7422_v50 = vrot.slane %v7421_v6, 2 }
0x3400   : > { %v7418_v62 = vpop.xlane.xlu1 %7417 }
0x3401   : > { %v7423_v12 = vadd.f32 %v7422_v50, %v7421_v6  ;;  %v7426_v11 = vadd.f32 %v7418_v62, %v7415_v31 }
0x3403   : > { %v7424_v46 = vrot.slane %v7423_v12, 1  ;;  %v7427_v16 = vrot.slane %v7426_v11, 4 }
0x3405   : > { %v7425_v19 = vadd.f32 %v7424_v46, %v7423_v12  ;;  %v7428_v47 = vadd.f32 %v7427_v16, %v7426_v11 }
0x3407   : > { %v7433_v35 = vmul.f32 0.001953125, %v7425_v19  ;;  %v7429_v45 = vrot.slane %v7428_v47, 2 }
0x3409   : > { %v7435_v2 = vadd.f32 1e-05, %v7433_v35  ;;  %v7430_v48 = vadd.f32 %v7429_v45, %v7428_v47 }
0x340b   : > { %9983 = vrsqrt.f32 %v7435_v2  ;;  %v7431_v55 = vrot.slane %v7430_v48, 1 }
0x340d   : > { %v7432_v3 = vadd.f32 %v7431_v55, %v7430_v48 }
0x340f   : > { %v7434_v63 = vmul.f32 0.001953125, %v7432_v3 }
0x3411   : > { %v7436_v15 = vadd.f32 1e-05, %v7434_v63 }
0x3413   : > { %9985 = vrsqrt.f32 %v7436_v15 }
0x3415   : > { %v9984_v57 = vpop.eup %9983 }
0x3416   : > { %v7439_v7 = vmul.f32 %v9984_v57, %v7399_v9  ;;  %v7440_v21 = vmul.f32 %v9984_v57, %v7400_v27 }
0x3418   : > { %v7443_v43 = vmul.f32 %v8083_v20, %v7439_v7  ;;  %v7444_v40 = vmul.f32 %v8084_v60, %v7440_v21 }
0x341a   : > { %v7447_v23 = vadd.f32 %v8085_v22, %v7443_v43  ;;  %v7448_v61 = vadd.f32 %v8086_v42, %v7444_v40 }
0x341c   : > { %7451 = vst.msk [vmem:[%s10103_s20] sm:$0xff] %vm5907_vm11, %v7447_v23  ;;  %7452 = vst.msk [vmem:[%s10103_s20 + $0x8] sm:$0xff] %vm5907_vm11, %v7448_v61 }
0x341d   : > { %v9986_v39 = vpop.eup %9985 }
0x341e   : > { %v7441_v26 = vmul.f32 %v9986_v39, %v7401_v30  ;;  %v7442_v13 = vmul.f32 %v9986_v39, %v7402_v34 }
0x3420   : > { %v7445_v32 = vmul.f32 %v8083_v20, %v7441_v26  ;;  %v7446_v14 = vmul.f32 %v8084_v60, %v7442_v13 }
0x3422   : > { %v7449_v37 = vadd.f32 %v8085_v22, %v7445_v32  ;;  %v7450_v58 = vadd.f32 %v8086_v42, %v7446_v14 }
0x3424   : > { %7453 = vst.msk [vmem:[%s10103_s20 + $0x10] sm:$0xff] %vm5907_vm11, %v7449_v37  ;;  %7454 = vst.msk [vmem:[%s10103_s20 + $0x18] sm:$0xff] %vm5907_vm11, %v7450_v58 }
0x3425 PF: > { %7461 = sbr.rel (!%p10099_p4) target bundleno = 13357 (0x342d), region = 68  ;;  %s8088_s25 = sshll.u32 (%p10099_p4), %s10088_s12, 3  ;;  %v7497_v28 = vld [vmem:[%s10103_s20] sm:$0xff] (%p10099_p4)  ;;  %v7499_v52 = vld [vmem:[%s10103_s20 + $0x8] sm:$0xff] (%p10099_p4) }
0x3426   : > { %s7463_s27 = scalar_lea.vmem (%p10099_p4), %s12438_s9, %s8088_s25 }
0x3427   : > { %7498 = vst [vmem:[%s7463_s27] sm:$0xff] (%p10099_p4), %v7497_v28  ;;  %7500 = vst [vmem:[%s7463_s27 + $0x10] sm:$0xff] (%p10099_p4), %v7499_v52 }
0x342b   : > { %v7501_v36 = vld [vmem:[%s10103_s20 + $0x10] sm:$0xff] (%p10099_p4)  ;;  %v7503_v49 = vld [vmem:[%s10103_s20 + $0x18] sm:$0xff] (%p10099_p4) }
0x342c   : > { %7502 = vst [vmem:[%s7463_s27 + $0x20] sm:$0xff] %v7501_v36  ;;  %7504 = vst [vmem:[%s7463_s27 + $0x30] sm:$0xff] %v7503_v49 }
0x342d PF: > { %p16_p9 = scmp.ge.s32.totalorder %s10090_s13, 4   ;;  %s12440_s30 = smov %s10005_s10 }
0x342e   : > { %s12441_s10 = smov %s10097_s16  ;;  %s12442_s11 = smov %s10090_s13 }
0x342f   :  { %18 = sbr.rel (!%p16_p9) target bundleno = 2 (0x2), region = 200 }

</bundles_post_ra>
